<compile_context>
chip_gen: v6e
topology: v6e:2x2x1
jax: 0.10.0
libtpu: 0.0.40
codegen_flags: <defaults>
</compile_context>

<pallas_src>
import functools

import numpy as np
import jax
import jax.numpy as jnp
from jax.experimental import pallas as pl
from jax.experimental.pallas import tpu as pltpu


# -----------------------------------------------------------------------------
# Exact 1-D matrix for F.interpolate(scale_factor=2, mode='bilinear',
# align_corners=True) along one axis: shape (2*n_in, n_in).  Host numpy
# constant, cached per size (never rebuilt / re-materialized per call).
# -----------------------------------------------------------------------------
@functools.lru_cache(maxsize=None)
def _interp_matrix_np(n_in: int) -> np.ndarray:
    n_out = 2 * n_in
    if n_in == 1:
        return np.ones((n_out, 1), np.float32)
    src = np.arange(n_out, dtype=np.float64) * (n_in - 1) / (n_out - 1)
    lo = np.clip(np.floor(src).astype(np.int64), 0, n_in - 2)
    frac = src - lo
    a = np.zeros((n_out, n_in), np.float64)
    rows = np.arange(n_out)
    a[rows, lo] += 1.0 - frac
    a[rows, lo + 1] += frac
    return a.astype(np.float32)


# -----------------------------------------------------------------------------
# Fused Pallas kernel: all five (upsample -> 1x1 conv) stages for one batch
# element.  Per stage:   u_new = (P @ u + Q @ skip) @ CW + bias
#   P  = kron(Wt_prev_cols, ah)   (1x1 conv on prev channels fused w/ H-upsample)
#   Q  = kron(Wt_skip_cols, ah)   (1x1 conv on skip channels fused w/ H-upsample)
#   CW = aw.T                     (W-axis upsample, lane-side matmul)
# Everything is a plain 2-D f32 matmul; no reshapes/transposes inside the kernel.
# -----------------------------------------------------------------------------
def _hfa_fused_kernel(
    x5_ref, x4_ref, x3_ref, x2_ref, x1_ref,
    p5_ref, cw5_ref, b5_ref,
    p4_ref, q4_ref, cw4_ref, b4_ref,
    p3_ref, q3_ref, cw3_ref, b3_ref,
    p2_ref, q2_ref, cw2_ref, b2_ref,
    p1_ref, q1_ref, cw1_ref, b1_ref,
    o_ref,
):
    f32 = jnp.float32
    # Stage 5 (no skip): conv5 + 2x upsample of x5.
    t = jnp.dot(p5_ref[...], x5_ref[...], preferred_element_type=f32)
    u = jnp.dot(t, cw5_ref[...], preferred_element_type=f32) + b5_ref[...]

    # Stages 4..1: split-matmul "concat" with the skip input, then W-upsample.
    stages = (
        (p4_ref, q4_ref, x4_ref, cw4_ref, b4_ref),
        (p3_ref, q3_ref, x3_ref, cw3_ref, b3_ref),
        (p2_ref, q2_ref, x2_ref, cw2_ref, b2_ref),
        (p1_ref, q1_ref, x1_ref, cw1_ref, b1_ref),
    )
    for p_ref, q_ref, s_ref, cw_ref, b_ref in stages:
        t = (jnp.dot(p_ref[...], u, preferred_element_type=f32)
             + jnp.dot(q_ref[...], s_ref[...], preferred_element_type=f32))
        u = jnp.dot(t, cw_ref[...], preferred_element_type=f32) + b_ref[...]

    o_ref[...] = u.astype(o_ref.dtype)


# -----------------------------------------------------------------------------
# Wrapper: builds the tiny per-stage constant operators and calls the kernel.
# Inputs / output are NCHW (PyTorch convention).
# -----------------------------------------------------------------------------
def hfablock_forward_pallas(params, x1, x2, x3, x4, x5):
    B = x5.shape[0]
    xs = (x5, x4, x3, x2, x1)                       # processing order
    names = ("conv5", "conv4", "conv3", "conv2", "conv1")

    flat_xs, x_specs, const_args = [], [], []
    c_prev = 0
    out_c = out_ho = out_wo = 0
    for idx, (name, x) in enumerate(zip(names, xs)):
        _, cx, hi, wi = x.shape
        w, b = params[name]                         # w: (Cin, Cout), b: (Cout,)
        cout = w.shape[1]
        ho, wo = 2 * hi, 2 * wi
        ah = jnp.asarray(_interp_matrix_np(hi))     # (Ho, Hi)
        aw = jnp.asarray(_interp_matrix_np(wi))     # (Wo, Wi)
        wt = w.T                                    # (Cout, Cin)

        if idx == 0:
            const_args.append(jnp.kron(wt, ah))                 # P5 (Cout*Ho, Cin*Hi)
        else:
            const_args.append(jnp.kron(wt[:, :c_prev], ah))     # P  (prev channels)
            const_args.append(jnp.kron(wt[:, c_prev:], ah))     # Q  (skip channels)
        const_args.append(aw.T)                                 # CW (Wi, Wo)
        const_args.append(jnp.repeat(b, ho).reshape(cout * ho, 1))  # bias column

        flat_xs.append(x.reshape(B, cx * hi, wi))               # free reshape, NCHW is already channels-first
        x_specs.append(pl.BlockSpec((None, cx * hi, wi), lambda bi: (bi, 0, 0)))

        c_prev = cout
        out_c, out_ho, out_wo = cout, ho, wo

    const_specs = [pl.BlockSpec(c.shape, lambda bi: (0, 0)) for c in const_args]
    out_rows = out_c * out_ho

    out = pl.pallas_call(
        _hfa_fused_kernel,
        out_shape=jax.ShapeDtypeStruct((B, out_rows, out_wo), jnp.float32),
        grid=(B,),
        in_specs=x_specs + const_specs,
        out_specs=pl.BlockSpec((None, out_rows, out_wo), lambda bi: (bi, 0, 0)),
        compiler_params=pltpu.CompilerParams(
            dimension_semantics=("parallel",),
            vmem_limit_bytes=32 * 1024 * 1024,       # fits v7x's 64 MiB VMEM easily
        ),
    )(*flat_xs, *const_args)

    return out.reshape(B, out_c, out_ho, out_wo)     # back to NCHW (free reshape)


# -----------------------------------------------------------------------------
# Pure-JAX reference: literal upsample-then-conv with explicit concats (matches
# the PyTorch forward order).  Used only for the correctness check.
# -----------------------------------------------------------------------------
def _upsample2x_ref(x):
    _, _, h, w = x.shape
    ah = jnp.asarray(_interp_matrix_np(h))
    aw = jnp.asarray(_interp_matrix_np(w))
    x = jnp.einsum("Oh,bchw->bcOw", ah, x)
    x = jnp.einsum("Ow,bchw->bchO", aw, x)
    return x


def hfablock_forward_ref(params, x1, x2, x3, x4, x5):
    def conv1x1(x, w, b):
        return jnp.einsum("bchw,cd->bdhw", x, w) + b[None, :, None, None]

    x = conv1x1(_upsample2x_ref(x5), *params["conv5"])
    x = jnp.concatenate([x, x4], axis=1)
    x = conv1x1(_upsample2x_ref(x), *params["conv4"])
    x = jnp.concatenate([x, x3], axis=1)
    x = conv1x1(_upsample2x_ref(x), *params["conv3"])
    x = jnp.concatenate([x, x2], axis=1)
    x = conv1x1(_upsample2x_ref(x), *params["conv2"])
    x = jnp.concatenate([x, x1], axis=1)
    x = conv1x1(_upsample2x_ref(x), *params["conv1"])
    return x


# -----------------------------------------------------------------------------
# HFABlock parameters (deterministic, PyTorch-Conv2d-style uniform init).
# Weights stored as (Cin, Cout); biases as (Cout,).
# -----------------------------------------------------------------------------
def init_hfablock_params(key, channels=3):
    c = channels
    layer_dims = [
        ("conv5", 64, c),
        ("conv4", 32 + c, 2 * c),
        ("conv3", 16 + 2 * c, 3 * c),
        ("conv2", 8 + 3 * c, 4 * c),
        ("conv1", 4 + 4 * c, 5 * c),
    ]
    params = {}
    keys = jax.random.split(key, len(layer_dims))
    for k, (name, cin, cout) in zip(keys, layer_dims):
        kw, kb = jax.random.split(k)
        bound = 1.0 / jnp.sqrt(float(cin))
        w = jax.random.uniform(kw, (cin, cout), jnp.float32, -bound, bound)
        b = jax.random.uniform(kb, (cout,), jnp.float32, -bound, bound)
        params[name] = (w, b)
    return params


if __name__ == "__main__":
    key = jax.random.PRNGKey(0)
    k1, k2, k3, k4, k5, kp = jax.random.split(key, 6)

    B = 2
    # NCHW pyramid consistent with HFABlock's channel counts.
    x1 = jax.random.normal(k1, (B, 4, 32, 32), jnp.float32)
    x2 = jax.random.normal(k2, (B, 8, 16, 16), jnp.float32)
    x3 = jax.random.normal(k3, (B, 16, 8, 8), jnp.float32)
    x4 = jax.random.normal(k4, (B, 32, 4, 4), jnp.float32)
    x5 = jax.random.normal(k5, (B, 64, 2, 2), jnp.float32)

    params = init_hfablock_params(kp, channels=3)

    fwd = jax.jit(hfablock_forward_pallas)
    out = jax.block_until_ready(fwd(params, x1, x2, x3, x4, x5))
    assert out.shape == (B, 15, 64, 64), out.shape

    # Correctness check against a literal (upsample -> concat -> conv) reference.
    ref = jax.block_until_ready(hfablock_forward_ref(params, x1, x2, x3, x4, x5))
    max_err = float(jnp.max(jnp.abs(out - ref)))
    assert max_err < 1e-3, f"max abs error {max_err}"

    print("KERNEL_OK")
</pallas_src>

<mosaic_0001>
module attributes {stable_mosaic.version = 11 : i64} {
  func.func @_hfa_fused_kernel(%arg0: i32, %arg1: memref<1x128x2xf32, #tpu.memory_space<vmem>>, %arg2: memref<1x128x4xf32, #tpu.memory_space<vmem>>, %arg3: memref<1x128x8xf32, #tpu.memory_space<vmem>>, %arg4: memref<1x128x16xf32, #tpu.memory_space<vmem>>, %arg5: memref<1x128x32xf32, #tpu.memory_space<vmem>>, %arg6: memref<12x128xf32, #tpu.memory_space<vmem>>, %arg7: memref<2x4xf32, #tpu.memory_space<vmem>>, %arg8: memref<12x1xf32, #tpu.memory_space<vmem>>, %arg9: memref<48x12xf32, #tpu.memory_space<vmem>>, %arg10: memref<48x128xf32, #tpu.memory_space<vmem>>, %arg11: memref<4x8xf32, #tpu.memory_space<vmem>>, %arg12: memref<48x1xf32, #tpu.memory_space<vmem>>, %arg13: memref<144x48xf32, #tpu.memory_space<vmem>>, %arg14: memref<144x128xf32, #tpu.memory_space<vmem>>, %arg15: memref<8x16xf32, #tpu.memory_space<vmem>>, %arg16: memref<144x1xf32, #tpu.memory_space<vmem>>, %arg17: memref<384x144xf32, #tpu.memory_space<vmem>>, %arg18: memref<384x128xf32, #tpu.memory_space<vmem>>, %arg19: memref<16x32xf32, #tpu.memory_space<vmem>>, %arg20: memref<384x1xf32, #tpu.memory_space<vmem>>, %arg21: memref<960x384xf32, #tpu.memory_space<vmem>>, %arg22: memref<960x128xf32, #tpu.memory_space<vmem>>, %arg23: memref<32x64xf32, #tpu.memory_space<vmem>>, %arg24: memref<960x1xf32, #tpu.memory_space<vmem>>, %arg25: memref<1x960x64xf32, #tpu.memory_space<vmem>>) attributes {dimension_semantics = [#tpu.dimension_semantics<parallel>], iteration_bounds = array<i64: 2>, scalar_prefetch = 0 : i64, scratch_operands = 0 : i64, tpu.core_type = #tpu.core_type<tc>, window_params = [{transform_indices = @transform_0, window_bounds = array<i64: 1, 128, 2>}, {transform_indices = @transform_1, window_bounds = array<i64: 1, 128, 4>}, {transform_indices = @transform_2, window_bounds = array<i64: 1, 128, 8>}, {transform_indices = @transform_3, window_bounds = array<i64: 1, 128, 16>}, {transform_indices = @transform_4, window_bounds = array<i64: 1, 128, 32>}, {pipeline_mode = #tpu.pipeline_mode<synchronous>, transform_indices = @transform_5, window_bounds = array<i64: 12, 128>}, {pipeline_mode = #tpu.pipeline_mode<synchronous>, transform_indices = @transform_6, window_bounds = array<i64: 2, 4>}, {pipeline_mode = #tpu.pipeline_mode<synchronous>, transform_indices = @transform_7, window_bounds = array<i64: 12, 1>}, {pipeline_mode = #tpu.pipeline_mode<synchronous>, transform_indices = @transform_8, window_bounds = array<i64: 48, 12>}, {pipeline_mode = #tpu.pipeline_mode<synchronous>, transform_indices = @transform_9, window_bounds = array<i64: 48, 128>}, {pipeline_mode = #tpu.pipeline_mode<synchronous>, transform_indices = @transform_10, window_bounds = array<i64: 4, 8>}, {pipeline_mode = #tpu.pipeline_mode<synchronous>, transform_indices = @transform_11, window_bounds = array<i64: 48, 1>}, {pipeline_mode = #tpu.pipeline_mode<synchronous>, transform_indices = @transform_12, window_bounds = array<i64: 144, 48>}, {pipeline_mode = #tpu.pipeline_mode<synchronous>, transform_indices = @transform_13, window_bounds = array<i64: 144, 128>}, {pipeline_mode = #tpu.pipeline_mode<synchronous>, transform_indices = @transform_14, window_bounds = array<i64: 8, 16>}, {pipeline_mode = #tpu.pipeline_mode<synchronous>, transform_indices = @transform_15, window_bounds = array<i64: 144, 1>}, {pipeline_mode = #tpu.pipeline_mode<synchronous>, transform_indices = @transform_16, window_bounds = array<i64: 384, 144>}, {pipeline_mode = #tpu.pipeline_mode<synchronous>, transform_indices = @transform_17, window_bounds = array<i64: 384, 128>}, {pipeline_mode = #tpu.pipeline_mode<synchronous>, transform_indices = @transform_18, window_bounds = array<i64: 16, 32>}, {pipeline_mode = #tpu.pipeline_mode<synchronous>, transform_indices = @transform_19, window_bounds = array<i64: 384, 1>}, {pipeline_mode = #tpu.pipeline_mode<synchronous>, transform_indices = @transform_20, window_bounds = array<i64: 960, 384>}, {pipeline_mode = #tpu.pipeline_mode<synchronous>, transform_indices = @transform_21, window_bounds = array<i64: 960, 128>}, {pipeline_mode = #tpu.pipeline_mode<synchronous>, transform_indices = @transform_22, window_bounds = array<i64: 32, 64>}, {pipeline_mode = #tpu.pipeline_mode<synchronous>, transform_indices = @transform_23, window_bounds = array<i64: 960, 1>}, {transform_indices = @transform_24, window_bounds = array<i64: 1, 960, 64>}]} {
    %c0 = arith.constant 0 : index
    %c0_0 = arith.constant 0 : index
    %0 = vector.load %arg6[%c0, %c0_0] : memref<12x128xf32, #tpu.memory_space<vmem>>, vector<12x128xf32>
    %c0_1 = arith.constant 0 : index
    %c0_2 = arith.constant 0 : index
    %c0_3 = arith.constant 0 : index
    %1 = vector.load %arg1[%c0_1, %c0_2, %c0_3] : memref<1x128x2xf32, #tpu.memory_space<vmem>>, vector<1x128x2xf32>
    %2 = vector.shape_cast %1 : vector<1x128x2xf32> to vector<128x2xf32>
    %cst = arith.constant dense<0.000000e+00> : vector<12x2xf32>
    %3 = tpu.matmul %0, %2, %cst {dimension_numbers = #tpu.dot_dimension_numbers<[1], [0], [0], [1], [0, 0, 1, 1], [], []>} : vector<12x128xf32>, vector<128x2xf32>, vector<12x2xf32> -> vector<12x2xf32>
    %c0_4 = arith.constant 0 : index
    %c0_5 = arith.constant 0 : index
    %4 = vector.load %arg7[%c0_4, %c0_5] : memref<2x4xf32, #tpu.memory_space<vmem>>, vector<2x4xf32>
    %cst_6 = arith.constant dense<0.000000e+00> : vector<12x4xf32>
    %5 = tpu.matmul %3, %4, %cst_6 {dimension_numbers = #tpu.dot_dimension_numbers<[1], [0], [0], [1], [0, 0, 1, 1], [], []>} : vector<12x2xf32>, vector<2x4xf32>, vector<12x4xf32> -> vector<12x4xf32>
    %c0_7 = arith.constant 0 : index
    %c0_8 = arith.constant 0 : index
    %6 = vector.load %arg8[%c0_7, %c0_8] : memref<12x1xf32, #tpu.memory_space<vmem>>, vector<12x1xf32>
    %7 = vector.broadcast %6 : vector<12x1xf32> to vector<12x4xf32>
    %8 = arith.addf %5, %7 : vector<12x4xf32>
    %c0_9 = arith.constant 0 : index
    %c0_10 = arith.constant 0 : index
    %9 = vector.load %arg9[%c0_9, %c0_10] : memref<48x12xf32, #tpu.memory_space<vmem>>, vector<48x12xf32>
    %cst_11 = arith.constant dense<0.000000e+00> : vector<48x4xf32>
    %10 = tpu.matmul %9, %8, %cst_11 {dimension_numbers = #tpu.dot_dimension_numbers<[1], [0], [0], [1], [0, 0, 1, 1], [], []>} : vector<48x12xf32>, vector<12x4xf32>, vector<48x4xf32> -> vector<48x4xf32>
    %c0_12 = arith.constant 0 : index
    %c0_13 = arith.constant 0 : index
    %11 = vector.load %arg10[%c0_12, %c0_13] : memref<48x128xf32, #tpu.memory_space<vmem>>, vector<48x128xf32>
    %c0_14 = arith.constant 0 : index
    %c0_15 = arith.constant 0 : index
    %c0_16 = arith.constant 0 : index
    %12 = vector.load %arg2[%c0_14, %c0_15, %c0_16] : memref<1x128x4xf32, #tpu.memory_space<vmem>>, vector<1x128x4xf32>
    %13 = vector.shape_cast %12 : vector<1x128x4xf32> to vector<128x4xf32>
    %cst_17 = arith.constant dense<0.000000e+00> : vector<48x4xf32>
    %14 = tpu.matmul %11, %13, %cst_17 {dimension_numbers = #tpu.dot_dimension_numbers<[1], [0], [0], [1], [0, 0, 1, 1], [], []>} : vector<48x128xf32>, vector<128x4xf32>, vector<48x4xf32> -> vector<48x4xf32>
    %15 = arith.addf %10, %14 : vector<48x4xf32>
    %c0_18 = arith.constant 0 : index
    %c0_19 = arith.constant 0 : index
    %16 = vector.load %arg11[%c0_18, %c0_19] : memref<4x8xf32, #tpu.memory_space<vmem>>, vector<4x8xf32>
    %cst_20 = arith.constant dense<0.000000e+00> : vector<48x8xf32>
    %17 = tpu.matmul %15, %16, %cst_20 {dimension_numbers = #tpu.dot_dimension_numbers<[1], [0], [0], [1], [0, 0, 1, 1], [], []>} : vector<48x4xf32>, vector<4x8xf32>, vector<48x8xf32> -> vector<48x8xf32>
    %c0_21 = arith.constant 0 : index
    %c0_22 = arith.constant 0 : index
    %18 = vector.load %arg12[%c0_21, %c0_22] : memref<48x1xf32, #tpu.memory_space<vmem>>, vector<48x1xf32>
    %19 = vector.broadcast %18 : vector<48x1xf32> to vector<48x8xf32>
    %20 = arith.addf %17, %19 : vector<48x8xf32>
    %c0_23 = arith.constant 0 : index
    %c0_24 = arith.constant 0 : index
    %21 = vector.load %arg13[%c0_23, %c0_24] : memref<144x48xf32, #tpu.memory_space<vmem>>, vector<144x48xf32>
    %cst_25 = arith.constant dense<0.000000e+00> : vector<144x8xf32>
    %22 = tpu.matmul %21, %20, %cst_25 {dimension_numbers = #tpu.dot_dimension_numbers<[1], [0], [0], [1], [0, 0, 1, 1], [], []>} : vector<144x48xf32>, vector<48x8xf32>, vector<144x8xf32> -> vector<144x8xf32>
    %c0_26 = arith.constant 0 : index
    %c0_27 = arith.constant 0 : index
    %23 = vector.load %arg14[%c0_26, %c0_27] : memref<144x128xf32, #tpu.memory_space<vmem>>, vector<144x128xf32>
    %c0_28 = arith.constant 0 : index
    %c0_29 = arith.constant 0 : index
    %c0_30 = arith.constant 0 : index
    %24 = vector.load %arg3[%c0_28, %c0_29, %c0_30] : memref<1x128x8xf32, #tpu.memory_space<vmem>>, vector<1x128x8xf32>
    %25 = vector.shape_cast %24 : vector<1x128x8xf32> to vector<128x8xf32>
    %cst_31 = arith.constant dense<0.000000e+00> : vector<144x8xf32>
    %26 = tpu.matmul %23, %25, %cst_31 {dimension_numbers = #tpu.dot_dimension_numbers<[1], [0], [0], [1], [0, 0, 1, 1], [], []>} : vector<144x128xf32>, vector<128x8xf32>, vector<144x8xf32> -> vector<144x8xf32>
    %27 = arith.addf %22, %26 : vector<144x8xf32>
    %c0_32 = arith.constant 0 : index
    %c0_33 = arith.constant 0 : index
    %28 = vector.load %arg15[%c0_32, %c0_33] : memref<8x16xf32, #tpu.memory_space<vmem>>, vector<8x16xf32>
    %cst_34 = arith.constant dense<0.000000e+00> : vector<144x16xf32>
    %29 = tpu.matmul %27, %28, %cst_34 {dimension_numbers = #tpu.dot_dimension_numbers<[1], [0], [0], [1], [0, 0, 1, 1], [], []>} : vector<144x8xf32>, vector<8x16xf32>, vector<144x16xf32> -> vector<144x16xf32>
    %c0_35 = arith.constant 0 : index
    %c0_36 = arith.constant 0 : index
    %30 = vector.load %arg16[%c0_35, %c0_36] : memref<144x1xf32, #tpu.memory_space<vmem>>, vector<144x1xf32>
    %31 = vector.broadcast %30 : vector<144x1xf32> to vector<144x16xf32>
    %32 = arith.addf %29, %31 : vector<144x16xf32>
    %c0_37 = arith.constant 0 : index
    %c0_38 = arith.constant 0 : index
    %33 = vector.load %arg17[%c0_37, %c0_38] : memref<384x144xf32, #tpu.memory_space<vmem>>, vector<384x144xf32>
    %cst_39 = arith.constant dense<0.000000e+00> : vector<384x16xf32>
    %34 = tpu.matmul %33, %32, %cst_39 {dimension_numbers = #tpu.dot_dimension_numbers<[1], [0], [0], [1], [0, 0, 1, 1], [], []>} : vector<384x144xf32>, vector<144x16xf32>, vector<384x16xf32> -> vector<384x16xf32>
    %c0_40 = arith.constant 0 : index
    %c0_41 = arith.constant 0 : index
    %35 = vector.load %arg18[%c0_40, %c0_41] : memref<384x128xf32, #tpu.memory_space<vmem>>, vector<384x128xf32>
    %c0_42 = arith.constant 0 : index
    %c0_43 = arith.constant 0 : index
    %c0_44 = arith.constant 0 : index
    %36 = vector.load %arg4[%c0_42, %c0_43, %c0_44] : memref<1x128x16xf32, #tpu.memory_space<vmem>>, vector<1x128x16xf32>
    %37 = vector.shape_cast %36 : vector<1x128x16xf32> to vector<128x16xf32>
    %cst_45 = arith.constant dense<0.000000e+00> : vector<384x16xf32>
    %38 = tpu.matmul %35, %37, %cst_45 {dimension_numbers = #tpu.dot_dimension_numbers<[1], [0], [0], [1], [0, 0, 1, 1], [], []>} : vector<384x128xf32>, vector<128x16xf32>, vector<384x16xf32> -> vector<384x16xf32>
    %39 = arith.addf %34, %38 : vector<384x16xf32>
    %c0_46 = arith.constant 0 : index
    %c0_47 = arith.constant 0 : index
    %40 = vector.load %arg19[%c0_46, %c0_47] : memref<16x32xf32, #tpu.memory_space<vmem>>, vector<16x32xf32>
    %cst_48 = arith.constant dense<0.000000e+00> : vector<384x32xf32>
    %41 = tpu.matmul %39, %40, %cst_48 {dimension_numbers = #tpu.dot_dimension_numbers<[1], [0], [0], [1], [0, 0, 1, 1], [], []>} : vector<384x16xf32>, vector<16x32xf32>, vector<384x32xf32> -> vector<384x32xf32>
    %c0_49 = arith.constant 0 : index
    %c0_50 = arith.constant 0 : index
    %42 = vector.load %arg20[%c0_49, %c0_50] : memref<384x1xf32, #tpu.memory_space<vmem>>, vector<384x1xf32>
    %43 = vector.broadcast %42 : vector<384x1xf32> to vector<384x32xf32>
    %44 = arith.addf %41, %43 : vector<384x32xf32>
    %c0_51 = arith.constant 0 : index
    %c0_52 = arith.constant 0 : index
    %45 = vector.load %arg21[%c0_51, %c0_52] : memref<960x384xf32, #tpu.memory_space<vmem>>, vector<960x384xf32>
    %cst_53 = arith.constant dense<0.000000e+00> : vector<960x32xf32>
    %46 = tpu.matmul %45, %44, %cst_53 {dimension_numbers = #tpu.dot_dimension_numbers<[1], [0], [0], [1], [0, 0, 1, 1], [], []>} : vector<960x384xf32>, vector<384x32xf32>, vector<960x32xf32> -> vector<960x32xf32>
    %c0_54 = arith.constant 0 : index
    %c0_55 = arith.constant 0 : index
    %47 = vector.load %arg22[%c0_54, %c0_55] : memref<960x128xf32, #tpu.memory_space<vmem>>, vector<960x128xf32>
    %c0_56 = arith.constant 0 : index
    %c0_57 = arith.constant 0 : index
    %c0_58 = arith.constant 0 : index
    %48 = vector.load %arg5[%c0_56, %c0_57, %c0_58] : memref<1x128x32xf32, #tpu.memory_space<vmem>>, vector<1x128x32xf32>
    %49 = vector.shape_cast %48 : vector<1x128x32xf32> to vector<128x32xf32>
    %cst_59 = arith.constant dense<0.000000e+00> : vector<960x32xf32>
    %50 = tpu.matmul %47, %49, %cst_59 {dimension_numbers = #tpu.dot_dimension_numbers<[1], [0], [0], [1], [0, 0, 1, 1], [], []>} : vector<960x128xf32>, vector<128x32xf32>, vector<960x32xf32> -> vector<960x32xf32>
    %51 = arith.addf %46, %50 : vector<960x32xf32>
    %c0_60 = arith.constant 0 : index
    %c0_61 = arith.constant 0 : index
    %52 = vector.load %arg23[%c0_60, %c0_61] : memref<32x64xf32, #tpu.memory_space<vmem>>, vector<32x64xf32>
    %cst_62 = arith.constant dense<0.000000e+00> : vector<960x64xf32>
    %53 = tpu.matmul %51, %52, %cst_62 {dimension_numbers = #tpu.dot_dimension_numbers<[1], [0], [0], [1], [0, 0, 1, 1], [], []>} : vector<960x32xf32>, vector<32x64xf32>, vector<960x64xf32> -> vector<960x64xf32>
    %c0_63 = arith.constant 0 : index
    %c0_64 = arith.constant 0 : index
    %54 = vector.load %arg24[%c0_63, %c0_64] : memref<960x1xf32, #tpu.memory_space<vmem>>, vector<960x1xf32>
    %55 = vector.broadcast %54 : vector<960x1xf32> to vector<960x64xf32>
    %56 = arith.addf %53, %55 : vector<960x64xf32>
    %c0_65 = arith.constant 0 : index
    %c0_66 = arith.constant 0 : index
    %c0_67 = arith.constant 0 : index
    %57 = vector.load %arg25[%c0_65, %c0_66, %c0_67] : memref<1x960x64xf32, #tpu.memory_space<vmem>>, vector<1x960x64xf32>
    %58 = vector.shape_cast %57 : vector<1x960x64xf32> to vector<960x64xf32>
    %59 = vector.shape_cast %56 : vector<960x64xf32> to vector<1x960x64xf32>
    tpu.vector_store %arg25[%c0_65, %c0_66, %c0_67], %59 {strides = array<i32>} : memref<1x960x64xf32, #tpu.memory_space<vmem>>, vector<1x960x64xf32>,
    return
  }
  func.func @transform_0(%arg0: i32) -> (i32, i32, i32) {
    %c0_i32 = arith.constant 0 : i32
    %c0_i32_0 = arith.constant 0 : i32
    %c0_i32_1 = arith.constant 0 : i32
    return %arg0, %c0_i32, %c0_i32_0 : i32, i32, i32
  }
  func.func @transform_1(%arg0: i32) -> (i32, i32, i32) {
    %c0_i32 = arith.constant 0 : i32
    %c0_i32_0 = arith.constant 0 : i32
    %c0_i32_1 = arith.constant 0 : i32
    return %arg0, %c0_i32, %c0_i32_0 : i32, i32, i32
  }
  func.func @transform_2(%arg0: i32) -> (i32, i32, i32) {
    %c0_i32 = arith.constant 0 : i32
    %c0_i32_0 = arith.constant 0 : i32
    %c0_i32_1 = arith.constant 0 : i32
    return %arg0, %c0_i32, %c0_i32_0 : i32, i32, i32
  }
  func.func @transform_3(%arg0: i32) -> (i32, i32, i32) {
    %c0_i32 = arith.constant 0 : i32
    %c0_i32_0 = arith.constant 0 : i32
    %c0_i32_1 = arith.constant 0 : i32
    return %arg0, %c0_i32, %c0_i32_0 : i32, i32, i32
  }
  func.func @transform_4(%arg0: i32) -> (i32, i32, i32) {
    %c0_i32 = arith.constant 0 : i32
    %c0_i32_0 = arith.constant 0 : i32
    %c0_i32_1 = arith.constant 0 : i32
    return %arg0, %c0_i32, %c0_i32_0 : i32, i32, i32
  }
  func.func @transform_5(%arg0: i32) -> (i32, i32) {
    %c0_i32 = arith.constant 0 : i32
    %c0_i32_0 = arith.constant 0 : i32
    %c0_i32_1 = arith.constant 0 : i32
    return %c0_i32, %c0_i32_0 : i32, i32
  }
  func.func @transform_6(%arg0: i32) -> (i32, i32) {
    %c0_i32 = arith.constant 0 : i32
    %c0_i32_0 = arith.constant 0 : i32
    %c0_i32_1 = arith.constant 0 : i32
    return %c0_i32, %c0_i32_0 : i32, i32
  }
  func.func @transform_7(%arg0: i32) -> (i32, i32) {
    %c0_i32 = arith.constant 0 : i32
    %c0_i32_0 = arith.constant 0 : i32
    %c0_i32_1 = arith.constant 0 : i32
    return %c0_i32, %c0_i32_0 : i32, i32
  }
  func.func @transform_8(%arg0: i32) -> (i32, i32) {
    %c0_i32 = arith.constant 0 : i32
    %c0_i32_0 = arith.constant 0 : i32
    %c0_i32_1 = arith.constant 0 : i32
    return %c0_i32, %c0_i32_0 : i32, i32
  }
  func.func @transform_9(%arg0: i32) -> (i32, i32) {
    %c0_i32 = arith.constant 0 : i32
    %c0_i32_0 = arith.constant 0 : i32
    %c0_i32_1 = arith.constant 0 : i32
    return %c0_i32, %c0_i32_0 : i32, i32
  }
  func.func @transform_10(%arg0: i32) -> (i32, i32) {
    %c0_i32 = arith.constant 0 : i32
    %c0_i32_0 = arith.constant 0 : i32
    %c0_i32_1 = arith.constant 0 : i32
    return %c0_i32, %c0_i32_0 : i32, i32
  }
  func.func @transform_11(%arg0: i32) -> (i32, i32) {
    %c0_i32 = arith.constant 0 : i32
    %c0_i32_0 = arith.constant 0 : i32
    %c0_i32_1 = arith.constant 0 : i32
    return %c0_i32, %c0_i32_0 : i32, i32
  }
  func.func @transform_12(%arg0: i32) -> (i32, i32) {
    %c0_i32 = arith.constant 0 : i32
    %c0_i32_0 = arith.constant 0 : i32
    %c0_i32_1 = arith.constant 0 : i32
    return %c0_i32, %c0_i32_0 : i32, i32
  }
  func.func @transform_13(%arg0: i32) -> (i32, i32) {
    %c0_i32 = arith.constant 0 : i32
    %c0_i32_0 = arith.constant 0 : i32
    %c0_i32_1 = arith.constant 0 : i32
    return %c0_i32, %c0_i32_0 : i32, i32
  }
  func.func @transform_14(%arg0: i32) -> (i32, i32) {
    %c0_i32 = arith.constant 0 : i32
    %c0_i32_0 = arith.constant 0 : i32
    %c0_i32_1 = arith.constant 0 : i32
    return %c0_i32, %c0_i32_0 : i32, i32
  }
  func.func @transform_15(%arg0: i32) -> (i32, i32) {
    %c0_i32 = arith.constant 0 : i32
    %c0_i32_0 = arith.constant 0 : i32
    %c0_i32_1 = arith.constant 0 : i32
    return %c0_i32, %c0_i32_0 : i32, i32
  }
  func.func @transform_16(%arg0: i32) -> (i32, i32) {
    %c0_i32 = arith.constant 0 : i32
    %c0_i32_0 = arith.constant 0 : i32
    %c0_i32_1 = arith.constant 0 : i32
    return %c0_i32, %c0_i32_0 : i32, i32
  }
  func.func @transform_17(%arg0: i32) -> (i32, i32) {
    %c0_i32 = arith.constant 0 : i32
    %c0_i32_0 = arith.constant 0 : i32
    %c0_i32_1 = arith.constant 0 : i32
    return %c0_i32, %c0_i32_0 : i32, i32
  }
  func.func @transform_18(%arg0: i32) -> (i32, i32) {
    %c0_i32 = arith.constant 0 : i32
    %c0_i32_0 = arith.constant 0 : i32
    %c0_i32_1 = arith.constant 0 : i32
    return %c0_i32, %c0_i32_0 : i32, i32
  }
  func.func @transform_19(%arg0: i32) -> (i32, i32) {
    %c0_i32 = arith.constant 0 : i32
    %c0_i32_0 = arith.constant 0 : i32
    %c0_i32_1 = arith.constant 0 : i32
    return %c0_i32, %c0_i32_0 : i32, i32
  }
  func.func @transform_20(%arg0: i32) -> (i32, i32) {
    %c0_i32 = arith.constant 0 : i32
    %c0_i32_0 = arith.constant 0 : i32
    %c0_i32_1 = arith.constant 0 : i32
    return %c0_i32, %c0_i32_0 : i32, i32
  }
  func.func @transform_21(%arg0: i32) -> (i32, i32) {
    %c0_i32 = arith.constant 0 : i32
    %c0_i32_0 = arith.constant 0 : i32
    %c0_i32_1 = arith.constant 0 : i32
    return %c0_i32, %c0_i32_0 : i32, i32
  }
  func.func @transform_22(%arg0: i32) -> (i32, i32) {
    %c0_i32 = arith.constant 0 : i32
    %c0_i32_0 = arith.constant 0 : i32
    %c0_i32_1 = arith.constant 0 : i32
    return %c0_i32, %c0_i32_0 : i32, i32
  }
  func.func @transform_23(%arg0: i32) -> (i32, i32) {
    %c0_i32 = arith.constant 0 : i32
    %c0_i32_0 = arith.constant 0 : i32
    %c0_i32_1 = arith.constant 0 : i32
    return %c0_i32, %c0_i32_0 : i32, i32
  }
  func.func @transform_24(%arg0: i32) -> (i32, i32, i32) {
    %c0_i32 = arith.constant 0 : i32
    %c0_i32_0 = arith.constant 0 : i32
    %c0_i32_1 = arith.constant 0 : i32
    return %arg0, %c0_i32, %c0_i32_0 : i32, i32, i32
  }
}

</mosaic_0001>

<bundles_post_ra>
// kernel: hfablock_forward_pallas.1
= control target key start
LH: loop header
LB: loop body
LE: loop exit
PB: predicated region body
PF: predicated region fallthrough
CT: control target
= control target key end

     0   :  { %s15195_s0 = inlined_call_operand.vmem [shape: f32[2,128,2], index: 0, kind: input, shape index: {}]   ;;  %s15196_s1 = inlined_call_operand.vmem [shape: f32[2,128,4], index: 1, kind: input, shape index: {}]   ;;  %s15197_s2 = inlined_call_operand.vmem [shape: f32[2,128,8], index: 2, kind: input, shape index: {}]   ;;  %s15198_s3 = inlined_call_operand.vmem [shape: f32[2,128,16], index: 3, kind: input, shape index: {}]   ;;  %s15199_s4 = inlined_call_operand.vmem [shape: f32[2,128,32], index: 4, kind: input, shape index: {}]   ;;  %s15200_s5 = inlined_call_operand.vmem [shape: f32[12,128], index: 5, kind: input, shape index: {}]   ;;  %s15201_s6 = inlined_call_operand.vmem [shape: f32[2,4], index: 6, kind: input, shape index: {}]   ;;  %s15202_s7 = inlined_call_operand.vmem [shape: f32[12,1], index: 7, kind: input, shape index: {}]   ;;  %s15203_s8 = inlined_call_operand.vmem [shape: f32[48,12], index: 8, kind: input, shape index: {}]   ;;  %s15204_s9 = inlined_call_operand.vmem [shape: f32[48,128], index: 9, kind: input, shape index: {}]   ;;  %s15205_s10 = inlined_call_operand.vmem [shape: f32[4,8], index: 10, kind: input, shape index: {}]   ;;  %s15206_s11 = inlined_call_operand.vmem [shape: f32[48,1], index: 11, kind: input, shape index: {}]   ;;  %s15207_s12 = inlined_call_operand.vmem [shape: f32[144,48], index: 12, kind: input, shape index: {}]   ;;  %s15208_s13 = inlined_call_operand.vmem [shape: f32[144,128], index: 13, kind: input, shape index: {}]   ;;  %s15209_s14 = inlined_call_operand.vmem [shape: f32[8,16], index: 14, kind: input, shape index: {}]   ;;  %s15210_s15 = inlined_call_operand.vmem [shape: f32[144,1], index: 15, kind: input, shape index: {}]   ;;  %s15211_s16 = inlined_call_operand.vmem [shape: f32[384,144], index: 16, kind: input, shape index: {}]   ;;  %s15212_s17 = inlined_call_operand.vmem [shape: f32[384,128], index: 17, kind: input, shape index: {}]   ;;  %s15213_s18 = inlined_call_operand.vmem [shape: f32[16,32], index: 18, kind: input, shape index: {}]   ;;  %s15214_s19 = inlined_call_operand.vmem [shape: f32[384,1], index: 19, kind: input, shape index: {}]   ;;  %s15215_s20 = inlined_call_operand.vmem [shape: f32[960,384], index: 20, kind: input, shape index: {}]   ;;  %s15216_s21 = inlined_call_operand.vmem [shape: f32[960,128], index: 21, kind: input, shape index: {}]   ;;  %s15217_s22 = inlined_call_operand.vmem [shape: f32[32,64], index: 22, kind: input, shape index: {}]   ;;  %s15218_s23 = inlined_call_operand.vmem [shape: f32[960,1], index: 23, kind: input, shape index: {}]   ;;  %s15219_s24 = inlined_call_operand.hbm [shape: f32[2,960,64], index: 24, kind: output, shape index: {}]  }
   0x1   :  { %15231 = sst [smem:[#allocation147_spill]] %s15195_s0 }
   0x2   :  { %15232 = sst [smem:[#allocation148_spill]] %s15196_s1 }
   0x3   :  { %15233 = sst [smem:[#allocation149_spill]] %s15197_s2 }
   0x4   :  { %15234 = sst [smem:[#allocation150_spill]] %s15198_s3 }
   0x5   :  { %15235 = sst [smem:[#allocation151_spill]] %s15199_s4 }
   0x6   :  { %15236 = sst [smem:[#allocation152_spill]] %s15200_s5 }
   0x7   :  { %15237 = sst [smem:[#allocation153_spill]] %s15201_s6 }
   0x8   :  { %15238 = sst [smem:[#allocation154_spill]] %s15202_s7 }
   0x9   :  { %15239 = sst [smem:[#allocation155_spill]] %s15203_s8 }
   0xa   :  { %15240 = sst [smem:[#allocation156_spill]] %s15204_s9 }
   0xb   :  { %15241 = sst [smem:[#allocation157_spill]] %s15205_s10 }
   0xc   :  { %29 = vsyncpa [#allocation3], 0 }
   0xd   :  { %31 = vsyncpa [#allocation3 + $0x1], 0  ;;  %s10510_s5 = smov 0   ;;  %s10512_s26 = smov 0  }
   0xe   :  { %s10514_s27 = smov 0   ;;  %s10516_s28 = smov 0  }
   0xf LB: > { %15242 = sst [smem:[#allocation5_spill]] %s10366_s5  ;;  %s10531_s6 = sadd.s32 4294967295, %s10378_s28   ;;  %s10378_s28 = sphi %s10516_s28, %s15588_s28   ;;  %s10374_s27 = sphi %s10514_s27, %s15590_s27   ;;  %s10370_s26 = sphi %s10512_s26, %s15592_s26   ;;  %s10366_s5 = sphi %s10510_s5, %s15591_s5  }
  0x10   : > { %15243 = sst [smem:[#allocation6_spill]] %s10374_s27  ;;  %s8279_s2 = sadd.s32 4294967294, %s10378_s28  }
  0x11   : > { %15244 = sst [smem:[#allocation7_spill]] %s10378_s28  ;;  %s10535_s29 = sadd.s32 1, %s10378_s28  }
  0x12   : > { %15245 = sst [smem:[#allocation8_spill]] %s10535_s29  ;;  %s573_s0 = sadd.s32 1, %s10374_s27 }
  0x13   : > { %s570_s7 = ssub.s32 %s10378_s28, %s10535_s29  ;;  %p583_p0 = scmp.ne.s32.totalorder %s10374_s27, %s10370_s26 }
  0x14   : > { %p571_p1 = scmp.eq.s32.totalorder %s570_s7, 0  ;;  %p584_p2 = scmp.eq.s32.totalorder %s10531_s6, 1 }
  0x15   : > { %p589_p3 = scmp.ne.s32.totalorder %s10370_s26, %s10366_s5  ;;  %p590_p4 = scmp.eq.s32.totalorder %s8279_s2, 1 }
  0x16   : > { %s10546_s30 = scalar_select %p571_p1, %s10374_s27, %s573_s0  }
  0x17   : > { %p10548_p5 = por %p584_p2, %p583_p0  ;;  %p10552_p6 = por %p590_p4, %p589_p3 }
  0x18   : > { %15246 = sst [smem:[#allocation9_spill]] %s10546_s30  ;;  %p8282_p7 = scmp.ge.s32.totalorder %s10378_s28, 1 }
  0x19   : > { %s15248_s25 = scalar_select %p10552_p6, 1, 0 }
  0x1a   : > { %p705_p8 = scmp.lt.s32.totalorder %s10378_s28, 3 }
  0x1b   : > { %15249 = sst [smem:[#allocation10_spill]] %s15248_s25 }
  0x1c   : > { %p706_p9 = pnand %p8282_p7, %p705_p8 }
  0x1e   : > { %709 = sbr.rel (%p706_p9) target bundleno = 2771 (0xad3), region = 116 }
  0x23   : > { %s15250_s1 = sld [smem:[#allocation154_spill]]  ;;  %p791_p10 = scmp.lt.s32.totalorder %s10531_s6, 1  ;;  %v10380_v1 = vmov 0   ;;  %v1253_v6 = vld [vmem:[%s15206_s11 + $0x18] sm:$0xff]  ;;  %v1251_v9 = vld [vmem:[%s15206_s11 + $0x8] sm:$0xff]  ;;  %vm929_vm0 = vcmask 1041408  }
  0x24   : > { %10316 = vset.pattern.permute.xlu0 %v10380_v1  ;;  %10317 = vset.pattern.permute.xlu1 %v10380_v1  ;;  %s15251_s29 = sld [smem:[#allocation152_spill]]  ;;  %v1836_v12 = vld [vmem:[%s15210_s15 + $0x78] sm:$0xff]  ;;  %v1834_v15 = vld [vmem:[%s15210_s15 + $0x68] sm:$0xff]  ;;  %v6288_v63 = vld [vmem:[%s15218_s23] sm:$0xff]  ;;  %vm922_vm1 = vcmask 15360   ;;  %vm1131_vm2 = vcmask 97280  }
  0x25   : > { %s792_s2 = scalar_select %p791_p10, %s10531_s6, 1  ;;  %v1832_v18 = vld [vmem:[%s15210_s15 + $0x58] sm:$0xff]  ;;  %v1830_v21 = vld [vmem:[%s15210_s15 + $0x48] sm:$0xff]  ;;  %v6290_v1 = vld [vmem:[%s15218_s23 + $0x10] sm:$0xff]  ;;  %vm1150_vm3 = vcmask 1043456   ;;  %vm1286_vm4 = vcmask 31744  }
  0x26   : > { %s15252_s5 = sld [smem:[#allocation147_spill]]  ;;  %v1828_v24 = vld [vmem:[%s15210_s15 + $0x38] sm:$0xff]  ;;  %v1826_v27 = vld [vmem:[%s15210_s15 + $0x28] sm:$0xff]  ;;  %vm1610_vm5 = vcmask 392192   ;;  %vm1929_vm6 = vcmask 64512   ;;  %vm2604_vm7 = vcmask 130048  }
  0x27   : > { %s10569_s25 = sshll.u32 %s792_s2, 7  ;;  %v1824_v29 = vld [vmem:[%s15210_s15 + $0x18] sm:$0xff]  ;;  %v1822_v30 = vld [vmem:[%s15210_s15 + $0x8] sm:$0xff]  ;;  %s15258_s30 = sld [smem:[#allocation148_spill]]  ;;  %vm7008_vm8 = vcmask 261120   ;;  %vm8034_vm9 = vcmask 523264  }
  0x28   : > { %v1838_v31 = vld [vmem:[%s15210_s15 + $0x88] sm:$0xff]  ;;  %v3071_v32 = vld [vmem:[%s15214_s19 + $0x78] sm:$0xff]  ;;  %s15265_s9 = sld [smem:[#allocation156_spill]] }
  0x29   : > { %v911_v0 = vld [vmem:[%s15250_s1 + $0x8] sm:$0xf]  ;;  %v910_v2 = vld [vmem:[%s15250_s1] sm:$0xff]  ;;  %v3067_v34 = vld [vmem:[%s15214_s19 + $0x58] sm:$0xff]  ;;  %s15292_s10 = sld [smem:[#allocation157_spill]] }
  0x2a   : > { %919 = vperm.xlu0 %10316, %v911_v0   ;;  %v816_v3 = vld [vmem:[%s15251_s29] sm:$0xff]  ;;  %v817_v28 = vld [vmem:[%s15251_s29 + $0x8] sm:$0xf]  ;;  %v3063_v36 = vld [vmem:[%s15214_s19 + $0x38] sm:$0xff]  ;;  %s15253_s29 = sld [smem:[#allocation153_spill]] }
  0x2b   : > { %9247 = vmatprep.mubr.f32.mxu0 %v816_v3  ;;  %v3069_v33 = vld [vmem:[%s15214_s19 + $0x68] sm:$0xff]  ;;  %v3059_v38 = vld [vmem:[%s15214_s19 + $0x18] sm:$0xff]  ;;  %v6292_v3 = vld [vmem:[%s15218_s23 + $0x20] sm:$0xff]  ;;  %s15301_s27 = sld [smem:[#allocation149_spill]] }
  0x2c   : > { %s10575_s28 = scalar_lea.vmem %s15252_s5, %s10569_s25  ;;  %v3065_v35 = vld [vmem:[%s15214_s19 + $0x48] sm:$0xff]  ;;  %v3087_v40 = vld [vmem:[%s15214_s19 + $0xf8] sm:$0xff] }
  0x2d   : > { %v833_v4 = vld [vmem:[%s10575_s28 + $0x78] sm:$0xff]  ;;  %v832_v5 = vld [vmem:[%s10575_s28 + $0x70] sm:$0xff]  ;;  %v831_v7 = vld [vmem:[%s10575_s28 + $0x68] sm:$0xff]  ;;  %s10917_s5 = scalar_lea.vmem %s15258_s30, %s10569_s25  ;;  %s15266_s30 = sld [smem:[#allocation155_spill]] }
  0x2e   : > { %914 = vperm.xlu0 %10316, %v910_v2   ;;  %9215 = vmatprep.subr.mxu0 %v833_v4  ;;  %v830_v8 = vld [vmem:[%s10575_s28 + $0x60] sm:$0xff]  ;;  %v829_v10 = vld [vmem:[%s10575_s28 + $0x58] sm:$0xff]  ;;  %v828_v11 = vld [vmem:[%s10575_s28 + $0x50] sm:$0xff] }
  0x2f   : > { %9216 = vmatpush3.msra.mxu0 %v833_v4  ;;  %v827_v13 = vld [vmem:[%s10575_s28 + $0x48] sm:$0xff]  ;;  %v826_v14 = vld [vmem:[%s10575_s28 + $0x40] sm:$0xff]  ;;  %v825_v16 = vld [vmem:[%s10575_s28 + $0x38] sm:$0xff] }
  0x30   : > { %9217 = vmatprep.subr.mxu0 %v832_v5  ;;  %v824_v17 = vld [vmem:[%s10575_s28 + $0x30] sm:$0xff]  ;;  %v823_v19 = vld [vmem:[%s10575_s28 + $0x28] sm:$0xff]  ;;  %v822_v20 = vld [vmem:[%s10575_s28 + $0x20] sm:$0xff] }
  0x31   : > { %9218 = vmatpush3.msra.mxu0 %v832_v5  ;;  %v821_v22 = vld [vmem:[%s10575_s28 + $0x18] sm:$0xff]  ;;  %v820_v23 = vld [vmem:[%s10575_s28 + $0x10] sm:$0xff]  ;;  %v819_v25 = vld [vmem:[%s10575_s28 + $0x8] sm:$0xff]  ;;  %s11416_s1 = scalar_lea.vmem %s15301_s27, %s10569_s25  ;;  %s10382_s27 = smov [#allocation2]  }
  0x32   : > { %1273 = vperm.xlu0 %10316, %v1253_v6   ;;  %9219 = vmatprep.subr.mxu0 %v831_v7  ;;  %v818_v26 = vld [vmem:[%s10575_s28] sm:$0xff]  ;;  %v3061_v37 = vld [vmem:[%s15214_s19 + $0x28] sm:$0xff]  ;;  %v3083_v42 = vld [vmem:[%s15214_s19 + $0xd8] sm:$0xff] }
  0x33   : > { %9220 = vmatpush3.msra.mxu0 %v831_v7  ;;  %v3057_v39 = vld [vmem:[%s15214_s19 + $0x8] sm:$0xff]  ;;  %v3079_v44 = vld [vmem:[%s15214_s19 + $0xb8] sm:$0xff]  ;;  %v909_v46 = vld [vmem:[%s15253_s29] sm:$0x3]  ;;  %s15308_s29 = sld [smem:[#allocation151_spill]] }
  0x34   : > { %9221 = vmatprep.subr.mxu0 %v830_v8  ;;  %v3085_v41 = vld [vmem:[%s15214_s19 + $0xe8] sm:$0xff]  ;;  %9250 = vmatprep.subr.msk.mxu1 %vm929_vm0, %v909_v46  ;;  %v3075_v47 = vld [vmem:[%s15214_s19 + $0x98] sm:$0xff]  ;;  %v6294_v5 = vld [vmem:[%s15218_s23 + $0x30] sm:$0xff] }
  0x35   : > { %9222 = vmatpush3.msra.mxu0 %v830_v8  ;;  %v3081_v43 = vld [vmem:[%s15214_s19 + $0xc8] sm:$0xff]  ;;  %9251 = vmatpush3.msk.msra.mxu1 %vm929_vm0, %v909_v46  ;;  %v3103_v49 = vld [vmem:[%s15214_s19 + $0x178] sm:$0xff]  ;;  %v6296_v7 = vld [vmem:[%s15218_s23 + $0x40] sm:$0xff] }
  0x36   : > { %1263 = vperm.xlu0 %10316, %v1251_v9   ;;  %9223 = vmatprep.subr.mxu0 %v829_v10  ;;  %v3077_v45 = vld [vmem:[%s15214_s19 + $0xa8] sm:$0xff]  ;;  %v3099_v51 = vld [vmem:[%s15214_s19 + $0x158] sm:$0xff]  ;;  %v6298_v9 = vld [vmem:[%s15218_s23 + $0x50] sm:$0xff] }
  0x37   : > { %9224 = vmatpush3.msra.mxu0 %v829_v10  ;;  %v3073_v48 = vld [vmem:[%s15214_s19 + $0x88] sm:$0xff]  ;;  %v3095_v55 = vld [vmem:[%s15214_s19 + $0x138] sm:$0xff] }
  0x38   : > { %9225 = vmatprep.subr.mxu0 %v828_v11  ;;  %v3101_v50 = vld [vmem:[%s15214_s19 + $0x168] sm:$0xff]  ;;  %v3091_v59 = vld [vmem:[%s15214_s19 + $0x118] sm:$0xff] }
  0x39   : > { %9226 = vmatpush3.msra.mxu0 %v828_v11  ;;  %v3097_v53 = vld [vmem:[%s15214_s19 + $0x148] sm:$0xff]  ;;  %v6300_v11 = vld [vmem:[%s15218_s23 + $0x60] sm:$0xff]  ;;  %s12104_s28 = scalar_lea.vmem %s15308_s29, %s10569_s25  ;;  %s788_s29 = sand.u32 1, %s10370_s26  }
  0x3a   : > { %1916 = vperm.xlu0 %10316, %v1836_v12   ;;  %9227 = vmatprep.subr.mxu0 %v827_v13  ;;  %v3093_v57 = vld [vmem:[%s15214_s19 + $0x128] sm:$0xff]  ;;  %v6302_v12 = vld [vmem:[%s15218_s23 + $0x70] sm:$0xff]  ;;  %s10271_s0 = smul.u32 960, %s788_s29 }
  0x3b   : > { %9228 = vmatpush3.msra.mxu0 %v827_v13  ;;  %v3089_v61 = vld [vmem:[%s15214_s19 + $0x108] sm:$0xff] }
  0x3c   : > { %9229 = vmatprep.subr.mxu0 %v826_v14  ;;  %s14715_s7 = scalar_lea.vmem [#allocation2], %s10271_s0 }
  0x3d   : > { %9230 = vmatpush3.msra.mxu0 %v826_v14  ;;  %v6304_v14 = vld [vmem:[%s15218_s23 + $0x80] sm:$0xff] }
  0x3e   : > { %1906 = vperm.xlu0 %10316, %v1834_v15   ;;  %9231 = vmatprep.subr.mxu0 %v825_v16 }
  0x3f   : > { %9232 = vmatpush3.msra.mxu0 %v825_v16  ;;  %v6306_v16 = vld [vmem:[%s15218_s23 + $0x90] sm:$0xff] }
  0x40   : > { %9233 = vmatprep.subr.mxu0 %v824_v17 }
  0x41   : > { %9234 = vmatpush3.msra.mxu0 %v824_v17  ;;  %v6308_v17 = vld [vmem:[%s15218_s23 + $0xa0] sm:$0xff] }
  0x42   : > { %1896 = vperm.xlu0 %10316, %v1832_v18   ;;  %9235 = vmatprep.subr.mxu0 %v823_v19 }
  0x43   : > { %9236 = vmatpush3.msra.mxu0 %v823_v19  ;;  %v6310_v19 = vld [vmem:[%s15218_s23 + $0xb0] sm:$0xff] }
  0x44   : > { %9237 = vmatprep.subr.mxu0 %v822_v20 }
  0x45   : > { %9238 = vmatpush3.msra.mxu0 %v822_v20 }
  0x46   : > { %1886 = vperm.xlu0 %10316, %v1830_v21   ;;  %9239 = vmatprep.subr.mxu0 %v821_v22  ;;  %v1255_v21 = vld [vmem:[%s15206_s11 + $0x28] sm:$0xff] }
  0x47   : > { %9240 = vmatpush3.msra.mxu0 %v821_v22  ;;  %v6312_v22 = vld [vmem:[%s15218_s23 + $0xc0] sm:$0xff]  ;;  %1283 = vperm.xlu1 %10317, %v1255_v21   ;;  %v6346_v21 = vld [vmem:[%s15218_s23 + $0x1d0] sm:$0xff] }
  0x48   : > { %9241 = vmatprep.subr.mxu0 %v820_v23 }
  0x49   : > { %9242 = vmatpush3.msra.mxu0 %v820_v23  ;;  %v1254_v23 = vld [vmem:[%s15206_s11 + $0x20] sm:$0xff] }
  0x4a   : > { %1876 = vperm.xlu0 %10316, %v1828_v24   ;;  %9243 = vmatprep.subr.mxu0 %v819_v25  ;;  %v6314_v24 = vld [vmem:[%s15218_s23 + $0xd0] sm:$0xff] }
  0x4b   : > { %9244 = vmatpush3.msra.mxu0 %v819_v25  ;;  %1278 = vperm.xlu1 %10317, %v1254_v23  }
  0x4c   : > { %9245 = vmatprep.subr.mxu0 %v818_v26 }
  0x4d   : > { %9246 = vmatpush3.msra.mxu0 %v818_v26  ;;  %v1252_v26 = vld [vmem:[%s15206_s11 + $0x10] sm:$0xff] }
  0x4e   : > { %1866 = vperm.xlu0 %10316, %v1826_v27   ;;  %9248 = vmatmul.mubr.f32.vlgmr.msra.gmra.mxu0 %v817_v28  ;;  %v6316_v27 = vld [vmem:[%s15218_s23 + $0xe0] sm:$0xff] }
  0x4f   : > { %1268 = vperm.xlu1 %10317, %v1252_v26   ;;  %v3058_v26 = vld [vmem:[%s15214_s19 + $0x10] sm:$0xff] }
  0x52   : > { %1856 = vperm.xlu0 %10316, %v1824_v29   ;;  %v1250_v29 = vld [vmem:[%s15206_s11] sm:$0xff] }
  0x53   : > { %1258 = vperm.xlu1 %10317, %v1250_v29   ;;  %v6350_v29 = vld [vmem:[%s15218_s23 + $0x1f0] sm:$0xff] }
  0x56   : > { %1846 = vperm.xlu0 %10316, %v1822_v30   ;;  %v6318_v30 = vld [vmem:[%s15218_s23 + $0xf0] sm:$0xff] }
  0x5a   : > { %1926 = vperm.xlu0 %10316, %v1838_v31   ;;  %v1835_v31 = vld [vmem:[%s15210_s15 + $0x70] sm:$0xff] }
  0x5b   : > { %1911 = vperm.xlu1 %10317, %v1835_v31   ;;  %v1034_v31 = vld [vmem:[%s10917_s5 + $0x70] sm:$0xff] }
  0x5e   : > { %3181 = vperm.xlu0 %10316, %v3071_v32   ;;  %v6320_v32 = vld [vmem:[%s15218_s23 + $0x100] sm:$0xff] }
  0x62   : > { %3171 = vperm.xlu0 %10316, %v3069_v33  }
  0x66   : > { %3161 = vperm.xlu0 %10316, %v3067_v34   ;;  %v1833_v34 = vld [vmem:[%s15210_s15 + $0x60] sm:$0xff] }
  0x67   : > { %1901 = vperm.xlu1 %10317, %v1833_v34   ;;  %v1033_v34 = vld [vmem:[%s10917_s5 + $0x68] sm:$0xff] }
  0x6a   : > { %3151 = vperm.xlu0 %10316, %v3065_v35   ;;  %v6322_v35 = vld [vmem:[%s15218_s23 + $0x110] sm:$0xff] }
  0x6e   : > { %3141 = vperm.xlu0 %10316, %v3063_v36  }
  0x72   : > { %3131 = vperm.xlu0 %10316, %v3061_v37   ;;  %v1831_v37 = vld [vmem:[%s15210_s15 + $0x50] sm:$0xff] }
  0x73   : > { %1891 = vperm.xlu1 %10317, %v1831_v37   ;;  %v1032_v37 = vld [vmem:[%s10917_s5 + $0x60] sm:$0xff] }
  0x76   : > { %3121 = vperm.xlu0 %10316, %v3059_v38   ;;  %v6324_v38 = vld [vmem:[%s15218_s23 + $0x120] sm:$0xff] }
  0x7a   : > { %3111 = vperm.xlu0 %10316, %v3057_v39   ;;  %v1829_v39 = vld [vmem:[%s15210_s15 + $0x40] sm:$0xff] }
  0x7b   : > { %1881 = vperm.xlu1 %10317, %v1829_v39   ;;  %v1031_v39 = vld [vmem:[%s10917_s5 + $0x58] sm:$0xff] }
  0x7e   : > { %3261 = vperm.xlu0 %10316, %v3087_v40   ;;  %v6326_v40 = vld [vmem:[%s15218_s23 + $0x130] sm:$0xff] }
  0x82   : > { %3251 = vperm.xlu0 %10316, %v3085_v41  }
  0x86   : > { %3241 = vperm.xlu0 %10316, %v3083_v42   ;;  %v1827_v42 = vld [vmem:[%s15210_s15 + $0x30] sm:$0xff] }
  0x87   : > { %1871 = vperm.xlu1 %10317, %v1827_v42   ;;  %v6354_v42 = vld [vmem:[%s15218_s23 + $0x210] sm:$0xff] }
  0x8a   : > { %3231 = vperm.xlu0 %10316, %v3081_v43   ;;  %v6328_v43 = vld [vmem:[%s15218_s23 + $0x140] sm:$0xff] }
  0x8e   : > { %3221 = vperm.xlu0 %10316, %v3079_v44  }
  0x92   : > { %3211 = vperm.xlu0 %10316, %v3077_v45   ;;  %v1825_v45 = vld [vmem:[%s15210_s15 + $0x20] sm:$0xff] }
  0x93   : > { %1861 = vperm.xlu1 %10317, %v1825_v45   ;;  %v3084_v45 = vld [vmem:[%s15214_s19 + $0xe0] sm:$0xff] }
  0x96   : > { %3201 = vperm.xlu0 %10316, %v3075_v47   ;;  %v6330_v47 = vld [vmem:[%s15218_s23 + $0x150] sm:$0xff] }
  0x9a   : > { %3191 = vperm.xlu0 %10316, %v3073_v48  }
  0x9e   : > { %3341 = vperm.xlu0 %10316, %v3103_v49   ;;  %v1823_v49 = vld [vmem:[%s15210_s15 + $0x10] sm:$0xff] }
  0x9f   : > { %1851 = vperm.xlu1 %10317, %v1823_v49   ;;  %v1028_v49 = vld [vmem:[%s10917_s5 + $0x40] sm:$0xff] }
  0xa2   : > { %3331 = vperm.xlu0 %10316, %v3101_v50   ;;  %v6332_v50 = vld [vmem:[%s15218_s23 + $0x160] sm:$0xff] }
  0xa5   : > { %v10689_v52 = vpop.permute.xlu0 %919 }
  0xa6   : > { %3321 = vperm.xlu0 %10316, %v3099_v51  }
  0xa9   : > { %v10694_v54 = vpop.permute.xlu0 %914 }
  0xaa   : > { %3311 = vperm.xlu0 %10316, %v3097_v53   ;;  %v1821_v53 = vld [vmem:[%s15210_s15] sm:$0xff] }
  0xab   : > { %1841 = vperm.xlu1 %10317, %v1821_v53   ;;  %v1027_v53 = vld [vmem:[%s10917_s5 + $0x38] sm:$0xff] }
  0xad   : > { %v10699_v56 = vpop.permute.xlu0 %1273 }
  0xae   : > { %3301 = vperm.xlu0 %10316, %v3095_v55   ;;  %v6334_v55 = vld [vmem:[%s15218_s23 + $0x170] sm:$0xff] }
  0xb1   : > { %v10704_v58 = vpop.permute.xlu0 %1263 }
  0xb2   : > { %3291 = vperm.xlu0 %10316, %v3093_v57  }
  0xb5   : > { %v10709_v60 = vpop.permute.xlu0 %1916 }
  0xb6   : > { %3281 = vperm.xlu0 %10316, %v3091_v59   ;;  %v1837_v59 = vld [vmem:[%s15210_s15 + $0x80] sm:$0xff] }
  0xb7   : > { %1921 = vperm.xlu1 %10317, %v1837_v59   ;;  %v1026_v59 = vld [vmem:[%s10917_s5 + $0x30] sm:$0xff] }
  0xb9   : > { %v10714_v62 = vpop.permute.xlu0 %1906 }
  0xba   : > { %3271 = vperm.xlu0 %10316, %v3089_v61   ;;  %v6336_v61 = vld [vmem:[%s15218_s23 + $0x180] sm:$0xff] }
  0xbd   : > { %v10719_v0 = vpop.permute.xlu0 %1896 }
  0xbe   : > { %6410 = vperm.xlu0 %10316, %v6288_v63   ;;  %v3070_v63 = vld [vmem:[%s15214_s19 + $0x70] sm:$0xff] }
  0xbf   : > { %3176 = vperm.xlu1 %10317, %v3070_v63   ;;  %v1025_v63 = vld [vmem:[%s10917_s5 + $0x28] sm:$0xff] }
  0xc1   : > { %v10724_v2 = vpop.permute.xlu0 %1886 }
  0xc2   : > { %6420 = vperm.xlu0 %10316, %v6290_v1   ;;  %v6338_v1 = vld [vmem:[%s15218_s23 + $0x190] sm:$0xff] }
  0xc5   : > { %v10729_v4 = vpop.permute.xlu0 %1876 }
  0xc6   : > { %6430 = vperm.xlu0 %10316, %v6292_v3  }
  0xc9   : > { %v10734_v6 = vpop.permute.xlu0 %1866 }
  0xca   : > { %6440 = vperm.xlu0 %10316, %v6294_v5   ;;  %v3068_v5 = vld [vmem:[%s15214_s19 + $0x60] sm:$0xff] }
  0xcb   : > { %3166 = vperm.xlu1 %10317, %v3068_v5   ;;  %v6360_v5 = vld [vmem:[%s15218_s23 + $0x240] sm:$0xff] }
  0xcd   : > { %v10739_v8 = vpop.permute.xlu0 %1856 }
  0xce   : > { %6450 = vperm.xlu0 %10316, %v6296_v7   ;;  %v6340_v7 = vld [vmem:[%s15218_s23 + $0x1a0] sm:$0xff] }
  0xd1   : > { %v10744_v10 = vpop.permute.xlu0 %1846 }
  0xd2   : > { %6460 = vperm.xlu0 %10316, %v6298_v9  }
  0xd5   : > { %v10752_v13 = vpop.permute.xlu0 %1926 }
  0xd6   : > { %6470 = vperm.xlu0 %10316, %v6300_v11   ;;  %v3066_v11 = vld [vmem:[%s15214_s19 + $0x50] sm:$0xff] }
  0xd7   : > { %3156 = vperm.xlu1 %10317, %v3066_v11   ;;  %v3078_v11 = vld [vmem:[%s15214_s19 + $0xb0] sm:$0xff] }
  0xd9   : > { %v10757_v15 = vpop.permute.xlu0 %3181 }
  0xda   : > { %6480 = vperm.xlu0 %10316, %v6302_v12   ;;  %v6342_v12 = vld [vmem:[%s15218_s23 + $0x1b0] sm:$0xff] }
  0xdd   : > { %v10765_v18 = vpop.permute.xlu0 %3171 }
  0xde   : > { %6490 = vperm.xlu0 %10316, %v6304_v14   ;;  %v3064_v14 = vld [vmem:[%s15214_s19 + $0x40] sm:$0xff] }
  0xdf   : > { %3146 = vperm.xlu1 %10317, %v3064_v14   ;;  %v6362_v14 = vld [vmem:[%s15218_s23 + $0x250] sm:$0xff] }
  0xe1   : > { %v10770_v20 = vpop.permute.xlu0 %3161 }
  0xe2   : > { %6500 = vperm.xlu0 %10316, %v6306_v16   ;;  %v6344_v16 = vld [vmem:[%s15218_s23 + $0x1c0] sm:$0xff] }
  0xe5   : > { %v10784_v25 = vpop.permute.xlu0 %3151 }
  0xe6   : > { %6510 = vperm.xlu0 %10316, %v6308_v17  }
  0xe9   : > { %v10792_v28 = vpop.permute.xlu0 %3141 }
  0xea   : > { %6520 = vperm.xlu0 %10316, %v6310_v19   ;;  %v3062_v19 = vld [vmem:[%s15214_s19 + $0x30] sm:$0xff] }
  0xeb   : > { %3136 = vperm.xlu1 %10317, %v3062_v19   ;;  %v1022_v19 = vld [vmem:[%s10917_s5 + $0x10] sm:$0xff] }
  0xed   : > { %v10806_v33 = vpop.permute.xlu0 %3131 }
  0xee   : > { %6530 = vperm.xlu0 %10316, %v6312_v22   ;;  %v3060_v22 = vld [vmem:[%s15214_s19 + $0x20] sm:$0xff] }
  0xef   : > { %3126 = vperm.xlu1 %10317, %v3060_v22   ;;  %v6364_v22 = vld [vmem:[%s15218_s23 + $0x260] sm:$0xff] }
  0xf1   : > { %v10814_v36 = vpop.permute.xlu0 %3121 }
  0xf2   : > { %6540 = vperm.xlu0 %10316, %v6314_v24   ;;  %v6348_v24 = vld [vmem:[%s15218_s23 + $0x1e0] sm:$0xff] }
  0xf3   : > { %3116 = vperm.xlu1 %10317, %v3058_v26   ;;  %v1020_v26 = vld [vmem:[%s10917_s5] sm:$0xff] }
  0xf5   : > { %v10828_v41 = vpop.permute.xlu0 %3111 }
  0xf6   : > { %6550 = vperm.xlu0 %10316, %v6316_v27   ;;  %v1035_v27 = vld [vmem:[%s10917_s5 + $0x78] sm:$0xff] }
  0xf7   : > { %9255 = vmatprep.subr.mxu1 %v1035_v27 }
  0xf9   : > { %v10836_v44 = vpop.permute.xlu0 %3261 }
  0xfa   : > { %6560 = vperm.xlu0 %10316, %v6318_v30  }
  0xfd   : > { %v10850_v51 = vpop.permute.xlu0 %3251 }
  0xfe   : > { %6570 = vperm.xlu0 %10316, %v6320_v32   ;;  %v3056_v32 = vld [vmem:[%s15214_s19] sm:$0xff] }
  0xff   : > { %3106 = vperm.xlu1 %10317, %v3056_v32   ;;  %v6366_v32 = vld [vmem:[%s15218_s23 + $0x270] sm:$0xff] }
 0x101   : > { %v10858_v57 = vpop.permute.xlu0 %3241 }
 0x102   : > { %6580 = vperm.xlu0 %10316, %v6322_v35   ;;  %v6352_v35 = vld [vmem:[%s15218_s23 + $0x200] sm:$0xff] }
 0x105   : > { %v10872_v3 = vpop.permute.xlu0 %3231 }
 0x106   : > { %6590 = vperm.xlu0 %10316, %v6324_v38   ;;  %15254 = vst [vmem:[#allocation11_spill] sm:$0xff] %v10872_v3  ;;  %v3086_v38 = vld [vmem:[%s15214_s19 + $0xf0] sm:$0xff] }
 0x107   : > { %3256 = vperm.xlu1 %10317, %v3086_v38   ;;  %v1016_v38 = vld [vmem:[%s15265_s9 + $0x10] sm:$0xff] }
 0x109   : > { %v10880_v9 = vpop.permute.xlu0 %3221 }
 0x10a   : > { %6600 = vperm.xlu0 %10316, %v6326_v40   ;;  %15255 = vst [vmem:[#allocation12_spill] sm:$0xff] %v10880_v9 }
 0x10b   : > { %3246 = vperm.xlu1 %10317, %v3084_v45   ;;  %v3102_v45 = vld [vmem:[%s15214_s19 + $0x170] sm:$0xff] }
 0x10d   : > { %v10894_v17 = vpop.permute.xlu0 %3211 }
 0x10e   : > { %6610 = vperm.xlu0 %10316, %v6328_v43   ;;  %v9249_v46 = vpop.f32.mrf.mxu0  ;;  %15256 = vst [vmem:[#allocation13_spill] sm:$0xff] %v10894_v17  ;;  %v1030_v43 = vld [vmem:[%s10917_s5 + $0x50] sm:$0xff] }
 0x110   : > { %v900_v48 = vpop.f32.mrf.mxu0 }
 0x111   : > { %9252 = vmatprep.mubr.msk.f32.mxu1 %vm922_vm1, %v900_v48  ;;  %v10905_v23 = vpop.permute.xlu0 %3201 }
 0x112   : > { %6620 = vperm.xlu0 %10316, %v6330_v47   ;;  %9253 = vmatmul.mubr.msk.f32.vlgmr.msra.gmra.mxu1 %vm922_vm1, %v9249_v46  ;;  %15257 = vst [vmem:[#allocation14_spill] sm:$0xff] %v10905_v23  ;;  %v1029_v46 = vld [vmem:[%s10917_s5 + $0x48] sm:$0xff]  ;;  %v6356_v47 = vld [vmem:[%s15218_s23 + $0x220] sm:$0xff] }
 0x113   : > { %9256 = vmatpush3.msra.mxu1 %v1035_v27 }
 0x114   : > { %9257 = vmatprep.subr.mxu1 %v1034_v31 }
 0x115   : > { %v10923_v30 = vpop.permute.xlu0 %3191  ;;  %9258 = vmatpush3.msra.mxu1 %v1034_v31  ;;  %v1014_v31 = vld [vmem:[%s15265_s9] sm:$0xff] }
 0x116   : > { %6630 = vperm.xlu0 %10316, %v6332_v50   ;;  %15259 = vst [vmem:[#allocation15_spill] sm:$0xff] %v10923_v30  ;;  %9259 = vmatprep.subr.mxu1 %v1033_v34  ;;  %v3082_v50 = vld [vmem:[%s15214_s19 + $0xd0] sm:$0xff] }
 0x117   : > { %9260 = vmatpush3.msra.mxu1 %v1033_v34  ;;  %3236 = vperm.xlu1 %10317, %v3082_v50   ;;  %v1015_v34 = vld [vmem:[%s15265_s9 + $0x8] sm:$0xff] }
 0x118   : > { %9261 = vmatprep.subr.mxu1 %v1032_v37  ;;  %9287 = vmatprep.mubr.f32.mxu1 %v1014_v31 }
 0x119   : > { %v10938_v40 = vpop.permute.xlu0 %3341  ;;  %9262 = vmatpush3.msra.mxu1 %v1032_v37  ;;  %v3072_v37 = vld [vmem:[%s15214_s19 + $0x80] sm:$0xff] }
 0x11a   : > { %6640 = vperm.xlu0 %10316, %v6334_v55   ;;  %15260 = vst [vmem:[#allocation16_spill] sm:$0xff] %v10938_v40  ;;  %9263 = vmatprep.subr.mxu1 %v1031_v39  ;;  %v6358_v55 = vld [vmem:[%s15218_s23 + $0x230] sm:$0xff]  ;;  %v1450_v40 = vld [vmem:[%s11416_s1 + $0x58] sm:$0xff] }
 0x11b   : > { %9264 = vmatpush3.msra.mxu1 %v1031_v39  ;;  %v1017_v39 = vld [vmem:[%s15265_s9 + $0x18] sm:$0xff] }
 0x11c   : > { %9265 = vmatprep.subr.mxu1 %v1030_v43 }
 0x11d   : > { %9266 = vmatpush3.msra.mxu1 %v1030_v43  ;;  %v10951_v48 = vpop.permute.xlu0 %3331 }
 0x11e   : > { %6650 = vperm.xlu0 %10316, %v6336_v61   ;;  %15261 = vst [vmem:[#allocation17_spill] sm:$0xff] %v10951_v48  ;;  %9267 = vmatprep.subr.mxu1 %v1029_v46  ;;  %v3080_v61 = vld [vmem:[%s15214_s19 + $0xc0] sm:$0xff] }
 0x11f   : > { %9268 = vmatpush3.msra.mxu1 %v1029_v46  ;;  %3226 = vperm.xlu1 %10317, %v3080_v61   ;;  %v1018_v46 = vld [vmem:[%s15265_s9 + $0x20] sm:$0xff]  ;;  %v11045_v61 = vpop.permute.xlu1 %1283 }
 0x120   : > { %9269 = vmatprep.subr.mxu1 %v1028_v49 }
 0x121   : > { %9270 = vmatpush3.msra.mxu1 %v1028_v49  ;;  %v6370_v49 = vld [vmem:[%s15218_s23 + $0x290] sm:$0xff] }
 0x122   : > { %6660 = vperm.xlu0 %10316, %v6338_v1   ;;  %9271 = vmatprep.subr.mxu1 %v1027_v53  ;;  %v10966_v1 = vpop.permute.xlu0 %3321 }
 0x123   : > { %9272 = vmatpush3.msra.mxu1 %v1027_v53  ;;  %15262 = vst [vmem:[#allocation18_spill] sm:$0xff] %v10966_v1  ;;  %3216 = vperm.xlu1 %10317, %v3078_v11   ;;  %v3100_v53 = vld [vmem:[%s15214_s19 + $0x160] sm:$0xff]  ;;  %v11055_v11 = vpop.permute.xlu1 %1278 }
 0x124   : > { %9273 = vmatprep.subr.mxu1 %v1026_v59 }
 0x125   : > { %9274 = vmatpush3.msra.mxu1 %v1026_v59  ;;  %v3098_v59 = vld [vmem:[%s15214_s19 + $0x150] sm:$0xff] }
 0x126   : > { %6670 = vperm.xlu0 %10316, %v6340_v7   ;;  %9275 = vmatprep.subr.mxu1 %v1025_v63  ;;  %v1024_v7 = vld [vmem:[%s10917_s5 + $0x20] sm:$0xff] }
 0x127   : > { %9276 = vmatpush3.msra.mxu1 %v1025_v63  ;;  %v6374_v63 = vld [vmem:[%s15218_s23 + $0x2b0] sm:$0xff] }
 0x128   : > { %9277 = vmatprep.subr.mxu1 %v1024_v7 }
 0x129   : > { %9278 = vmatpush3.msra.mxu1 %v1024_v7  ;;  %v3096_v7 = vld [vmem:[%s15214_s19 + $0x140] sm:$0xff] }
 0x12a   : > { %6680 = vperm.xlu0 %10316, %v6342_v12   ;;  %v1023_v12 = vld [vmem:[%s10917_s5 + $0x18] sm:$0xff] }
 0x12b   : > { %9279 = vmatprep.subr.mxu1 %v1023_v12 }
 0x12c   : > { %9280 = vmatpush3.msra.mxu1 %v1023_v12  ;;  %v6376_v12 = vld [vmem:[%s15218_s23 + $0x2c0] sm:$0xff] }
 0x12d   : > { %9281 = vmatprep.subr.mxu1 %v1022_v19 }
 0x12e   : > { %6690 = vperm.xlu0 %10316, %v6344_v16   ;;  %v10979_v16 = vpop.permute.xlu0 %3311  ;;  %9282 = vmatpush3.msra.mxu1 %v1022_v19 }
 0x12f   : > { %15263 = vst [vmem:[#allocation19_spill] sm:$0xff] %v10979_v16 }
 0x132   : > { %6700 = vperm.xlu0 %10316, %v6346_v21   ;;  %v3076_v21 = vld [vmem:[%s15214_s19 + $0xa0] sm:$0xff]  ;;  %v10990_v27 = vpop.permute.xlu0 %3301 }
 0x133   : > { %3206 = vperm.xlu1 %10317, %v3076_v21   ;;  %15264 = vst [vmem:[#allocation20_spill] sm:$0xff] %v10990_v27  ;;  %v11065_v21 = vpop.permute.xlu1 %1268 }
 0x136   : > { %6710 = vperm.xlu0 %10316, %v6348_v24   ;;  %v1021_v24 = vld [vmem:[%s10917_s5 + $0x8] sm:$0xff]  ;;  %v11020_v43 = vpop.permute.xlu0 %3291 }
 0x137   : > { %9283 = vmatprep.subr.mxu1 %v1021_v24  ;;  %15267 = vst [vmem:[#allocation21_spill] sm:$0xff] %v11020_v43 }
 0x138   : > { %9284 = vmatpush3.msra.mxu1 %v1021_v24  ;;  %v3092_v24 = vld [vmem:[%s15214_s19 + $0x120] sm:$0xff] }
 0x139   : > { %9285 = vmatprep.subr.mxu1 %v1020_v26 }
 0x13a   : > { %6720 = vperm.xlu0 %10316, %v6350_v29   ;;  %v3074_v29 = vld [vmem:[%s15214_s19 + $0x90] sm:$0xff]  ;;  %9286 = vmatpush3.msra.mxu1 %v1020_v26  ;;  %v11034_v50 = vpop.permute.xlu0 %3281  ;;  %v11073_v26 = vpop.permute.xlu1 %1258 }
 0x13b   : > { %3196 = vperm.xlu1 %10317, %v3074_v29   ;;  %9288 = vmatmul.mubr.f32.vlgmr.msra.gmra.mxu1 %v1015_v34  ;;  %15268 = vst [vmem:[#allocation22_spill] sm:$0xff] %v11034_v50  ;;  %v6380_v29 = vld [vmem:[%s15218_s23 + $0x2e0] sm:$0xff] }
 0x13c   : > { %9290 = vmatprep.mubr.f32.mxu1 %v1016_v38 }
 0x13e   : > { %6730 = vperm.xlu0 %10316, %v6352_v35   ;;  %v1008_v35 = vld [vmem:[%s15266_s30] sm:$0xff]  ;;  %v11083_v34 = vpop.permute.xlu1 %1911 }
 0x13f   : > { %9300 = vmatprep.mubr.msk.f32.mxu0 %vm1131_vm2, %v1008_v35  ;;  %3186 = vperm.xlu1 %10317, %v3072_v37   ;;  %v6382_v35 = vld [vmem:[%s15218_s23 + $0x2f0] sm:$0xff]  ;;  %v3088_v37 = vld [vmem:[%s15214_s19 + $0x100] sm:$0xff] }
 0x140   : > { %9291 = vmatmul.mubr.f32.gmra.mxu1 %v1017_v39 }
 0x141   : > { %9293 = vmatprep.mubr.f32.mxu1 %v1018_v46 }
 0x142   : > { %6740 = vperm.xlu0 %10316, %v6354_v42   ;;  %v6368_v42 = vld [vmem:[%s15218_s23 + $0x280] sm:$0xff]  ;;  %v11093_v39 = vpop.permute.xlu1 %1901 }
 0x143   : > { %3336 = vperm.xlu1 %10317, %v3102_v45   ;;  %v6289_v45 = vld [vmem:[%s15218_s23 + $0x8] sm:$0xff] }
 0x146   : > { %6750 = vperm.xlu0 %10316, %v6356_v47   ;;  %v1019_v47 = vld [vmem:[%s15265_s9 + $0x28] sm:$0xff]  ;;  %v11101_v46 = vpop.permute.xlu1 %1891  ;;  %s8169_s9 = sshll.u32 %s14715_s7, 4  ;;  %s15147_s9 = int_to_ptr.vmem [resolvable:$true] %s8169_s9 }
 0x147   : > { %9294 = vmatmul.mubr.f32.gmra.mxu1 %v1019_v47  ;;  %3326 = vperm.xlu1 %10317, %v3100_v53   ;;  %v6386_v47 = vld [vmem:[%s15218_s23 + $0x310] sm:$0xff]  ;;  %v6291_v53 = vld [vmem:[%s15218_s23 + $0x18] sm:$0xff]  ;;  %s10318_s5 = scalar_lea.vmem %s15147_s9, 15360 }
 0x148   : > { %p10319_p11 = scmp.ne.s32.totalorder %s15147_s9, %s10318_s5 }
 0x14a   : > { %6760 = vperm.xlu0 %10316, %v6358_v55   ;;  %v6372_v55 = vld [vmem:[%s15218_s23 + $0x2a0] sm:$0xff]  ;;  %p10320_p12 = pnand %p10319_p11, %p10548_p5 }
 0x14b   : > { %3316 = vperm.xlu1 %10317, %v3098_v59   ;;  %v6388_v59 = vld [vmem:[%s15218_s23 + $0x320] sm:$0xff] }
 0x14c   : > { %p10321_p13 = pneg %p10320_p12 }
 0x14e   : > { %6770 = vperm.xlu0 %10316, %v6360_v5   ;;  %v11050_v5 = vpop.permute.xlu0 %3271 }
 0x14f   : > { %15269 = vst [vmem:[#allocation23_spill] sm:$0xff] %v11050_v5  ;;  %3306 = vperm.xlu1 %10317, %v3096_v7  }
 0x152   : > { %6780 = vperm.xlu0 %10316, %v6362_v14   ;;  %v3094_v14 = vld [vmem:[%s15214_s19 + $0x130] sm:$0xff]  ;;  %v11063_v19 = vpop.permute.xlu0 %6410 }
 0x153   : > { %15270 = vst [vmem:[#allocation24_spill] sm:$0xff] %v11063_v19  ;;  %3296 = vperm.xlu1 %10317, %v3094_v14   ;;  %v6390_v14 = vld [vmem:[%s15218_s23 + $0x330] sm:$0xff] }
 0x156   : > { %6790 = vperm.xlu0 %10316, %v6364_v22   ;;  %v6378_v22 = vld [vmem:[%s15218_s23 + $0x2d0] sm:$0xff]  ;;  %v11078_v31 = vpop.permute.xlu0 %6420 }
 0x157   : > { %3286 = vperm.xlu1 %10317, %v3092_v24   ;;  %15271 = vst [vmem:[#allocation25_spill] sm:$0xff] %v11078_v31 }
 0x15a   : > { %6800 = vperm.xlu0 %10316, %v6366_v32   ;;  %v3090_v32 = vld [vmem:[%s15214_s19 + $0x110] sm:$0xff]  ;;  %v11091_v38 = vpop.permute.xlu0 %6430 }
 0x15b   : > { %3276 = vperm.xlu1 %10317, %v3090_v32   ;;  %15272 = vst [vmem:[#allocation26_spill] sm:$0xff] %v11091_v38 }
 0x15e   : > { %6810 = vperm.xlu0 %10316, %v6368_v42   ;;  %v6384_v42 = vld [vmem:[%s15218_s23 + $0x300] sm:$0xff] }
 0x15f   : > { %3266 = vperm.xlu1 %10317, %v3088_v37  }
 0x162   : > { %6820 = vperm.xlu0 %10316, %v6370_v49   ;;  %v11106_v49 = vpop.permute.xlu0 %6440 }
 0x163   : > { %6415 = vperm.xlu1 %10317, %v6289_v45   ;;  %15273 = vst [vmem:[#allocation27_spill] sm:$0xff] %v11106_v49  ;;  %v6299_v45 = vld [vmem:[%s15218_s23 + $0x58] sm:$0xff] }
 0x166   : > { %6830 = vperm.xlu0 %10316, %v6372_v55   ;;  %v11111_v55 = vpop.permute.xlu1 %1881  ;;  %v11119_v7 = vpop.permute.xlu0 %6450 }
 0x167   : > { %6425 = vperm.xlu1 %10317, %v6291_v53   ;;  %15274 = vst [vmem:[#allocation28_spill] sm:$0xff] %v11119_v7  ;;  %v6396_v53 = vld [vmem:[%s15218_s23 + $0x360] sm:$0xff] }
 0x16a   : > { %6840 = vperm.xlu0 %10316, %v6374_v63   ;;  %v6293_v63 = vld [vmem:[%s15218_s23 + $0x28] sm:$0xff]  ;;  %v11134_v32 = vpop.permute.xlu0 %6460 }
 0x16b   : > { %6435 = vperm.xlu1 %10317, %v6293_v63   ;;  %15275 = vst [vmem:[#allocation29_spill] sm:$0xff] %v11134_v32  ;;  %v6301_v63 = vld [vmem:[%s15218_s23 + $0x68] sm:$0xff] }
 0x16e   : > { %6850 = vperm.xlu0 %10316, %v6376_v12   ;;  %v11121_v12 = vpop.permute.xlu1 %1871 }
 0x172   : > { %6860 = vperm.xlu0 %10316, %v6378_v22   ;;  %v6295_v22 = vld [vmem:[%s15218_s23 + $0x38] sm:$0xff]  ;;  %v11129_v24 = vpop.permute.xlu1 %1861 }
 0x173   : > { %6445 = vperm.xlu1 %10317, %v6295_v22  }
 0x176   : > { %6870 = vperm.xlu0 %10316, %v6380_v29   ;;  %v6392_v29 = vld [vmem:[%s15218_s23 + $0x340] sm:$0xff]  ;;  %v11139_v37 = vpop.permute.xlu1 %1851 }
 0x17a   : > { %6880 = vperm.xlu0 %10316, %v6382_v35   ;;  %v6297_v35 = vld [vmem:[%s15218_s23 + $0x48] sm:$0xff] }
 0x17b   : > { %6455 = vperm.xlu1 %10317, %v6297_v35   ;;  %v6303_v35 = vld [vmem:[%s15218_s23 + $0x78] sm:$0xff] }
 0x17e   : > { %6890 = vperm.xlu0 %10316, %v6384_v42   ;;  %v6394_v42 = vld [vmem:[%s15218_s23 + $0x350] sm:$0xff] }
 0x17f   : > { %6465 = vperm.xlu1 %10317, %v6299_v45   ;;  %v6305_v45 = vld [vmem:[%s15218_s23 + $0x88] sm:$0xff] }
 0x182   : > { %6900 = vperm.xlu0 %10316, %v6386_v47   ;;  %v11147_v47 = vpop.permute.xlu0 %6470 }
 0x183   : > { %15276 = vst [vmem:[#allocation30_spill] sm:$0xff] %v11147_v47  ;;  %6475 = vperm.xlu1 %10317, %v6301_v63   ;;  %v6402_v63 = vld [vmem:[%s15218_s23 + $0x390] sm:$0xff] }
 0x186   : > { %6910 = vperm.xlu0 %10316, %v6388_v59   ;;  %v11152_v59 = vpop.permute.xlu1 %1841  ;;  %v11160_v22 = vpop.permute.xlu0 %6480 }
 0x187   : > { %15277 = vst [vmem:[#allocation31_spill] sm:$0xff] %v11160_v22  ;;  %6485 = vperm.xlu1 %10317, %v6303_v35   ;;  %v6404_v35 = vld [vmem:[%s15218_s23 + $0x3a0] sm:$0xff] }
 0x18a   : > { %6920 = vperm.xlu0 %10316, %v6390_v14   ;;  %v6398_v14 = vld [vmem:[%s15218_s23 + $0x370] sm:$0xff] }
 0x18b   : > { %6495 = vperm.xlu1 %10317, %v6305_v45   ;;  %v6406_v45 = vld [vmem:[%s15218_s23 + $0x3b0] sm:$0xff] }
 0x18e   : > { %6930 = vperm.xlu0 %10316, %v6392_v29   ;;  %v11162_v29 = vpop.permute.xlu1 %1921 }
 0x192   : > { %6940 = vperm.xlu0 %10316, %v6394_v42   ;;  %v6400_v42 = vld [vmem:[%s15218_s23 + $0x380] sm:$0xff]  ;;  %v11178_v22 = vpop.permute.xlu1 %3176 }
 0x196   : > { %6950 = vperm.xlu0 %10316, %v6396_v53   ;;  %v11173_v53 = vpop.permute.xlu0 %6490 }
 0x197   : > { %15278 = vst [vmem:[#allocation32_spill] sm:$0xff] %v11173_v53  ;;  %v6309_v53 = vld [vmem:[%s15218_s23 + $0xa8] sm:$0xff] }
 0x19a   : > { %6960 = vperm.xlu0 %10316, %v6398_v14   ;;  %v6307_v14 = vld [vmem:[%s15218_s23 + $0x98] sm:$0xff]  ;;  %v11186_v47 = vpop.permute.xlu0 %6500 }
 0x19b   : > { %6505 = vperm.xlu1 %10317, %v6307_v14   ;;  %15279 = vst [vmem:[#allocation33_spill] sm:$0xff] %v11186_v47  ;;  %v6313_v47 = vld [vmem:[%s15218_s23 + $0xc8] sm:$0xff] }
 0x19e   : > { %6970 = vperm.xlu0 %10316, %v6400_v42   ;;  %v11188_v42 = vpop.permute.xlu1 %3166  ;;  %v11199_v32 = vpop.permute.xlu0 %6510 }
 0x19f   : > { %6515 = vperm.xlu1 %10317, %v6309_v53   ;;  %15280 = vst [vmem:[#allocation34_spill] sm:$0xff] %v11199_v32  ;;  %v6317_v32 = vld [vmem:[%s15218_s23 + $0xe8] sm:$0xff] }
 0x1a2   : > { %6980 = vperm.xlu0 %10316, %v6402_v63   ;;  %v6311_v63 = vld [vmem:[%s15218_s23 + $0xb8] sm:$0xff]  ;;  %v11201_v14 = vpop.permute.xlu1 %3156 }
 0x1a3   : > { %6525 = vperm.xlu1 %10317, %v6311_v63   ;;  %v6319_v63 = vld [vmem:[%s15218_s23 + $0xf8] sm:$0xff] }
 0x1a6   : > { %6990 = vperm.xlu0 %10316, %v6404_v35   ;;  %v6315_v35 = vld [vmem:[%s15218_s23 + $0xd8] sm:$0xff]  ;;  %v11209_v53 = vpop.permute.xlu1 %3146 }
 0x1a7   : > { %6535 = vperm.xlu1 %10317, %v6313_v47   ;;  %v6321_v47 = vld [vmem:[%s15218_s23 + $0x108] sm:$0xff] }
 0x1aa   : > { %7000 = vperm.xlu0 %10316, %v6406_v45   ;;  %v11214_v45 = vpop.permute.xlu1 %3136 }
 0x1ab   : > { %6545 = vperm.xlu1 %10317, %v6315_v35   ;;  %v6323_v35 = vld [vmem:[%s15218_s23 + $0x118] sm:$0xff] }
 0x1ae   : > { %v11222_v7 = vpop.permute.xlu1 %3126 }
 0x1af   : > { %6555 = vperm.xlu1 %10317, %v6317_v32   ;;  %v6325_v32 = vld [vmem:[%s15218_s23 + $0x128] sm:$0xff] }
 0x1b2   : > { %v11227_v49 = vpop.permute.xlu1 %3116 }
 0x1b3   : > { %6565 = vperm.xlu1 %10317, %v6319_v63   ;;  %v6327_v63 = vld [vmem:[%s15218_s23 + $0x138] sm:$0xff] }
 0x1b6   : > { %v11235_v38 = vpop.permute.xlu1 %3106 }
 0x1b7   : > { %6575 = vperm.xlu1 %10317, %v6321_v47   ;;  %v6329_v47 = vld [vmem:[%s15218_s23 + $0x148] sm:$0xff] }
 0x1ba   : > { %v11240_v31 = vpop.permute.xlu1 %3256 }
 0x1bb   : > { %6585 = vperm.xlu1 %10317, %v6323_v35   ;;  %v6331_v35 = vld [vmem:[%s15218_s23 + $0x158] sm:$0xff] }
 0x1be   : > { %v11249_v50 = vpop.permute.xlu1 %3246 }
 0x1bf   : > { %6595 = vperm.xlu1 %10317, %v6325_v32  }
 0x1c3   : > { %6605 = vperm.xlu1 %10317, %v6327_v63   ;;  %v6333_v63 = vld [vmem:[%s15218_s23 + $0x168] sm:$0xff] }
 0x1c7   : > { %6615 = vperm.xlu1 %10317, %v6329_v47   ;;  %v1009_v47 = vld [vmem:[%s15266_s30 + $0x8] sm:$0xff] }
 0x1cb   : > { %6625 = vperm.xlu1 %10317, %v6331_v35   ;;  %v1012_v35 = vld [vmem:[%s15266_s30 + $0x20] sm:$0xff] }
 0x1cf   : > { %6635 = vperm.xlu1 %10317, %v6333_v63   ;;  %v6339_v63 = vld [vmem:[%s15218_s23 + $0x198] sm:$0xff] }
 0x1d2   : > { %v9254_v19 = vpop.f32.mrf.mxu1 }
 0x1d3   : > { %v1005_v32 = vadd.f32 %v9254_v19, %v10689_v52  ;;  %v1010_v52 = vld [vmem:[%s15266_s30 + $0x10] sm:$0xff]  ;;  %v6335_v19 = vld [vmem:[%s15218_s23 + $0x178] sm:$0xff] }
 0x1d4   : > { %v999_v5 = vpop.f32.mrf.mxu1  ;;  %6645 = vperm.xlu1 %10317, %v6335_v19  }
 0x1d5   : > { %v1000_v43 = vadd.f32 %v999_v5, %v10694_v54  ;;  %9296 = vmatprep.subr.msk.mxu0 %vm1150_vm3, %v1005_v32  ;;  %v1011_v54 = vld [vmem:[%s15266_s30 + $0x18] sm:$0xff]  ;;  %v11268_v5 = vpop.permute.xlu1 %3236 }
 0x1d6   : > { %9297 = vmatpush3.msk.msra.mxu0 %vm1150_vm3, %v1005_v32  ;;  %v6337_v32 = vld [vmem:[%s15218_s23 + $0x188] sm:$0xff] }
 0x1d7   : > { %9298 = vmatprep.subr.mxu0 %v1000_v43 }
 0x1d8   : > { %9299 = vmatpush3.msra.mxu0 %v1000_v43  ;;  %v1013_v43 = vld [vmem:[%s15266_s30 + $0x28] sm:$0xff]  ;;  %6655 = vperm.xlu1 %10317, %v6337_v32  }
 0x1d9   : > { %9301 = vmatmul.mubr.msk.f32.vlgmr.msra.gmra.mxu0 %vm1131_vm2, %v1009_v47  ;;  %v11284_v47 = vpop.permute.xlu1 %3226 }
 0x1da   : > { %9303 = vmatprep.mubr.msk.f32.mxu0 %vm1131_vm2, %v1010_v52  ;;  %15281 = vst [vmem:[#allocation35_spill] sm:$0xff] %v11284_v47  ;;  %v6341_v52 = vld [vmem:[%s15218_s23 + $0x1a8] sm:$0xff] }
 0x1dc   : > { %6665 = vperm.xlu1 %10317, %v6339_v63  }
 0x1dd   : > { %9304 = vmatmul.mubr.msk.f32.gmra.mxu0 %vm1131_vm2, %v1011_v54  ;;  %v11290_v19 = vpop.permute.xlu1 %3216  ;;  %v6343_v54 = vld [vmem:[%s15218_s23 + $0x1b8] sm:$0xff] }
 0x1de   : > { %9306 = vmatprep.mubr.msk.f32.mxu0 %vm1131_vm2, %v1012_v35  ;;  %15282 = vst [vmem:[#allocation36_spill] sm:$0xff] %v11290_v19  ;;  %v6345_v35 = vld [vmem:[%s15218_s23 + $0x1c8] sm:$0xff] }
 0x1e0   : > { %6675 = vperm.xlu1 %10317, %v6341_v52   ;;  %v6349_v52 = vld [vmem:[%s15218_s23 + $0x1e8] sm:$0xff] }
 0x1e1   : > { %9307 = vmatmul.mubr.msk.f32.gmra.mxu0 %vm1131_vm2, %v1013_v43  ;;  %v11298_v32 = vpop.permute.xlu1 %3206  ;;  %v6347_v43 = vld [vmem:[%s15218_s23 + $0x1d8] sm:$0xff] }
 0x1e2   : > { %15283 = vst [vmem:[#allocation37_spill] sm:$0xff] %v11298_v32 }
 0x1e4   : > { %6685 = vperm.xlu1 %10317, %v6343_v54   ;;  %v6351_v54 = vld [vmem:[%s15218_s23 + $0x1f8] sm:$0xff] }
 0x1e5   : > { %v11303_v63 = vpop.permute.xlu1 %3196 }
 0x1e6   : > { %15284 = vst [vmem:[#allocation38_spill] sm:$0xff] %v11303_v63 }
 0x1e8   : > { %6695 = vperm.xlu1 %10317, %v6345_v35   ;;  %v6353_v35 = vld [vmem:[%s15218_s23 + $0x208] sm:$0xff] }
 0x1e9   : > { %v11311_v27 = vpop.permute.xlu1 %3186 }
 0x1ea   : > { %15285 = vst [vmem:[#allocation39_spill] sm:$0xff] %v11311_v27 }
 0x1ec   : > { %6705 = vperm.xlu1 %10317, %v6347_v43   ;;  %v6355_v43 = vld [vmem:[%s15218_s23 + $0x218] sm:$0xff] }
 0x1ed   : > { %v11316_v16 = vpop.permute.xlu1 %3336 }
 0x1ee   : > { %15286 = vst [vmem:[#allocation40_spill] sm:$0xff] %v11316_v16 }
 0x1f0   : > { %6715 = vperm.xlu1 %10317, %v6349_v52   ;;  %v6357_v52 = vld [vmem:[%s15218_s23 + $0x228] sm:$0xff] }
 0x1f1   : > { %v11324_v1 = vpop.permute.xlu1 %3326 }
 0x1f2   : > { %15287 = vst [vmem:[#allocation41_spill] sm:$0xff] %v11324_v1 }
 0x1f4   : > { %6725 = vperm.xlu1 %10317, %v6351_v54   ;;  %v6359_v54 = vld [vmem:[%s15218_s23 + $0x238] sm:$0xff] }
 0x1f5   : > { %v11329_v48 = vpop.permute.xlu1 %3316 }
 0x1f6   : > { %15288 = vst [vmem:[#allocation42_spill] sm:$0xff] %v11329_v48  ;;  %v1249_v48 = vld [vmem:[%s15292_s10] sm:$0xf] }
 0x1f7   : > { %9309 = vmatprep.subr.msk.mxu1 %vm1150_vm3, %v1249_v48 }
 0x1f8   : > { %6735 = vperm.xlu1 %10317, %v6353_v35   ;;  %v6361_v35 = vld [vmem:[%s15218_s23 + $0x248] sm:$0xff]  ;;  %9310 = vmatpush3.msk.msra.mxu1 %vm1150_vm3, %v1249_v48 }
 0x1f9   : > { %v11337_v16 = vpop.permute.xlu1 %3306  ;;  %v6377_v48 = vld [vmem:[%s15218_s23 + $0x2c8] sm:$0xff] }
 0x1fa   : > { %15289 = vst [vmem:[#allocation43_spill] sm:$0xff] %v11337_v16 }
 0x1fc   : > { %6745 = vperm.xlu1 %10317, %v6355_v43   ;;  %v6363_v43 = vld [vmem:[%s15218_s23 + $0x258] sm:$0xff] }
 0x1fd   : > { %v11342_v1 = vpop.permute.xlu1 %3296 }
 0x1fe   : > { %15290 = vst [vmem:[#allocation44_spill] sm:$0xff] %v11342_v1  ;;  %v6375_v1 = vld [vmem:[%s15218_s23 + $0x2b8] sm:$0xff] }
 0x200   : > { %6755 = vperm.xlu1 %10317, %v6357_v52   ;;  %v6365_v52 = vld [vmem:[%s15218_s23 + $0x268] sm:$0xff] }
 0x204   : > { %6765 = vperm.xlu1 %10317, %v6359_v54   ;;  %v6367_v54 = vld [vmem:[%s15218_s23 + $0x278] sm:$0xff] }
 0x208   : > { %6775 = vperm.xlu1 %10317, %v6361_v35   ;;  %v11347_v35 = vpop.permute.xlu1 %3286 }
 0x209   : > { %15291 = vst [vmem:[#allocation45_spill] sm:$0xff] %v11347_v35  ;;  %v6373_v35 = vld [vmem:[%s15218_s23 + $0x2a8] sm:$0xff] }
 0x20c   : > { %6785 = vperm.xlu1 %10317, %v6363_v43   ;;  %v6369_v43 = vld [vmem:[%s15218_s23 + $0x288] sm:$0xff] }
 0x210   : > { %6795 = vperm.xlu1 %10317, %v6365_v52   ;;  %v6371_v52 = vld [vmem:[%s15218_s23 + $0x298] sm:$0xff] }
 0x214   : > { %6805 = vperm.xlu1 %10317, %v6367_v54   ;;  %v11360_v54 = vpop.permute.xlu1 %3276 }
 0x215   : > { %15293 = vst [vmem:[#allocation46_spill] sm:$0xff] %v11360_v54 }
 0x218   : > { %6815 = vperm.xlu1 %10317, %v6369_v43   ;;  %v11368_v16 = vpop.permute.xlu1 %3266 }
 0x219   : > { %15294 = vst [vmem:[#allocation47_spill] sm:$0xff] %v11368_v16 }
 0x21c   : > { %6825 = vperm.xlu1 %10317, %v6371_v52   ;;  %v11373_v43 = vpop.permute.xlu1 %6415  ;;  %v6379_v52 = vld [vmem:[%s15218_s23 + $0x2d8] sm:$0xff] }
 0x21d   : > { %15295 = vst [vmem:[#allocation48_spill] sm:$0xff] %v11373_v43 }
 0x220   : > { %6835 = vperm.xlu1 %10317, %v6373_v35   ;;  %v6381_v35 = vld [vmem:[%s15218_s23 + $0x2e8] sm:$0xff]  ;;  %v11381_v54 = vpop.permute.xlu1 %6425 }
 0x221   : > { %15296 = vst [vmem:[#allocation49_spill] sm:$0xff] %v11381_v54 }
 0x224   : > { %6845 = vperm.xlu1 %10317, %v6375_v1   ;;  %v6383_v1 = vld [vmem:[%s15218_s23 + $0x2f8] sm:$0xff]  ;;  %v11386_v16 = vpop.permute.xlu1 %6435 }
 0x225   : > { %15297 = vst [vmem:[#allocation50_spill] sm:$0xff] %v11386_v16 }
 0x228   : > { %6855 = vperm.xlu1 %10317, %v6377_v48   ;;  %v6385_v48 = vld [vmem:[%s15218_s23 + $0x308] sm:$0xff]  ;;  %v11394_v43 = vpop.permute.xlu1 %6445 }
 0x229   : > { %15298 = vst [vmem:[#allocation51_spill] sm:$0xff] %v11394_v43  ;;  %v6399_v43 = vld [vmem:[%s15218_s23 + $0x378] sm:$0xff] }
 0x22c   : > { %6865 = vperm.xlu1 %10317, %v6379_v52   ;;  %v6387_v52 = vld [vmem:[%s15218_s23 + $0x318] sm:$0xff]  ;;  %v11399_v54 = vpop.permute.xlu1 %6455 }
 0x22d   : > { %15299 = vst [vmem:[#allocation52_spill] sm:$0xff] %v11399_v54  ;;  %v1452_v54 = vld [vmem:[%s11416_s1 + $0x68] sm:$0xff] }
 0x230   : > { %6875 = vperm.xlu1 %10317, %v6381_v35   ;;  %v6389_v35 = vld [vmem:[%s15218_s23 + $0x328] sm:$0xff]  ;;  %v11407_v16 = vpop.permute.xlu1 %6465 }
 0x231   : > { %15300 = vst [vmem:[#allocation53_spill] sm:$0xff] %v11407_v16  ;;  %v1453_v16 = vld [vmem:[%s11416_s1 + $0x70] sm:$0xff] }
 0x234   : > { %6885 = vperm.xlu1 %10317, %v6383_v1   ;;  %v6391_v1 = vld [vmem:[%s15218_s23 + $0x338] sm:$0xff] }
 0x238   : > { %6895 = vperm.xlu1 %10317, %v6385_v48   ;;  %v6393_v48 = vld [vmem:[%s15218_s23 + $0x348] sm:$0xff] }
 0x23c   : > { %6905 = vperm.xlu1 %10317, %v6387_v52   ;;  %v6395_v52 = vld [vmem:[%s15218_s23 + $0x358] sm:$0xff] }
 0x240   : > { %6915 = vperm.xlu1 %10317, %v6389_v35   ;;  %v11418_v35 = vpop.permute.xlu1 %6475 }
 0x241   : > { %15302 = vst [vmem:[#allocation54_spill] sm:$0xff] %v11418_v35 }
 0x244   : > { %6925 = vperm.xlu1 %10317, %v6391_v1   ;;  %v1454_v1 = vld [vmem:[%s11416_s1 + $0x78] sm:$0xff]  ;;  %v11429_v35 = vpop.permute.xlu1 %6485 }
 0x245   : > { %9320 = vmatprep.subr.mxu0 %v1454_v1  ;;  %15303 = vst [vmem:[#allocation55_spill] sm:$0xff] %v11429_v35 }
 0x246   : > { %9321 = vmatpush3.msra.mxu0 %v1454_v1  ;;  %v6401_v1 = vld [vmem:[%s15218_s23 + $0x388] sm:$0xff] }
 0x247   : > { %9322 = vmatprep.subr.mxu0 %v1453_v16 }
 0x248   : > { %6935 = vperm.xlu1 %10317, %v6393_v48   ;;  %v6397_v48 = vld [vmem:[%s15218_s23 + $0x368] sm:$0xff]  ;;  %9323 = vmatpush3.msra.mxu0 %v1453_v16  ;;  %v11437_v27 = vpop.permute.xlu1 %6495  ;;  %v6403_v16 = vld [vmem:[%s15218_s23 + $0x398] sm:$0xff] }
 0x249   : > { %9324 = vmatprep.subr.mxu0 %v1452_v54  ;;  %15304 = vst [vmem:[#allocation56_spill] sm:$0xff] %v11437_v27 }
 0x24a   : > { %9325 = vmatpush3.msra.mxu0 %v1452_v54  ;;  %v6405_v54 = vld [vmem:[%s15218_s23 + $0x3a8] sm:$0xff] }
 0x24c   : > { %6945 = vperm.xlu1 %10317, %v6395_v52   ;;  %v1451_v52 = vld [vmem:[%s11416_s1 + $0x60] sm:$0xff] }
 0x24d   : > { %9326 = vmatprep.subr.mxu0 %v1451_v52 }
 0x24e   : > { %9327 = vmatpush3.msra.mxu0 %v1451_v52 }
 0x24f   : > { %9328 = vmatprep.subr.mxu0 %v1450_v40 }
 0x250   : > { %6955 = vperm.xlu1 %10317, %v6397_v48   ;;  %9329 = vmatpush3.msra.mxu0 %v1450_v40  ;;  %v1449_v48 = vld [vmem:[%s11416_s1 + $0x50] sm:$0xff]  ;;  %v6407_v40 = vld [vmem:[%s15218_s23 + $0x3b8] sm:$0xff] }
 0x251   : > { %9330 = vmatprep.subr.mxu0 %v1449_v48 }
 0x252   : > { %9331 = vmatpush3.msra.mxu0 %v1449_v48 }
 0x254   : > { %6965 = vperm.xlu1 %10317, %v6399_v43   ;;  %v11445_v43 = vpop.permute.xlu1 %6505 }
 0x255   : > { %15305 = vst [vmem:[#allocation57_spill] sm:$0xff] %v11445_v43 }
 0x258   : > { %6975 = vperm.xlu1 %10317, %v6401_v1   ;;  %v11450_v52 = vpop.permute.xlu1 %6515  ;;  %v9289_v1 = vpop.f32.mrf.mxu1 }
 0x259   : > { %15306 = vst [vmem:[#allocation58_spill] sm:$0xff] %v11450_v52 }
 0x25a   : > { %v1102_v27 = vpop.f32.mrf.mxu1 }
 0x25c   : > { %6985 = vperm.xlu1 %10317, %v6403_v16   ;;  %v9292_v35 = vpop.f32.mrf.mxu1 }
 0x25e   : > { %v1112_v16 = vpop.f32.mrf.mxu1 }
 0x260   : > { %6995 = vperm.xlu1 %10317, %v6405_v54   ;;  %v9295_v54 = vpop.f32.mrf.mxu1 }
 0x262   : > { %v1122_v19 = vpop.f32.mrf.mxu1 }
 0x264   : > { %7005 = vperm.xlu1 %10317, %v6407_v40  }
 0x299   : > { %v9302_v30 = vpop.f32.mrf.mxu0 }
 0x29a   : > { %v1226_v23 = vadd.f32 %v9302_v30, %v9289_v1  ;;  %v1439_v1 = vld [vmem:[%s11416_s1] sm:$0xff] }
 0x29b   : > { %v1220_v48 = vpop.f32.mrf.mxu0 }
 0x29c   : > { %v1221_v63 = vadd.f32 %v1220_v48, %v1102_v27  ;;  %v1421_v48 = vld [vmem:[%s15208_s13] sm:$0xff] }
 0x29d   : > { %v9305_v32 = vpop.f32.mrf.mxu0  ;;  %9352 = vmatprep.mubr.f32.mxu0 %v1421_v48  ;;  %v1436_v48 = vld [vmem:[%s15208_s13 + $0x78] sm:$0xff] }
 0x29e   : > { %9311 = vmatprep.mubr.msk.f32.mxu1 %vm1286_vm4, %v1221_v63  ;;  %v1236_v40 = vadd.f32 %v9305_v32, %v9292_v35  ;;  %v1447_v32 = vld [vmem:[%s11416_s1 + $0x40] sm:$0xff]  ;;  %v1446_v63 = vld [vmem:[%s11416_s1 + $0x38] sm:$0xff] }
 0x29f   : > { %v1230_v43 = vpop.f32.mrf.mxu0  ;;  %9312 = vmatmul.mubr.msk.f32.vlgmr.msra.gmra.mxu1 %vm1286_vm4, %v1226_v23  ;;  %v1448_v23 = vld [vmem:[%s11416_s1 + $0x48] sm:$0xff]  ;;  %v1442_v35 = vld [vmem:[%s11416_s1 + $0x18] sm:$0xff] }
 0x2a0   : > { %v1231_v52 = vadd.f32 %v1230_v43, %v1112_v16  ;;  %9332 = vmatprep.subr.mxu0 %v1448_v23  ;;  %v1441_v43 = vld [vmem:[%s11416_s1 + $0x10] sm:$0xff]  ;;  %v1422_v16 = vld [vmem:[%s15208_s13 + $0x8] sm:$0xff] }
 0x2a1   : > { %v9308_v17 = vpop.f32.mrf.mxu0  ;;  %9333 = vmatpush3.msra.mxu0 %v1448_v23  ;;  %v1426_v23 = vld [vmem:[%s15208_s13 + $0x28] sm:$0xff] }
 0x2a2   : > { %9314 = vmatprep.mubr.msk.f32.mxu1 %vm1286_vm4, %v1231_v52  ;;  %v1246_v27 = vadd.f32 %v9308_v17, %v9295_v54  ;;  %9334 = vmatprep.subr.mxu0 %v1447_v32  ;;  %v1444_v17 = vld [vmem:[%s11416_s1 + $0x28] sm:$0xff]  ;;  %v1403_v54 = vld [vmem:[%s15207_s12] sm:$0xff] }
 0x2a3   : > { %v1240_v9 = vpop.f32.mrf.mxu0  ;;  %9315 = vmatmul.mubr.msk.f32.gmra.mxu1 %vm1286_vm4, %v1236_v40  ;;  %9335 = vmatpush3.msra.mxu0 %v1447_v32  ;;  %v1440_v52 = vld [vmem:[%s11416_s1 + $0x8] sm:$0xff]  ;;  %v1423_v40 = vld [vmem:[%s15208_s13 + $0x10] sm:$0xff] }
 0x2a4   : > { %v1241_v30 = vadd.f32 %v1240_v9, %v1122_v19  ;;  %9336 = vmatprep.subr.mxu0 %v1446_v63  ;;  %v1445_v9 = vld [vmem:[%s11416_s1 + $0x30] sm:$0xff]  ;;  %v1443_v19 = vld [vmem:[%s11416_s1 + $0x20] sm:$0xff]  ;;  %s15307_s1 = sld [smem:[#allocation150_spill]] }
 0x2a5   : > { %9337 = vmatpush3.msra.mxu0 %v1446_v63  ;;  %v1427_v32 = vld [vmem:[%s15208_s13 + $0x30] sm:$0xff]  ;;  %v1428_v63 = vld [vmem:[%s15208_s13 + $0x38] sm:$0xff] }
 0x2a6   : > { %9317 = vmatprep.mubr.msk.f32.mxu1 %vm1286_vm4, %v1241_v30  ;;  %9338 = vmatprep.subr.mxu0 %v1445_v9  ;;  %v1424_v30 = vld [vmem:[%s15208_s13 + $0x18] sm:$0xff] }
 0x2a7   : > { %9318 = vmatmul.mubr.msk.f32.gmra.mxu1 %vm1286_vm4, %v1246_v27  ;;  %9339 = vmatpush3.msra.mxu0 %v1445_v9  ;;  %v1425_v27 = vld [vmem:[%s15208_s13 + $0x20] sm:$0xff] }
 0x2a8   : > { %9340 = vmatprep.subr.mxu0 %v1444_v17  ;;  %9391 = vmatprep.mubr.msk.f32.mxu1 %vm1610_vm5, %v1403_v54  ;;  %v1429_v9 = vld [vmem:[%s15208_s13 + $0x40] sm:$0xff]  ;;  %v1438_v54 = vld [vmem:[%s15208_s13 + $0x88] sm:$0xff] }
 0x2a9   : > { %9341 = vmatpush3.msra.mxu0 %v1444_v17  ;;  %v1430_v17 = vld [vmem:[%s15208_s13 + $0x48] sm:$0xff] }
 0x2aa   : > { %9342 = vmatprep.subr.mxu0 %v1443_v19  ;;  %s11626_s2 = scalar_lea.vmem %s15307_s1, %s10569_s25  ;;  %s10272_s25 = smul.u32 15360, %s10531_s6 }
 0x2ab   : > { %9343 = vmatpush3.msra.mxu0 %v1443_v19  ;;  %v1431_v19 = vld [vmem:[%s15208_s13 + $0x50] sm:$0xff]  ;;  %s15155_s6 = scalar_lea.sflag [#allocation3], %s788_s29  ;;  %s10322_s1 = sshll.u32 %s10382_s27, 4  ;;  %s10323_s1 = int_to_ptr.vmem [resolvable:$false] %s10322_s1 }
 0x2ac   : > { %9344 = vmatprep.subr.mxu0 %v1442_v35  ;;  %s15145_s4 = scalar_lea.hbm %s15219_s24, %s10272_s25  ;;  %p10325_p0 = scmp.lt.s32.totalorder %s15147_s9, %s10323_s1 }
 0x2ad   : > { %9345 = vmatpush3.msra.mxu0 %v1442_v35  ;;  %v1432_v35 = vld [vmem:[%s15208_s13 + $0x58] sm:$0xff] }
 0x2ae   : > { %9346 = vmatprep.subr.mxu0 %v1441_v43 }
 0x2af   : > { %9347 = vmatpush3.msra.mxu0 %v1441_v43  ;;  %v1433_v43 = vld [vmem:[%s15208_s13 + $0x60] sm:$0xff] }
 0x2b0   : > { %9348 = vmatprep.subr.mxu0 %v1440_v52 }
 0x2b1   : > { %9349 = vmatpush3.msra.mxu0 %v1440_v52  ;;  %v1434_v52 = vld [vmem:[%s15208_s13 + $0x68] sm:$0xff] }
 0x2b2   : > { %9350 = vmatprep.subr.mxu0 %v1439_v1 }
 0x2b3   : > { %9351 = vmatpush3.msra.mxu0 %v1439_v1  ;;  %v1435_v1 = vld [vmem:[%s15208_s13 + $0x70] sm:$0xff] }
 0x2b4   : > { %9353 = vmatmul.mubr.f32.vlgmr.msra.gmra.mxu0 %v1422_v16  ;;  %v1437_v16 = vld [vmem:[%s15208_s13 + $0x80] sm:$0xff] }
 0x2b5   : > { %9355 = vmatprep.mubr.f32.mxu0 %v1423_v40 }
 0x2b8   : > { %9356 = vmatmul.mubr.f32.gmra.mxu0 %v1424_v30 }
 0x2b9   : > { %9358 = vmatprep.mubr.f32.mxu0 %v1425_v27 }
 0x2bc   : > { %9359 = vmatmul.mubr.f32.gmra.mxu0 %v1426_v23 }
 0x2bd   : > { %9361 = vmatprep.mubr.f32.mxu0 %v1427_v32 }
 0x2c0   : > { %9362 = vmatmul.mubr.f32.gmra.mxu0 %v1428_v63 }
 0x2c1   : > { %9364 = vmatprep.mubr.f32.mxu0 %v1429_v9 }
 0x2c4   : > { %9365 = vmatmul.mubr.f32.gmra.mxu0 %v1430_v17 }
 0x2c5   : > { %9367 = vmatprep.mubr.f32.mxu0 %v1431_v19 }
 0x2c8   : > { %9368 = vmatmul.mubr.f32.gmra.mxu0 %v1432_v35 }
 0x2c9   : > { %9370 = vmatprep.mubr.f32.mxu0 %v1433_v43 }
 0x2cc   : > { %9371 = vmatmul.mubr.f32.gmra.mxu0 %v1434_v52 }
 0x2cd   : > { %9373 = vmatprep.mubr.f32.mxu0 %v1435_v1  ;;  %v1409_v1 = vld [vmem:[%s15207_s12 + $0x30] sm:$0xff] }
 0x2d0   : > { %9374 = vmatmul.mubr.f32.gmra.mxu0 %v1436_v48  ;;  %v1410_v48 = vld [vmem:[%s15207_s12 + $0x38] sm:$0xff] }
 0x2d1   : > { %9376 = vmatprep.mubr.f32.mxu0 %v1437_v16  ;;  %v1411_v16 = vld [vmem:[%s15207_s12 + $0x40] sm:$0xff] }
 0x2d4   : > { %9377 = vmatmul.mubr.f32.gmra.mxu0 %v1438_v54  ;;  %v1412_v54 = vld [vmem:[%s15207_s12 + $0x48] sm:$0xff] }
 0x35f   : > { %v9313_v40 = vpop.f32.mrf.mxu1 }
 0x360   : > { %v1380_v43 = vadd.f32 %v9313_v40, %v10704_v58  ;;  %v1406_v58 = vld [vmem:[%s15207_s12 + $0x18] sm:$0xff]  ;;  %v1413_v40 = vld [vmem:[%s15207_s12 + $0x50] sm:$0xff] }
 0x361   : > { %v1374_v30 = vpop.f32.mrf.mxu1 }
 0x362   : > { %v1375_v52 = vadd.f32 %v1374_v30, %v11073_v26  ;;  %v1408_v26 = vld [vmem:[%s15207_s12 + $0x28] sm:$0xff]  ;;  %v1414_v30 = vld [vmem:[%s15207_s12 + $0x58] sm:$0xff] }
 0x363   : > { %v9316_v27 = vpop.f32.mrf.mxu1 }
 0x364   : > { %v1390_v19 = vadd.f32 %v9316_v27, %v10699_v56  ;;  %v1820_v56 = vld [vmem:[%s15209_s14] sm:$0xff] }
 0x365   : > { %v1384_v23 = vpop.f32.mrf.mxu1  ;;  %v1415_v27 = vld [vmem:[%s15207_s12 + $0x60] sm:$0xff] }
 0x366   : > { %v1385_v35 = vadd.f32 %v1384_v23, %v11065_v21  ;;  %v1407_v21 = vld [vmem:[%s15207_s12 + $0x20] sm:$0xff]  ;;  %v1416_v23 = vld [vmem:[%s15207_s12 + $0x68] sm:$0xff] }
 0x367   : > { %v9319_v32 = vpop.f32.mrf.mxu1 }
 0x368   : > { %v1400_v63 = vadd.f32 %v9319_v32, %v11045_v61  ;;  %v1404_v61 = vld [vmem:[%s15207_s12 + $0x8] sm:$0xff]  ;;  %v1417_v32 = vld [vmem:[%s15207_s12 + $0x70] sm:$0xff] }
 0x369   : > { %v1394_v9 = vpop.f32.mrf.mxu1 }
 0x36a   : > { %v1395_v17 = vadd.f32 %v1394_v9, %v11055_v11  ;;  %9379 = vmatprep.subr.mxu1 %v1400_v63  ;;  %v1405_v11 = vld [vmem:[%s15207_s12 + $0x10] sm:$0xff]  ;;  %v1419_v9 = vld [vmem:[%s15207_s12 + $0x80] sm:$0xff] }
 0x36b   : > { %9380 = vmatpush3.msra.mxu1 %v1400_v63  ;;  %v1418_v63 = vld [vmem:[%s15207_s12 + $0x78] sm:$0xff] }
 0x36c   : > { %9381 = vmatprep.subr.mxu1 %v1395_v17 }
 0x36d   : > { %9382 = vmatpush3.msra.mxu1 %v1395_v17  ;;  %v1420_v17 = vld [vmem:[%s15207_s12 + $0x88] sm:$0xff] }
 0x36e   : > { %9383 = vmatprep.subr.mxu1 %v1390_v19 }
 0x36f   : > { %9384 = vmatpush3.msra.mxu1 %v1390_v19 }
 0x370   : > { %9385 = vmatprep.subr.mxu1 %v1385_v35 }
 0x371   : > { %9386 = vmatpush3.msra.mxu1 %v1385_v35 }
 0x372   : > { %9387 = vmatprep.subr.mxu1 %v1380_v43 }
 0x373   : > { %9388 = vmatpush3.msra.mxu1 %v1380_v43 }
 0x374   : > { %9389 = vmatprep.subr.mxu1 %v1375_v52  ;;  %v9354_v19 = vpop.f32.mrf.mxu0 }
 0x375   : > { %9390 = vmatpush3.msra.mxu1 %v1375_v52 }
 0x376   : > { %9392 = vmatmul.mubr.msk.f32.vlgmr.msra.gmra.mxu1 %vm1610_vm5, %v1404_v61  ;;  %9418 = vmatprep.subr.mxu1 %v1820_v56  ;;  %v1521_v35 = vpop.f32.mrf.mxu0 }
 0x377   : > { %9394 = vmatprep.mubr.msk.f32.mxu1 %vm1610_vm5, %v1405_v11  ;;  %9419 = vmatpush3.msra.mxu1 %v1820_v56 }
 0x378   : > { %v9357_v43 = vpop.f32.mrf.mxu0 }
 0x37a   : > { %9395 = vmatmul.mubr.msk.f32.gmra.mxu1 %vm1610_vm5, %v1406_v58  ;;  %v1531_v52 = vpop.f32.mrf.mxu0 }
 0x37b   : > { %9397 = vmatprep.mubr.msk.f32.mxu1 %vm1610_vm5, %v1407_v21 }
 0x37c   : > { %v9360_v61 = vpop.f32.mrf.mxu0 }
 0x37e   : > { %9398 = vmatmul.mubr.msk.f32.gmra.mxu1 %vm1610_vm5, %v1408_v26  ;;  %v1541_v56 = vpop.f32.mrf.mxu0 }
 0x37f   : > { %9400 = vmatprep.mubr.msk.f32.mxu1 %vm1610_vm5, %v1409_v1 }
 0x380   : > { %v9363_v11 = vpop.f32.mrf.mxu0 }
 0x382   : > { %9401 = vmatmul.mubr.msk.f32.gmra.mxu1 %vm1610_vm5, %v1410_v48  ;;  %v1551_v58 = vpop.f32.mrf.mxu0 }
 0x383   : > { %9403 = vmatprep.mubr.msk.f32.mxu1 %vm1610_vm5, %v1411_v16 }
 0x384   : > { %v9366_v21 = vpop.f32.mrf.mxu0 }
 0x386   : > { %9404 = vmatmul.mubr.msk.f32.gmra.mxu1 %vm1610_vm5, %v1412_v54  ;;  %v1561_v48 = vpop.f32.mrf.mxu0 }
 0x387   : > { %9406 = vmatprep.mubr.msk.f32.mxu1 %vm1610_vm5, %v1413_v40 }
 0x38a   : > { %9407 = vmatmul.mubr.msk.f32.gmra.mxu1 %vm1610_vm5, %v1414_v30 }
 0x38b   : > { %9409 = vmatprep.mubr.msk.f32.mxu1 %vm1610_vm5, %v1415_v27  ;;  %v9369_v27 = vpop.f32.mrf.mxu0 }
 0x38e   : > { %9410 = vmatmul.mubr.msk.f32.gmra.mxu1 %vm1610_vm5, %v1416_v23 }
 0x38f   : > { %9412 = vmatprep.mubr.msk.f32.mxu1 %vm1610_vm5, %v1417_v32 }
 0x392   : > { %9413 = vmatmul.mubr.msk.f32.gmra.mxu1 %vm1610_vm5, %v1418_v63 }
 0x393   : > { %9415 = vmatprep.mubr.msk.f32.mxu1 %vm1610_vm5, %v1419_v9 }
 0x396   : > { %9416 = vmatmul.mubr.msk.f32.gmra.mxu1 %vm1610_vm5, %v1420_v17  ;;  %v1571_v17 = vpop.f32.mrf.mxu0 }
 0x436   : > { %v9393_v26 = vpop.f32.mrf.mxu1 }
 0x437   : > { %v1737_v54 = vadd.f32 %v9393_v26, %v9354_v19  ;;  %v9372_v26 = vpop.f32.mrf.mxu0 }
 0x438   : > { %v1731_v1 = vpop.f32.mrf.mxu1 }
 0x439   : > { %v1732_v16 = vadd.f32 %v1731_v1, %v1521_v35 }
 0x43a   : > { %v9396_v40 = vpop.f32.mrf.mxu1 }
 0x43b   : > { %9420 = vmatprep.mubr.msk.f32.mxu1 %vm1929_vm6, %v1732_v16  ;;  %v1747_v32 = vadd.f32 %v9396_v40, %v9357_v43 }
 0x43c   : > { %v1741_v30 = vpop.f32.mrf.mxu1  ;;  %9421 = vmatmul.mubr.msk.f32.vlgmr.msra.gmra.mxu1 %vm1929_vm6, %v1737_v54  ;;  %v1581_v54 = vpop.f32.mrf.mxu0 }
 0x43d   : > { %v1742_v23 = vadd.f32 %v1741_v30, %v1531_v52 }
 0x43e   : > { %v9399_v63 = vpop.f32.mrf.mxu1 }
 0x43f   : > { %9423 = vmatprep.mubr.msk.f32.mxu1 %vm1929_vm6, %v1742_v23  ;;  %v1757_v3 = vadd.f32 %v9399_v63, %v9360_v61 }
 0x440   : > { %v1751_v9 = vpop.f32.mrf.mxu1  ;;  %9424 = vmatmul.mubr.msk.f32.gmra.mxu1 %vm1929_vm6, %v1747_v32 }
 0x441   : > { %v1752_v47 = vadd.f32 %v1751_v9, %v1541_v56 }
 0x442   : > { %v9402_v35 = vpop.f32.mrf.mxu1 }
 0x443   : > { %9426 = vmatprep.mubr.msk.f32.mxu1 %vm1929_vm6, %v1752_v47  ;;  %v1767_v16 = vadd.f32 %v9402_v35, %v9363_v11  ;;  %v9375_v47 = vpop.f32.mrf.mxu0 }
 0x444   : > { %v1761_v19 = vpop.f32.mrf.mxu1  ;;  %9427 = vmatmul.mubr.msk.f32.gmra.mxu1 %vm1929_vm6, %v1757_v3 }
 0x445   : > { %v1762_v1 = vadd.f32 %v1761_v19, %v1551_v58  ;;  %v1591_v32 = vpop.f32.mrf.mxu0 }
 0x446   : > { %v9405_v52 = vpop.f32.mrf.mxu1 }
 0x447   : > { %9429 = vmatprep.mubr.msk.f32.mxu1 %vm1929_vm6, %v1762_v1  ;;  %v1777_v30 = vadd.f32 %v9405_v52, %v9366_v21  ;;  %v9378_v21 = vpop.f32.mrf.mxu0 }
 0x448   : > { %v1771_v43 = vpop.f32.mrf.mxu1  ;;  %9430 = vmatmul.mubr.msk.f32.gmra.mxu1 %vm1929_vm6, %v1767_v16 }
 0x449   : > { %v1772_v40 = vadd.f32 %v1771_v43, %v1561_v48  ;;  %v1601_v1 = vpop.f32.mrf.mxu0 }
 0x44a   : > { %v9408_v56 = vpop.f32.mrf.mxu1 }
 0x44b   : > { %9432 = vmatprep.mubr.msk.f32.mxu1 %vm1929_vm6, %v1772_v40  ;;  %v1787_v23 = vadd.f32 %v9408_v56, %v9369_v27  ;;  %v2297_v40 = vld [vmem:[%s11626_s2 + $0x70] sm:$0xff]  ;;  %v2295_v56 = vld [vmem:[%s11626_s2 + $0x60] sm:$0xff] }
 0x44c   : > { %v1781_v61 = vpop.f32.mrf.mxu1  ;;  %9433 = vmatmul.mubr.msk.f32.gmra.mxu1 %vm1929_vm6, %v1777_v30  ;;  %v2296_v30 = vld [vmem:[%s11626_s2 + $0x68] sm:$0xff] }
 0x44d   : > { %v1782_v3 = vadd.f32 %v1781_v61, %v1571_v17  ;;  %v2294_v61 = vld [vmem:[%s11626_s2 + $0x58] sm:$0xff] }
 0x44e   : > { %v9411_v58 = vpop.f32.mrf.mxu1 }
 0x44f   : > { %9435 = vmatprep.mubr.msk.f32.mxu1 %vm1929_vm6, %v1782_v3  ;;  %v1797_v9 = vadd.f32 %v9411_v58, %v9372_v26  ;;  %v10381_v26 = vmov 0.0   ;;  %v2292_v3 = vld [vmem:[%s11626_s2 + $0x48] sm:$0xff]  ;;  %v2290_v58 = vld [vmem:[%s11626_s2 + $0x38] sm:$0xff] }
 0x450   : > { %v1791_v11 = vpop.f32.mrf.mxu1  ;;  %9436 = vmatmul.mubr.msk.f32.gmra.mxu1 %vm1929_vm6, %v1787_v23  ;;  %2749 = vmatprep.subr.mxu1 %v10381_v26  ;;  %v2291_v23 = vld [vmem:[%s11626_s2 + $0x40] sm:$0xff] }
 0x451   : > { %v1792_v63 = vadd.f32 %v1791_v11, %v1581_v54  ;;  %v2298_v54 = vld [vmem:[%s11626_s2 + $0x78] sm:$0xff]  ;;  %v2289_v11 = vld [vmem:[%s11626_s2 + $0x30] sm:$0xff] }
 0x452   : > { %v9414_v48 = vpop.f32.mrf.mxu1  ;;  %9447 = vmatprep.subr.mxu0 %v2298_v54 }
 0x453   : > { %9438 = vmatprep.mubr.msk.f32.mxu1 %vm1929_vm6, %v1792_v63  ;;  %v1807_v17 = vadd.f32 %v9414_v48, %v9375_v47  ;;  %9448 = vmatpush3.msra.mxu0 %v2298_v54  ;;  %v2293_v47 = vld [vmem:[%s11626_s2 + $0x50] sm:$0xff]  ;;  %v2287_v63 = vld [vmem:[%s11626_s2 + $0x20] sm:$0xff] }
 0x454   : > { %v1801_v35 = vpop.f32.mrf.mxu1  ;;  %9439 = vmatmul.mubr.msk.f32.gmra.mxu1 %vm1929_vm6, %v1797_v9  ;;  %9449 = vmatprep.subr.mxu0 %v2297_v40  ;;  %v2286_v9 = vld [vmem:[%s11626_s2 + $0x18] sm:$0xff]  ;;  %v2285_v48 = vld [vmem:[%s11626_s2 + $0x10] sm:$0xff] }
 0x455   : > { %v1802_v19 = vadd.f32 %v1801_v35, %v1591_v32  ;;  %9450 = vmatpush3.msra.mxu0 %v2297_v40  ;;  %v2288_v32 = vld [vmem:[%s11626_s2 + $0x28] sm:$0xff]  ;;  %v2283_v35 = vld [vmem:[%s11626_s2] sm:$0xff]  ;;  %v2241_v54 = vld [vmem:[%s15212_s17 + $0x30] sm:$0xff] }
 0x456   : > { %v9417_v27 = vpop.f32.mrf.mxu1  ;;  %9451 = vmatprep.subr.mxu0 %v2296_v30  ;;  %v2242_v40 = vld [vmem:[%s15212_s17 + $0x38] sm:$0xff] }
 0x457   : > { %9441 = vmatprep.mubr.msk.f32.mxu1 %vm1929_vm6, %v1802_v19  ;;  %v1817_v16 = vadd.f32 %v9417_v27, %v9378_v21  ;;  %9452 = vmatpush3.msra.mxu0 %v2296_v30  ;;  %v2284_v21 = vld [vmem:[%s11626_s2 + $0x8] sm:$0xff]  ;;  %v2235_v19 = vld [vmem:[%s15212_s17] sm:$0xff] }
 0x458   : > { %v1811_v52 = vpop.f32.mrf.mxu1  ;;  %9442 = vmatmul.mubr.msk.f32.gmra.mxu1 %vm1929_vm6, %v1807_v17  ;;  %9453 = vmatprep.subr.mxu0 %v2295_v56  ;;  %v2236_v17 = vld [vmem:[%s15212_s17 + $0x8] sm:$0xff]  ;;  %v2243_v30 = vld [vmem:[%s15212_s17 + $0x40] sm:$0xff] }
 0x459   : > { %v1812_v43 = vadd.f32 %v1811_v52, %v1601_v1  ;;  %9454 = vmatpush3.msra.mxu0 %v2295_v56  ;;  %9479 = vmatprep.mubr.f32.mxu0 %v2235_v19  ;;  %v2140_v27 = vld [vmem:[%s15211_s16 + $0x8] sm:$0xff]  ;;  %v2237_v1 = vld [vmem:[%s15212_s17 + $0x10] sm:$0xff]  ;;  %v2239_v52 = vld [vmem:[%s15212_s17 + $0x20] sm:$0xff] }
 0x45a   : > { %9455 = vmatprep.subr.mxu0 %v2294_v61  ;;  %v2244_v56 = vld [vmem:[%s15212_s17 + $0x48] sm:$0xff]  ;;  %v2253_v19 = vld [vmem:[%s15212_s17 + $0x90] sm:$0xff] }
 0x45b   : > { %9444 = vmatprep.mubr.msk.f32.mxu1 %vm1929_vm6, %v1812_v43  ;;  %9456 = vmatpush3.msra.mxu0 %v2294_v61  ;;  %v2240_v43 = vld [vmem:[%s15212_s17 + $0x28] sm:$0xff]  ;;  %v2245_v61 = vld [vmem:[%s15212_s17 + $0x50] sm:$0xff] }
 0x45c   : > { %9445 = vmatmul.mubr.msk.f32.gmra.mxu1 %vm1929_vm6, %v1817_v16  ;;  %9457 = vmatprep.subr.mxu0 %v2293_v47  ;;  %v2238_v16 = vld [vmem:[%s15212_s17 + $0x18] sm:$0xff] }
 0x45d   : > { %9458 = vmatpush3.msra.mxu0 %v2293_v47  ;;  %8346 = vmatprep.mubr.msk.f32.mxu1 %vm2604_vm7, %v2140_v27  ;;  %v2246_v47 = vld [vmem:[%s15212_s17 + $0x58] sm:$0xff] }
 0x45e   : > { %9459 = vmatprep.subr.mxu0 %v2292_v3 }
 0x45f   : > { %9460 = vmatpush3.msra.mxu0 %v2292_v3  ;;  %v2247_v3 = vld [vmem:[%s15212_s17 + $0x60] sm:$0xff] }
 0x460   : > { %9461 = vmatprep.subr.mxu0 %v2291_v23 }
 0x461   : > { %9462 = vmatpush3.msra.mxu0 %v2291_v23  ;;  %v2248_v23 = vld [vmem:[%s15212_s17 + $0x68] sm:$0xff] }
 0x462   : > { %9463 = vmatprep.subr.mxu0 %v2290_v58 }
 0x463   : > { %9464 = vmatpush3.msra.mxu0 %v2290_v58  ;;  %v2249_v58 = vld [vmem:[%s15212_s17 + $0x70] sm:$0xff] }
 0x464   : > { %9465 = vmatprep.subr.mxu0 %v2289_v11 }
 0x465   : > { %9466 = vmatpush3.msra.mxu0 %v2289_v11  ;;  %v2250_v11 = vld [vmem:[%s15212_s17 + $0x78] sm:$0xff] }
 0x466   : > { %9467 = vmatprep.subr.mxu0 %v2288_v32 }
 0x467   : > { %9468 = vmatpush3.msra.mxu0 %v2288_v32  ;;  %v2251_v32 = vld [vmem:[%s15212_s17 + $0x80] sm:$0xff] }
 0x468   : > { %9469 = vmatprep.subr.mxu0 %v2287_v63 }
 0x469   : > { %9470 = vmatpush3.msra.mxu0 %v2287_v63  ;;  %v2252_v63 = vld [vmem:[%s15212_s17 + $0x88] sm:$0xff] }
 0x46a   : > { %9471 = vmatprep.subr.mxu0 %v2286_v9 }
 0x46b   : > { %9472 = vmatpush3.msra.mxu0 %v2286_v9 }
 0x46c   : > { %9473 = vmatprep.subr.mxu0 %v2285_v48 }
 0x46d   : > { %9474 = vmatpush3.msra.mxu0 %v2285_v48 }
 0x46e   : > { %9475 = vmatprep.subr.mxu0 %v2284_v21 }
 0x46f   : > { %9476 = vmatpush3.msra.mxu0 %v2284_v21 }
 0x470   : > { %9477 = vmatprep.subr.mxu0 %v2283_v35 }
 0x471   : > { %9478 = vmatpush3.msra.mxu0 %v2283_v35 }
 0x472   : > { %9480 = vmatmul.mubr.f32.vlgmr.msra.gmra.mxu0 %v2236_v17  ;;  %v2254_v17 = vld [vmem:[%s15212_s17 + $0x98] sm:$0xff] }
 0x473   : > { %9482 = vmatprep.mubr.f32.mxu0 %v2237_v1 }
 0x476   : > { %9483 = vmatmul.mubr.f32.gmra.mxu0 %v2238_v16 }
 0x477   : > { %9485 = vmatprep.mubr.f32.mxu0 %v2239_v52 }
 0x47a   : > { %9486 = vmatmul.mubr.f32.gmra.mxu0 %v2240_v43  ;;  %v2255_v43 = vld [vmem:[%s15212_s17 + $0xa0] sm:$0xff] }
 0x47b   : > { %9488 = vmatprep.mubr.f32.mxu0 %v2241_v54  ;;  %v2256_v54 = vld [vmem:[%s15212_s17 + $0xa8] sm:$0xff] }
 0x47e   : > { %9489 = vmatmul.mubr.f32.gmra.mxu0 %v2242_v40 }
 0x47f   : > { %9491 = vmatprep.mubr.f32.mxu0 %v2243_v30 }
 0x482   : > { %9492 = vmatmul.mubr.f32.gmra.mxu0 %v2244_v56 }
 0x483   : > { %9494 = vmatprep.mubr.f32.mxu0 %v2245_v61 }
 0x486   : > { %9495 = vmatmul.mubr.f32.gmra.mxu0 %v2246_v47  ;;  %v2257_v47 = vld [vmem:[%s15212_s17 + $0xb0] sm:$0xff] }
 0x487   : > { %9497 = vmatprep.mubr.f32.mxu0 %v2247_v3  ;;  %v2258_v3 = vld [vmem:[%s15212_s17 + $0xb8] sm:$0xff] }
 0x48a   : > { %9498 = vmatmul.mubr.f32.gmra.mxu0 %v2248_v23 }
 0x48b   : > { %9500 = vmatprep.mubr.f32.mxu0 %v2249_v58 }
 0x48e   : > { %9501 = vmatmul.mubr.f32.gmra.mxu0 %v2250_v11 }
 0x48f   : > { %9503 = vmatprep.mubr.f32.mxu0 %v2251_v32 }
 0x492   : > { %9504 = vmatmul.mubr.f32.gmra.mxu0 %v2252_v63 }
 0x493   : > { %9506 = vmatprep.mubr.f32.mxu0 %v2253_v19  ;;  %v2259_v19 = vld [vmem:[%s15212_s17 + $0xc0] sm:$0xff] }
 0x496   : > { %9507 = vmatmul.mubr.f32.gmra.mxu0 %v2254_v17  ;;  %v2260_v17 = vld [vmem:[%s15212_s17 + $0xc8] sm:$0xff] }
 0x497   : > { %9509 = vmatprep.mubr.f32.mxu0 %v2255_v43 }
 0x49a   : > { %9510 = vmatmul.mubr.f32.gmra.mxu0 %v2256_v54 }
 0x49b   : > { %9512 = vmatprep.mubr.f32.mxu0 %v2257_v47 }
 0x49e   : > { %9513 = vmatmul.mubr.f32.gmra.mxu0 %v2258_v3 }
 0x49f   : > { %9515 = vmatprep.mubr.f32.mxu0 %v2259_v19  ;;  %v2150_v19 = vld [vmem:[%s15211_s16 + $0x58] sm:$0xff] }
 0x4a2   : > { %9516 = vmatmul.mubr.f32.gmra.mxu0 %v2260_v17  ;;  %v2272_v17 = vld [vmem:[%s15212_s17 + $0x128] sm:$0xff] }
 0x4fc   : > { %v11702_v9 = vpop.f32.mrf.mxu1 }
 0x4fe   : > { %v11704_v48 = vpop.f32.mrf.mxu1 }
 0x500   : > { %v11706_v21 = vpop.f32.mrf.mxu1 }
 0x502   : > { %v11708_v35 = vpop.f32.mrf.mxu1 }
 0x504   : > { %v9428_v27 = vpop.f32.mrf.mxu1 }
 0x506   : > { %v2070_v1 = vpop.f32.mrf.mxu1 }
 0x508   : > { %v9431_v16 = vpop.f32.mrf.mxu1 }
 0x50a   : > { %v2080_v52 = vpop.f32.mrf.mxu1 }
 0x50c   : > { %v9434_v40 = vpop.f32.mrf.mxu1 }
 0x50e   : > { %v2090_v30 = vpop.f32.mrf.mxu1 }
 0x510   : > { %v9437_v56 = vpop.f32.mrf.mxu1 }
 0x511   : > { %v2106_v47 = vadd.f32 %v9437_v56, %v10719_v0  ;;  %v2096_v0 = vadd.f32 %v9434_v40, %v10724_v2  ;;  %v2086_v56 = vadd.f32 %v9431_v16, %v10729_v4  ;;  %v2264_v2 = vld [vmem:[%s15212_s17 + $0xe8] sm:$0xff]  ;;  %v2081_v40 = vadd.f32 %v2080_v52, %v11121_v12  ;;  %v2265_v12 = vld [vmem:[%s15212_s17 + $0xf0] sm:$0xff]  ;;  %v2143_v52 = vld [vmem:[%s15211_s16 + $0x20] sm:$0xff] }
 0x512   : > { %v2100_v61 = vpop.f32.mrf.mxu1  ;;  %v2076_v4 = vadd.f32 %v9428_v27, %v10734_v6  ;;  %v2066_v16 = vadd.f32 %v11706_v21, %v10739_v8  ;;  %v2266_v6 = vld [vmem:[%s15212_s17 + $0xf8] sm:$0xff]  ;;  %v2056_v8 = vadd.f32 %v11702_v9, %v10744_v10  ;;  %v2051_v21 = vadd.f32 %v11704_v48, %v11152_v59  ;;  %v2139_v10 = vld [vmem:[%s15211_s16] sm:$0xff]  ;;  %v2141_v9 = vld [vmem:[%s15211_s16 + $0x10] sm:$0xff] }
 0x513   : > { %v2101_v3 = vadd.f32 %v2100_v61, %v11101_v46  ;;  %v2263_v46 = vld [vmem:[%s15212_s17 + $0xe0] sm:$0xff]  ;;  %v2144_v48 = vld [vmem:[%s15211_s16 + $0x28] sm:$0xff]  ;;  %v2146_v61 = vld [vmem:[%s15211_s16 + $0x38] sm:$0xff] }
 0x514   : > { %v9440_v23 = vpop.f32.mrf.mxu1  ;;  %v2267_v59 = vld [vmem:[%s15212_s17 + $0x100] sm:$0xff] }
 0x515   : > { %v2116_v54 = vadd.f32 %v9440_v23, %v10714_v62  ;;  %v2262_v62 = vld [vmem:[%s15212_s17 + $0xd8] sm:$0xff] }
 0x516   : > { %v2110_v58 = vpop.f32.mrf.mxu1  ;;  %v2270_v23 = vld [vmem:[%s15212_s17 + $0x118] sm:$0xff] }
 0x518   : > { %v9443_v11 = vpop.f32.mrf.mxu1 }
 0x519   : > { %v2126_v32 = vadd.f32 %v9443_v11, %v10709_v60  ;;  %v2111_v60 = vadd.f32 %v2110_v58, %v11093_v39  ;;  %v2091_v39 = vadd.f32 %v2090_v30, %v11111_v55  ;;  %v2071_v55 = vadd.f32 %v2070_v1, %v11129_v24  ;;  %v2269_v30 = vld [vmem:[%s15212_s17 + $0x110] sm:$0xff]  ;;  %v2148_v11 = vld [vmem:[%s15211_s16 + $0x48] sm:$0xff] }
 0x51a   : > { %v2120_v63 = vpop.f32.mrf.mxu1  ;;  %v2061_v24 = vadd.f32 %v11708_v35, %v11139_v37  ;;  %v2145_v58 = vld [vmem:[%s15211_s16 + $0x30] sm:$0xff] }
 0x51b   : > { %v2121_v43 = vadd.f32 %v2120_v63, %v11083_v34  ;;  %2750 = vmatpush1.msra.mxu1 %v2126_v32  ;;  %v2261_v34 = vld [vmem:[%s15212_s17 + $0xd0] sm:$0xff]  ;;  %v2147_v32 = vld [vmem:[%s15211_s16 + $0x40] sm:$0xff] }
 0x51c   : > { %2751 = vmatprep.subr.mxu1 %v10381_v26  ;;  %9518 = vmatprep.mubr.f32.mxu0 %v2261_v34  ;;  %v9446_v27 = vpop.f32.mrf.mxu1  ;;  %v2271_v63 = vld [vmem:[%s15212_s17 + $0x120] sm:$0xff]  ;;  %v2154_v34 = vld [vmem:[%s15211_s16 + $0x78] sm:$0xff] }
 0x51d   : > { %2752 = vmatpush1.msra.mxu1 %v2121_v43  ;;  %9519 = vmatmul.mubr.f32.gmra.mxu0 %v2262_v62  ;;  %v2136_v37 = vadd.f32 %v9446_v27, %v10752_v13  ;;  %v2142_v13 = vld [vmem:[%s15211_s16 + $0x18] sm:$0xff]  ;;  %v2149_v43 = vld [vmem:[%s15211_s16 + $0x50] sm:$0xff]  ;;  %v2164_v27 = vld [vmem:[%s15211_s16 + $0xc8] sm:$0xff] }
 0x51e   : > { %2753 = vmatprep.subr.mxu1 %v10381_v26  ;;  %9521 = vmatprep.mubr.f32.mxu0 %v2263_v46  ;;  %v2130_v1 = vpop.f32.mrf.mxu1  ;;  %v2274_v62 = vld [vmem:[%s15212_s17 + $0x138] sm:$0xff] }
 0x51f   : > { %2754 = vmatpush1.msra.mxu1 %v2116_v54  ;;  %v2131_v35 = vadd.f32 %v2130_v1, %v11162_v29  ;;  %v2268_v29 = vld [vmem:[%s15212_s17 + $0x108] sm:$0xff]  ;;  %v2158_v46 = vld [vmem:[%s15211_s16 + $0x98] sm:$0xff] }
 0x520   : > { %2755 = vmatprep.subr.mxu1 %v10381_v26  ;;  %v2152_v54 = vld [vmem:[%s15211_s16 + $0x68] sm:$0xff]  ;;  %v2166_v1 = vld [vmem:[%s15211_s16 + $0xd8] sm:$0xff] }
 0x521   : > { %2756 = vmatpush1.msra.mxu1 %v2111_v60  ;;  %9522 = vmatmul.mubr.f32.gmra.mxu0 %v2264_v2  ;;  %v2151_v60 = vld [vmem:[%s15211_s16 + $0x60] sm:$0xff]  ;;  %v2276_v2 = vld [vmem:[%s15212_s17 + $0x148] sm:$0xff] }
 0x522   : > { %2757 = vmatprep.subr.mxu1 %v10381_v26  ;;  %9524 = vmatprep.mubr.f32.mxu0 %v2265_v12  ;;  %v2162_v12 = vld [vmem:[%s15211_s16 + $0xb8] sm:$0xff] }
 0x523   : > { %2758 = vmatpush1.msra.mxu1 %v2106_v47  ;;  %v2273_v47 = vld [vmem:[%s15212_s17 + $0x130] sm:$0xff] }
 0x524   : > { %2759 = vmatprep.subr.mxu1 %v10381_v26 }
 0x525   : > { %2760 = vmatpush1.msra.mxu1 %v2101_v3  ;;  %9525 = vmatmul.mubr.f32.gmra.mxu0 %v2266_v6  ;;  %v2153_v3 = vld [vmem:[%s15211_s16 + $0x70] sm:$0xff]  ;;  %v2278_v6 = vld [vmem:[%s15212_s17 + $0x158] sm:$0xff] }
 0x526   : > { %2761 = vmatprep.subr.mxu1 %v10381_v26  ;;  %9527 = vmatprep.mubr.f32.mxu0 %v2267_v59  ;;  %v2167_v59 = vld [vmem:[%s15211_s16 + $0xe0] sm:$0xff] }
 0x527   : > { %2762 = vmatpush1.msra.mxu1 %v2096_v0  ;;  %v2156_v0 = vld [vmem:[%s15211_s16 + $0x88] sm:$0xff] }
 0x528   : > { %2763 = vmatprep.subr.mxu1 %v10381_v26 }
 0x529   : > { %2764 = vmatpush1.msra.mxu1 %v2091_v39  ;;  %9528 = vmatmul.mubr.f32.gmra.mxu0 %v2268_v29  ;;  %v2155_v39 = vld [vmem:[%s15211_s16 + $0x80] sm:$0xff]  ;;  %v2281_v29 = vld [vmem:[%s15212_s17 + $0x170] sm:$0xff] }
 0x52a   : > { %2765 = vmatprep.subr.mxu1 %v10381_v26  ;;  %9530 = vmatprep.mubr.f32.mxu0 %v2269_v30  ;;  %v2172_v30 = vld [vmem:[%s15211_s16 + $0x108] sm:$0xff] }
 0x52b   : > { %2766 = vmatpush1.msra.mxu1 %v2086_v56  ;;  %v2275_v56 = vld [vmem:[%s15212_s17 + $0x140] sm:$0xff] }
 0x52c   : > { %2767 = vmatprep.subr.mxu1 %v10381_v26 }
 0x52d   : > { %2768 = vmatpush1.msra.mxu1 %v2081_v40  ;;  %9531 = vmatmul.mubr.f32.gmra.mxu0 %v2270_v23  ;;  %v2157_v40 = vld [vmem:[%s15211_s16 + $0x90] sm:$0xff]  ;;  %v2174_v23 = vld [vmem:[%s15211_s16 + $0x118] sm:$0xff] }
 0x52e   : > { %2769 = vmatprep.subr.mxu1 %v10381_v26  ;;  %9533 = vmatprep.mubr.f32.mxu0 %v2271_v63  ;;  %v2175_v63 = vld [vmem:[%s15211_s16 + $0x120] sm:$0xff] }
 0x52f   : > { %2770 = vmatpush1.msra.mxu1 %v2076_v4  ;;  %v2160_v4 = vld [vmem:[%s15211_s16 + $0xa8] sm:$0xff] }
 0x530   : > { %2771 = vmatprep.subr.mxu1 %v10381_v26 }
 0x531   : > { %2772 = vmatpush1.msra.mxu1 %v2071_v55  ;;  %9534 = vmatmul.mubr.f32.gmra.mxu0 %v2272_v17  ;;  %v2159_v55 = vld [vmem:[%s15211_s16 + $0xa0] sm:$0xff]  ;;  %v2177_v17 = vld [vmem:[%s15211_s16 + $0x130] sm:$0xff] }
 0x532   : > { %2773 = vmatprep.subr.mxu1 %v10381_v26  ;;  %9536 = vmatprep.mubr.f32.mxu0 %v2273_v47  ;;  %v2181_v47 = vld [vmem:[%s15211_s16 + $0x150] sm:$0xff] }
 0x533   : > { %2774 = vmatpush1.msra.mxu1 %v2066_v16  ;;  %v2277_v16 = vld [vmem:[%s15212_s17 + $0x150] sm:$0xff] }
 0x534   : > { %2775 = vmatprep.subr.mxu1 %v10381_v26 }
 0x535   : > { %2776 = vmatpush1.msra.mxu1 %v2061_v24  ;;  %9537 = vmatmul.mubr.f32.gmra.mxu0 %v2274_v62  ;;  %v2161_v24 = vld [vmem:[%s15211_s16 + $0xb0] sm:$0xff]  ;;  %v2183_v62 = vld [vmem:[%s15211_s16 + $0x160] sm:$0xff] }
 0x536   : > { %2777 = vmatprep.subr.mxu1 %v10381_v26  ;;  %9539 = vmatprep.mubr.f32.mxu0 %v2275_v56  ;;  %v2187_v56 = vld [vmem:[%s15211_s16 + $0x180] sm:$0xff] }
 0x537   : > { %2778 = vmatpush1.msra.mxu1 %v2056_v8  ;;  %v2163_v8 = vld [vmem:[%s15211_s16 + $0xc0] sm:$0xff] }
 0x538   : > { %2779 = vmatprep.subr.mxu1 %v10381_v26 }
 0x539   : > { %2780 = vmatpush1.msra.mxu1 %v2051_v21  ;;  %9540 = vmatmul.mubr.f32.gmra.mxu0 %v2276_v2  ;;  %v2279_v21 = vld [vmem:[%s15212_s17 + $0x160] sm:$0xff]  ;;  %v2189_v2 = vld [vmem:[%s15211_s16 + $0x190] sm:$0xff] }
 0x53a   : > { %2809 = vmatprep.subr.mxu1 %v10381_v26  ;;  %9542 = vmatprep.mubr.f32.mxu0 %v2277_v16  ;;  %v2193_v16 = vld [vmem:[%s15211_s16 + $0x1b0] sm:$0xff] }
 0x53b   : > { %2810 = vmatpush2.msra.mxu1 %v2136_v37  ;;  %v2280_v37 = vld [vmem:[%s15212_s17 + $0x168] sm:$0xff] }
 0x53c   : > { %2811 = vmatprep.subr.mxu1 %v10381_v26 }
 0x53d   : > { %2812 = vmatpush2.msra.mxu1 %v2131_v35  ;;  %9543 = vmatmul.mubr.f32.gmra.mxu0 %v2278_v6  ;;  %v2165_v35 = vld [vmem:[%s15211_s16 + $0xd0] sm:$0xff]  ;;  %v2195_v6 = vld [vmem:[%s15211_s16 + $0x1c0] sm:$0xff] }
 0x53e   : > { %2814 = vmatmul.mubr.f32.vlgmr.msra.gmra.mxu1 %v2139_v10  ;;  %9545 = vmatprep.mubr.f32.mxu0 %v2279_v21  ;;  %v2168_v10 = vld [vmem:[%s15211_s16 + $0xe8] sm:$0xff]  ;;  %v2199_v21 = vld [vmem:[%s15211_s16 + $0x1e0] sm:$0xff] }
 0x53f   : > { %8347 = vmatprep.mubr.msk.f32.mxu1 %vm2604_vm7, %v2142_v13  ;;  %v3055_v13 = vld [vmem:[%s15213_s18 + $0x8] sm:$0xff] }
 0x540   : > { %9551 = vmatprep.subr.mxu0 %v3055_v13 }
 0x541   : > { %9546 = vmatmul.mubr.f32.gmra.mxu0 %v2280_v37  ;;  %v2201_v37 = vld [vmem:[%s15211_s16 + $0x1f0] sm:$0xff] }
 0x542   : > { %2819 = vmatmul.mubr.f32.gmra.mxu1 %v2141_v9  ;;  %v2170_v9 = vld [vmem:[%s15211_s16 + $0xf8] sm:$0xff]  ;;  %9548 = vmatprep.mubr.f32.mxu0 %v2281_v29  ;;  %v2208_v29 = vld [vmem:[%s15211_s16 + $0x228] sm:$0xff] }
 0x543   : > { %8348 = vmatprep.mubr.msk.f32.mxu1 %vm2604_vm7, %v2144_v48  ;;  %9552 = vmatpush3.msra.mxu0 %v3055_v13  ;;  %v2282_v48 = vld [vmem:[%s15212_s17 + $0x178] sm:$0xff]  ;;  %v2205_v13 = vld [vmem:[%s15211_s16 + $0x210] sm:$0xff] }
 0x545   : > { %9549 = vmatmul.mubr.f32.gmra.mxu0 %v2282_v48  ;;  %v2210_v48 = vld [vmem:[%s15211_s16 + $0x238] sm:$0xff] }
 0x546   : > { %2824 = vmatmul.mubr.f32.gmra.mxu1 %v2143_v52  ;;  %v2169_v52 = vld [vmem:[%s15211_s16 + $0xf0] sm:$0xff] }
 0x547   : > { %8349 = vmatprep.mubr.msk.f32.mxu1 %vm2604_vm7, %v2146_v61  ;;  %v2171_v61 = vld [vmem:[%s15211_s16 + $0x100] sm:$0xff] }
 0x54a   : > { %2829 = vmatmul.mubr.f32.gmra.mxu1 %v2145_v58  ;;  %v2173_v58 = vld [vmem:[%s15211_s16 + $0x110] sm:$0xff] }
 0x54b   : > { %8350 = vmatprep.mubr.msk.f32.mxu1 %vm2604_vm7, %v2148_v11  ;;  %v2176_v11 = vld [vmem:[%s15211_s16 + $0x128] sm:$0xff] }
 0x54e   : > { %2834 = vmatmul.mubr.f32.gmra.mxu1 %v2147_v32  ;;  %v3054_v32 = vld [vmem:[%s15213_s18] sm:$0xff] }
 0x54f   : > { %8351 = vmatprep.mubr.msk.f32.mxu1 %vm2604_vm7, %v2150_v19  ;;  %9553 = vmatprep.subr.mxu0 %v3054_v32  ;;  %v2178_v19 = vld [vmem:[%s15211_s16 + $0x138] sm:$0xff] }
 0x550   : > { %9554 = vmatpush3.msra.mxu0 %v3054_v32  ;;  %v2216_v32 = vld [vmem:[%s15211_s16 + $0x268] sm:$0xff] }
 0x552   : > { %2839 = vmatmul.mubr.f32.gmra.mxu1 %v2149_v43  ;;  %v2180_v43 = vld [vmem:[%s15211_s16 + $0x148] sm:$0xff] }
 0x553   : > { %8352 = vmatprep.mubr.msk.f32.mxu1 %vm2604_vm7, %v2152_v54  ;;  %v2179_v54 = vld [vmem:[%s15211_s16 + $0x140] sm:$0xff] }
 0x556   : > { %2844 = vmatmul.mubr.f32.gmra.mxu1 %v2151_v60  ;;  %v2182_v60 = vld [vmem:[%s15211_s16 + $0x158] sm:$0xff] }
 0x557   : > { %8353 = vmatprep.mubr.msk.f32.mxu1 %vm2604_vm7, %v2154_v34  ;;  %v2184_v34 = vld [vmem:[%s15211_s16 + $0x168] sm:$0xff] }
 0x55a   : > { %2849 = vmatmul.mubr.f32.gmra.mxu1 %v2153_v3  ;;  %v2186_v3 = vld [vmem:[%s15211_s16 + $0x178] sm:$0xff] }
 0x55b   : > { %8354 = vmatprep.mubr.msk.f32.mxu1 %vm2604_vm7, %v2156_v0  ;;  %v2185_v0 = vld [vmem:[%s15211_s16 + $0x170] sm:$0xff] }
 0x55e   : > { %2854 = vmatmul.mubr.f32.gmra.mxu1 %v2155_v39  ;;  %v2188_v39 = vld [vmem:[%s15211_s16 + $0x188] sm:$0xff] }
 0x55f   : > { %8355 = vmatprep.mubr.msk.f32.mxu1 %vm2604_vm7, %v2158_v46  ;;  %v2190_v46 = vld [vmem:[%s15211_s16 + $0x198] sm:$0xff] }
 0x562   : > { %2859 = vmatmul.mubr.f32.gmra.mxu1 %v2157_v40  ;;  %v2192_v40 = vld [vmem:[%s15211_s16 + $0x1a8] sm:$0xff] }
 0x563   : > { %8356 = vmatprep.mubr.msk.f32.mxu1 %vm2604_vm7, %v2160_v4  ;;  %v2191_v4 = vld [vmem:[%s15211_s16 + $0x1a0] sm:$0xff] }
 0x566   : > { %2864 = vmatmul.mubr.f32.gmra.mxu1 %v2159_v55  ;;  %v2194_v55 = vld [vmem:[%s15211_s16 + $0x1b8] sm:$0xff] }
 0x567   : > { %8357 = vmatprep.mubr.msk.f32.mxu1 %vm2604_vm7, %v2162_v12  ;;  %v2196_v12 = vld [vmem:[%s15211_s16 + $0x1c8] sm:$0xff] }
 0x56a   : > { %2869 = vmatmul.mubr.f32.gmra.mxu1 %v2161_v24  ;;  %v2198_v24 = vld [vmem:[%s15211_s16 + $0x1d8] sm:$0xff] }
 0x56b   : > { %8358 = vmatprep.mubr.msk.f32.mxu1 %vm2604_vm7, %v2164_v27  ;;  %v2197_v27 = vld [vmem:[%s15211_s16 + $0x1d0] sm:$0xff] }
 0x56e   : > { %2874 = vmatmul.mubr.f32.gmra.mxu1 %v2163_v8  ;;  %v2200_v8 = vld [vmem:[%s15211_s16 + $0x1e8] sm:$0xff] }
 0x56f   : > { %8359 = vmatprep.mubr.msk.f32.mxu1 %vm2604_vm7, %v2166_v1  ;;  %v2202_v1 = vld [vmem:[%s15211_s16 + $0x1f8] sm:$0xff] }
 0x572   : > { %2879 = vmatmul.mubr.f32.gmra.mxu1 %v2165_v35  ;;  %v2204_v35 = vld [vmem:[%s15211_s16 + $0x208] sm:$0xff] }
 0x573   : > { %8360 = vmatprep.mubr.msk.f32.mxu1 %vm2604_vm7, %v2168_v10  ;;  %v2203_v10 = vld [vmem:[%s15211_s16 + $0x200] sm:$0xff] }
 0x576   : > { %2884 = vmatmul.mubr.f32.gmra.mxu1 %v2167_v59  ;;  %v2206_v59 = vld [vmem:[%s15211_s16 + $0x218] sm:$0xff] }
 0x577   : > { %8361 = vmatprep.mubr.msk.f32.mxu1 %vm2604_vm7, %v2170_v9  ;;  %v2207_v9 = vld [vmem:[%s15211_s16 + $0x220] sm:$0xff] }
 0x57a   : > { %2889 = vmatmul.mubr.f32.gmra.mxu1 %v2169_v52  ;;  %v2209_v52 = vld [vmem:[%s15211_s16 + $0x230] sm:$0xff] }
 0x57b   : > { %8362 = vmatprep.mubr.msk.f32.mxu1 %vm2604_vm7, %v2172_v30  ;;  %v2212_v30 = vld [vmem:[%s15211_s16 + $0x248] sm:$0xff] }
 0x57e   : > { %2894 = vmatmul.mubr.f32.gmra.mxu1 %v2171_v61  ;;  %v2211_v61 = vld [vmem:[%s15211_s16 + $0x240] sm:$0xff] }
 0x57f   : > { %8363 = vmatprep.mubr.msk.f32.mxu1 %vm2604_vm7, %v2174_v23  ;;  %v2214_v23 = vld [vmem:[%s15211_s16 + $0x258] sm:$0xff] }
 0x582   : > { %2899 = vmatmul.mubr.f32.gmra.mxu1 %v2173_v58  ;;  %v12110_v58 = vld [vmem:[%s12104_s28 + $0x78] sm:$0xff] }
 0x583   : > { %8364 = vmatprep.mubr.msk.f32.mxu1 %vm2604_vm7, %v2176_v11  ;;  %10239 = vmatprep.subr.mxu1 %v12110_v58  ;;  %v2213_v11 = vld [vmem:[%s15211_s16 + $0x250] sm:$0xff] }
 0x584   : > { %9627 = vmatprep.subr.mxu0 %v12110_v58  ;;  %10255 = vmatpush3.msra.mxu1 %v12110_v58 }
 0x586   : > { %2904 = vmatmul.mubr.f32.gmra.mxu1 %v2175_v63  ;;  %v2215_v63 = vld [vmem:[%s15211_s16 + $0x260] sm:$0xff] }
 0x587   : > { %8365 = vmatprep.mubr.msk.f32.mxu1 %vm2604_vm7, %v2178_v19  ;;  %v2218_v19 = vld [vmem:[%s15211_s16 + $0x278] sm:$0xff] }
 0x58a   : > { %2909 = vmatmul.mubr.f32.gmra.mxu1 %v2177_v17  ;;  %v2217_v17 = vld [vmem:[%s15211_s16 + $0x270] sm:$0xff] }
 0x58b   : > { %8366 = vmatprep.mubr.msk.f32.mxu1 %vm2604_vm7, %v2180_v43  ;;  %v12134_v43 = vld [vmem:[%s12104_s28 + $0x70] sm:$0xff] }
 0x58c   : > { %10240 = vmatprep.subr.mxu1 %v12134_v43 }
 0x58d   : > { %10256 = vmatpush3.msra.mxu1 %v12134_v43 }
 0x58e   : > { %2914 = vmatmul.mubr.f32.gmra.mxu1 %v2179_v54  ;;  %v2220_v54 = vld [vmem:[%s15211_s16 + $0x288] sm:$0xff] }
 0x58f   : > { %8367 = vmatprep.mubr.msk.f32.mxu1 %vm2604_vm7, %v2182_v60  ;;  %v2219_v60 = vld [vmem:[%s15211_s16 + $0x280] sm:$0xff] }
 0x592   : > { %2919 = vmatmul.mubr.f32.gmra.mxu1 %v2181_v47  ;;  %v2222_v47 = vld [vmem:[%s15211_s16 + $0x298] sm:$0xff] }
 0x593   : > { %8368 = vmatprep.mubr.msk.f32.mxu1 %vm2604_vm7, %v2184_v34  ;;  %v2221_v34 = vld [vmem:[%s15211_s16 + $0x290] sm:$0xff] }
 0x596   : > { %2924 = vmatmul.mubr.f32.gmra.mxu1 %v2183_v62  ;;  %v2224_v62 = vld [vmem:[%s15211_s16 + $0x2a8] sm:$0xff] }
 0x597   : > { %8369 = vmatprep.mubr.msk.f32.mxu1 %vm2604_vm7, %v2186_v3  ;;  %v2223_v3 = vld [vmem:[%s15211_s16 + $0x2a0] sm:$0xff] }
 0x59a   : > { %2929 = vmatmul.mubr.f32.gmra.mxu1 %v2185_v0  ;;  %v4286_v0 = vld [vmem:[%s12104_s28 + $0x68] sm:$0xff] }
 0x59b   : > { %8370 = vmatprep.mubr.msk.f32.mxu1 %vm2604_vm7, %v2188_v39  ;;  %v2226_v39 = vld [vmem:[%s15211_s16 + $0x2b8] sm:$0xff]  ;;  %10241 = vmatprep.subr.mxu1 %v4286_v0 }
 0x59c   : > { %10257 = vmatpush3.msra.mxu1 %v4286_v0 }
 0x59e   : > { %2934 = vmatmul.mubr.f32.gmra.mxu1 %v2187_v56  ;;  %v2225_v56 = vld [vmem:[%s15211_s16 + $0x2b0] sm:$0xff] }
 0x59f   : > { %8371 = vmatprep.mubr.msk.f32.mxu1 %vm2604_vm7, %v2190_v46  ;;  %v2228_v46 = vld [vmem:[%s15211_s16 + $0x2c8] sm:$0xff] }
 0x5a2   : > { %2939 = vmatmul.mubr.f32.gmra.mxu1 %v2189_v2  ;;  %v2227_v2 = vld [vmem:[%s15211_s16 + $0x2c0] sm:$0xff] }
 0x5a3   : > { %8372 = vmatprep.mubr.msk.f32.mxu1 %vm2604_vm7, %v2192_v40  ;;  %v2230_v40 = vld [vmem:[%s15211_s16 + $0x2d8] sm:$0xff] }
 0x5a6   : > { %2944 = vmatmul.mubr.f32.gmra.mxu1 %v2191_v4  ;;  %v2229_v4 = vld [vmem:[%s15211_s16 + $0x2d0] sm:$0xff] }
 0x5a7   : > { %8373 = vmatprep.mubr.msk.f32.mxu1 %vm2604_vm7, %v2194_v55  ;;  %v4285_v55 = vld [vmem:[%s12104_s28 + $0x60] sm:$0xff] }
 0x5a8   : > { %10242 = vmatprep.subr.mxu1 %v4285_v55 }
 0x5a9   : > { %10258 = vmatpush3.msra.mxu1 %v4285_v55 }
 0x5aa   : > { %2949 = vmatmul.mubr.f32.gmra.mxu1 %v2193_v16  ;;  %v2232_v16 = vld [vmem:[%s15211_s16 + $0x2e8] sm:$0xff] }
 0x5ab   : > { %8374 = vmatprep.mubr.msk.f32.mxu1 %vm2604_vm7, %v2196_v12  ;;  %v2231_v12 = vld [vmem:[%s15211_s16 + $0x2e0] sm:$0xff] }
 0x5ae   : > { %2954 = vmatmul.mubr.f32.gmra.mxu1 %v2195_v6  ;;  %v2234_v6 = vld [vmem:[%s15211_s16 + $0x2f8] sm:$0xff] }
 0x5af   : > { %8375 = vmatprep.mubr.msk.f32.mxu1 %vm2604_vm7, %v2198_v24  ;;  %v2233_v24 = vld [vmem:[%s15211_s16 + $0x2f0] sm:$0xff] }
 0x5b2   : > { %2959 = vmatmul.mubr.f32.gmra.mxu1 %v2197_v27  ;;  %v9481_v27 = vpop.f32.mrf.mxu0 }
 0x5b3   : > { %8376 = vmatprep.mubr.msk.f32.mxu1 %vm2604_vm7, %v2200_v8  ;;  %v4284_v8 = vld [vmem:[%s12104_s28 + $0x58] sm:$0xff] }
 0x5b4   : > { %10243 = vmatprep.subr.mxu1 %v4284_v8 }
 0x5b5   : > { %10259 = vmatpush3.msra.mxu1 %v4284_v8 }
 0x5b6   : > { %2964 = vmatmul.mubr.f32.gmra.mxu1 %v2199_v21  ;;  %v2365_v21 = vpop.f32.mrf.mxu0 }
 0x5b7   : > { %8377 = vmatprep.mubr.msk.f32.mxu1 %vm2604_vm7, %v2202_v1 }
 0x5ba   : > { %2969 = vmatmul.mubr.f32.gmra.mxu1 %v2201_v37 }
 0x5bb   : > { %8378 = vmatprep.mubr.msk.f32.mxu1 %vm2604_vm7, %v2204_v35 }
 0x5be   : > { %2974 = vmatmul.mubr.f32.gmra.mxu1 %v2203_v10  ;;  %v9484_v10 = vpop.f32.mrf.mxu0 }
 0x5bf   : > { %8379 = vmatprep.mubr.msk.f32.mxu1 %vm2604_vm7, %v2206_v59 }
 0x5c2   : > { %2979 = vmatmul.mubr.f32.gmra.mxu1 %v2205_v13 }
 0x5c3   : > { %8380 = vmatprep.mubr.msk.f32.mxu1 %vm2604_vm7, %v2208_v29 }
 0x5c6   : > { %2984 = vmatmul.mubr.f32.gmra.mxu1 %v2207_v9  ;;  %v2375_v9 = vpop.f32.mrf.mxu0 }
 0x5c7   : > { %8381 = vmatprep.mubr.msk.f32.mxu1 %vm2604_vm7, %v2210_v48 }
 0x5ca   : > { %2989 = vmatmul.mubr.f32.gmra.mxu1 %v2209_v52  ;;  %v4283_v52 = vld [vmem:[%s12104_s28 + $0x50] sm:$0xff] }
 0x5cb   : > { %8382 = vmatprep.mubr.msk.f32.mxu1 %vm2604_vm7, %v2212_v30  ;;  %10244 = vmatprep.subr.mxu1 %v4283_v52 }
 0x5cc   : > { %10260 = vmatpush3.msra.mxu1 %v4283_v52 }
 0x5ce   : > { %2994 = vmatmul.mubr.f32.gmra.mxu1 %v2211_v61 }
 0x5cf   : > { %8383 = vmatprep.mubr.msk.f32.mxu1 %vm2604_vm7, %v2214_v23  ;;  %v9487_v23 = vpop.f32.mrf.mxu0 }
 0x5d2   : > { %2999 = vmatmul.mubr.f32.gmra.mxu1 %v2213_v11 }
 0x5d3   : > { %8384 = vmatprep.mubr.msk.f32.mxu1 %vm2604_vm7, %v2216_v32 }
 0x5d6   : > { %3004 = vmatmul.mubr.f32.gmra.mxu1 %v2215_v63 }
 0x5d7   : > { %8385 = vmatprep.mubr.msk.f32.mxu1 %vm2604_vm7, %v2218_v19  ;;  %v2385_v19 = vpop.f32.mrf.mxu0 }
 0x5da   : > { %3009 = vmatmul.mubr.f32.gmra.mxu1 %v2217_v17 }
 0x5db   : > { %8386 = vmatprep.mubr.msk.f32.mxu1 %vm2604_vm7, %v2220_v54 }
 0x5de   : > { %3014 = vmatmul.mubr.f32.gmra.mxu1 %v2219_v60 }
 0x5df   : > { %8387 = vmatprep.mubr.msk.f32.mxu1 %vm2604_vm7, %v2222_v47 }
 0x5e2   : > { %3019 = vmatmul.mubr.f32.gmra.mxu1 %v2221_v34  ;;  %v4282_v34 = vld [vmem:[%s12104_s28 + $0x48] sm:$0xff] }
 0x5e3   : > { %8388 = vmatprep.mubr.msk.f32.mxu1 %vm2604_vm7, %v2224_v62  ;;  %10245 = vmatprep.subr.mxu1 %v4282_v34 }
 0x5e4   : > { %10261 = vmatpush3.msra.mxu1 %v4282_v34 }
 0x5e6   : > { %3024 = vmatmul.mubr.f32.gmra.mxu1 %v2223_v3 }
 0x5e7   : > { %8389 = vmatprep.mubr.msk.f32.mxu1 %vm2604_vm7, %v2226_v39 }
 0x5ea   : > { %3029 = vmatmul.mubr.f32.gmra.mxu1 %v2225_v56 }
 0x5eb   : > { %8390 = vmatprep.mubr.msk.f32.mxu1 %vm2604_vm7, %v2228_v46 }
 0x5ee   : > { %3034 = vmatmul.mubr.f32.gmra.mxu1 %v2227_v2 }
 0x5ef   : > { %8391 = vmatprep.mubr.msk.f32.mxu1 %vm2604_vm7, %v2230_v40 }
 0x5f2   : > { %3039 = vmatmul.mubr.f32.gmra.mxu1 %v2229_v4 }
 0x5f3   : > { %8392 = vmatprep.mubr.msk.f32.mxu1 %vm2604_vm7, %v2232_v16 }
 0x5f6   : > { %3044 = vmatmul.mubr.f32.gmra.mxu1 %v2231_v12  ;;  %v4281_v12 = vld [vmem:[%s12104_s28 + $0x40] sm:$0xff] }
 0x5f7   : > { %8393 = vmatprep.mubr.msk.f32.mxu1 %vm2604_vm7, %v2234_v6  ;;  %10246 = vmatprep.subr.mxu1 %v4281_v12 }
 0x5f8   : > { %10262 = vmatpush3.msra.mxu1 %v4281_v12 }
 0x5fa   : > { %3049 = vmatmul.mubr.f32.gmra.mxu1 %v2233_v24 }
 0x5fe   : > { %v2815_v1 = vpop.f32.mrf.mxu1 }
 0x5ff   : > { %v2816_v37 = vadd.f32 %v2815_v1, %v2365_v21 }
 0x600   : > { %v2817_v35 = vpop.f32.mrf.mxu1 }
 0x601   : > { %9555 = vmatprep.mubr.msk.f32.mxu0 %vm2604_vm7, %v2816_v37 }
 0x602   : > { %v2820_v59 = vpop.f32.mrf.mxu1 }
 0x603   : > { %v2821_v13 = vadd.f32 %v9481_v27, %v2820_v59 }
 0x604   : > { %v2822_v29 = vpop.f32.mrf.mxu1 }
 0x605   : > { %9556 = vmatmul.mubr.msk.f32.vlgmr.msra.gmra.mxu0 %vm2604_vm7, %v2821_v13 }
 0x606   : > { %v2825_v48 = vpop.f32.mrf.mxu1  ;;  %9628 = vmatpush3.msra.mxu0 %v12110_v58 }
 0x607   : > { %v2826_v30 = vadd.f32 %v2825_v48, %v2375_v9  ;;  %9629 = vmatprep.subr.mxu0 %v12134_v43  ;;  %v4280_v48 = vld [vmem:[%s12104_s28 + $0x38] sm:$0xff] }
 0x608   : > { %v2827_v61 = vpop.f32.mrf.mxu1  ;;  %9630 = vmatpush3.msra.mxu0 %v12134_v43  ;;  %v9490_v43 = vpop.f32.mrf.mxu0  ;;  %10247 = vmatprep.subr.mxu1 %v4280_v48 }
 0x609   : > { %9558 = vmatprep.mubr.msk.f32.mxu0 %vm2604_vm7, %v2826_v30  ;;  %9631 = vmatprep.subr.mxu0 %v4286_v0 }
 0x60a   : > { %v2830_v11 = vpop.f32.mrf.mxu1  ;;  %9632 = vmatpush3.msra.mxu0 %v4286_v0  ;;  %v2395_v3 = vpop.f32.mrf.mxu0  ;;  %10263 = vmatpush3.msra.mxu1 %v4280_v48 }
 0x60b   : > { %v2831_v32 = vadd.f32 %v9484_v10, %v2830_v11  ;;  %9633 = vmatprep.subr.mxu0 %v4285_v55 }
 0x60c   : > { %v2832_v63 = vpop.f32.mrf.mxu1  ;;  %9634 = vmatpush3.msra.mxu0 %v4285_v55  ;;  %v9493_v46 = vpop.f32.mrf.mxu0 }
 0x60d   : > { %9559 = vmatmul.mubr.msk.f32.gmra.mxu0 %vm2604_vm7, %v2831_v32  ;;  %9635 = vmatprep.subr.mxu0 %v4284_v8 }
 0x60e   : > { %v2835_v58 = vpop.f32.mrf.mxu1  ;;  %9636 = vmatpush3.msra.mxu0 %v4284_v8  ;;  %v2405_v55 = vpop.f32.mrf.mxu0 }
 0x60f   : > { %v2836_v17 = vadd.f32 %v2835_v58, %v2385_v19  ;;  %9637 = vmatprep.subr.mxu0 %v4283_v52 }
 0x610   : > { %v2837_v54 = vpop.f32.mrf.mxu1  ;;  %9638 = vmatpush3.msra.mxu0 %v4283_v52  ;;  %v9496_v27 = vpop.f32.mrf.mxu0 }
 0x611   : > { %9561 = vmatprep.mubr.msk.f32.mxu0 %vm2604_vm7, %v2836_v17  ;;  %9639 = vmatprep.subr.mxu0 %v4282_v34 }
 0x612   : > { %v2840_v60 = vpop.f32.mrf.mxu1  ;;  %9640 = vmatpush3.msra.mxu0 %v4282_v34  ;;  %v2415_v37 = vpop.f32.mrf.mxu0 }
 0x613   : > { %v2841_v47 = vadd.f32 %v9487_v23, %v2840_v60  ;;  %9641 = vmatprep.subr.mxu0 %v4281_v12 }
 0x614   : > { %v2842_v62 = vpop.f32.mrf.mxu1  ;;  %9642 = vmatpush3.msra.mxu0 %v4281_v12  ;;  %v9499_v13 = vpop.f32.mrf.mxu0 }
 0x615   : > { %9562 = vmatmul.mubr.msk.f32.gmra.mxu0 %vm2604_vm7, %v2841_v47  ;;  %9643 = vmatprep.subr.mxu0 %v4280_v48 }
 0x616   : > { %v2845_v0 = vpop.f32.mrf.mxu1  ;;  %v2425_v30 = vpop.f32.mrf.mxu0  ;;  %9644 = vmatpush3.msra.mxu0 %v4280_v48  ;;  %v4277_v48 = vld [vmem:[%s12104_s28 + $0x20] sm:$0xff] }
 0x617   : > { %v2846_v39 = vadd.f32 %v2845_v0, %v2395_v3 }
 0x618   : > { %v2847_v56 = vpop.f32.mrf.mxu1  ;;  %v9502_v32 = vpop.f32.mrf.mxu0 }
 0x619   : > { %9564 = vmatprep.mubr.msk.f32.mxu0 %vm2604_vm7, %v2846_v39  ;;  %v4278_v56 = vld [vmem:[%s12104_s28 + $0x28] sm:$0xff] }
 0x61a   : > { %v2850_v2 = vpop.f32.mrf.mxu1  ;;  %v2435_v17 = vpop.f32.mrf.mxu0 }
 0x61b   : > { %v2851_v40 = vadd.f32 %v9490_v43, %v2850_v2  ;;  %v4279_v43 = vld [vmem:[%s12104_s28 + $0x30] sm:$0xff] }
 0x61c   : > { %v2852_v4 = vpop.f32.mrf.mxu1  ;;  %10248 = vmatprep.subr.mxu1 %v4279_v43  ;;  %9645 = vmatprep.subr.mxu0 %v4279_v43  ;;  %v9505_v34 = vpop.f32.mrf.mxu0 }
 0x61d   : > { %9565 = vmatmul.mubr.msk.f32.gmra.mxu0 %vm2604_vm7, %v2851_v40  ;;  %10264 = vmatpush3.msra.mxu1 %v4279_v43 }
 0x61e   : > { %v2855_v16 = vpop.f32.mrf.mxu1  ;;  %9646 = vmatpush3.msra.mxu0 %v4279_v43  ;;  %v2445_v39 = vpop.f32.mrf.mxu0  ;;  %10249 = vmatprep.subr.mxu1 %v4278_v56 }
 0x61f   : > { %v2856_v6 = vadd.f32 %v2855_v16, %v2405_v55  ;;  %9647 = vmatprep.subr.mxu0 %v4278_v56  ;;  %10265 = vmatpush3.msra.mxu1 %v4278_v56 }
 0x620   : > { %v2857_v24 = vpop.f32.mrf.mxu1  ;;  %9648 = vmatpush3.msra.mxu0 %v4278_v56  ;;  %v9508_v4 = vpop.f32.mrf.mxu0  ;;  %10250 = vmatprep.subr.mxu1 %v4277_v48 }
 0x621   : > { %9567 = vmatprep.mubr.msk.f32.mxu0 %vm2604_vm7, %v2856_v6  ;;  %10266 = vmatpush3.msra.mxu1 %v4277_v48 }
 0x622   : > { %v2860_v8 = vpop.f32.mrf.mxu1  ;;  %v2455_v6 = vpop.f32.mrf.mxu0  ;;  %9649 = vmatprep.subr.mxu0 %v4277_v48 }
 0x623   : > { %v2861_v21 = vadd.f32 %v9493_v46, %v2860_v8  ;;  %9650 = vmatpush3.msra.mxu0 %v4277_v48 }
 0x624   : > { %v2862_v1 = vpop.f32.mrf.mxu1 }
 0x625   : > { %9568 = vmatmul.mubr.msk.f32.gmra.mxu0 %vm2604_vm7, %v2861_v21  ;;  %v9511_v21 = vpop.f32.mrf.mxu0 }
 0x626   : > { %v2865_v35 = vpop.f32.mrf.mxu1 }
 0x627   : > { %v2866_v10 = vadd.f32 %v2865_v35, %v2415_v37 }
 0x628   : > { %v2867_v59 = vpop.f32.mrf.mxu1 }
 0x629   : > { %9570 = vmatprep.mubr.msk.f32.mxu0 %vm2604_vm7, %v2866_v10  ;;  %v2465_v10 = vpop.f32.mrf.mxu0 }
 0x62a   : > { %v2870_v29 = vpop.f32.mrf.mxu1 }
 0x62b   : > { %v2871_v9 = vadd.f32 %v9496_v27, %v2870_v29 }
 0x62c   : > { %v2872_v52 = vpop.f32.mrf.mxu1 }
 0x62d   : > { %9571 = vmatmul.mubr.msk.f32.gmra.mxu0 %vm2604_vm7, %v2871_v9  ;;  %v9514_v9 = vpop.f32.mrf.mxu0 }
 0x62e   : > { %v2875_v61 = vpop.f32.mrf.mxu1 }
 0x62f   : > { %v2876_v23 = vadd.f32 %v2875_v61, %v2425_v30 }
 0x630   : > { %v2877_v11 = vpop.f32.mrf.mxu1 }
 0x631   : > { %9573 = vmatprep.mubr.msk.f32.mxu0 %vm2604_vm7, %v2876_v23  ;;  %v2475_v23 = vpop.f32.mrf.mxu0 }
 0x632   : > { %v2880_v63 = vpop.f32.mrf.mxu1 }
 0x633   : > { %v2881_v19 = vadd.f32 %v9499_v13, %v2880_v63 }
 0x634   : > { %v2882_v58 = vpop.f32.mrf.mxu1 }
 0x635   : > { %9574 = vmatmul.mubr.msk.f32.gmra.mxu0 %vm2604_vm7, %v2881_v19  ;;  %v9517_v19 = vpop.f32.mrf.mxu0  ;;  %v4276_v58 = vld [vmem:[%s12104_s28 + $0x18] sm:$0xff] }
 0x636   : > { %v2885_v54 = vpop.f32.mrf.mxu1  ;;  %10251 = vmatprep.subr.mxu1 %v4276_v58  ;;  %9651 = vmatprep.subr.mxu0 %v4276_v58 }
 0x637   : > { %v2886_v60 = vadd.f32 %v2885_v54, %v2435_v17  ;;  %10267 = vmatpush3.msra.mxu1 %v4276_v58  ;;  %9652 = vmatpush3.msra.mxu0 %v4276_v58 }
 0x638   : > { %v2887_v47 = vpop.f32.mrf.mxu1 }
 0x639   : > { %9576 = vmatprep.mubr.msk.f32.mxu0 %vm2604_vm7, %v2886_v60  ;;  %v2485_v60 = vpop.f32.mrf.mxu0 }
 0x63a   : > { %v2890_v62 = vpop.f32.mrf.mxu1 }
 0x63b   : > { %v2891_v3 = vadd.f32 %v9502_v32, %v2890_v62 }
 0x63c   : > { %v2892_v0 = vpop.f32.mrf.mxu1 }
 0x63d   : > { %9577 = vmatmul.mubr.msk.f32.gmra.mxu0 %vm2604_vm7, %v2891_v3  ;;  %v9520_v3 = vpop.f32.mrf.mxu0 }
 0x63e   : > { %v2895_v46 = vpop.f32.mrf.mxu1 }
 0x63f   : > { %v2896_v2 = vadd.f32 %v2895_v46, %v2445_v39  ;;  %v2495_v46 = vpop.f32.mrf.mxu0 }
 0x640   : > { %v2897_v40 = vpop.f32.mrf.mxu1 }
 0x641   : > { %9579 = vmatprep.mubr.msk.f32.mxu0 %vm2604_vm7, %v2896_v2 }
 0x642   : > { %v2900_v55 = vpop.f32.mrf.mxu1 }
 0x643   : > { %v2901_v16 = vadd.f32 %v9505_v34, %v2900_v55  ;;  %v9523_v55 = vpop.f32.mrf.mxu0 }
 0x644   : > { %v2902_v12 = vpop.f32.mrf.mxu1 }
 0x645   : > { %9580 = vmatmul.mubr.msk.f32.gmra.mxu0 %vm2604_vm7, %v2901_v16  ;;  %v4275_v16 = vld [vmem:[%s12104_s28 + $0x10] sm:$0xff] }
 0x646   : > { %v2905_v24 = vpop.f32.mrf.mxu1  ;;  %10252 = vmatprep.subr.mxu1 %v4275_v16  ;;  %9653 = vmatprep.subr.mxu0 %v4275_v16 }
 0x647   : > { %v2906_v27 = vadd.f32 %v2905_v24, %v2455_v6  ;;  %10268 = vmatpush3.msra.mxu1 %v4275_v16  ;;  %9654 = vmatpush3.msra.mxu0 %v4275_v16 }
 0x648   : > { %v2907_v8 = vpop.f32.mrf.mxu1 }
 0x649   : > { %9582 = vmatprep.mubr.msk.f32.mxu0 %vm2604_vm7, %v2906_v27  ;;  %v2505_v27 = vpop.f32.mrf.mxu0 }
 0x64a   : > { %v2910_v1 = vpop.f32.mrf.mxu1 }
 0x64b   : > { %v2911_v37 = vadd.f32 %v9508_v4, %v2910_v1 }
 0x64c   : > { %v2912_v35 = vpop.f32.mrf.mxu1 }
 0x64d   : > { %9583 = vmatmul.mubr.msk.f32.gmra.mxu0 %vm2604_vm7, %v2911_v37  ;;  %v9526_v37 = vpop.f32.mrf.mxu0  ;;  %v4274_v35 = vld [vmem:[%s12104_s28 + $0x8] sm:$0xff] }
 0x64e   : > { %v2915_v59 = vpop.f32.mrf.mxu1  ;;  %10253 = vmatprep.subr.mxu1 %v4274_v35  ;;  %9655 = vmatprep.subr.mxu0 %v4274_v35 }
 0x64f   : > { %v2916_v13 = vadd.f32 %v2915_v59, %v2465_v10  ;;  %10269 = vmatpush3.msra.mxu1 %v4274_v35  ;;  %v4273_v59 = vld [vmem:[%s12104_s28] sm:$0xff]  ;;  %9656 = vmatpush3.msra.mxu0 %v4274_v35  ;;  %v2515_v48 = vpop.f32.mrf.mxu0  ;;  %s10324_s28 = scalar_lea.vmem %s10323_s1, 30720 }
 0x650   : > { %v2917_v29 = vpop.f32.mrf.mxu1  ;;  %10254 = vmatprep.subr.mxu1 %v4273_v59  ;;  %9657 = vmatprep.subr.mxu0 %v4273_v59  ;;  %p10326_p1 = scmp.lt.s32.totalorder %s10324_s28, %s10318_s5 }
 0x651   : > { %9585 = vmatprep.mubr.msk.f32.mxu0 %vm2604_vm7, %v2916_v13  ;;  %v4221_v29 = vld [vmem:[%s15216_s21 + $0x220] sm:$0xff]  ;;  %10270 = vmatpush3.msra.mxu1 %v4273_v59 }
 0x652   : > { %v2920_v52 = vpop.f32.mrf.mxu1  ;;  %9761 = vmatprep.mubr.f32.mxu1 %v4221_v29  ;;  %4954 = vmatprep.subr.mxu1 %v10381_v26  ;;  %p10327_p2 = por %p10326_p1, %p10325_p0 }
 0x653   : > { %v2921_v30 = vadd.f32 %v9511_v21, %v2920_v52  ;;  %v4222_v52 = vld [vmem:[%s15216_s21 + $0x228] sm:$0xff]  ;;  %9658 = vmatpush3.msra.mxu0 %v4273_v59 }
 0x654   : > { %v2922_v61 = vpop.f32.mrf.mxu1  ;;  %9762 = vmatmul.mubr.f32.vlgmr.msra.gmra.mxu1 %v4222_v52  ;;  %v4234_v59 = vld [vmem:[%s15216_s21 + $0x288] sm:$0xff]  ;;  %p10328_p3 = pnand %p10327_p2, %p10321_p13 }
 0x655   : > { %9586 = vmatmul.mubr.msk.f32.gmra.mxu0 %vm2604_vm7, %v2921_v30 }
 0x656   : > { %v2925_v11 = vpop.f32.mrf.mxu1 }
 0x657   : > { %v2926_v32 = vadd.f32 %v2925_v11, %v2475_v23  ;;  %v4223_v23 = vld [vmem:[%s15216_s21 + $0x230] sm:$0xff] }
 0x658   : > { %v2927_v63 = vpop.f32.mrf.mxu1  ;;  %9764 = vmatprep.mubr.f32.mxu1 %v4223_v23 }
 0x659   : > { %9588 = vmatprep.mubr.msk.f32.mxu0 %vm2604_vm7, %v2926_v32  ;;  %v9529_v32 = vpop.f32.mrf.mxu0  ;;  %v4224_v63 = vld [vmem:[%s15216_s21 + $0x238] sm:$0xff] }
 0x65a   : > { %v2930_v17 = vpop.f32.mrf.mxu1  ;;  %9765 = vmatmul.mubr.f32.gmra.mxu1 %v4224_v63 }
 0x65b   : > { %v2931_v54 = vadd.f32 %v9514_v9, %v2930_v17  ;;  %v4225_v17 = vld [vmem:[%s15216_s21 + $0x240] sm:$0xff] }
 0x65c   : > { %v2932_v43 = vpop.f32.mrf.mxu1  ;;  %9767 = vmatprep.mubr.f32.mxu1 %v4225_v17 }
 0x65d   : > { %9589 = vmatmul.mubr.msk.f32.gmra.mxu0 %vm2604_vm7, %v2931_v54  ;;  %v2525_v43 = vpop.f32.mrf.mxu0 }
 0x65e   : > { %v2935_v47 = vpop.f32.mrf.mxu1 }
 0x65f   : > { %v2936_v34 = vadd.f32 %v2935_v47, %v2485_v60  ;;  %v4226_v60 = vld [vmem:[%s15216_s21 + $0x248] sm:$0xff] }
 0x660   : > { %v2937_v62 = vpop.f32.mrf.mxu1  ;;  %9768 = vmatmul.mubr.f32.gmra.mxu1 %v4226_v60 }
 0x661   : > { %9591 = vmatprep.mubr.msk.f32.mxu0 %vm2604_vm7, %v2936_v34  ;;  %v4227_v62 = vld [vmem:[%s15216_s21 + $0x250] sm:$0xff] }
 0x662   : > { %v2940_v0 = vpop.f32.mrf.mxu1  ;;  %9770 = vmatprep.mubr.f32.mxu1 %v4227_v62 }
 0x663   : > { %v2941_v39 = vadd.f32 %v9517_v19, %v2940_v0  ;;  %v9532_v0 = vpop.f32.mrf.mxu0 }
 0x664   : > { %v2942_v56 = vpop.f32.mrf.mxu1 }
 0x665   : > { %9592 = vmatmul.mubr.msk.f32.gmra.mxu0 %vm2604_vm7, %v2941_v39  ;;  %v4228_v39 = vld [vmem:[%s15216_s21 + $0x258] sm:$0xff] }
 0x666   : > { %v2945_v2 = vpop.f32.mrf.mxu1  ;;  %9771 = vmatmul.mubr.f32.gmra.mxu1 %v4228_v39 }
 0x667   : > { %v2946_v40 = vadd.f32 %v2945_v2, %v2495_v46  ;;  %v4229_v2 = vld [vmem:[%s15216_s21 + $0x260] sm:$0xff] }
 0x668   : > { %v2947_v4 = vpop.f32.mrf.mxu1  ;;  %9773 = vmatprep.mubr.f32.mxu1 %v4229_v2 }
 0x669   : > { %9594 = vmatprep.mubr.msk.f32.mxu0 %vm2604_vm7, %v2946_v40  ;;  %v2535_v4 = vpop.f32.mrf.mxu0 }
 0x66a   : > { %v2950_v12 = vpop.f32.mrf.mxu1 }
 0x66b   : > { %v2951_v6 = vadd.f32 %v9520_v3, %v2950_v12 }
 0x66c   : > { %v2952_v24 = vpop.f32.mrf.mxu1 }
 0x66d   : > { %9595 = vmatmul.mubr.msk.f32.gmra.mxu0 %vm2604_vm7, %v2951_v6  ;;  %v4231_v6 = vld [vmem:[%s15216_s21 + $0x270] sm:$0xff] }
 0x66e   : > { %v2955_v8 = vpop.f32.mrf.mxu1 }
 0x66f   : > { %v2956_v21 = vadd.f32 %v2955_v8, %v2505_v27  ;;  %v9535_v27 = vpop.f32.mrf.mxu0  ;;  %v4232_v8 = vld [vmem:[%s15216_s21 + $0x278] sm:$0xff] }
 0x670   : > { %v2957_v1 = vpop.f32.mrf.mxu1 }
 0x671   : > { %9597 = vmatprep.mubr.msk.f32.mxu0 %vm2604_vm7, %v2956_v21 }
 0x672   : > { %v2960_v10 = vpop.f32.mrf.mxu1 }
 0x673   : > { %v2961_v13 = vadd.f32 %v9523_v55, %v2960_v10  ;;  %v4230_v55 = vld [vmem:[%s15216_s21 + $0x268] sm:$0xff]  ;;  %v2545_v10 = vpop.f32.mrf.mxu0 }
 0x674   : > { %v2962_v9 = vpop.f32.mrf.mxu1  ;;  %9774 = vmatmul.mubr.f32.gmra.mxu1 %v4230_v55 }
 0x675   : > { %9598 = vmatmul.mubr.msk.f32.gmra.mxu0 %vm2604_vm7, %v2961_v13  ;;  %9776 = vmatprep.mubr.f32.mxu1 %v4231_v6  ;;  %v4235_v9 = vld [vmem:[%s15216_s21 + $0x290] sm:$0xff]  ;;  %v9538_v52 = vpop.f32.mrf.mxu0 }
 0x676   : > { %v2965_v30 = vpop.f32.mrf.mxu1 }
 0x677   : > { %v2966_v61 = vadd.f32 %v2965_v30, %v2515_v48  ;;  %v4236_v30 = vld [vmem:[%s15216_s21 + $0x298] sm:$0xff]  ;;  %v2555_v63 = vpop.f32.mrf.mxu0 }
 0x678   : > { %v2967_v11 = vpop.f32.mrf.mxu1  ;;  %9777 = vmatmul.mubr.f32.gmra.mxu1 %v4232_v8 }
 0x679   : > { %9600 = vmatprep.mubr.msk.f32.mxu0 %vm2604_vm7, %v2966_v61  ;;  %v4237_v11 = vld [vmem:[%s15216_s21 + $0x2a0] sm:$0xff]  ;;  %v9541_v60 = vpop.f32.mrf.mxu0 }
 0x67a   : > { %v2970_v19 = vpop.f32.mrf.mxu1 }
 0x67b   : > { %v2971_v58 = vadd.f32 %v9526_v37, %v2970_v19  ;;  %v4233_v37 = vld [vmem:[%s15216_s21 + $0x280] sm:$0xff]  ;;  %v4238_v19 = vld [vmem:[%s15216_s21 + $0x2a8] sm:$0xff]  ;;  %v2565_v39 = vpop.f32.mrf.mxu0 }
 0x67c   : > { %v2972_v54 = vpop.f32.mrf.mxu1  ;;  %9779 = vmatprep.mubr.f32.mxu1 %v4233_v37 }
 0x67d   : > { %9601 = vmatmul.mubr.msk.f32.gmra.mxu0 %vm2604_vm7, %v2971_v58  ;;  %9780 = vmatmul.mubr.f32.gmra.mxu1 %v4234_v59  ;;  %v4239_v54 = vld [vmem:[%s15216_s21 + $0x2b0] sm:$0xff]  ;;  %v9544_v55 = vpop.f32.mrf.mxu0 }
 0x67e   : > { %v2975_v47 = vpop.f32.mrf.mxu1  ;;  %9782 = vmatprep.mubr.f32.mxu1 %v4235_v9 }
 0x67f   : > { %v2976_v34 = vadd.f32 %v2975_v47, %v2525_v43  ;;  %v4240_v47 = vld [vmem:[%s15216_s21 + $0x2b8] sm:$0xff]  ;;  %v2575_v8 = vpop.f32.mrf.mxu0 }
 0x680   : > { %v2977_v3 = vpop.f32.mrf.mxu1 }
 0x681   : > { %9603 = vmatprep.mubr.msk.f32.mxu0 %vm2604_vm7, %v2976_v34  ;;  %9783 = vmatmul.mubr.f32.gmra.mxu1 %v4236_v30  ;;  %v4241_v3 = vld [vmem:[%s15216_s21 + $0x2c0] sm:$0xff]  ;;  %v9547_v59 = vpop.f32.mrf.mxu0 }
 0x682   : > { %v2980_v56 = vpop.f32.mrf.mxu1  ;;  %9785 = vmatprep.mubr.f32.mxu1 %v4237_v11 }
 0x683   : > { %v2981_v46 = vadd.f32 %v9529_v32, %v2980_v56  ;;  %v4242_v56 = vld [vmem:[%s15216_s21 + $0x2c8] sm:$0xff]  ;;  %v2585_v30 = vpop.f32.mrf.mxu0 }
 0x684   : > { %v2982_v40 = vpop.f32.mrf.mxu1 }
 0x685   : > { %9604 = vmatmul.mubr.msk.f32.gmra.mxu0 %vm2604_vm7, %v2981_v46  ;;  %9786 = vmatmul.mubr.f32.gmra.mxu1 %v4238_v19  ;;  %v4243_v40 = vld [vmem:[%s15216_s21 + $0x2d0] sm:$0xff]  ;;  %v9550_v19 = vpop.f32.mrf.mxu0 }
 0x686   : > { %v2985_v16 = vpop.f32.mrf.mxu1  ;;  %9788 = vmatprep.mubr.f32.mxu1 %v4239_v54 }
 0x687   : > { %v2986_v12 = vadd.f32 %v2985_v16, %v2535_v4  ;;  %v4244_v16 = vld [vmem:[%s15216_s21 + $0x2d8] sm:$0xff] }
 0x688   : > { %v2987_v24 = vpop.f32.mrf.mxu1 }
 0x689   : > { %9606 = vmatprep.mubr.msk.f32.mxu0 %vm2604_vm7, %v2986_v12  ;;  %9789 = vmatmul.mubr.f32.gmra.mxu1 %v4240_v47  ;;  %v4245_v24 = vld [vmem:[%s15216_s21 + $0x2e0] sm:$0xff]  ;;  %v2595_v47 = vpop.f32.mrf.mxu0 }
 0x68a   : > { %v2990_v21 = vpop.f32.mrf.mxu1  ;;  %9791 = vmatprep.mubr.f32.mxu1 %v4241_v3 }
 0x68b   : > { %v2991_v1 = vadd.f32 %v9532_v0, %v2990_v21  ;;  %v4246_v21 = vld [vmem:[%s15216_s21 + $0x2e8] sm:$0xff] }
 0x68c   : > { %v2992_v35 = vpop.f32.mrf.mxu1 }
 0x68d   : > { %9607 = vmatmul.mubr.msk.f32.gmra.mxu0 %vm2604_vm7, %v2991_v1  ;;  %9792 = vmatmul.mubr.f32.gmra.mxu1 %v4242_v56  ;;  %v4247_v35 = vld [vmem:[%s15216_s21 + $0x2f0] sm:$0xff]  ;;  %v4256_v56 = vld [vmem:[%s15216_s21 + $0x338] sm:$0xff] }
 0x68e   : > { %v2995_v13 = vpop.f32.mrf.mxu1  ;;  %9794 = vmatprep.mubr.f32.mxu1 %v4243_v40  ;;  %v4153_v40 = vld [vmem:[%s15216_s21] sm:$0xff] }
 0x68f   : > { %v2996_v29 = vadd.f32 %v2995_v13, %v2545_v10  ;;  %v4248_v13 = vld [vmem:[%s15216_s21 + $0x2f8] sm:$0xff] }
 0x690   : > { %v2997_v48 = vpop.f32.mrf.mxu1 }
 0x691   : > { %9609 = vmatprep.mubr.msk.f32.mxu0 %vm2604_vm7, %v2996_v29  ;;  %9795 = vmatmul.mubr.f32.gmra.mxu1 %v4244_v16  ;;  %v4249_v48 = vld [vmem:[%s15216_s21 + $0x300] sm:$0xff]  ;;  %v4258_v16 = vld [vmem:[%s15216_s21 + $0x348] sm:$0xff] }
 0x692   : > { %v3000_v61 = vpop.f32.mrf.mxu1  ;;  %9797 = vmatprep.mubr.f32.mxu1 %v4245_v24  ;;  %v4259_v24 = vld [vmem:[%s15216_s21 + $0x350] sm:$0xff] }
 0x693   : > { %v3001_v23 = vadd.f32 %v9535_v27, %v3000_v61  ;;  %v4250_v61 = vld [vmem:[%s15216_s21 + $0x308] sm:$0xff] }
 0x694   : > { %v3002_v32 = vpop.f32.mrf.mxu1 }
 0x695   : > { %9610 = vmatmul.mubr.msk.f32.gmra.mxu0 %vm2604_vm7, %v3001_v23  ;;  %9798 = vmatmul.mubr.f32.gmra.mxu1 %v4246_v21  ;;  %v4251_v32 = vld [vmem:[%s15216_s21 + $0x310] sm:$0xff]  ;;  %v4157_v21 = vld [vmem:[%s15216_s21 + $0x20] sm:$0xff] }
 0x696   : > { %v3005_v58 = vpop.f32.mrf.mxu1  ;;  %9800 = vmatprep.mubr.f32.mxu1 %v4247_v35  ;;  %v4158_v35 = vld [vmem:[%s15216_s21 + $0x28] sm:$0xff] }
 0x697   : > { %v3006_v17 = vadd.f32 %v3005_v58, %v2555_v63  ;;  %v4252_v58 = vld [vmem:[%s15216_s21 + $0x318] sm:$0xff] }
 0x698   : > { %v3007_v43 = vpop.f32.mrf.mxu1 }
 0x699   : > { %9612 = vmatprep.mubr.msk.f32.mxu0 %vm2604_vm7, %v3006_v17  ;;  %9801 = vmatmul.mubr.f32.gmra.mxu1 %v4248_v13  ;;  %v4253_v43 = vld [vmem:[%s15216_s21 + $0x320] sm:$0xff]  ;;  %v4264_v13 = vld [vmem:[%s15216_s21 + $0x378] sm:$0xff] }
 0x69a   : > { %v3010_v34 = vpop.f32.mrf.mxu1  ;;  %9803 = vmatprep.mubr.f32.mxu1 %v4249_v48  ;;  %v4265_v48 = vld [vmem:[%s15216_s21 + $0x380] sm:$0xff] }
 0x69b   : > { %v3011_v62 = vadd.f32 %v9538_v52, %v3010_v34  ;;  %v4254_v34 = vld [vmem:[%s15216_s21 + $0x328] sm:$0xff] }
 0x69c   : > { %v3012_v0 = vpop.f32.mrf.mxu1 }
 0x69d   : > { %9613 = vmatmul.mubr.msk.f32.gmra.mxu0 %vm2604_vm7, %v3011_v62  ;;  %9804 = vmatmul.mubr.f32.gmra.mxu1 %v4250_v61  ;;  %v4255_v0 = vld [vmem:[%s15216_s21 + $0x330] sm:$0xff] }
 0x69e   : > { %v3015_v46 = vpop.f32.mrf.mxu1  ;;  %9806 = vmatprep.mubr.f32.mxu1 %v4251_v32  ;;  %v4163_v61 = vld [vmem:[%s15216_s21 + $0x50] sm:$0xff]  ;;  %v4164_v32 = vld [vmem:[%s15216_s21 + $0x58] sm:$0xff] }
 0x69f   : > { %v3016_v2 = vadd.f32 %v3015_v46, %v2565_v39 }
 0x6a0   : > { %v3017_v4 = vpop.f32.mrf.mxu1 }
 0x6a1   : > { %9615 = vmatprep.mubr.msk.f32.mxu0 %vm2604_vm7, %v3016_v2  ;;  %9807 = vmatmul.mubr.f32.gmra.mxu1 %v4252_v58  ;;  %v4257_v4 = vld [vmem:[%s15216_s21 + $0x340] sm:$0xff] }
 0x6a2   : > { %v3020_v12 = vpop.f32.mrf.mxu1  ;;  %9809 = vmatprep.mubr.f32.mxu1 %v4253_v43  ;;  %v4269_v58 = vld [vmem:[%s15216_s21 + $0x3a0] sm:$0xff] }
 0x6a3   : > { %v3021_v6 = vadd.f32 %v9541_v60, %v3020_v12  ;;  %v4154_v12 = vld [vmem:[%s15216_s21 + $0x8] sm:$0xff] }
 0x6a4   : > { %v3022_v27 = vpop.f32.mrf.mxu1 }
 0x6a5   : > { %9616 = vmatmul.mubr.msk.f32.gmra.mxu0 %vm2604_vm7, %v3021_v6  ;;  %9810 = vmatmul.mubr.f32.gmra.mxu1 %v4254_v34  ;;  %v4155_v6 = vld [vmem:[%s15216_s21 + $0x10] sm:$0xff]  ;;  %v4260_v27 = vld [vmem:[%s15216_s21 + $0x358] sm:$0xff] }
 0x6a6   : > { %v3025_v1 = vpop.f32.mrf.mxu1  ;;  %9812 = vmatprep.mubr.f32.mxu1 %v4255_v0  ;;  %v4272_v34 = vld [vmem:[%s15216_s21 + $0x3b8] sm:$0xff]  ;;  %v4169_v0 = vld [vmem:[%s15216_s21 + $0x80] sm:$0xff] }
 0x6a7   : > { %v3026_v37 = vadd.f32 %v3025_v1, %v2575_v8  ;;  %v4156_v8 = vld [vmem:[%s15216_s21 + $0x18] sm:$0xff]  ;;  %v4261_v1 = vld [vmem:[%s15216_s21 + $0x360] sm:$0xff] }
 0x6a8   : > { %v3027_v10 = vpop.f32.mrf.mxu1 }
 0x6a9   : > { %9618 = vmatprep.mubr.msk.f32.mxu0 %vm2604_vm7, %v3026_v37  ;;  %9813 = vmatmul.mubr.f32.gmra.mxu1 %v4256_v56  ;;  %v4262_v37 = vld [vmem:[%s15216_s21 + $0x368] sm:$0xff]  ;;  %v4159_v10 = vld [vmem:[%s15216_s21 + $0x30] sm:$0xff] }
 0x6aa   : > { %v3030_v29 = vpop.f32.mrf.mxu1  ;;  %9815 = vmatprep.mubr.f32.mxu1 %v4257_v4  ;;  %v3794_v56 = vld [vmem:[%s15215_s20 + $0x8] sm:$0xff]  ;;  %v4172_v4 = vld [vmem:[%s15216_s21 + $0x98] sm:$0xff] }
 0x6ab   : > { %v3031_v9 = vadd.f32 %v9544_v55, %v3030_v29  ;;  %v4160_v29 = vld [vmem:[%s15216_s21 + $0x38] sm:$0xff] }
 0x6ac   : > { %v3032_v52 = vpop.f32.mrf.mxu1 }
 0x6ad   : > { %9619 = vmatmul.mubr.msk.f32.gmra.mxu0 %vm2604_vm7, %v3031_v9  ;;  %9816 = vmatmul.mubr.f32.gmra.mxu1 %v4258_v16  ;;  %v4161_v9 = vld [vmem:[%s15216_s21 + $0x40] sm:$0xff]  ;;  %v4266_v52 = vld [vmem:[%s15216_s21 + $0x388] sm:$0xff] }
 0x6ae   : > { %v3035_v23 = vpop.f32.mrf.mxu1  ;;  %9818 = vmatprep.mubr.f32.mxu1 %v4259_v24  ;;  %v4173_v16 = vld [vmem:[%s15216_s21 + $0xa0] sm:$0xff]  ;;  %v4175_v24 = vld [vmem:[%s15216_s21 + $0xb0] sm:$0xff] }
 0x6af   : > { %v3036_v11 = vadd.f32 %v3035_v23, %v2585_v30  ;;  %v4162_v30 = vld [vmem:[%s15216_s21 + $0x48] sm:$0xff]  ;;  %v4267_v23 = vld [vmem:[%s15216_s21 + $0x390] sm:$0xff] }
 0x6b0   : > { %v3037_v63 = vpop.f32.mrf.mxu1 }
 0x6b1   : > { %9621 = vmatprep.mubr.msk.f32.mxu0 %vm2604_vm7, %v3036_v11  ;;  %9819 = vmatmul.mubr.f32.gmra.mxu1 %v4260_v27  ;;  %v4268_v11 = vld [vmem:[%s15216_s21 + $0x398] sm:$0xff] }
 0x6b2   : > { %v3040_v17 = vpop.f32.mrf.mxu1  ;;  %9821 = vmatprep.mubr.f32.mxu1 %v4261_v1  ;;  %v4177_v1 = vld [vmem:[%s15216_s21 + $0xc0] sm:$0xff] }
 0x6b3   : > { %v3041_v54 = vadd.f32 %v9547_v59, %v3040_v17  ;;  %v4263_v59 = vld [vmem:[%s15216_s21 + $0x370] sm:$0xff]  ;;  %v4270_v17 = vld [vmem:[%s15216_s21 + $0x3a8] sm:$0xff] }
 0x6b4   : > { %v3042_v60 = vpop.f32.mrf.mxu1 }
 0x6b5   : > { %9622 = vmatmul.mubr.msk.f32.gmra.mxu0 %vm2604_vm7, %v3041_v54  ;;  %9822 = vmatmul.mubr.f32.gmra.mxu1 %v4262_v37  ;;  %v4166_v54 = vld [vmem:[%s15216_s21 + $0x68] sm:$0xff]  ;;  %v4167_v60 = vld [vmem:[%s15216_s21 + $0x70] sm:$0xff] }
 0x6b6   : > { %v3045_v62 = vpop.f32.mrf.mxu1  ;;  %9824 = vmatprep.mubr.f32.mxu1 %v4263_v59  ;;  %v4178_v37 = vld [vmem:[%s15216_s21 + $0xc8] sm:$0xff] }
 0x6b7   : > { %v3046_v3 = vadd.f32 %v3045_v62, %v2595_v47  ;;  %v4271_v47 = vld [vmem:[%s15216_s21 + $0x3b0] sm:$0xff] }
 0x6b8   : > { %v3047_v39 = vpop.f32.mrf.mxu1 }
 0x6b9   : > { %9624 = vmatprep.mubr.msk.f32.mxu0 %vm2604_vm7, %v3046_v3  ;;  %9825 = vmatmul.mubr.f32.gmra.mxu1 %v4264_v13  ;;  %v4168_v3 = vld [vmem:[%s15216_s21 + $0x78] sm:$0xff] }
 0x6ba   : > { %v3050_v46 = vpop.f32.mrf.mxu1  ;;  %9827 = vmatprep.mubr.f32.mxu1 %v4265_v48  ;;  %v4180_v13 = vld [vmem:[%s15216_s21 + $0xd8] sm:$0xff]  ;;  %v4182_v48 = vld [vmem:[%s15216_s21 + $0xe8] sm:$0xff] }
 0x6bb   : > { %v3051_v2 = vadd.f32 %v9550_v19, %v3050_v46  ;;  %v4165_v19 = vld [vmem:[%s15216_s21 + $0x60] sm:$0xff]  ;;  %v4170_v46 = vld [vmem:[%s15216_s21 + $0x88] sm:$0xff] }
 0x6bc   : > { %v3052_v55 = vpop.f32.mrf.mxu1 }
 0x6bd   : > { %9625 = vmatmul.mubr.msk.f32.gmra.mxu0 %vm2604_vm7, %v3051_v2  ;;  %9828 = vmatmul.mubr.f32.gmra.mxu1 %v4266_v52 }
 0x6be   : > { %9659 = vmatprep.mubr.f32.mxu0 %v4153_v40  ;;  %9830 = vmatprep.mubr.f32.mxu1 %v4267_v23  ;;  %v4171_v40 = vld [vmem:[%s15216_s21 + $0x90] sm:$0xff] }
 0x6c1   : > { %9660 = vmatmul.mubr.f32.vlgmr.msra.gmra.mxu0 %v4154_v12  ;;  %9831 = vmatmul.mubr.f32.gmra.mxu1 %v4268_v11  ;;  %v4185_v11 = vld [vmem:[%s15216_s21 + $0x100] sm:$0xff] }
 0x6c2   : > { %9662 = vmatprep.mubr.f32.mxu0 %v4155_v6  ;;  %9833 = vmatprep.mubr.f32.mxu1 %v4269_v58  ;;  %v4174_v6 = vld [vmem:[%s15216_s21 + $0xa8] sm:$0xff] }
 0x6c3   : > { %v4186_v58 = vld [vmem:[%s15216_s21 + $0x108] sm:$0xff] }
 0x6c5   : > { %9663 = vmatmul.mubr.f32.gmra.mxu0 %v4156_v8  ;;  %v12440_v63 = vpop.f32.mrf.mxu0  ;;  %9834 = vmatmul.mubr.f32.gmra.mxu1 %v4270_v17  ;;  %v4176_v8 = vld [vmem:[%s15216_s21 + $0xb8] sm:$0xff] }
 0x6c6   : > { %9665 = vmatprep.mubr.f32.mxu0 %v4157_v21  ;;  %9836 = vmatprep.mubr.f32.mxu1 %v4271_v47 }
 0x6c7   : > { %v12454_v43 = vpop.f32.mrf.mxu0 }
 0x6c9   : > { %9666 = vmatmul.mubr.f32.gmra.mxu0 %v4158_v35  ;;  %9837 = vmatmul.mubr.f32.gmra.mxu1 %v4272_v34  ;;  %v4189_v34 = vld [vmem:[%s15216_s21 + $0x120] sm:$0xff] }
 0x6ca   : > { %9668 = vmatprep.mubr.f32.mxu0 %v4159_v10  ;;  %5018 = vmatprep.mubr.f32.mxu1 %v3794_v56  ;;  %v4179_v10 = vld [vmem:[%s15216_s21 + $0xd0] sm:$0xff]  ;;  %v4192_v56 = vld [vmem:[%s15216_s21 + $0x138] sm:$0xff] }
 0x6cd   : > { %9669 = vmatmul.mubr.f32.gmra.mxu0 %v4160_v29  ;;  %v12465_v62 = vpop.f32.mrf.mxu0  ;;  %v4181_v29 = vld [vmem:[%s15216_s21 + $0xe0] sm:$0xff] }
 0x6ce   : > { %9671 = vmatprep.mubr.f32.mxu0 %v4161_v9 }
 0x6cf   : > { %v12473_v39 = vpop.f32.mrf.mxu0 }
 0x6d1   : > { %9672 = vmatmul.mubr.f32.gmra.mxu0 %v4162_v30  ;;  %v4183_v30 = vld [vmem:[%s15216_s21 + $0xf0] sm:$0xff] }
 0x6d2   : > { %9674 = vmatprep.mubr.f32.mxu0 %v4163_v61  ;;  %v4184_v61 = vld [vmem:[%s15216_s21 + $0xf8] sm:$0xff] }
 0x6d5   : > { %9675 = vmatmul.mubr.f32.gmra.mxu0 %v4164_v32  ;;  %v12481_v2 = vpop.f32.mrf.mxu0 }
 0x6d6   : > { %9677 = vmatprep.mubr.f32.mxu0 %v4165_v19 }
 0x6d7   : > { %v12489_v55 = vpop.f32.mrf.mxu0 }
 0x6d9   : > { %9678 = vmatmul.mubr.f32.gmra.mxu0 %v4166_v54  ;;  %v4187_v54 = vld [vmem:[%s15216_s21 + $0x110] sm:$0xff] }
 0x6da   : > { %9680 = vmatprep.mubr.f32.mxu0 %v4167_v60 }
 0x6dd   : > { %9681 = vmatmul.mubr.f32.gmra.mxu0 %v4168_v3  ;;  %v12494_v12 = vpop.f32.mrf.mxu0  ;;  %v4190_v3 = vld [vmem:[%s15216_s21 + $0x128] sm:$0xff] }
 0x6de   : > { %9683 = vmatprep.mubr.f32.mxu0 %v4169_v0  ;;  %v4191_v0 = vld [vmem:[%s15216_s21 + $0x130] sm:$0xff] }
 0x6df   : > { %v12502_v27 = vpop.f32.mrf.mxu0 }
 0x6e1   : > { %9684 = vmatmul.mubr.f32.gmra.mxu0 %v4170_v46  ;;  %v4193_v46 = vld [vmem:[%s15216_s21 + $0x140] sm:$0xff] }
 0x6e2   : > { %9686 = vmatprep.mubr.f32.mxu0 %v4171_v40  ;;  %v4194_v40 = vld [vmem:[%s15216_s21 + $0x148] sm:$0xff] }
 0x6e5   : > { %9687 = vmatmul.mubr.f32.gmra.mxu0 %v4172_v4  ;;  %v9569_v21 = vpop.f32.mrf.mxu0  ;;  %v4195_v4 = vld [vmem:[%s15216_s21 + $0x150] sm:$0xff] }
 0x6e6   : > { %9689 = vmatprep.mubr.f32.mxu0 %v4173_v16  ;;  %v4196_v16 = vld [vmem:[%s15216_s21 + $0x158] sm:$0xff] }
 0x6e7   : > { %v3594_v35 = vpop.f32.mrf.mxu0 }
 0x6e9   : > { %9690 = vmatmul.mubr.f32.gmra.mxu0 %v4174_v6  ;;  %v3575_v6 = vadd.f32 %v12489_v55, %v11222_v7  ;;  %v4199_v7 = vld [vmem:[%s15216_s21 + $0x170] sm:$0xff]  ;;  %v3565_v55 = vadd.f32 %v12473_v39, %v11227_v49  ;;  %v4201_v49 = vld [vmem:[%s15216_s21 + $0x180] sm:$0xff]  ;;  %v3555_v39 = vadd.f32 %v12454_v43, %v11235_v38  ;;  %v4204_v43 = vld [vmem:[%s15216_s21 + $0x198] sm:$0xff] }
 0x6ea   : > { %9692 = vmatprep.mubr.f32.mxu0 %v4175_v24  ;;  %v4203_v38 = vld [vmem:[%s15216_s21 + $0x190] sm:$0xff] }
 0x6ed   : > { %9693 = vmatmul.mubr.f32.gmra.mxu0 %v4176_v8  ;;  %v9572_v59 = vpop.f32.mrf.mxu0 }
 0x6ee   : > { %9695 = vmatprep.mubr.f32.mxu0 %v4177_v1  ;;  %v4205_v1 = vld [vmem:[%s15216_s21 + $0x1a0] sm:$0xff] }
 0x6ef   : > { %v3604_v9 = vpop.f32.mrf.mxu0 }
 0x6f1   : > { %9696 = vmatmul.mubr.f32.gmra.mxu0 %v4178_v37 }
 0x6f2   : > { %9698 = vmatprep.mubr.f32.mxu0 %v4179_v10  ;;  %v4207_v10 = vld [vmem:[%s15216_s21 + $0x1b0] sm:$0xff] }
 0x6f5   : > { %9699 = vmatmul.mubr.f32.gmra.mxu0 %v4180_v13  ;;  %v9575_v52 = vpop.f32.mrf.mxu0  ;;  %v4208_v13 = vld [vmem:[%s15216_s21 + $0x1b8] sm:$0xff] }
 0x6f6   : > { %9701 = vmatprep.mubr.f32.mxu0 %v4181_v29  ;;  %v3620_v47 = vadd.f32 %v9575_v52, %v10765_v18  ;;  %v3610_v18 = vadd.f32 %v9572_v59, %v10770_v20  ;;  %v3600_v20 = vadd.f32 %v9569_v21, %v10784_v25  ;;  %v3590_v25 = vadd.f32 %v12494_v12, %v10792_v28 }
 0x6f7   : > { %v3614_v23 = vpop.f32.mrf.mxu0  ;;  %v3580_v28 = vadd.f32 %v12481_v2, %v10806_v33  ;;  %v3570_v33 = vadd.f32 %v12465_v62, %v10814_v36  ;;  %v4198_v2 = vld [vmem:[%s15216_s21 + $0x168] sm:$0xff]  ;;  %v3560_v36 = vadd.f32 %v12440_v63, %v10828_v41  ;;  %v4200_v62 = vld [vmem:[%s15216_s21 + $0x178] sm:$0xff] }
 0x6f8   : > { %v4202_v41 = vld [vmem:[%s15216_s21 + $0x188] sm:$0xff] }
 0x6f9   : > { %9702 = vmatmul.mubr.f32.gmra.mxu0 %v4182_v48  ;;  %v4210_v48 = vld [vmem:[%s15216_s21 + $0x1c8] sm:$0xff] }
 0x6fa   : > { %9704 = vmatprep.mubr.f32.mxu0 %v4183_v30  ;;  %v4211_v30 = vld [vmem:[%s15216_s21 + $0x1d0] sm:$0xff] }
 0x6fd   : > { %v9578_v32 = vpop.f32.mrf.mxu0  ;;  %9705 = vmatmul.mubr.f32.gmra.mxu0 %v4184_v61 }
 0x6fe   : > { %v3630_v19 = vadd.f32 %v9578_v32, %v10757_v15  ;;  %9707 = vmatprep.mubr.f32.mxu0 %v4185_v11  ;;  %v4188_v15 = vld [vmem:[%s15216_s21 + $0x118] sm:$0xff]  ;;  %v4213_v11 = vld [vmem:[%s15216_s21 + $0x1e0] sm:$0xff] }
 0x6ff   : > { %v3624_v17 = vpop.f32.mrf.mxu0 }
 0x700   : > { %v3625_v60 = vadd.f32 %v3624_v17, %v11178_v22  ;;  %4955 = vmatpush1.msra.mxu1 %v3630_v19  ;;  %v3615_v22 = vadd.f32 %v3614_v23, %v11188_v42  ;;  %v3605_v42 = vadd.f32 %v3604_v9, %v11201_v14  ;;  %v3595_v14 = vadd.f32 %v3594_v35, %v11209_v53  ;;  %v4206_v35 = vld [vmem:[%s15216_s21 + $0x1a8] sm:$0xff]  ;;  %v4209_v9 = vld [vmem:[%s15216_s21 + $0x1c0] sm:$0xff]  ;;  %v4212_v23 = vld [vmem:[%s15216_s21 + $0x1d8] sm:$0xff] }
 0x701   : > { %4956 = vmatprep.subr.mxu1 %v10381_v26  ;;  %9708 = vmatmul.mubr.f32.gmra.mxu0 %v4186_v58  ;;  %v3585_v53 = vadd.f32 %v12502_v27, %v11214_v45  ;;  %v4197_v45 = vld [vmem:[%s15216_s21 + $0x160] sm:$0xff]  ;;  %v4214_v19 = vld [vmem:[%s15216_s21 + $0x1e8] sm:$0xff]  ;;  %v4215_v17 = vld [vmem:[%s15216_s21 + $0x1f0] sm:$0xff] }
 0x702   : > { %4957 = vmatpush1.msra.mxu1 %v3625_v60  ;;  %9710 = vmatprep.mubr.f32.mxu0 %v4187_v54  ;;  %v4216_v54 = vld [vmem:[%s15216_s21 + $0x1f8] sm:$0xff] }
 0x703   : > { %4958 = vmatprep.subr.mxu1 %v10381_v26 }
 0x704   : > { %4959 = vmatpush1.msra.mxu1 %v3620_v47  ;;  %v4217_v47 = vld [vmem:[%s15216_s21 + $0x200] sm:$0xff] }
 0x705   : > { %4960 = vmatprep.subr.mxu1 %v10381_v26  ;;  %9711 = vmatmul.mubr.f32.gmra.mxu0 %v4188_v15  ;;  %v12590_v12 = vpop.f32.mrf.mxu0 }
 0x706   : > { %4961 = vmatpush1.msra.mxu1 %v3615_v22  ;;  %9713 = vmatprep.mubr.f32.mxu0 %v4189_v34  ;;  %v4218_v22 = vld [vmem:[%s15216_s21 + $0x208] sm:$0xff] }
 0x707   : > { %4962 = vmatprep.subr.mxu1 %v10381_v26  ;;  %v12604_v24 = vpop.f32.mrf.mxu0 }
 0x708   : > { %4963 = vmatpush1.msra.mxu1 %v3610_v18 }
 0x709   : > { %4964 = vmatprep.subr.mxu1 %v10381_v26  ;;  %9714 = vmatmul.mubr.f32.gmra.mxu0 %v4190_v3  ;;  %v4219_v3 = vld [vmem:[%s15216_s21 + $0x210] sm:$0xff] }
 0x70a   : > { %4965 = vmatpush1.msra.mxu1 %v3605_v42  ;;  %9716 = vmatprep.mubr.f32.mxu0 %v4191_v0 }
 0x70b   : > { %4966 = vmatprep.subr.mxu1 %v10381_v26 }
 0x70c   : > { %4967 = vmatpush1.msra.mxu1 %v3600_v20  ;;  %v3795_v20 = vld [vmem:[%s15215_s20 + $0x10] sm:$0xff] }
 0x70d   : > { %4968 = vmatprep.subr.mxu1 %v10381_v26  ;;  %9717 = vmatmul.mubr.f32.gmra.mxu0 %v4192_v56  ;;  %v12612_v27 = vpop.f32.mrf.mxu0 }
 0x70e   : > { %4969 = vmatpush1.msra.mxu1 %v3595_v14  ;;  %9719 = vmatprep.mubr.f32.mxu0 %v4193_v46  ;;  %v15309_v46 = vld [vmem:[#allocation11_spill] sm:$0xff] }
 0x70f   : > { %4970 = vmatprep.subr.mxu1 %v10381_v26  ;;  %v12626_v8 = vpop.f32.mrf.mxu0 }
 0x710   : > { %4971 = vmatpush1.msra.mxu1 %v3590_v25 }
 0x711   : > { %4972 = vmatprep.subr.mxu1 %v10381_v26  ;;  %9720 = vmatmul.mubr.f32.gmra.mxu0 %v4194_v40 }
 0x712   : > { %4973 = vmatpush1.msra.mxu1 %v3585_v53  ;;  %9722 = vmatprep.mubr.f32.mxu0 %v4195_v4 }
 0x713   : > { %4974 = vmatprep.subr.mxu1 %v10381_v26 }
 0x714   : > { %4975 = vmatpush1.msra.mxu1 %v3580_v28  ;;  %v12719_v53 = vpop.f32.mrf.mxu1  ;;  %v15314_v28 = vld [vmem:[#allocation13_spill] sm:$0xff] }
 0x715   : > { %4976 = vmatprep.subr.mxu1 %v10381_v26  ;;  %9723 = vmatmul.mubr.f32.gmra.mxu0 %v4196_v16  ;;  %v12632_v63 = vpop.f32.mrf.mxu0  ;;  %15313 = vst [vmem:[#allocation11_spill] sm:$0xff] %v12719_v53  ;;  %v4002_v53 = vld [vmem:[%s15215_s20 + $0x688] sm:$0xff] }
 0x716   : > { %4977 = vmatpush1.msra.mxu1 %v3575_v6  ;;  %9725 = vmatprep.mubr.f32.mxu0 %v4197_v45  ;;  %v3660_v16 = vadd.f32 %v12632_v63, %v15314_v28  ;;  %v15315_v6 = vld [vmem:[#allocation37_spill] sm:$0xff]  ;;  %v15320_v63 = vld [vmem:[#allocation15_spill] sm:$0xff] }
 0x717   : > { %4978 = vmatprep.subr.mxu1 %v10381_v26  ;;  %v12641_v21 = vpop.f32.mrf.mxu0 }
 0x718   : > { %4979 = vmatpush1.msra.mxu1 %v3570_v33  ;;  %v3655_v33 = vadd.f32 %v12641_v21, %v15315_v6  ;;  %v15334_v6 = vld [vmem:[#allocation17_spill] sm:$0xff] }
 0x719   : > { %4980 = vmatprep.subr.mxu1 %v10381_v26  ;;  %9726 = vmatmul.mubr.f32.gmra.mxu0 %v4198_v2  ;;  %v12729_v2 = vpop.f32.mrf.mxu1 }
 0x71a   : > { %4981 = vmatpush1.msra.mxu1 %v3565_v55  ;;  %9728 = vmatprep.mubr.f32.mxu0 %v4199_v7  ;;  %v15317_v7 = vld [vmem:[#allocation14_spill] sm:$0xff] }
 0x71b   : > { %4982 = vmatprep.subr.mxu1 %v10381_v26  ;;  %v3650_v55 = vadd.f32 %v12612_v27, %v15317_v7  ;;  %v15321_v27 = vld [vmem:[#allocation39_spill] sm:$0xff] }
 0x71c   : > { %4983 = vmatpush1.msra.mxu1 %v3560_v36 }
 0x71d   : > { %4984 = vmatprep.subr.mxu1 %v10381_v26  ;;  %9729 = vmatmul.mubr.f32.gmra.mxu0 %v4200_v62  ;;  %v12646_v37 = vpop.f32.mrf.mxu0  ;;  %v15318_v62 = vld [vmem:[#allocation38_spill] sm:$0xff] }
 0x71e   : > { %4985 = vmatpush1.msra.mxu1 %v3555_v39  ;;  %9731 = vmatprep.mubr.f32.mxu0 %v4201_v49  ;;  %v3645_v49 = vadd.f32 %v12626_v8, %v15318_v62  ;;  %v3793_v8 = vld [vmem:[%s15215_s20] sm:$0xff] }
 0x71f   : > { %4986 = vmatprep.subr.mxu1 %v10381_v26  ;;  %v12654_v59 = vpop.f32.mrf.mxu0 }
 0x721   : > { %9732 = vmatmul.mubr.f32.gmra.mxu0 %v4202_v41  ;;  %v12741_v41 = vpop.f32.mrf.mxu1 }
 0x722   : > { %9734 = vmatprep.mubr.f32.mxu0 %v4203_v38  ;;  %v3640_v38 = vadd.f32 %v12590_v12, %v15320_v63  ;;  %v3827_v63 = vld [vmem:[%s15215_s20 + $0x110] sm:$0xff] }
 0x723   : > { %v12757_v12 = vpop.f32.mrf.mxu1 }
 0x725   : > { %9735 = vmatmul.mubr.f32.gmra.mxu0 %v4204_v43  ;;  %v9593_v29 = vpop.f32.mrf.mxu0  ;;  %v3635_v43 = vadd.f32 %v12604_v24, %v15321_v27  ;;  %v3796_v24 = vld [vmem:[%s15215_s20 + $0x18] sm:$0xff] }
 0x726   : > { %9737 = vmatprep.mubr.f32.mxu0 %v4205_v1  ;;  %v3680_v14 = vadd.f32 %v9593_v29, %v15309_v46  ;;  %v3797_v1 = vld [vmem:[%s15215_s20 + $0x20] sm:$0xff]  ;;  %v3803_v29 = vld [vmem:[%s15215_s20 + $0x50] sm:$0xff] }
 0x727   : > { %v3674_v52 = vpop.f32.mrf.mxu0 }
 0x729   : > { %9738 = vmatmul.mubr.f32.gmra.mxu0 %v4206_v35  ;;  %v3800_v35 = vld [vmem:[%s15215_s20 + $0x38] sm:$0xff] }
 0x72a   : > { %9740 = vmatprep.mubr.f32.mxu0 %v4207_v10 }
 0x72d   : > { %9741 = vmatmul.mubr.f32.gmra.mxu0 %v4208_v13  ;;  %v9596_v61 = vpop.f32.mrf.mxu0 }
 0x72e   : > { %9743 = vmatprep.mubr.f32.mxu0 %v4209_v9 }
 0x72f   : > { %v3684_v32 = vpop.f32.mrf.mxu0 }
 0x730   : > { %v3685_v56 = vadd.f32 %v3684_v32, %v11268_v5  ;;  %v15312_v5 = vld [vmem:[#allocation36_spill] sm:$0xff]  ;;  %v3809_v32 = vld [vmem:[%s15215_s20 + $0x80] sm:$0xff] }
 0x731   : > { %9744 = vmatmul.mubr.f32.gmra.mxu0 %v4210_v48  ;;  %v3665_v4 = vadd.f32 %v12654_v59, %v15312_v5  ;;  %15322 = vst [vmem:[#allocation36_spill] sm:$0xff] %v12757_v12  ;;  %v3799_v59 = vld [vmem:[%s15215_s20 + $0x30] sm:$0xff]  ;;  %v3802_v48 = vld [vmem:[%s15215_s20 + $0x48] sm:$0xff]  ;;  %v3820_v5 = vld [vmem:[%s15215_s20 + $0xd8] sm:$0xff] }
 0x732   : > { %9746 = vmatprep.mubr.f32.mxu0 %v4211_v30  ;;  %v3806_v30 = vld [vmem:[%s15215_s20 + $0x68] sm:$0xff]  ;;  %v3944_v12 = vld [vmem:[%s15215_s20 + $0x4b8] sm:$0xff] }
 0x735   : > { %9747 = vmatmul.mubr.f32.gmra.mxu0 %v4212_v23  ;;  %v9599_v58 = vpop.f32.mrf.mxu0 }
 0x736   : > { %9749 = vmatprep.mubr.f32.mxu0 %v4213_v11  ;;  %v3700_v42 = vadd.f32 %v9599_v58, %v10850_v51  ;;  %v3690_v51 = vadd.f32 %v9596_v61, %v10858_v57  ;;  %v15311_v57 = vld [vmem:[#allocation12_spill] sm:$0xff]  ;;  %v3805_v11 = vld [vmem:[%s15215_s20 + $0x60] sm:$0xff] }
 0x737   : > { %v3694_v60 = vpop.f32.mrf.mxu0  ;;  %v3670_v40 = vadd.f32 %v12646_v37, %v15311_v57  ;;  %15319 = vst [vmem:[#allocation12_spill] sm:$0xff] %v12741_v41  ;;  %v15332_v57 = vld [vmem:[#allocation40_spill] sm:$0xff]  ;;  %v3996_v41 = vld [vmem:[%s15215_s20 + $0x658] sm:$0xff] }
 0x739   : > { %9750 = vmatmul.mubr.f32.gmra.mxu0 %v4214_v19 }
 0x73a   : > { %9752 = vmatprep.mubr.f32.mxu0 %v4215_v17  ;;  %v3808_v17 = vld [vmem:[%s15215_s20 + $0x78] sm:$0xff] }
 0x73d   : > { %v9602_v15 = vpop.f32.mrf.mxu0  ;;  %9753 = vmatmul.mubr.f32.gmra.mxu0 %v4216_v54 }
 0x73e   : > { %v3710_v34 = vadd.f32 %v9602_v15, %v10836_v44  ;;  %9755 = vmatprep.mubr.f32.mxu0 %v4217_v47  ;;  %v4220_v44 = vld [vmem:[%s15216_s21 + $0x218] sm:$0xff]  ;;  %v3811_v15 = vld [vmem:[%s15215_s20 + $0x90] sm:$0xff] }
 0x73f   : > { %v3704_v18 = vpop.f32.mrf.mxu0 }
 0x740   : > { %v3705_v0 = vadd.f32 %v3704_v18, %v11240_v31  ;;  %4987 = vmatpush2.msra.mxu1 %v3710_v34  ;;  %v3695_v31 = vadd.f32 %v3694_v60, %v11249_v50  ;;  %v15310_v50 = vld [vmem:[#allocation35_spill] sm:$0xff]  ;;  %v3812_v60 = vld [vmem:[%s15215_s20 + $0x98] sm:$0xff] }
 0x741   : > { %4988 = vmatprep.subr.mxu1 %v10381_v26  ;;  %9756 = vmatmul.mubr.f32.gmra.mxu0 %v4218_v22  ;;  %v3675_v25 = vadd.f32 %v3674_v52, %v15310_v50  ;;  %15316 = vst [vmem:[#allocation35_spill] sm:$0xff] %v12729_v2  ;;  %v3815_v22 = vld [vmem:[%s15215_s20 + $0xb0] sm:$0xff] }
 0x742   : > { %4989 = vmatpush2.msra.mxu1 %v3705_v0  ;;  %9758 = vmatprep.mubr.f32.mxu0 %v4219_v3  ;;  %v3814_v0 = vld [vmem:[%s15215_s20 + $0xa8] sm:$0xff]  ;;  %v3947_v2 = vld [vmem:[%s15215_s20 + $0x4d0] sm:$0xff] }
 0x743   : > { %4990 = vmatprep.subr.mxu1 %v10381_v26 }
 0x744   : > { %4991 = vmatpush2.msra.mxu1 %v3700_v42  ;;  %v3818_v42 = vld [vmem:[%s15215_s20 + $0xc8] sm:$0xff] }
 0x745   : > { %4992 = vmatprep.subr.mxu1 %v10381_v26  ;;  %9759 = vmatmul.mubr.f32.gmra.mxu0 %v4220_v44  ;;  %v12723_v45 = vpop.f32.mrf.mxu0 }
 0x746   : > { %4993 = vmatpush2.msra.mxu1 %v3695_v31  ;;  %9871 = vmatprep.mubr.f32.mxu0 %v3795_v20  ;;  %v3817_v31 = vld [vmem:[%s15215_s20 + $0xc0] sm:$0xff] }
 0x747   : > { %4994 = vmatprep.subr.mxu1 %v10381_v26  ;;  %v12733_v36 = vpop.f32.mrf.mxu0 }
 0x748   : > { %4995 = vmatpush2.msra.mxu1 %v3690_v51 }
 0x749   : > { %4996 = vmatprep.subr.mxu1 %v10381_v26 }
 0x74a   : > { %4997 = vmatpush2.msra.mxu1 %v3685_v56  ;;  %v3821_v56 = vld [vmem:[%s15215_s20 + $0xe0] sm:$0xff] }
 0x74b   : > { %4998 = vmatprep.subr.mxu1 %v10381_v26 }
 0x74c   : > { %4999 = vmatpush2.msra.mxu1 %v3680_v14  ;;  %v15331_v14 = vld [vmem:[#allocation16_spill] sm:$0xff] }
 0x74d   : > { %5000 = vmatprep.subr.mxu1 %v10381_v26  ;;  %v12738_v39 = vpop.f32.mrf.mxu0 }
 0x74e   : > { %5001 = vmatpush2.msra.mxu1 %v3675_v25 }
 0x74f   : > { %5002 = vmatprep.subr.mxu1 %v10381_v26  ;;  %v12751_v21 = vpop.f32.mrf.mxu0 }
 0x750   : > { %5003 = vmatpush2.msra.mxu1 %v3670_v40 }
 0x751   : > { %5004 = vmatprep.subr.mxu1 %v10381_v26 }
 0x752   : > { %5005 = vmatpush2.msra.mxu1 %v3665_v4  ;;  %v3824_v4 = vld [vmem:[%s15215_s20 + $0xf8] sm:$0xff] }
 0x753   : > { %5006 = vmatprep.subr.mxu1 %v10381_v26 }
 0x754   : > { %5007 = vmatpush2.msra.mxu1 %v3660_v16 }
 0x755   : > { %5008 = vmatprep.subr.mxu1 %v10381_v26  ;;  %v12759_v37 = vpop.f32.mrf.mxu0 }
 0x756   : > { %5009 = vmatpush2.msra.mxu1 %v3655_v33 }
 0x757   : > { %5010 = vmatprep.subr.mxu1 %v10381_v26  ;;  %v12769_v10 = vpop.f32.mrf.mxu0 }
 0x758   : > { %5011 = vmatpush2.msra.mxu1 %v3650_v55  ;;  %v15335_v55 = vld [vmem:[#allocation41_spill] sm:$0xff] }
 0x759   : > { %5012 = vmatprep.subr.mxu1 %v10381_v26 }
 0x75a   : > { %5013 = vmatpush2.msra.mxu1 %v3645_v49  ;;  %v3823_v49 = vld [vmem:[%s15215_s20 + $0xf0] sm:$0xff] }
 0x75b   : > { %5014 = vmatprep.subr.mxu1 %v10381_v26 }
 0x75c   : > { %5015 = vmatpush2.msra.mxu1 %v3640_v38 }
 0x75d   : > { %5016 = vmatprep.subr.mxu1 %v10381_v26  ;;  %v12767_v26 = vpop.f32.mrf.mxu1  ;;  %v12774_v13 = vpop.f32.mrf.mxu0 }
 0x75e   : > { %5017 = vmatpush2.msra.mxu1 %v3635_v43  ;;  %15323 = vst [vmem:[#allocation13_spill] sm:$0xff] %v12767_v26  ;;  %v15337_v43 = vld [vmem:[#allocation18_spill] sm:$0xff]  ;;  %v3938_v26 = vld [vmem:[%s15215_s20 + $0x488] sm:$0xff] }
 0x75f   : > { %5019 = vmatmul.mubr.f32.vlgmr.msra.gmra.mxu1 %v3793_v8  ;;  %v12779_v9 = vpop.f32.mrf.mxu1  ;;  %v12784_v52 = vpop.f32.mrf.mxu0 }
 0x760   : > { %5023 = vmatprep.mubr.f32.mxu1 %v3797_v1  ;;  %15324 = vst [vmem:[#allocation37_spill] sm:$0xff] %v12779_v9  ;;  %v3941_v9 = vld [vmem:[%s15215_s20 + $0x4a0] sm:$0xff] }
 0x761   : > { %v12789_v61 = vpop.f32.mrf.mxu1 }
 0x762   : > { %15325 = vst [vmem:[#allocation14_spill] sm:$0xff] %v12789_v61 }
 0x763   : > { %5024 = vmatmul.mubr.f32.gmra.mxu1 %v3796_v24  ;;  %v12799_v19 = vpop.f32.mrf.mxu1  ;;  %v15338_v24 = vld [vmem:[#allocation42_spill] sm:$0xff] }
 0x764   : > { %5028 = vmatprep.mubr.f32.mxu1 %v3800_v35  ;;  %15326 = vst [vmem:[#allocation38_spill] sm:$0xff] %v12799_v19  ;;  %v3932_v19 = vld [vmem:[%s15215_s20 + $0x458] sm:$0xff] }
 0x765   : > { %v12791_v23 = vpop.f32.mrf.mxu0  ;;  %v12809_v47 = vpop.f32.mrf.mxu1 }
 0x766   : > { %15327 = vst [vmem:[#allocation15_spill] sm:$0xff] %v12809_v47 }
 0x767   : > { %5029 = vmatmul.mubr.f32.gmra.mxu1 %v3799_v59  ;;  %v12801_v58 = vpop.f32.mrf.mxu0  ;;  %v12817_v18 = vpop.f32.mrf.mxu1  ;;  %v3826_v59 = vld [vmem:[%s15215_s20 + $0x108] sm:$0xff] }
 0x768   : > { %5033 = vmatprep.mubr.f32.mxu1 %v3803_v29  ;;  %15328 = vst [vmem:[#allocation39_spill] sm:$0xff] %v12817_v18  ;;  %v3830_v29 = vld [vmem:[%s15215_s20 + $0x128] sm:$0xff] }
 0x769   : > { %v12825_v44 = vpop.f32.mrf.mxu1 }
 0x76a   : > { %15329 = vst [vmem:[#allocation59_spill] sm:$0xff] %v12825_v44 }
 0x76b   : > { %5034 = vmatmul.mubr.f32.gmra.mxu1 %v3802_v48  ;;  %v12833_v46 = vpop.f32.mrf.mxu1 }
 0x76c   : > { %5038 = vmatprep.mubr.f32.mxu1 %v3806_v30  ;;  %15330 = vst [vmem:[#allocation60_spill] sm:$0xff] %v12833_v46 }
 0x76d   : > { %v9620_v54 = vpop.f32.mrf.mxu0  ;;  %v12843_v28 = vpop.f32.mrf.mxu1 }
 0x76e   : > { %15333 = vst [vmem:[#allocation16_spill] sm:$0xff] %v12843_v28  ;;  %v3770_v8 = vadd.f32 %v9620_v54, %v15337_v43  ;;  %v15341_v54 = vld [vmem:[#allocation43_spill] sm:$0xff]  ;;  %v3914_v28 = vld [vmem:[%s15215_s20 + $0x3c8] sm:$0xff] }
 0x76f   : > { %5039 = vmatmul.mubr.f32.gmra.mxu1 %v3805_v11  ;;  %v3764_v34 = vpop.f32.mrf.mxu0  ;;  %v12857_v38 = vpop.f32.mrf.mxu1  ;;  %v15340_v11 = vld [vmem:[#allocation19_spill] sm:$0xff] }
 0x770   : > { %5043 = vmatprep.mubr.f32.mxu1 %v3809_v32  ;;  %15336 = vst [vmem:[#allocation40_spill] sm:$0xff] %v12857_v38  ;;  %v3765_v35 = vadd.f32 %v3764_v34, %v15338_v24  ;;  %v3760_v32 = vadd.f32 %v12791_v23, %v15340_v11  ;;  %v3833_v34 = vld [vmem:[%s15215_s20 + $0x140] sm:$0xff]  ;;  %v3798_v11 = vld [vmem:[%s15215_s20 + $0x28] sm:$0xff] }
 0x771   : > { %v12871_v48 = vpop.f32.mrf.mxu1 }
 0x772   : > { %15339 = vst [vmem:[#allocation17_spill] sm:$0xff] %v12871_v48 }
 0x773   : > { %5044 = vmatmul.mubr.f32.gmra.mxu1 %v3808_v17  ;;  %v12887_v23 = vpop.f32.mrf.mxu1 }
 0x774   : > { %5048 = vmatprep.mubr.f32.mxu1 %v3812_v60  ;;  %v3755_v60 = vadd.f32 %v12801_v58, %v15341_v54  ;;  %15342 = vst [vmem:[#allocation41_spill] sm:$0xff] %v12887_v23 }
 0x775   : > { %v9623_v3 = vpop.f32.mrf.mxu0 }
 0x776   : > { %v3780_v33 = vadd.f32 %v9623_v3, %v15334_v6  ;;  %v15343_v3 = vld [vmem:[#allocation20_spill] sm:$0xff]  ;;  %v15349_v6 = vld [vmem:[#allocation22_spill] sm:$0xff] }
 0x777   : > { %5049 = vmatmul.mubr.f32.gmra.mxu1 %v3811_v15  ;;  %v3774_v20 = vpop.f32.mrf.mxu0  ;;  %v3829_v15 = vld [vmem:[%s15215_s20 + $0x120] sm:$0xff] }
 0x778   : > { %5053 = vmatprep.mubr.f32.mxu1 %v3815_v22  ;;  %v3775_v62 = vadd.f32 %v3774_v20, %v15335_v55  ;;  %v15350_v55 = vld [vmem:[#allocation46_spill] sm:$0xff] }
 0x77b   : > { %5054 = vmatmul.mubr.f32.gmra.mxu1 %v3814_v0  ;;  %v3750_v0 = vadd.f32 %v12774_v13, %v15343_v3  ;;  %v12903_v13 = vpop.f32.mrf.mxu1  ;;  %v3848_v3 = vld [vmem:[%s15215_s20 + $0x1b8] sm:$0xff] }
 0x77c   : > { %5058 = vmatprep.mubr.f32.mxu1 %v3818_v42  ;;  %v15344_v42 = vld [vmem:[#allocation44_spill] sm:$0xff]  ;;  %15345 = vst [vmem:[#allocation18_spill] sm:$0xff] %v12903_v13 }
 0x77d   : > { %v9626_v51 = vpop.f32.mrf.mxu0  ;;  %v3745_v20 = vadd.f32 %v12784_v52, %v15344_v42 }
 0x77e   : > { %v3790_v50 = vadd.f32 %v9626_v51, %v15331_v14  ;;  %v3836_v51 = vld [vmem:[%s15215_s20 + $0x158] sm:$0xff]  ;;  %v15346_v14 = vld [vmem:[#allocation21_spill] sm:$0xff] }
 0x77f   : > { %v3784_v25 = vpop.f32.mrf.mxu0  ;;  %5059 = vmatmul.mubr.f32.gmra.mxu1 %v3817_v31  ;;  %v3832_v31 = vld [vmem:[%s15215_s20 + $0x138] sm:$0xff] }
 0x780   : > { %v3785_v40 = vadd.f32 %v3784_v25, %v15332_v57  ;;  %9839 = vmatprep.subr.mxu0 %v3790_v50  ;;  %5063 = vmatprep.mubr.f32.mxu1 %v3821_v56  ;;  %v15347_v25 = vld [vmem:[#allocation45_spill] sm:$0xff] }
 0x781   : > { %9840 = vmatpush3.msra.mxu0 %v3790_v50  ;;  %v12845_v16 = vpop.f32.mrf.mxu0  ;;  %v3740_v50 = vadd.f32 %v12759_v37, %v15346_v14  ;;  %v3735_v57 = vadd.f32 %v12769_v10, %v15347_v25  ;;  %v12919_v37 = vpop.f32.mrf.mxu1  ;;  %v3810_v14 = vld [vmem:[%s15215_s20 + $0x88] sm:$0xff] }
 0x782   : > { %9841 = vmatprep.subr.mxu0 %v3785_v40  ;;  %15348 = vst [vmem:[#allocation42_spill] sm:$0xff] %v12919_v37 }
 0x783   : > { %5064 = vmatmul.mubr.f32.gmra.mxu1 %v3820_v5  ;;  %9842 = vmatpush3.msra.mxu0 %v3785_v40  ;;  %v12848_v7 = vpop.f32.mrf.mxu0  ;;  %v3835_v40 = vld [vmem:[%s15215_s20 + $0x150] sm:$0xff] }
 0x784   : > { %9843 = vmatprep.subr.mxu0 %v3780_v33  ;;  %5068 = vmatprep.mubr.f32.mxu1 %v3824_v4  ;;  %v3839_v5 = vld [vmem:[%s15215_s20 + $0x170] sm:$0xff] }
 0x785   : > { %9844 = vmatpush3.msra.mxu0 %v3780_v33  ;;  %v12859_v27 = vpop.f32.mrf.mxu0  ;;  %v3730_v33 = vadd.f32 %v12738_v39, %v15349_v6  ;;  %v12935_v39 = vpop.f32.mrf.mxu1  ;;  %v3850_v6 = vld [vmem:[%s15215_s20 + $0x1c8] sm:$0xff] }
 0x786   : > { %9845 = vmatprep.subr.mxu0 %v3775_v62  ;;  %15351 = vst [vmem:[#allocation19_spill] sm:$0xff] %v12935_v39 }
 0x787   : > { %5069 = vmatmul.mubr.f32.gmra.mxu1 %v3823_v49  ;;  %9846 = vmatpush3.msra.mxu0 %v3775_v62  ;;  %v12862_v1 = vpop.f32.mrf.mxu0  ;;  %v3725_v62 = vadd.f32 %v12751_v21, %v15350_v55  ;;  %v3838_v49 = vld [vmem:[%s15215_s20 + $0x168] sm:$0xff] }
 0x788   : > { %9847 = vmatprep.subr.mxu0 %v3770_v8  ;;  %5073 = vmatprep.mubr.f32.mxu1 %v3827_v63  ;;  %v3842_v63 = vld [vmem:[%s15215_s20 + $0x188] sm:$0xff] }
 0x789   : > { %9848 = vmatpush3.msra.mxu0 %v3770_v8  ;;  %v12873_v30 = vpop.f32.mrf.mxu0  ;;  %v15352_v8 = vld [vmem:[#allocation23_spill] sm:$0xff]  ;;  %v3854_v55 = vld [vmem:[%s15215_s20 + $0x1e8] sm:$0xff] }
 0x78a   : > { %9849 = vmatprep.subr.mxu0 %v3765_v35  ;;  %v3720_v24 = vadd.f32 %v12723_v45, %v15352_v8  ;;  %v3845_v45 = vld [vmem:[%s15215_s20 + $0x1a0] sm:$0xff] }
 0x78b   : > { %5074 = vmatmul.mubr.f32.gmra.mxu1 %v3826_v59  ;;  %9850 = vmatpush3.msra.mxu0 %v3765_v35  ;;  %v12877_v17 = vpop.f32.mrf.mxu0  ;;  %v15353_v35 = vld [vmem:[#allocation47_spill] sm:$0xff] }
 0x78c   : > { %9851 = vmatprep.subr.mxu0 %v3760_v32  ;;  %5078 = vmatprep.mubr.f32.mxu1 %v3830_v29  ;;  %v3715_v59 = vadd.f32 %v12733_v36, %v15353_v35  ;;  %v3841_v29 = vld [vmem:[%s15215_s20 + $0x180] sm:$0xff]  ;;  %v3822_v35 = vld [vmem:[%s15215_s20 + $0xe8] sm:$0xff] }
 0x78d   : > { %9852 = vmatpush3.msra.mxu0 %v3760_v32  ;;  %v12889_v22 = vpop.f32.mrf.mxu0  ;;  %v12954_v32 = vpop.f32.mrf.mxu1  ;;  %v3801_v36 = vld [vmem:[%s15215_s20 + $0x40] sm:$0xff] }
 0x78e   : > { %9853 = vmatprep.subr.mxu0 %v3755_v60  ;;  %15354 = vst [vmem:[#allocation43_spill] sm:$0xff] %v12954_v32 }
 0x78f   : > { %5079 = vmatmul.mubr.f32.gmra.mxu1 %v3829_v15  ;;  %9854 = vmatpush3.msra.mxu0 %v3755_v60  ;;  %v12893_v58 = vpop.f32.mrf.mxu0  ;;  %v3844_v15 = vld [vmem:[%s15215_s20 + $0x198] sm:$0xff] }
 0x790   : > { %9855 = vmatprep.subr.mxu0 %v3750_v0  ;;  %5083 = vmatprep.mubr.f32.mxu1 %v3833_v34  ;;  %v3804_v34 = vld [vmem:[%s15215_s20 + $0x58] sm:$0xff] }
 0x791   : > { %9856 = vmatpush3.msra.mxu0 %v3750_v0  ;;  %v12905_v56 = vpop.f32.mrf.mxu0  ;;  %v12972_v0 = vpop.f32.mrf.mxu1 }
 0x792   : > { %9857 = vmatprep.subr.mxu0 %v3745_v20  ;;  %15355 = vst [vmem:[#allocation20_spill] sm:$0xff] %v12972_v0 }
 0x793   : > { %5084 = vmatmul.mubr.f32.gmra.mxu1 %v3832_v31  ;;  %9858 = vmatpush3.msra.mxu0 %v3745_v20  ;;  %v12909_v52 = vpop.f32.mrf.mxu0  ;;  %v3807_v20 = vld [vmem:[%s15215_s20 + $0x70] sm:$0xff]  ;;  %v12990_v25 = vpop.f32.mrf.mxu1 }
 0x794   : > { %9859 = vmatprep.subr.mxu0 %v3740_v50  ;;  %5088 = vmatprep.mubr.f32.mxu1 %v3836_v51  ;;  %v3847_v51 = vld [vmem:[%s15215_s20 + $0x1b0] sm:$0xff]  ;;  %15356 = vst [vmem:[#allocation44_spill] sm:$0xff] %v12990_v25 }
 0x795   : > { %9860 = vmatpush3.msra.mxu0 %v3740_v50  ;;  %v12921_v4 = vpop.f32.mrf.mxu0  ;;  %v3851_v50 = vld [vmem:[%s15215_s20 + $0x1d0] sm:$0xff] }
 0x796   : > { %9861 = vmatprep.subr.mxu0 %v3735_v57 }
 0x797   : > { %5089 = vmatmul.mubr.f32.gmra.mxu1 %v3835_v40  ;;  %9862 = vmatpush3.msra.mxu0 %v3735_v57  ;;  %v12925_v10 = vpop.f32.mrf.mxu0  ;;  %v3813_v40 = vld [vmem:[%s15215_s20 + $0xa0] sm:$0xff] }
 0x798   : > { %9863 = vmatprep.subr.mxu0 %v3730_v33  ;;  %5093 = vmatprep.mubr.f32.mxu1 %v3839_v5 }
 0x799   : > { %9864 = vmatpush3.msra.mxu0 %v3730_v33  ;;  %v12937_v43 = vpop.f32.mrf.mxu0  ;;  %v3816_v33 = vld [vmem:[%s15215_s20 + $0xb8] sm:$0xff] }
 0x79a   : > { %9865 = vmatprep.subr.mxu0 %v3725_v62 }
 0x79b   : > { %5094 = vmatmul.mubr.f32.gmra.mxu1 %v3838_v49  ;;  %9866 = vmatpush3.msra.mxu0 %v3725_v62  ;;  %v12941_v21 = vpop.f32.mrf.mxu0  ;;  %v13008_v62 = vpop.f32.mrf.mxu1 }
 0x79c   : > { %9867 = vmatprep.subr.mxu0 %v3720_v24  ;;  %5098 = vmatprep.mubr.f32.mxu1 %v3842_v63  ;;  %15358 = vst [vmem:[#allocation45_spill] sm:$0xff] %v13008_v62  ;;  %v3819_v63 = vld [vmem:[%s15215_s20 + $0xd0] sm:$0xff] }
 0x79d   : > { %9868 = vmatpush3.msra.mxu0 %v3720_v24  ;;  %v12956_v54 = vpop.f32.mrf.mxu0  ;;  %v3853_v24 = vld [vmem:[%s15215_s20 + $0x1e0] sm:$0xff] }
 0x79e   : > { %9869 = vmatprep.subr.mxu0 %v3715_v59 }
 0x79f   : > { %5099 = vmatmul.mubr.f32.gmra.mxu1 %v3841_v29  ;;  %9870 = vmatpush3.msra.mxu0 %v3715_v59  ;;  %v12961_v60 = vpop.f32.mrf.mxu0  ;;  %v3857_v59 = vld [vmem:[%s15215_s20 + $0x200] sm:$0xff]  ;;  %v13026_v29 = vpop.f32.mrf.mxu1 }
 0x7a0   : > { %9872 = vmatmul.mubr.f32.vlgmr.msra.gmra.mxu0 %v3798_v11  ;;  %5103 = vmatprep.mubr.f32.mxu1 %v3845_v45  ;;  %15361 = vst [vmem:[#allocation23_spill] sm:$0xff] %v13026_v29  ;;  %v3825_v45 = vld [vmem:[%s15215_s20 + $0x100] sm:$0xff] }
 0x7a1   : > { %9874 = vmatprep.mubr.f32.mxu0 %v3801_v36  ;;  %v12974_v42 = vpop.f32.mrf.mxu0 }
 0x7a3   : > { %5104 = vmatmul.mubr.f32.gmra.mxu1 %v3844_v15  ;;  %v12979_v31 = vpop.f32.mrf.mxu0  ;;  %v3856_v15 = vld [vmem:[%s15215_s20 + $0x1f8] sm:$0xff] }
 0x7a4   : > { %9875 = vmatmul.mubr.f32.gmra.mxu0 %v3804_v34  ;;  %5108 = vmatprep.mubr.f32.mxu1 %v3848_v3  ;;  %v3828_v34 = vld [vmem:[%s15215_s20 + $0x118] sm:$0xff] }
 0x7a5   : > { %9877 = vmatprep.mubr.f32.mxu0 %v3807_v20  ;;  %v12992_v57 = vpop.f32.mrf.mxu0  ;;  %v3860_v3 = vld [vmem:[%s15215_s20 + $0x218] sm:$0xff]  ;;  %v13044_v20 = vpop.f32.mrf.mxu1 }
 0x7a6   : > { %15357 = vst [vmem:[#allocation21_spill] sm:$0xff] %v12992_v57  ;;  %15364 = vst [vmem:[#allocation62_spill] sm:$0xff] %v13044_v20  ;;  %v4140_v57 = vld [vmem:[%s15215_s20 + $0xad8] sm:$0xff] }
 0x7a7   : > { %5109 = vmatmul.mubr.f32.gmra.mxu1 %v3847_v51  ;;  %v12997_v5 = vpop.f32.mrf.mxu0 }
 0x7a8   : > { %9878 = vmatmul.mubr.f32.gmra.mxu0 %v3810_v14  ;;  %5113 = vmatprep.mubr.f32.mxu1 %v3851_v50  ;;  %v3831_v14 = vld [vmem:[%s15215_s20 + $0x130] sm:$0xff] }
 0x7a9   : > { %9880 = vmatprep.mubr.f32.mxu0 %v3813_v40  ;;  %v13010_v49 = vpop.f32.mrf.mxu0  ;;  %v3859_v50 = vld [vmem:[%s15215_s20 + $0x210] sm:$0xff] }
 0x7aa   : > { %15359 = vst [vmem:[#allocation22_spill] sm:$0xff] %v13010_v49  ;;  %v4128_v49 = vld [vmem:[%s15215_s20 + $0xa78] sm:$0xff] }
 0x7ab   : > { %5114 = vmatmul.mubr.f32.gmra.mxu1 %v3850_v6  ;;  %v13015_v8 = vpop.f32.mrf.mxu0  ;;  %v3834_v6 = vld [vmem:[%s15215_s20 + $0x148] sm:$0xff] }
 0x7ac   : > { %15360 = vst [vmem:[#allocation46_spill] sm:$0xff] %v13015_v8  ;;  %9881 = vmatmul.mubr.f32.gmra.mxu0 %v3816_v33  ;;  %5118 = vmatprep.mubr.f32.mxu1 %v3854_v55  ;;  %v3863_v33 = vld [vmem:[%s15215_s20 + $0x230] sm:$0xff]  ;;  %v13062_v55 = vpop.f32.mrf.mxu1  ;;  %v4013_v8 = vld [vmem:[%s15215_s20 + $0x6e0] sm:$0xff] }
 0x7ad   : > { %9883 = vmatprep.mubr.f32.mxu0 %v3819_v63  ;;  %v13028_v11 = vpop.f32.mrf.mxu0  ;;  %15367 = vst [vmem:[#allocation65_spill] sm:$0xff] %v13062_v55  ;;  %v3837_v63 = vld [vmem:[%s15215_s20 + $0x160] sm:$0xff] }
 0x7ae   : > { %15362 = vst [vmem:[#allocation47_spill] sm:$0xff] %v13028_v11  ;;  %v4007_v11 = vld [vmem:[%s15215_s20 + $0x6b0] sm:$0xff] }
 0x7af   : > { %5119 = vmatmul.mubr.f32.gmra.mxu1 %v3853_v24  ;;  %v13033_v36 = vpop.f32.mrf.mxu0  ;;  %v3862_v24 = vld [vmem:[%s15215_s20 + $0x228] sm:$0xff] }
 0x7b0   : > { %15363 = vst [vmem:[#allocation61_spill] sm:$0xff] %v13033_v36  ;;  %9884 = vmatmul.mubr.f32.gmra.mxu0 %v3822_v35  ;;  %5123 = vmatprep.mubr.f32.mxu1 %v3857_v59  ;;  %v6287_v59 = vld [vmem:[%s15217_s22 + $0x18] sm:$0xff] }
 0x7b1   : > { %9886 = vmatprep.mubr.f32.mxu0 %v3825_v45  ;;  %v13046_v51 = vpop.f32.mrf.mxu0  ;;  %v3840_v45 = vld [vmem:[%s15215_s20 + $0x178] sm:$0xff]  ;;  %10051 = vmatprep.subr.mxu0 %v6287_v59 }
 0x7b2   : > { %15365 = vst [vmem:[#allocation63_spill] sm:$0xff] %v13046_v51  ;;  %10052 = vmatpush3.msra.mxu0 %v6287_v59  ;;  %v3868_v59 = vld [vmem:[%s15215_s20 + $0x258] sm:$0xff] }
 0x7b3   : > { %5124 = vmatmul.mubr.f32.gmra.mxu1 %v3856_v15  ;;  %v13054_v40 = vpop.f32.mrf.mxu0  ;;  %v3866_v15 = vld [vmem:[%s15215_s20 + $0x248] sm:$0xff] }
 0x7b4   : > { %9887 = vmatmul.mubr.f32.gmra.mxu0 %v3828_v34  ;;  %5128 = vmatprep.mubr.f32.mxu1 %v3860_v3  ;;  %15366 = vst [vmem:[#allocation64_spill] sm:$0xff] %v13054_v40  ;;  %v13081_v34 = vpop.f32.mrf.mxu1  ;;  %v3843_v3 = vld [vmem:[%s15215_s20 + $0x190] sm:$0xff]  ;;  %v4122_v40 = vld [vmem:[%s15215_s20 + $0xa48] sm:$0xff] }
 0x7b5   : > { %9889 = vmatprep.mubr.f32.mxu0 %v3831_v14  ;;  %v13070_v35 = vpop.f32.mrf.mxu0  ;;  %15369 = vst [vmem:[#allocation67_spill] sm:$0xff] %v13081_v34  ;;  %v3865_v14 = vld [vmem:[%s15215_s20 + $0x240] sm:$0xff] }
 0x7b6   : > { %15368 = vst [vmem:[#allocation66_spill] sm:$0xff] %v13070_v35  ;;  %v4116_v35 = vld [vmem:[%s15215_s20 + $0xa18] sm:$0xff] }
 0x7b7   : > { %5129 = vmatmul.mubr.f32.gmra.mxu1 %v3859_v50  ;;  %v13089_v50 = vpop.f32.mrf.mxu0 }
 0x7b8   : > { %9890 = vmatmul.mubr.f32.gmra.mxu0 %v3834_v6  ;;  %5133 = vmatprep.mubr.f32.mxu1 %v3863_v33  ;;  %15370 = vst [vmem:[#allocation68_spill] sm:$0xff] %v13089_v50  ;;  %v3846_v6 = vld [vmem:[%s15215_s20 + $0x1a8] sm:$0xff]  ;;  %v3869_v33 = vld [vmem:[%s15215_s20 + $0x260] sm:$0xff]  ;;  %v4004_v50 = vld [vmem:[%s15215_s20 + $0x698] sm:$0xff] }
 0x7b9   : > { %9892 = vmatprep.mubr.f32.mxu0 %v3837_v63  ;;  %v13097_v63 = vpop.f32.mrf.mxu1 }
 0x7ba   : > { %15371 = vst [vmem:[#allocation69_spill] sm:$0xff] %v13097_v63 }
 0x7bb   : > { %5134 = vmatmul.mubr.f32.gmra.mxu1 %v3862_v24  ;;  %v3849_v24 = vld [vmem:[%s15215_s20 + $0x1c0] sm:$0xff]  ;;  %v13113_v34 = vpop.f32.mrf.mxu1 }
 0x7bc   : > { %9893 = vmatmul.mubr.f32.gmra.mxu0 %v3840_v45  ;;  %5138 = vmatprep.mubr.f32.mxu1 %v3866_v15  ;;  %v13105_v45 = vpop.f32.mrf.mxu0  ;;  %v3852_v15 = vld [vmem:[%s15215_s20 + $0x1d8] sm:$0xff]  ;;  %15373 = vst [vmem:[#allocation71_spill] sm:$0xff] %v13113_v34  ;;  %v3875_v34 = vld [vmem:[%s15215_s20 + $0x290] sm:$0xff] }
 0x7bd   : > { %9895 = vmatprep.mubr.f32.mxu0 %v3843_v3  ;;  %15372 = vst [vmem:[#allocation70_spill] sm:$0xff] %v13105_v45  ;;  %v3872_v3 = vld [vmem:[%s15215_s20 + $0x278] sm:$0xff]  ;;  %v13129_v63 = vpop.f32.mrf.mxu1  ;;  %v4001_v45 = vld [vmem:[%s15215_s20 + $0x680] sm:$0xff] }
 0x7be   : > { %15375 = vst [vmem:[#allocation73_spill] sm:$0xff] %v13129_v63  ;;  %v3878_v63 = vld [vmem:[%s15215_s20 + $0x2a8] sm:$0xff] }
 0x7bf   : > { %5139 = vmatmul.mubr.f32.gmra.mxu1 %v3865_v14  ;;  %v3855_v14 = vld [vmem:[%s15215_s20 + $0x1f0] sm:$0xff]  ;;  %v13145_v20 = vpop.f32.mrf.mxu1 }
 0x7c0   : > { %9896 = vmatmul.mubr.f32.gmra.mxu0 %v3846_v6  ;;  %5143 = vmatprep.mubr.f32.mxu1 %v3869_v33  ;;  %v3871_v6 = vld [vmem:[%s15215_s20 + $0x270] sm:$0xff]  ;;  %v13121_v33 = vpop.f32.mrf.mxu0  ;;  %15377 = vst [vmem:[#allocation75_spill] sm:$0xff] %v13145_v20  ;;  %v3881_v20 = vld [vmem:[%s15215_s20 + $0x2c0] sm:$0xff] }
 0x7c1   : > { %9898 = vmatprep.mubr.f32.mxu0 %v3849_v24  ;;  %15374 = vst [vmem:[#allocation72_spill] sm:$0xff] %v13121_v33  ;;  %v3858_v24 = vld [vmem:[%s15215_s20 + $0x208] sm:$0xff]  ;;  %v13161_v55 = vpop.f32.mrf.mxu1 }
 0x7c2   : > { %15379 = vst [vmem:[#allocation77_spill] sm:$0xff] %v13161_v55  ;;  %v3884_v55 = vld [vmem:[%s15215_s20 + $0x2d8] sm:$0xff] }
 0x7c3   : > { %5144 = vmatmul.mubr.f32.gmra.mxu1 %v3868_v59  ;;  %v3861_v59 = vld [vmem:[%s15215_s20 + $0x220] sm:$0xff]  ;;  %v13177_v62 = vpop.f32.mrf.mxu1 }
 0x7c4   : > { %9899 = vmatmul.mubr.f32.gmra.mxu0 %v3852_v15  ;;  %5148 = vmatprep.mubr.f32.mxu1 %v3872_v3  ;;  %v3874_v15 = vld [vmem:[%s15215_s20 + $0x288] sm:$0xff]  ;;  %v13137_v3 = vpop.f32.mrf.mxu0  ;;  %15381 = vst [vmem:[#allocation79_spill] sm:$0xff] %v13177_v62  ;;  %v3887_v62 = vld [vmem:[%s15215_s20 + $0x2f0] sm:$0xff] }
 0x7c5   : > { %9901 = vmatprep.mubr.f32.mxu0 %v3855_v14  ;;  %15376 = vst [vmem:[#allocation74_spill] sm:$0xff] %v13137_v3  ;;  %v3864_v14 = vld [vmem:[%s15215_s20 + $0x238] sm:$0xff]  ;;  %v13193_v29 = vpop.f32.mrf.mxu1 }
 0x7c6   : > { %15383 = vst [vmem:[#allocation81_spill] sm:$0xff] %v13193_v29  ;;  %v3890_v29 = vld [vmem:[%s15215_s20 + $0x308] sm:$0xff] }
 0x7c7   : > { %5149 = vmatmul.mubr.f32.gmra.mxu1 %v3871_v6  ;;  %v3877_v6 = vld [vmem:[%s15215_s20 + $0x2a0] sm:$0xff]  ;;  %v13209_v0 = vpop.f32.mrf.mxu1 }
 0x7c8   : > { %9902 = vmatmul.mubr.f32.gmra.mxu0 %v3858_v24  ;;  %5153 = vmatprep.mubr.f32.mxu1 %v3875_v34  ;;  %v3867_v34 = vld [vmem:[%s15215_s20 + $0x250] sm:$0xff]  ;;  %v13153_v24 = vpop.f32.mrf.mxu0  ;;  %15385 = vst [vmem:[#allocation83_spill] sm:$0xff] %v13209_v0  ;;  %v3893_v0 = vld [vmem:[%s15215_s20 + $0x320] sm:$0xff] }
 0x7c9   : > { %9904 = vmatprep.mubr.f32.mxu0 %v3861_v59  ;;  %15378 = vst [vmem:[#allocation76_spill] sm:$0xff] %v13153_v24  ;;  %v3870_v59 = vld [vmem:[%s15215_s20 + $0x268] sm:$0xff]  ;;  %v13225_v25 = vpop.f32.mrf.mxu1 }
 0x7ca   : > { %15387 = vst [vmem:[#allocation85_spill] sm:$0xff] %v13225_v25  ;;  %v3896_v25 = vld [vmem:[%s15215_s20 + $0x338] sm:$0xff]  ;;  %v4110_v24 = vld [vmem:[%s15215_s20 + $0x9e8] sm:$0xff] }
 0x7cb   : > { %5154 = vmatmul.mubr.f32.gmra.mxu1 %v3874_v15  ;;  %v3880_v15 = vld [vmem:[%s15215_s20 + $0x2b8] sm:$0xff]  ;;  %v13241_v39 = vpop.f32.mrf.mxu1 }
 0x7cc   : > { %9905 = vmatmul.mubr.f32.gmra.mxu0 %v3864_v14  ;;  %5158 = vmatprep.mubr.f32.mxu1 %v3878_v63  ;;  %v3873_v63 = vld [vmem:[%s15215_s20 + $0x280] sm:$0xff]  ;;  %v13169_v14 = vpop.f32.mrf.mxu0  ;;  %15389 = vst [vmem:[#allocation87_spill] sm:$0xff] %v13241_v39  ;;  %v3899_v39 = vld [vmem:[%s15215_s20 + $0x350] sm:$0xff] }
 0x7cd   : > { %9907 = vmatprep.mubr.f32.mxu0 %v3867_v34  ;;  %15380 = vst [vmem:[#allocation78_spill] sm:$0xff] %v13169_v14  ;;  %v3876_v34 = vld [vmem:[%s15215_s20 + $0x298] sm:$0xff]  ;;  %v13257_v32 = vpop.f32.mrf.mxu1 }
 0x7ce   : > { %15391 = vst [vmem:[#allocation89_spill] sm:$0xff] %v13257_v32  ;;  %v3902_v32 = vld [vmem:[%s15215_s20 + $0x368] sm:$0xff]  ;;  %v4104_v14 = vld [vmem:[%s15215_s20 + $0x9b8] sm:$0xff] }
 0x7cf   : > { %5159 = vmatmul.mubr.f32.gmra.mxu1 %v3877_v6  ;;  %v3883_v6 = vld [vmem:[%s15215_s20 + $0x2d0] sm:$0xff]  ;;  %v13273_v13 = vpop.f32.mrf.mxu1 }
 0x7d0   : > { %9908 = vmatmul.mubr.f32.gmra.mxu0 %v3870_v59  ;;  %5163 = vmatprep.mubr.f32.mxu1 %v3881_v20  ;;  %v3879_v20 = vld [vmem:[%s15215_s20 + $0x2b0] sm:$0xff]  ;;  %v13185_v59 = vpop.f32.mrf.mxu0  ;;  %15393 = vst [vmem:[#allocation91_spill] sm:$0xff] %v13273_v13  ;;  %v3905_v13 = vld [vmem:[%s15215_s20 + $0x380] sm:$0xff] }
 0x7d1   : > { %9910 = vmatprep.mubr.f32.mxu0 %v3873_v63  ;;  %15382 = vst [vmem:[#allocation80_spill] sm:$0xff] %v13185_v59  ;;  %v3882_v63 = vld [vmem:[%s15215_s20 + $0x2c8] sm:$0xff]  ;;  %v13289_v37 = vpop.f32.mrf.mxu1 }
 0x7d2   : > { %15395 = vst [vmem:[#allocation93_spill] sm:$0xff] %v13289_v37  ;;  %v3908_v37 = vld [vmem:[%s15215_s20 + $0x398] sm:$0xff]  ;;  %v3998_v59 = vld [vmem:[%s15215_s20 + $0x668] sm:$0xff] }
 0x7d3   : > { %5164 = vmatmul.mubr.f32.gmra.mxu1 %v3880_v15  ;;  %v3886_v15 = vld [vmem:[%s15215_s20 + $0x2e8] sm:$0xff]  ;;  %v13305_v48 = vpop.f32.mrf.mxu1 }
 0x7d4   : > { %9911 = vmatmul.mubr.f32.gmra.mxu0 %v3876_v34  ;;  %5168 = vmatprep.mubr.f32.mxu1 %v3884_v55  ;;  %v3885_v55 = vld [vmem:[%s15215_s20 + $0x2e0] sm:$0xff]  ;;  %v13201_v34 = vpop.f32.mrf.mxu0  ;;  %15397 = vst [vmem:[#allocation95_spill] sm:$0xff] %v13305_v48  ;;  %v3911_v48 = vld [vmem:[%s15215_s20 + $0x3b0] sm:$0xff] }
 0x7d5   : > { %9913 = vmatprep.mubr.f32.mxu0 %v3879_v20  ;;  %15384 = vst [vmem:[#allocation82_spill] sm:$0xff] %v13201_v34  ;;  %v3888_v20 = vld [vmem:[%s15215_s20 + $0x2f8] sm:$0xff]  ;;  %v13321_v23 = vpop.f32.mrf.mxu1  ;;  %v3995_v34 = vld [vmem:[%s15215_s20 + $0x650] sm:$0xff] }
 0x7d6   : > { %15399 = vst [vmem:[#allocation97_spill] sm:$0xff] %v13321_v23  ;;  %v3936_v23 = vld [vmem:[%s15215_s20 + $0x478] sm:$0xff] }
 0x7d7   : > { %5169 = vmatmul.mubr.f32.gmra.mxu1 %v3883_v6  ;;  %v3889_v6 = vld [vmem:[%s15215_s20 + $0x300] sm:$0xff]  ;;  %v13340_v38 = vpop.f32.mrf.mxu1 }
 0x7d8   : > { %9914 = vmatmul.mubr.f32.gmra.mxu0 %v3882_v63  ;;  %5173 = vmatprep.mubr.f32.mxu1 %v3887_v62  ;;  %v3891_v62 = vld [vmem:[%s15215_s20 + $0x310] sm:$0xff]  ;;  %v13217_v63 = vpop.f32.mrf.mxu0  ;;  %15401 = vst [vmem:[#allocation99_spill] sm:$0xff] %v13340_v38 }
 0x7d9   : > { %9916 = vmatprep.mubr.f32.mxu0 %v3885_v55  ;;  %15386 = vst [vmem:[#allocation84_spill] sm:$0xff] %v13217_v63  ;;  %v3894_v55 = vld [vmem:[%s15215_s20 + $0x328] sm:$0xff]  ;;  %v13356_v38 = vpop.f32.mrf.mxu1 }
 0x7da   : > { %15403 = vst [vmem:[#allocation101_spill] sm:$0xff] %v13356_v38  ;;  %v3920_v38 = vld [vmem:[%s15215_s20 + $0x3f8] sm:$0xff] }
 0x7db   : > { %5174 = vmatmul.mubr.f32.gmra.mxu1 %v3886_v15  ;;  %v3892_v15 = vld [vmem:[%s15215_s20 + $0x318] sm:$0xff]  ;;  %v13372_v44 = vpop.f32.mrf.mxu1 }
 0x7dc   : > { %9917 = vmatmul.mubr.f32.gmra.mxu0 %v3888_v20  ;;  %5178 = vmatprep.mubr.f32.mxu1 %v3890_v29  ;;  %v3897_v29 = vld [vmem:[%s15215_s20 + $0x340] sm:$0xff]  ;;  %v13233_v20 = vpop.f32.mrf.mxu0  ;;  %15405 = vst [vmem:[#allocation103_spill] sm:$0xff] %v13372_v44  ;;  %v3923_v44 = vld [vmem:[%s15215_s20 + $0x410] sm:$0xff] }
 0x7dd   : > { %9919 = vmatprep.mubr.f32.mxu0 %v3891_v62  ;;  %15388 = vst [vmem:[#allocation86_spill] sm:$0xff] %v13233_v20  ;;  %v3900_v62 = vld [vmem:[%s15215_s20 + $0x358] sm:$0xff]  ;;  %v13388_v46 = vpop.f32.mrf.mxu1 }
 0x7de   : > { %15407 = vst [vmem:[#allocation105_spill] sm:$0xff] %v13388_v46  ;;  %v3926_v46 = vld [vmem:[%s15215_s20 + $0x428] sm:$0xff] }
 0x7df   : > { %5179 = vmatmul.mubr.f32.gmra.mxu1 %v3889_v6  ;;  %v3895_v6 = vld [vmem:[%s15215_s20 + $0x330] sm:$0xff]  ;;  %v13404_v47 = vpop.f32.mrf.mxu1 }
 0x7e0   : > { %9920 = vmatmul.mubr.f32.gmra.mxu0 %v3894_v55  ;;  %5183 = vmatprep.mubr.f32.mxu1 %v3893_v0  ;;  %v3903_v0 = vld [vmem:[%s15215_s20 + $0x370] sm:$0xff]  ;;  %v13249_v55 = vpop.f32.mrf.mxu0  ;;  %15409 = vst [vmem:[#allocation107_spill] sm:$0xff] %v13404_v47  ;;  %v3966_v47 = vld [vmem:[%s15215_s20 + $0x568] sm:$0xff] }
 0x7e1   : > { %9922 = vmatprep.mubr.f32.mxu0 %v3897_v29  ;;  %15390 = vst [vmem:[#allocation88_spill] sm:$0xff] %v13249_v55  ;;  %v3906_v29 = vld [vmem:[%s15215_s20 + $0x388] sm:$0xff]  ;;  %v13423_v18 = vpop.f32.mrf.mxu1 }
 0x7e2   : > { %15411 = vst [vmem:[#allocation109_spill] sm:$0xff] %v13423_v18  ;;  %v3972_v18 = vld [vmem:[%s15215_s20 + $0x598] sm:$0xff]  ;;  %v4098_v55 = vld [vmem:[%s15215_s20 + $0x988] sm:$0xff] }
 0x7e3   : > { %5184 = vmatmul.mubr.f32.gmra.mxu1 %v3892_v15  ;;  %v3898_v15 = vld [vmem:[%s15215_s20 + $0x348] sm:$0xff] }
 0x7e4   : > { %9923 = vmatmul.mubr.f32.gmra.mxu0 %v3900_v62  ;;  %5188 = vmatprep.mubr.f32.mxu1 %v3896_v25  ;;  %v3909_v25 = vld [vmem:[%s15215_s20 + $0x3a0] sm:$0xff]  ;;  %v13265_v62 = vpop.f32.mrf.mxu0 }
 0x7e5   : > { %9925 = vmatprep.mubr.f32.mxu0 %v3903_v0  ;;  %15392 = vst [vmem:[#allocation90_spill] sm:$0xff] %v13265_v62  ;;  %v3912_v0 = vld [vmem:[%s15215_s20 + $0x3b8] sm:$0xff]  ;;  %v3989_v62 = vld [vmem:[%s15215_s20 + $0x620] sm:$0xff] }
 0x7e7   : > { %5189 = vmatmul.mubr.f32.gmra.mxu1 %v3895_v6  ;;  %v3901_v6 = vld [vmem:[%s15215_s20 + $0x360] sm:$0xff] }
 0x7e8   : > { %9926 = vmatmul.mubr.f32.gmra.mxu0 %v3906_v29  ;;  %5193 = vmatprep.mubr.f32.mxu1 %v3899_v39  ;;  %v3915_v39 = vld [vmem:[%s15215_s20 + $0x3d0] sm:$0xff]  ;;  %v13281_v29 = vpop.f32.mrf.mxu0 }
 0x7e9   : > { %9928 = vmatprep.mubr.f32.mxu0 %v3909_v25  ;;  %15394 = vst [vmem:[#allocation92_spill] sm:$0xff] %v13281_v29  ;;  %v3918_v25 = vld [vmem:[%s15215_s20 + $0x3e8] sm:$0xff]  ;;  %v3992_v29 = vld [vmem:[%s15215_s20 + $0x638] sm:$0xff] }
 0x7eb   : > { %5194 = vmatmul.mubr.f32.gmra.mxu1 %v3898_v15  ;;  %v3904_v15 = vld [vmem:[%s15215_s20 + $0x378] sm:$0xff] }
 0x7ec   : > { %9929 = vmatmul.mubr.f32.gmra.mxu0 %v3912_v0  ;;  %5198 = vmatprep.mubr.f32.mxu1 %v3902_v32  ;;  %v3921_v32 = vld [vmem:[%s15215_s20 + $0x400] sm:$0xff]  ;;  %v13297_v0 = vpop.f32.mrf.mxu0 }
 0x7ed   : > { %9931 = vmatprep.mubr.f32.mxu0 %v3915_v39  ;;  %15396 = vst [vmem:[#allocation94_spill] sm:$0xff] %v13297_v0  ;;  %v3924_v39 = vld [vmem:[%s15215_s20 + $0x418] sm:$0xff]  ;;  %v3983_v0 = vld [vmem:[%s15215_s20 + $0x5f0] sm:$0xff] }
 0x7ef   : > { %5199 = vmatmul.mubr.f32.gmra.mxu1 %v3901_v6  ;;  %v3907_v6 = vld [vmem:[%s15215_s20 + $0x390] sm:$0xff] }
 0x7f0   : > { %9932 = vmatmul.mubr.f32.gmra.mxu0 %v3918_v25  ;;  %5203 = vmatprep.mubr.f32.mxu1 %v3905_v13  ;;  %v3927_v13 = vld [vmem:[%s15215_s20 + $0x430] sm:$0xff]  ;;  %v13313_v25 = vpop.f32.mrf.mxu0 }
 0x7f1   : > { %9934 = vmatprep.mubr.f32.mxu0 %v3921_v32  ;;  %15398 = vst [vmem:[#allocation96_spill] sm:$0xff] %v13313_v25  ;;  %v3930_v32 = vld [vmem:[%s15215_s20 + $0x448] sm:$0xff] }
 0x7f2   : > { %v3986_v25 = vld [vmem:[%s15215_s20 + $0x608] sm:$0xff] }
 0x7f3   : > { %5204 = vmatmul.mubr.f32.gmra.mxu1 %v3904_v15  ;;  %v3933_v15 = vld [vmem:[%s15215_s20 + $0x460] sm:$0xff] }
 0x7f4   : > { %9935 = vmatmul.mubr.f32.gmra.mxu0 %v3924_v39  ;;  %5208 = vmatprep.mubr.f32.mxu1 %v3908_v37  ;;  %v6286_v37 = vld [vmem:[%s15217_s22 + $0x10] sm:$0xff]  ;;  %v3910_v39 = vld [vmem:[%s15215_s20 + $0x3a8] sm:$0xff] }
 0x7f5   : > { %9937 = vmatprep.mubr.f32.mxu0 %v3927_v13  ;;  %10053 = vmatprep.subr.mxu0 %v6286_v37  ;;  %v13332_v13 = vpop.f32.mrf.mxu0 }
 0x7f6   : > { %10054 = vmatpush3.msra.mxu0 %v6286_v37  ;;  %15400 = vst [vmem:[#allocation98_spill] sm:$0xff] %v13332_v13  ;;  %v3942_v37 = vld [vmem:[%s15215_s20 + $0x4a8] sm:$0xff]  ;;  %v3977_v13 = vld [vmem:[%s15215_s20 + $0x5c0] sm:$0xff] }
 0x7f7   : > { %5209 = vmatmul.mubr.f32.gmra.mxu1 %v3907_v6  ;;  %v3913_v6 = vld [vmem:[%s15215_s20 + $0x3c0] sm:$0xff] }
 0x7f8   : > { %9938 = vmatmul.mubr.f32.gmra.mxu0 %v3930_v32  ;;  %5213 = vmatprep.mubr.f32.mxu1 %v3911_v48  ;;  %v3939_v48 = vld [vmem:[%s15215_s20 + $0x490] sm:$0xff]  ;;  %v13348_v32 = vpop.f32.mrf.mxu0 }
 0x7f9   : > { %9940 = vmatprep.mubr.f32.mxu0 %v3933_v15  ;;  %15402 = vst [vmem:[#allocation100_spill] sm:$0xff] %v13348_v32  ;;  %v3917_v15 = vld [vmem:[%s15215_s20 + $0x3e0] sm:$0xff]  ;;  %v3980_v32 = vld [vmem:[%s15215_s20 + $0x5d8] sm:$0xff] }
 0x7fb   : > { %5214 = vmatmul.mubr.f32.gmra.mxu1 %v3910_v39  ;;  %v13364_v39 = vpop.f32.mrf.mxu0 }
 0x7fc   : > { %9941 = vmatmul.mubr.f32.gmra.mxu0 %v3936_v23  ;;  %5218 = vmatprep.mubr.f32.mxu1 %v3914_v28  ;;  %v3945_v28 = vld [vmem:[%s15215_s20 + $0x4c0] sm:$0xff]  ;;  %v3916_v23 = vld [vmem:[%s15215_s20 + $0x3d8] sm:$0xff]  ;;  %15404 = vst [vmem:[#allocation102_spill] sm:$0xff] %v13364_v39  ;;  %v3971_v39 = vld [vmem:[%s15215_s20 + $0x590] sm:$0xff] }
 0x7fd   : > { %9943 = vmatprep.mubr.f32.mxu0 %v3939_v48  ;;  %v3948_v48 = vld [vmem:[%s15215_s20 + $0x4d8] sm:$0xff] }
 0x7ff   : > { %5219 = vmatmul.mubr.f32.gmra.mxu1 %v3913_v6  ;;  %v3951_v6 = vld [vmem:[%s15215_s20 + $0x4f0] sm:$0xff] }
 0x800   : > { %9944 = vmatmul.mubr.f32.gmra.mxu0 %v3942_v37  ;;  %5223 = vmatprep.mubr.f32.mxu1 %v3917_v15  ;;  %v3919_v37 = vld [vmem:[%s15215_s20 + $0x3f0] sm:$0xff]  ;;  %v13380_v15 = vpop.f32.mrf.mxu0 }
 0x801   : > { %9946 = vmatprep.mubr.f32.mxu0 %v3945_v28  ;;  %15406 = vst [vmem:[#allocation104_spill] sm:$0xff] %v13380_v15  ;;  %v3954_v28 = vld [vmem:[%s15215_s20 + $0x508] sm:$0xff] }
 0x802   : > { %v3974_v15 = vld [vmem:[%s15215_s20 + $0x5a8] sm:$0xff] }
 0x803   : > { %5224 = vmatmul.mubr.f32.gmra.mxu1 %v3916_v23  ;;  %v3922_v23 = vld [vmem:[%s15215_s20 + $0x408] sm:$0xff] }
 0x804   : > { %9947 = vmatmul.mubr.f32.gmra.mxu0 %v3948_v48  ;;  %5228 = vmatprep.mubr.f32.mxu1 %v3920_v38  ;;  %v3957_v38 = vld [vmem:[%s15215_s20 + $0x520] sm:$0xff]  ;;  %v13396_v48 = vpop.f32.mrf.mxu0 }
 0x805   : > { %9949 = vmatprep.mubr.f32.mxu0 %v3951_v6  ;;  %15408 = vst [vmem:[#allocation106_spill] sm:$0xff] %v13396_v48  ;;  %v3960_v6 = vld [vmem:[%s15215_s20 + $0x538] sm:$0xff]  ;;  %v3965_v48 = vld [vmem:[%s15215_s20 + $0x560] sm:$0xff] }
 0x807   : > { %5229 = vmatmul.mubr.f32.gmra.mxu1 %v3919_v37  ;;  %v6285_v37 = vld [vmem:[%s15217_s22 + $0x8] sm:$0xff] }
 0x808   : > { %9950 = vmatmul.mubr.f32.gmra.mxu0 %v3954_v28  ;;  %5233 = vmatprep.mubr.f32.mxu1 %v3923_v44  ;;  %v3963_v44 = vld [vmem:[%s15215_s20 + $0x550] sm:$0xff]  ;;  %v3925_v28 = vld [vmem:[%s15215_s20 + $0x420] sm:$0xff] }
 0x809   : > { %9952 = vmatprep.mubr.f32.mxu0 %v3957_v38  ;;  %v13415_v38 = vpop.f32.mrf.mxu0  ;;  %10055 = vmatprep.subr.mxu0 %v6285_v37 }
 0x80a   : > { %15410 = vst [vmem:[#allocation108_spill] sm:$0xff] %v13415_v38  ;;  %10056 = vmatpush3.msra.mxu0 %v6285_v37  ;;  %v13442_v37 = vpop.f32.mrf.mxu1  ;;  %v3968_v38 = vld [vmem:[%s15215_s20 + $0x578] sm:$0xff] }
 0x80b   : > { %5234 = vmatmul.mubr.f32.gmra.mxu1 %v3922_v23  ;;  %v3929_v23 = vld [vmem:[%s15215_s20 + $0x440] sm:$0xff]  ;;  %v13434_v61 = vpop.f32.mrf.mxu0  ;;  %15413 = vst [vmem:[#allocation111_spill] sm:$0xff] %v13442_v37 }
 0x80c   : > { %9953 = vmatmul.mubr.f32.gmra.mxu0 %v3960_v6  ;;  %5238 = vmatprep.mubr.f32.mxu1 %v3926_v46  ;;  %v6284_v46 = vld [vmem:[%s15217_s22] sm:$0xff]  ;;  %15412 = vst [vmem:[#allocation110_spill] sm:$0xff] %v13434_v61  ;;  %v13455_v37 = vpop.f32.mrf.mxu1  ;;  %v3959_v61 = vld [vmem:[%s15215_s20 + $0x530] sm:$0xff] }
 0x80d   : > { %9955 = vmatprep.mubr.f32.mxu0 %v3963_v44  ;;  %v3969_v6 = vld [vmem:[%s15215_s20 + $0x580] sm:$0xff]  ;;  %10057 = vmatprep.subr.mxu0 %v6284_v46  ;;  %v3928_v44 = vld [vmem:[%s15215_s20 + $0x438] sm:$0xff]  ;;  %15415 = vst [vmem:[#allocation113_spill] sm:$0xff] %v13455_v37 }
 0x80e   : > { %10058 = vmatpush3.msra.mxu0 %v6284_v46  ;;  %v3935_v46 = vld [vmem:[%s15215_s20 + $0x470] sm:$0xff]  ;;  %v3984_v37 = vld [vmem:[%s15215_s20 + $0x5f8] sm:$0xff] }
 0x80f   : > { %5239 = vmatmul.mubr.f32.gmra.mxu1 %v3925_v28  ;;  %v3931_v28 = vld [vmem:[%s15215_s20 + $0x450] sm:$0xff] }
 0x810   : > { %9956 = vmatmul.mubr.f32.gmra.mxu0 %v3966_v47  ;;  %5243 = vmatprep.mubr.f32.mxu1 %v3929_v23  ;;  %v3975_v47 = vld [vmem:[%s15215_s20 + $0x5b0] sm:$0xff]  ;;  %v13450_v23 = vpop.f32.mrf.mxu0 }
 0x811   : > { %9958 = vmatprep.mubr.f32.mxu0 %v3969_v6  ;;  %15414 = vst [vmem:[#allocation112_spill] sm:$0xff] %v13450_v23  ;;  %v3978_v6 = vld [vmem:[%s15215_s20 + $0x5c8] sm:$0xff] }
 0x812   : > { %v3962_v23 = vld [vmem:[%s15215_s20 + $0x548] sm:$0xff] }
 0x813   : > { %5244 = vmatmul.mubr.f32.gmra.mxu1 %v3928_v44  ;;  %v13466_v44 = vpop.f32.mrf.mxu0 }
 0x814   : > { %9959 = vmatmul.mubr.f32.gmra.mxu0 %v3972_v18  ;;  %5248 = vmatprep.mubr.f32.mxu1 %v3932_v19  ;;  %v3981_v19 = vld [vmem:[%s15215_s20 + $0x5e0] sm:$0xff]  ;;  %v3934_v18 = vld [vmem:[%s15215_s20 + $0x468] sm:$0xff]  ;;  %15416 = vst [vmem:[#allocation114_spill] sm:$0xff] %v13466_v44 }
 0x815   : > { %9961 = vmatprep.mubr.f32.mxu0 %v3975_v47  ;;  %v13468_v47 = vpop.f32.mrf.mxu1  ;;  %v3953_v44 = vld [vmem:[%s15215_s20 + $0x500] sm:$0xff] }
 0x816   : > { %15417 = vst [vmem:[#allocation115_spill] sm:$0xff] %v13468_v47  ;;  %v3990_v47 = vld [vmem:[%s15215_s20 + $0x628] sm:$0xff] }
 0x817   : > { %5249 = vmatmul.mubr.f32.gmra.mxu1 %v3931_v28  ;;  %v3987_v28 = vld [vmem:[%s15215_s20 + $0x610] sm:$0xff] }
 0x818   : > { %9962 = vmatmul.mubr.f32.gmra.mxu0 %v3978_v6  ;;  %5253 = vmatprep.mubr.f32.mxu1 %v3935_v46  ;;  %v3937_v6 = vld [vmem:[%s15215_s20 + $0x480] sm:$0xff]  ;;  %v13482_v46 = vpop.f32.mrf.mxu0 }
 0x819   : > { %9964 = vmatprep.mubr.f32.mxu0 %v3981_v19  ;;  %15418 = vst [vmem:[#allocation116_spill] sm:$0xff] %v13482_v46  ;;  %v13484_v19 = vpop.f32.mrf.mxu1  ;;  %v3956_v46 = vld [vmem:[%s15215_s20 + $0x518] sm:$0xff] }
 0x81a   : > { %15419 = vst [vmem:[#allocation117_spill] sm:$0xff] %v13484_v19 }
 0x81b   : > { %5254 = vmatmul.mubr.f32.gmra.mxu1 %v3934_v18  ;;  %v3940_v18 = vld [vmem:[%s15215_s20 + $0x498] sm:$0xff] }
 0x81c   : > { %9965 = vmatmul.mubr.f32.gmra.mxu0 %v3984_v37  ;;  %5258 = vmatprep.mubr.f32.mxu1 %v3938_v26  ;;  %v3993_v26 = vld [vmem:[%s15215_s20 + $0x640] sm:$0xff] }
 0x81d   : > { %9967 = vmatprep.mubr.f32.mxu0 %v3987_v28  ;;  %v13500_v28 = vpop.f32.mrf.mxu0 }
 0x81e   : > { %15420 = vst [vmem:[#allocation118_spill] sm:$0xff] %v13500_v28  ;;  %v4008_v28 = vld [vmem:[%s15215_s20 + $0x6b8] sm:$0xff] }
 0x81f   : > { %v13495_v37 = vpop.f32.mrf.mxu1  ;;  %5259 = vmatmul.mubr.f32.gmra.mxu1 %v3937_v6  ;;  %v3943_v6 = vld [vmem:[%s15215_s20 + $0x4b0] sm:$0xff] }
 0x820   : > { %9968 = vmatmul.mubr.f32.gmra.mxu0 %v3990_v47  ;;  %5263 = vmatprep.mubr.f32.mxu1 %v3941_v9  ;;  %v3999_v9 = vld [vmem:[%s15215_s20 + $0x670] sm:$0xff] }
 0x821   : > { %v5022_v19 = vpop.f32.mrf.mxu1  ;;  %9970 = vmatprep.mubr.f32.mxu0 %v3993_v26 }
 0x822   : > { %v13516_v19 = vpop.f32.mrf.mxu0 }
 0x823   : > { %v13511_v47 = vpop.f32.mrf.mxu1  ;;  %5264 = vmatmul.mubr.f32.gmra.mxu1 %v3940_v18  ;;  %15421 = vst [vmem:[#allocation119_spill] sm:$0xff] %v13516_v19  ;;  %v3946_v18 = vld [vmem:[%s15215_s20 + $0x4c8] sm:$0xff] }
 0x824   : > { %9971 = vmatmul.mubr.f32.gmra.mxu0 %v3996_v41  ;;  %5268 = vmatprep.mubr.f32.mxu1 %v3944_v12  ;;  %v4005_v41 = vld [vmem:[%s15215_s20 + $0x6a0] sm:$0xff]  ;;  %v3950_v19 = vld [vmem:[%s15215_s20 + $0x4e8] sm:$0xff] }
 0x825   : > { %v5027_v26 = vpop.f32.mrf.mxu1  ;;  %9973 = vmatprep.mubr.f32.mxu0 %v3999_v9  ;;  %v13532_v9 = vpop.f32.mrf.mxu0 }
 0x826   : > { %15422 = vst [vmem:[#allocation120_spill] sm:$0xff] %v13532_v9  ;;  %v4014_v9 = vld [vmem:[%s15215_s20 + $0x6e8] sm:$0xff] }
 0x827   : > { %v13527_v12 = vpop.f32.mrf.mxu1  ;;  %5269 = vmatmul.mubr.f32.gmra.mxu1 %v3943_v6  ;;  %v3949_v6 = vld [vmem:[%s15215_s20 + $0x4e0] sm:$0xff] }
 0x828   : > { %9974 = vmatmul.mubr.f32.gmra.mxu0 %v4002_v53  ;;  %5273 = vmatprep.mubr.f32.mxu1 %v3947_v2  ;;  %v4011_v53 = vld [vmem:[%s15215_s20 + $0x6d0] sm:$0xff] }
 0x829   : > { %v5032_v26 = vpop.f32.mrf.mxu1  ;;  %9976 = vmatprep.mubr.f32.mxu0 %v4005_v41  ;;  %v13548_v41 = vpop.f32.mrf.mxu0 }
 0x82a   : > { %15423 = vst [vmem:[#allocation121_spill] sm:$0xff] %v13548_v41  ;;  %v4020_v41 = vld [vmem:[%s15215_s20 + $0x718] sm:$0xff] }
 0x82b   : > { %v13543_v2 = vpop.f32.mrf.mxu1  ;;  %5274 = vmatmul.mubr.f32.gmra.mxu1 %v3946_v18  ;;  %v3952_v18 = vld [vmem:[%s15215_s20 + $0x4f8] sm:$0xff] }
 0x82c   : > { %9977 = vmatmul.mubr.f32.gmra.mxu0 %v4008_v28  ;;  %5278 = vmatprep.mubr.f32.mxu1 %v3950_v19  ;;  %v4017_v28 = vld [vmem:[%s15215_s20 + $0x700] sm:$0xff] }
 0x82d   : > { %v5037_v26 = vpop.f32.mrf.mxu1  ;;  %9979 = vmatprep.mubr.f32.mxu0 %v4011_v53  ;;  %v13564_v53 = vpop.f32.mrf.mxu0 }
 0x82e   : > { %15424 = vst [vmem:[#allocation122_spill] sm:$0xff] %v13564_v53  ;;  %v4026_v53 = vld [vmem:[%s15215_s20 + $0x748] sm:$0xff] }
 0x82f   : > { %v13559_v19 = vpop.f32.mrf.mxu1  ;;  %5279 = vmatmul.mubr.f32.gmra.mxu1 %v3949_v6  ;;  %v3955_v6 = vld [vmem:[%s15215_s20 + $0x510] sm:$0xff] }
 0x830   : > { %9980 = vmatmul.mubr.f32.gmra.mxu0 %v4014_v9  ;;  %5283 = vmatprep.mubr.f32.mxu1 %v3953_v44  ;;  %v4023_v44 = vld [vmem:[%s15215_s20 + $0x730] sm:$0xff] }
 0x831   : > { %v5042_v26 = vpop.f32.mrf.mxu1  ;;  %9982 = vmatprep.mubr.f32.mxu0 %v4017_v28  ;;  %v13580_v28 = vpop.f32.mrf.mxu0 }
 0x832   : > { %15425 = vst [vmem:[#allocation123_spill] sm:$0xff] %v13580_v28  ;;  %v4032_v28 = vld [vmem:[%s15215_s20 + $0x778] sm:$0xff] }
 0x833   : > { %v13575_v9 = vpop.f32.mrf.mxu1  ;;  %5284 = vmatmul.mubr.f32.gmra.mxu1 %v3952_v18  ;;  %v3958_v18 = vld [vmem:[%s15215_s20 + $0x528] sm:$0xff] }
 0x834   : > { %9983 = vmatmul.mubr.f32.gmra.mxu0 %v4020_v41  ;;  %5288 = vmatprep.mubr.f32.mxu1 %v3956_v46  ;;  %v4029_v46 = vld [vmem:[%s15215_s20 + $0x760] sm:$0xff] }
 0x835   : > { %v5047_v26 = vpop.f32.mrf.mxu1  ;;  %9985 = vmatprep.mubr.f32.mxu0 %v4023_v44  ;;  %v13596_v44 = vpop.f32.mrf.mxu0 }
 0x836   : > { %15426 = vst [vmem:[#allocation124_spill] sm:$0xff] %v13596_v44  ;;  %v4038_v44 = vld [vmem:[%s15215_s20 + $0x7a8] sm:$0xff] }
 0x837   : > { %v13591_v41 = vpop.f32.mrf.mxu1  ;;  %5289 = vmatmul.mubr.f32.gmra.mxu1 %v3955_v6  ;;  %v3961_v6 = vld [vmem:[%s15215_s20 + $0x540] sm:$0xff] }
 0x838   : > { %9986 = vmatmul.mubr.f32.gmra.mxu0 %v4026_v53  ;;  %5293 = vmatprep.mubr.f32.mxu1 %v3959_v61  ;;  %v4035_v61 = vld [vmem:[%s15215_s20 + $0x790] sm:$0xff] }
 0x839   : > { %v5052_v26 = vpop.f32.mrf.mxu1  ;;  %9988 = vmatprep.mubr.f32.mxu0 %v4029_v46  ;;  %v13612_v46 = vpop.f32.mrf.mxu0 }
 0x83a   : > { %15427 = vst [vmem:[#allocation125_spill] sm:$0xff] %v13612_v46  ;;  %v4044_v46 = vld [vmem:[%s15215_s20 + $0x7d8] sm:$0xff] }
 0x83b   : > { %v13607_v53 = vpop.f32.mrf.mxu1  ;;  %5294 = vmatmul.mubr.f32.gmra.mxu1 %v3958_v18  ;;  %v3964_v18 = vld [vmem:[%s15215_s20 + $0x558] sm:$0xff] }
 0x83c   : > { %9989 = vmatmul.mubr.f32.gmra.mxu0 %v4032_v28  ;;  %5298 = vmatprep.mubr.f32.mxu1 %v3962_v23  ;;  %v4041_v23 = vld [vmem:[%s15215_s20 + $0x7c0] sm:$0xff] }
 0x83d   : > { %v5057_v26 = vpop.f32.mrf.mxu1  ;;  %9991 = vmatprep.mubr.f32.mxu0 %v4035_v61  ;;  %v13628_v61 = vpop.f32.mrf.mxu0 }
 0x83e   : > { %15428 = vst [vmem:[#allocation126_spill] sm:$0xff] %v13628_v61  ;;  %v4050_v61 = vld [vmem:[%s15215_s20 + $0x808] sm:$0xff] }
 0x83f   : > { %v13623_v28 = vpop.f32.mrf.mxu1  ;;  %5299 = vmatmul.mubr.f32.gmra.mxu1 %v3961_v6  ;;  %v3967_v6 = vld [vmem:[%s15215_s20 + $0x570] sm:$0xff] }
 0x840   : > { %9992 = vmatmul.mubr.f32.gmra.mxu0 %v4038_v44  ;;  %5303 = vmatprep.mubr.f32.mxu1 %v3965_v48  ;;  %v4047_v48 = vld [vmem:[%s15215_s20 + $0x7f0] sm:$0xff] }
 0x841   : > { %v5062_v26 = vpop.f32.mrf.mxu1  ;;  %9994 = vmatprep.mubr.f32.mxu0 %v4041_v23  ;;  %v13644_v23 = vpop.f32.mrf.mxu0 }
 0x842   : > { %15429 = vst [vmem:[#allocation127_spill] sm:$0xff] %v13644_v23  ;;  %v4056_v23 = vld [vmem:[%s15215_s20 + $0x838] sm:$0xff] }
 0x843   : > { %v13639_v44 = vpop.f32.mrf.mxu1  ;;  %5304 = vmatmul.mubr.f32.gmra.mxu1 %v3964_v18  ;;  %v3970_v18 = vld [vmem:[%s15215_s20 + $0x588] sm:$0xff] }
 0x844   : > { %9995 = vmatmul.mubr.f32.gmra.mxu0 %v4044_v46  ;;  %5308 = vmatprep.mubr.f32.mxu1 %v3968_v38  ;;  %v4053_v38 = vld [vmem:[%s15215_s20 + $0x820] sm:$0xff] }
 0x845   : > { %v5067_v26 = vpop.f32.mrf.mxu1  ;;  %9997 = vmatprep.mubr.f32.mxu0 %v4047_v48  ;;  %v13660_v48 = vpop.f32.mrf.mxu0 }
 0x846   : > { %15430 = vst [vmem:[#allocation128_spill] sm:$0xff] %v13660_v48  ;;  %v4062_v48 = vld [vmem:[%s15215_s20 + $0x868] sm:$0xff] }
 0x847   : > { %v13655_v46 = vpop.f32.mrf.mxu1  ;;  %5309 = vmatmul.mubr.f32.gmra.mxu1 %v3967_v6  ;;  %v3973_v6 = vld [vmem:[%s15215_s20 + $0x5a0] sm:$0xff] }
 0x848   : > { %9998 = vmatmul.mubr.f32.gmra.mxu0 %v4050_v61  ;;  %5313 = vmatprep.mubr.f32.mxu1 %v3971_v39  ;;  %v4059_v39 = vld [vmem:[%s15215_s20 + $0x850] sm:$0xff] }
 0x849   : > { %v5072_v26 = vpop.f32.mrf.mxu1  ;;  %10000 = vmatprep.mubr.f32.mxu0 %v4053_v38  ;;  %v13676_v38 = vpop.f32.mrf.mxu0 }
 0x84a   : > { %15431 = vst [vmem:[#allocation129_spill] sm:$0xff] %v13676_v38  ;;  %v4068_v38 = vld [vmem:[%s15215_s20 + $0x898] sm:$0xff] }
 0x84b   : > { %v13671_v61 = vpop.f32.mrf.mxu1  ;;  %5314 = vmatmul.mubr.f32.gmra.mxu1 %v3970_v18  ;;  %v3976_v18 = vld [vmem:[%s15215_s20 + $0x5b8] sm:$0xff] }
 0x84c   : > { %10001 = vmatmul.mubr.f32.gmra.mxu0 %v4056_v23  ;;  %5318 = vmatprep.mubr.f32.mxu1 %v3974_v15  ;;  %v4065_v15 = vld [vmem:[%s15215_s20 + $0x880] sm:$0xff] }
 0x84d   : > { %v5077_v26 = vpop.f32.mrf.mxu1  ;;  %10003 = vmatprep.mubr.f32.mxu0 %v4059_v39  ;;  %v13692_v39 = vpop.f32.mrf.mxu0 }
 0x84e   : > { %15432 = vst [vmem:[#allocation130_spill] sm:$0xff] %v13692_v39  ;;  %v4074_v39 = vld [vmem:[%s15215_s20 + $0x8c8] sm:$0xff] }
 0x84f   : > { %v13687_v23 = vpop.f32.mrf.mxu1  ;;  %5319 = vmatmul.mubr.f32.gmra.mxu1 %v3973_v6  ;;  %v3979_v6 = vld [vmem:[%s15215_s20 + $0x5d0] sm:$0xff] }
 0x850   : > { %10004 = vmatmul.mubr.f32.gmra.mxu0 %v4062_v48  ;;  %5323 = vmatprep.mubr.f32.mxu1 %v3977_v13  ;;  %v4071_v13 = vld [vmem:[%s15215_s20 + $0x8b0] sm:$0xff] }
 0x851   : > { %v5082_v26 = vpop.f32.mrf.mxu1  ;;  %10006 = vmatprep.mubr.f32.mxu0 %v4065_v15  ;;  %v13708_v15 = vpop.f32.mrf.mxu0 }
 0x852   : > { %15433 = vst [vmem:[#allocation131_spill] sm:$0xff] %v13708_v15  ;;  %v4080_v15 = vld [vmem:[%s15215_s20 + $0x8f8] sm:$0xff] }
 0x853   : > { %v13703_v48 = vpop.f32.mrf.mxu1  ;;  %5324 = vmatmul.mubr.f32.gmra.mxu1 %v3976_v18  ;;  %v3982_v18 = vld [vmem:[%s15215_s20 + $0x5e8] sm:$0xff] }
 0x854   : > { %10007 = vmatmul.mubr.f32.gmra.mxu0 %v4068_v38  ;;  %5328 = vmatprep.mubr.f32.mxu1 %v3980_v32  ;;  %v4077_v32 = vld [vmem:[%s15215_s20 + $0x8e0] sm:$0xff] }
 0x855   : > { %v5087_v26 = vpop.f32.mrf.mxu1  ;;  %10009 = vmatprep.mubr.f32.mxu0 %v4071_v13  ;;  %v13724_v13 = vpop.f32.mrf.mxu0 }
 0x856   : > { %15434 = vst [vmem:[#allocation132_spill] sm:$0xff] %v13724_v13  ;;  %v4086_v13 = vld [vmem:[%s15215_s20 + $0x928] sm:$0xff] }
 0x857   : > { %v13719_v38 = vpop.f32.mrf.mxu1  ;;  %5329 = vmatmul.mubr.f32.gmra.mxu1 %v3979_v6  ;;  %v13737_v6 = vpop.f32.mrf.mxu0 }
 0x858   : > { %10010 = vmatmul.mubr.f32.gmra.mxu0 %v4074_v39  ;;  %5333 = vmatprep.mubr.f32.mxu1 %v3983_v0  ;;  %v4083_v0 = vld [vmem:[%s15215_s20 + $0x910] sm:$0xff]  ;;  %15435 = vst [vmem:[#allocation133_spill] sm:$0xff] %v13737_v6  ;;  %v4092_v6 = vld [vmem:[%s15215_s20 + $0x958] sm:$0xff] }
 0x859   : > { %v5092_v26 = vpop.f32.mrf.mxu1  ;;  %10012 = vmatprep.mubr.f32.mxu0 %v4077_v32  ;;  %v3985_v32 = vld [vmem:[%s15215_s20 + $0x600] sm:$0xff] }
 0x85b   : > { %v13735_v39 = vpop.f32.mrf.mxu1  ;;  %5334 = vmatmul.mubr.f32.gmra.mxu1 %v3982_v18 }
 0x85c   : > { %10013 = vmatmul.mubr.f32.gmra.mxu0 %v4080_v15  ;;  %5338 = vmatprep.mubr.f32.mxu1 %v3986_v25  ;;  %v4089_v15 = vld [vmem:[%s15215_s20 + $0x940] sm:$0xff] }
 0x85d   : > { %v5097_v26 = vpop.f32.mrf.mxu1  ;;  %10015 = vmatprep.mubr.f32.mxu0 %v4083_v0  ;;  %v3988_v0 = vld [vmem:[%s15215_s20 + $0x618] sm:$0xff] }
 0x85f   : > { %v13751_v18 = vpop.f32.mrf.mxu1  ;;  %5339 = vmatmul.mubr.f32.gmra.mxu1 %v3985_v32 }
 0x860   : > { %v13753_v25 = vpop.f32.mrf.mxu0  ;;  %10016 = vmatmul.mubr.f32.gmra.mxu0 %v4086_v13  ;;  %5343 = vmatprep.mubr.f32.mxu1 %v3989_v62  ;;  %v4095_v62 = vld [vmem:[%s15215_s20 + $0x970] sm:$0xff] }
 0x861   : > { %v5102_v26 = vpop.f32.mrf.mxu1  ;;  %10018 = vmatprep.mubr.f32.mxu0 %v4089_v15  ;;  %v3991_v15 = vld [vmem:[%s15215_s20 + $0x630] sm:$0xff] }
 0x862   : > { %v13764_v20 = vpop.f32.mrf.mxu0 }
 0x863   : > { %v13769_v13 = vpop.f32.mrf.mxu1  ;;  %5344 = vmatmul.mubr.f32.gmra.mxu1 %v3988_v0 }
 0x864   : > { %v13771_v32 = vpop.f32.mrf.mxu0  ;;  %10019 = vmatmul.mubr.f32.gmra.mxu0 %v4092_v6  ;;  %5348 = vmatprep.mubr.f32.mxu1 %v3992_v29  ;;  %v4101_v29 = vld [vmem:[%s15215_s20 + $0x9a0] sm:$0xff] }
 0x865   : > { %v5107_v26 = vpop.f32.mrf.mxu1  ;;  %10021 = vmatprep.mubr.f32.mxu0 %v4095_v62  ;;  %v3994_v62 = vld [vmem:[%s15215_s20 + $0x648] sm:$0xff] }
 0x866   : > { %v13782_v63 = vpop.f32.mrf.mxu0 }
 0x867   : > { %v13787_v6 = vpop.f32.mrf.mxu1  ;;  %5349 = vmatmul.mubr.f32.gmra.mxu1 %v3991_v15 }
 0x868   : > { %15436 = vst [vmem:[#allocation134_spill] sm:$0xff] %v13787_v6  ;;  %v13789_v0 = vpop.f32.mrf.mxu0  ;;  %10022 = vmatmul.mubr.f32.gmra.mxu0 %v4098_v55  ;;  %5353 = vmatprep.mubr.f32.mxu1 %v3995_v34  ;;  %v4107_v34 = vld [vmem:[%s15215_s20 + $0x9d0] sm:$0xff] }
 0x869   : > { %v5112_v26 = vpop.f32.mrf.mxu1  ;;  %10024 = vmatprep.mubr.f32.mxu0 %v4101_v29  ;;  %v3997_v29 = vld [vmem:[%s15215_s20 + $0x660] sm:$0xff]  ;;  %v4019_v6 = vld [vmem:[%s15215_s20 + $0x710] sm:$0xff] }
 0x86a   : > { %v13800_v3 = vpop.f32.mrf.mxu0 }
 0x86b   : > { %v13805_v55 = vpop.f32.mrf.mxu1  ;;  %5354 = vmatmul.mubr.f32.gmra.mxu1 %v3994_v62 }
 0x86c   : > { %15437 = vst [vmem:[#allocation135_spill] sm:$0xff] %v13805_v55  ;;  %v13807_v15 = vpop.f32.mrf.mxu0  ;;  %10025 = vmatmul.mubr.f32.gmra.mxu0 %v4104_v14  ;;  %5358 = vmatprep.mubr.f32.mxu1 %v3998_v59  ;;  %v4113_v14 = vld [vmem:[%s15215_s20 + $0xa00] sm:$0xff]  ;;  %v4016_v55 = vld [vmem:[%s15215_s20 + $0x6f8] sm:$0xff] }
 0x86d   : > { %v5117_v26 = vpop.f32.mrf.mxu1  ;;  %10027 = vmatprep.mubr.f32.mxu0 %v4107_v34  ;;  %v4000_v34 = vld [vmem:[%s15215_s20 + $0x678] sm:$0xff] }
 0x86e   : > { %v13818_v33 = vpop.f32.mrf.mxu0 }
 0x86f   : > { %v13823_v59 = vpop.f32.mrf.mxu1  ;;  %5359 = vmatmul.mubr.f32.gmra.mxu1 %v3997_v29 }
 0x870   : > { %15438 = vst [vmem:[#allocation136_spill] sm:$0xff] %v13823_v59  ;;  %v13825_v62 = vpop.f32.mrf.mxu0  ;;  %10028 = vmatmul.mubr.f32.gmra.mxu0 %v4110_v24  ;;  %5363 = vmatprep.mubr.f32.mxu1 %v4001_v45  ;;  %v4119_v45 = vld [vmem:[%s15215_s20 + $0xa30] sm:$0xff]  ;;  %v4134_v59 = vld [vmem:[%s15215_s20 + $0xaa8] sm:$0xff] }
 0x871   : > { %v5122_v26 = vpop.f32.mrf.mxu1  ;;  %10030 = vmatprep.mubr.f32.mxu0 %v4113_v14  ;;  %v4003_v14 = vld [vmem:[%s15215_s20 + $0x690] sm:$0xff] }
 0x872   : > { %v13836_v51 = vpop.f32.mrf.mxu0 }
 0x873   : > { %v13841_v24 = vpop.f32.mrf.mxu1  ;;  %5364 = vmatmul.mubr.f32.gmra.mxu1 %v4000_v34 }
 0x874   : > { %15439 = vst [vmem:[#allocation137_spill] sm:$0xff] %v13841_v24  ;;  %v13843_v29 = vpop.f32.mrf.mxu0  ;;  %10031 = vmatmul.mubr.f32.gmra.mxu0 %v4116_v35  ;;  %5368 = vmatprep.mubr.f32.mxu1 %v4004_v50  ;;  %v4125_v35 = vld [vmem:[%s15215_s20 + $0xa60] sm:$0xff]  ;;  %v4010_v24 = vld [vmem:[%s15215_s20 + $0x6c8] sm:$0xff] }
 0x875   : > { %v5127_v26 = vpop.f32.mrf.mxu1  ;;  %10033 = vmatprep.mubr.f32.mxu0 %v4119_v45  ;;  %v4006_v45 = vld [vmem:[%s15215_s20 + $0x6a8] sm:$0xff] }
 0x876   : > { %v13854_v36 = vpop.f32.mrf.mxu0 }
 0x877   : > { %v13859_v50 = vpop.f32.mrf.mxu1  ;;  %5369 = vmatmul.mubr.f32.gmra.mxu1 %v4003_v14 }
 0x878   : > { %15440 = vst [vmem:[#allocation138_spill] sm:$0xff] %v13859_v50  ;;  %v13861_v34 = vpop.f32.mrf.mxu0  ;;  %10034 = vmatmul.mubr.f32.gmra.mxu0 %v4122_v40  ;;  %5373 = vmatprep.mubr.f32.mxu1 %v4007_v11  ;;  %v4131_v11 = vld [vmem:[%s15215_s20 + $0xa90] sm:$0xff] }
 0x879   : > { %v5132_v26 = vpop.f32.mrf.mxu1  ;;  %10036 = vmatprep.mubr.f32.mxu0 %v4125_v35  ;;  %v4009_v35 = vld [vmem:[%s15215_s20 + $0x6c0] sm:$0xff] }
 0x87a   : > { %v13872_v50 = vpop.f32.mrf.mxu0 }
 0x87b   : > { %v13877_v40 = vpop.f32.mrf.mxu1  ;;  %5374 = vmatmul.mubr.f32.gmra.mxu1 %v4006_v45 }
 0x87c   : > { %15441 = vst [vmem:[#allocation139_spill] sm:$0xff] %v13877_v40  ;;  %v13879_v14 = vpop.f32.mrf.mxu0  ;;  %10037 = vmatmul.mubr.f32.gmra.mxu0 %v4128_v49  ;;  %5378 = vmatprep.mubr.f32.mxu1 %v4010_v24  ;;  %v4137_v49 = vld [vmem:[%s15215_s20 + $0xac0] sm:$0xff] }
 0x87d   : > { %v5137_v26 = vpop.f32.mrf.mxu1  ;;  %10039 = vmatprep.mubr.f32.mxu0 %v4131_v11  ;;  %v4012_v11 = vld [vmem:[%s15215_s20 + $0x6d8] sm:$0xff] }
 0x87e   : > { %v13890_v40 = vpop.f32.mrf.mxu0 }
 0x87f   : > { %v13895_v24 = vpop.f32.mrf.mxu1  ;;  %5379 = vmatmul.mubr.f32.gmra.mxu1 %v4009_v35 }
 0x880   : > { %15442 = vst [vmem:[#allocation140_spill] sm:$0xff] %v13895_v24  ;;  %v13897_v45 = vpop.f32.mrf.mxu0  ;;  %10040 = vmatmul.mubr.f32.gmra.mxu0 %v4134_v59  ;;  %5383 = vmatprep.mubr.f32.mxu1 %v4013_v8  ;;  %v4143_v8 = vld [vmem:[%s15215_s20 + $0xaf0] sm:$0xff] }
 0x881   : > { %15443 = vst [vmem:[#allocation141_spill] sm:$0xff] %v13897_v45  ;;  %v5142_v26 = vpop.f32.mrf.mxu1  ;;  %10042 = vmatprep.mubr.f32.mxu0 %v4137_v49  ;;  %v4015_v49 = vld [vmem:[%s15215_s20 + $0x6f0] sm:$0xff]  ;;  %v4146_v45 = vld [vmem:[%s15215_s20 + $0xb08] sm:$0xff] }
 0x882   : > { %v13908_v24 = vpop.f32.mrf.mxu0 }
 0x883   : > { %v13913_v59 = vpop.f32.mrf.mxu1  ;;  %5384 = vmatmul.mubr.f32.gmra.mxu1 %v4012_v11 }
 0x884   : > { %15444 = vst [vmem:[#allocation142_spill] sm:$0xff] %v13913_v59  ;;  %v13915_v35 = vpop.f32.mrf.mxu0  ;;  %10043 = vmatmul.mubr.f32.gmra.mxu0 %v4140_v57  ;;  %5388 = vmatprep.mubr.f32.mxu1 %v4016_v55  ;;  %v4149_v57 = vld [vmem:[%s15215_s20 + $0xb20] sm:$0xff] }
 0x885   : > { %15445 = vst [vmem:[#allocation143_spill] sm:$0xff] %v13915_v35  ;;  %v5147_v26 = vpop.f32.mrf.mxu1  ;;  %10045 = vmatprep.mubr.f32.mxu0 %v4143_v8  ;;  %v4018_v8 = vld [vmem:[%s15215_s20 + $0x708] sm:$0xff] }
 0x886   : > { %v13926_v59 = vpop.f32.mrf.mxu0  ;;  %v5021_v26 = vadd.f32 %v13495_v37, %v12848_v7  ;;  %v5026_v7 = vadd.f32 %v12845_v16, %v13511_v47 }
 0x887   : > { %15446 = vst [vmem:[#allocation144_spill] sm:$0xff] %v13926_v59  ;;  %v13931_v55 = vpop.f32.mrf.mxu1  ;;  %5389 = vmatmul.mubr.f32.gmra.mxu1 %v4015_v49  ;;  %v4152_v59 = vld [vmem:[%s15215_s20 + $0xb38] sm:$0xff]  ;;  %v4022_v49 = vld [vmem:[%s15215_s20 + $0x728] sm:$0xff] }
 0x888   : > { %15447 = vst [vmem:[#allocation145_spill] sm:$0xff] %v13931_v55  ;;  %v13933_v11 = vpop.f32.mrf.mxu0  ;;  %10046 = vmatmul.mubr.f32.gmra.mxu0 %v4146_v45  ;;  %5393 = vmatprep.mubr.f32.mxu1 %v4019_v6  ;;  %v5686_v6 = vadd.f32 %v13764_v20, %v5021_v26  ;;  %v4025_v20 = vld [vmem:[%s15215_s20 + $0x740] sm:$0xff]  ;;  %v5691_v16 = vadd.f32 %v13753_v25, %v5026_v7 }
 0x889   : > { %15448 = vst [vmem:[#allocation146_spill] sm:$0xff] %v13933_v11  ;;  %v5152_v35 = vpop.f32.mrf.mxu1  ;;  %10048 = vmatprep.mubr.f32.mxu0 %v4149_v57  ;;  %v5031_v57 = vadd.f32 %v13527_v12, %v12862_v1  ;;  %v5036_v26 = vadd.f32 %v12859_v27, %v13543_v2  ;;  %v4024_v12 = vld [vmem:[%s15215_s20 + $0x738] sm:$0xff]  ;;  %v5041_v25 = vadd.f32 %v13559_v19, %v12877_v17  ;;  %v4027_v19 = vld [vmem:[%s15215_s20 + $0x750] sm:$0xff] }
 0x88a   : > { %v13946_v55 = vpop.f32.mrf.mxu0  ;;  %v4021_v35 = vld [vmem:[%s15215_s20 + $0x720] sm:$0xff]  ;;  %v5046_v7 = vadd.f32 %v12873_v30, %v13575_v9 }
 0x88b   : > { %v13949_v45 = vpop.f32.mrf.mxu1  ;;  %5394 = vmatmul.mubr.f32.gmra.mxu1 %v4018_v8  ;;  %v5701_v27 = vadd.f32 %v13771_v32, %v5036_v26  ;;  %v5051_v32 = vadd.f32 %v13591_v41, %v12893_v58  ;;  %v4030_v41 = vld [vmem:[%s15215_s20 + $0x768] sm:$0xff] }
 0x88c   : > { %v13953_v37 = vpop.f32.mrf.mxu0  ;;  %10049 = vmatmul.mubr.f32.gmra.mxu0 %v4152_v59  ;;  %5398 = vmatprep.mubr.f32.mxu1 %v4022_v49  ;;  %v5696_v59 = vadd.f32 %v13782_v63, %v5031_v57  ;;  %v4028_v63 = vld [vmem:[%s15215_s20 + $0x758] sm:$0xff]  ;;  %v5706_v49 = vadd.f32 %v13800_v3, %v5041_v25  ;;  %v4031_v3 = vld [vmem:[%s15215_s20 + $0x770] sm:$0xff]  ;;  %v5711_v30 = vadd.f32 %v13789_v0, %v5046_v7 }
 0x88d   : > { %v5157_v11 = vpop.f32.mrf.mxu1  ;;  %10059 = vmatprep.mubr.msk.f32.mxu0 %vm7008_vm8, %v5686_v6  ;;  %v5716_v57 = vadd.f32 %v13818_v33, %v5051_v32  ;;  %v5061_v0 = vadd.f32 %v13623_v28, %v12909_v52  ;;  %v4034_v33 = vld [vmem:[%s15215_s20 + $0x788] sm:$0xff]  ;;  %v5066_v25 = vadd.f32 %v12905_v56, %v13639_v44  ;;  %v4033_v28 = vld [vmem:[%s15215_s20 + $0x780] sm:$0xff] }
 0x88e   : > { %v13965_v47 = vpop.f32.mrf.mxu0 }
 0x88f   : > { %v13968_v8 = vpop.f32.mrf.mxu1  ;;  %5399 = vmatmul.mubr.f32.gmra.mxu1 %v4021_v35  ;;  %v5726_v26 = vadd.f32 %v13836_v51, %v5061_v0  ;;  %v4037_v51 = vld [vmem:[%s15215_s20 + $0x7a0] sm:$0xff]  ;;  %v5731_v56 = vadd.f32 %v13825_v62, %v5066_v25  ;;  %v5081_v62 = vadd.f32 %v13687_v23, %v12941_v21  ;;  %v4039_v23 = vld [vmem:[%s15215_s20 + $0x7b0] sm:$0xff] }
 0x890   : > { %v13972_v1 = vpop.f32.mrf.mxu0  ;;  %10060 = vmatmul.mubr.msk.f32.vlgmr.msra.gmra.mxu0 %vm7008_vm8, %v5691_v16  ;;  %5403 = vmatprep.mubr.f32.mxu1 %v4025_v20  ;;  %v5056_v16 = vadd.f32 %v12889_v22, %v13607_v53 }
 0x891   : > { %v5162_v11 = vpop.f32.mrf.mxu1  ;;  %10062 = vmatprep.mubr.msk.f32.mxu0 %vm7008_vm8, %v5696_v59 }
 0x892   : > { %v13985_v2 = vpop.f32.mrf.mxu0  ;;  %v5721_v22 = vadd.f32 %v13807_v15, %v5056_v16  ;;  %v5071_v15 = vadd.f32 %v13655_v46, %v12925_v10  ;;  %v4036_v46 = vld [vmem:[%s15215_s20 + $0x798] sm:$0xff]  ;;  %v5096_v16 = vadd.f32 %v12956_v54, %v13735_v39 }
 0x893   : > { %v13988_v6 = vpop.f32.mrf.mxu1  ;;  %5404 = vmatmul.mubr.f32.gmra.mxu1 %v4024_v12 }
 0x894   : > { %v13992_v17 = vpop.f32.mrf.mxu0  ;;  %10063 = vmatmul.mubr.msk.f32.gmra.mxu0 %vm7008_vm8, %v5701_v27  ;;  %5408 = vmatprep.mubr.f32.mxu1 %v4028_v63  ;;  %v5736_v63 = vadd.f32 %v13854_v36, %v5071_v15  ;;  %v4040_v36 = vld [vmem:[%s15215_s20 + $0x7b8] sm:$0xff]  ;;  %v5761_v54 = vadd.f32 %v13879_v14, %v5096_v16 }
 0x895   : > { %v5167_v35 = vpop.f32.mrf.mxu1  ;;  %10065 = vmatprep.mubr.msk.f32.mxu0 %vm7008_vm8, %v5706_v49  ;;  %v5076_v49 = vadd.f32 %v12921_v4, %v13671_v61  ;;  %v15449_v14 = vld [vmem:[#allocation134_spill] sm:$0xff] }
 0x896   : > { %v14005_v9 = vpop.f32.mrf.mxu0  ;;  %v5086_v35 = vadd.f32 %v12937_v43, %v13703_v48 }
 0x897   : > { %v14008_v20 = vpop.f32.mrf.mxu1  ;;  %5409 = vmatmul.mubr.f32.gmra.mxu1 %v4027_v19  ;;  %v5741_v4 = vadd.f32 %v13843_v29, %v5076_v49  ;;  %v5746_v19 = vadd.f32 %v13872_v50, %v5081_v62  ;;  %v5091_v29 = vadd.f32 %v13719_v38, %v12961_v60  ;;  %v4043_v50 = vld [vmem:[%s15215_s20 + $0x7d0] sm:$0xff]  ;;  %v4042_v38 = vld [vmem:[%s15215_s20 + $0x7c8] sm:$0xff]  ;;  %v4048_v49 = vld [vmem:[%s15215_s20 + $0x7f8] sm:$0xff] }
 0x898   : > { %v14012_v58 = vpop.f32.mrf.mxu0  ;;  %10066 = vmatmul.mubr.msk.f32.gmra.mxu0 %vm7008_vm8, %v5711_v30  ;;  %5413 = vmatprep.mubr.f32.mxu1 %v4031_v3  ;;  %v5751_v43 = vadd.f32 %v13861_v34, %v5086_v35  ;;  %v5101_v34 = vadd.f32 %v13751_v18, %v12979_v31  ;;  %v4045_v18 = vld [vmem:[%s15215_s20 + $0x7e0] sm:$0xff]  ;;  %v15455_v62 = vld [vmem:[#allocation136_spill] sm:$0xff] }
 0x899   : > { %v5172_v59 = vpop.f32.mrf.mxu1  ;;  %10068 = vmatprep.mubr.msk.f32.mxu0 %vm7008_vm8, %v5716_v57  ;;  %v5756_v30 = vadd.f32 %v13890_v40, %v5091_v29  ;;  %v4046_v40 = vld [vmem:[%s15215_s20 + $0x7e8] sm:$0xff] }
 0x89a   : > { %v14025_v53 = vpop.f32.mrf.mxu0  ;;  %v5766_v0 = vadd.f32 %v13908_v24, %v5101_v34  ;;  %v4049_v24 = vld [vmem:[%s15215_s20 + $0x800] sm:$0xff]  ;;  %v15459_v34 = vld [vmem:[#allocation61_spill] sm:$0xff] }
 0x89b   : > { %v14028_v12 = vpop.f32.mrf.mxu1  ;;  %5414 = vmatmul.mubr.f32.gmra.mxu1 %v4030_v41 }
 0x89c   : > { %v14032_v52 = vpop.f32.mrf.mxu0  ;;  %10069 = vmatmul.mubr.msk.f32.gmra.mxu0 %vm7008_vm8, %v5721_v22  ;;  %5418 = vmatprep.mubr.f32.mxu1 %v4034_v33  ;;  %v5106_v33 = vadd.f32 %v12974_v42, %v13769_v13  ;;  %v5111_v22 = vadd.f32 %v15449_v14, %v12997_v5  ;;  %v15450_v42 = vld [vmem:[#allocation141_spill] sm:$0xff] }
 0x89d   : > { %v5177_v11 = vpop.f32.mrf.mxu1  ;;  %10071 = vmatprep.mubr.msk.f32.mxu0 %vm7008_vm8, %v5726_v26 }
 0x89e   : > { %v14045_v44 = vpop.f32.mrf.mxu0  ;;  %v5771_v13 = vadd.f32 %v15450_v42, %v5106_v33 }
 0x89f   : > { %v14048_v27 = vpop.f32.mrf.mxu1  ;;  %5419 = vmatmul.mubr.f32.gmra.mxu1 %v4033_v28  ;;  %v15451_v28 = vld [vmem:[#allocation144_spill] sm:$0xff] }
 0x8a0   : > { %v14052_v10 = vpop.f32.mrf.mxu0  ;;  %10072 = vmatmul.mubr.msk.f32.gmra.mxu0 %vm7008_vm8, %v5731_v56  ;;  %5423 = vmatprep.mubr.f32.mxu1 %v4037_v51  ;;  %v5776_v15 = vadd.f32 %v15451_v28, %v5111_v22  ;;  %v15452_v51 = vld [vmem:[#allocation135_spill] sm:$0xff]  ;;  %v15453_v56 = vld [vmem:[#allocation21_spill] sm:$0xff]  ;;  %v4054_v28 = vld [vmem:[%s15215_s20 + $0x828] sm:$0xff] }
 0x8a1   : > { %v5182_v7 = vpop.f32.mrf.mxu1  ;;  %10074 = vmatprep.mubr.msk.f32.mxu0 %vm7008_vm8, %v5736_v63  ;;  %v5116_v63 = vadd.f32 %v15453_v56, %v15452_v51  ;;  %v15465_v51 = vld [vmem:[#allocation140_spill] sm:$0xff] }
 0x8a2   : > { %v14065_v61 = vpop.f32.mrf.mxu0 }
 0x8a3   : > { %v14068_v32 = vpop.f32.mrf.mxu1  ;;  %5424 = vmatmul.mubr.f32.gmra.mxu1 %v4036_v46  ;;  %v15454_v46 = vld [vmem:[#allocation46_spill] sm:$0xff] }
 0x8a4   : > { %v14072_v21 = vpop.f32.mrf.mxu0  ;;  %10075 = vmatmul.mubr.msk.f32.gmra.mxu0 %vm7008_vm8, %v5741_v4  ;;  %5428 = vmatprep.mubr.f32.mxu1 %v4040_v36  ;;  %v5121_v7 = vadd.f32 %v15455_v62, %v15454_v46  ;;  %v4052_v4 = vld [vmem:[%s15215_s20 + $0x818] sm:$0xff] }
 0x8a5   : > { %v5187_v3 = vpop.f32.mrf.mxu1  ;;  %10077 = vmatprep.mubr.msk.f32.mxu0 %vm7008_vm8, %v5746_v19  ;;  %v15456_v19 = vld [vmem:[#allocation143_spill] sm:$0xff] }
 0x8a6   : > { %v14085_v48 = vpop.f32.mrf.mxu0  ;;  %v5781_v35 = vadd.f32 %v15456_v19, %v5116_v63  ;;  %v5786_v29 = vadd.f32 %v13946_v55, %v5121_v7  ;;  %v4055_v55 = vld [vmem:[%s15215_s20 + $0x830] sm:$0xff] }
 0x8a7   : > { %v14088_v57 = vpop.f32.mrf.mxu1  ;;  %5429 = vmatmul.mubr.f32.gmra.mxu1 %v4039_v23 }
 0x8a8   : > { %v14092_v60 = vpop.f32.mrf.mxu0  ;;  %10078 = vmatmul.mubr.msk.f32.gmra.mxu0 %vm7008_vm8, %v5751_v43  ;;  %5433 = vmatprep.mubr.f32.mxu1 %v4043_v50  ;;  %v15457_v50 = vld [vmem:[#allocation137_spill] sm:$0xff]  ;;  %v15458_v43 = vld [vmem:[#allocation22_spill] sm:$0xff] }
 0x8a9   : > { %v5192_v41 = vpop.f32.mrf.mxu1  ;;  %10080 = vmatprep.mubr.msk.f32.mxu0 %vm7008_vm8, %v5756_v30  ;;  %v5126_v30 = vadd.f32 %v15458_v43, %v15457_v50  ;;  %v15469_v50 = vld [vmem:[#allocation145_spill] sm:$0xff] }
 0x8aa   : > { %v14105_v39 = vpop.f32.mrf.mxu0  ;;  %v15460_v41 = vld [vmem:[#allocation138_spill] sm:$0xff] }
 0x8ab   : > { %v14108_v59 = vpop.f32.mrf.mxu1  ;;  %5434 = vmatmul.mubr.f32.gmra.mxu1 %v4042_v38  ;;  %v4051_v38 = vld [vmem:[%s15215_s20 + $0x810] sm:$0xff] }
 0x8ac   : > { %v14112_v31 = vpop.f32.mrf.mxu0  ;;  %10081 = vmatmul.mubr.msk.f32.gmra.mxu0 %vm7008_vm8, %v5761_v54  ;;  %5438 = vmatprep.mubr.f32.mxu1 %v4046_v40  ;;  %v5131_v40 = vadd.f32 %v15460_v41, %v15459_v34 }
 0x8ad   : > { %v5197_v26 = vpop.f32.mrf.mxu1  ;;  %10083 = vmatprep.mubr.msk.f32.mxu0 %vm7008_vm8, %v5766_v0  ;;  %v15461_v0 = vld [vmem:[#allocation146_spill] sm:$0xff] }
 0x8ae   : > { %v14125_v25 = vpop.f32.mrf.mxu0  ;;  %v5791_v33 = vadd.f32 %v15461_v0, %v5126_v30  ;;  %v5796_v14 = vadd.f32 %v13965_v47, %v5131_v40  ;;  %v15462_v26 = vld [vmem:[#allocation139_spill] sm:$0xff]  ;;  %v4058_v47 = vld [vmem:[%s15215_s20 + $0x848] sm:$0xff] }
 0x8af   : > { %v14128_v11 = vpop.f32.mrf.mxu1  ;;  %5439 = vmatmul.mubr.f32.gmra.mxu1 %v4045_v18 }
 0x8b0   : > { %v14132_v5 = vpop.f32.mrf.mxu0  ;;  %10084 = vmatmul.mubr.msk.f32.gmra.mxu0 %vm7008_vm8, %v5771_v13  ;;  %5443 = vmatprep.mubr.f32.mxu1 %v4049_v24  ;;  %v15463_v24 = vld [vmem:[#allocation47_spill] sm:$0xff] }
 0x8b1   : > { %v5202_v36 = vpop.f32.mrf.mxu1  ;;  %10086 = vmatprep.mubr.msk.f32.mxu0 %vm7008_vm8, %v5776_v15  ;;  %v5136_v42 = vadd.f32 %v15463_v24, %v15462_v26  ;;  %v15464_v15 = vld [vmem:[#allocation64_spill] sm:$0xff] }
 0x8b2   : > { %v14145_v23 = vpop.f32.mrf.mxu0  ;;  %v5141_v56 = vadd.f32 %v15465_v51, %v15464_v15  ;;  %v15466_v36 = vld [vmem:[#allocation142_spill] sm:$0xff] }
 0x8b3   : > { %v14148_v3 = vpop.f32.mrf.mxu1  ;;  %5444 = vmatmul.mubr.f32.gmra.mxu1 %v4048_v49  ;;  %v5801_v49 = vadd.f32 %v13953_v37, %v5136_v42  ;;  %v15468_v37 = vld [vmem:[#allocation68_spill] sm:$0xff]  ;;  %v15472_v15 = vld [vmem:[#allocation70_spill] sm:$0xff] }
 0x8b4   : > { %v14152_v16 = vpop.f32.mrf.mxu0  ;;  %10087 = vmatmul.mubr.msk.f32.gmra.mxu0 %vm7008_vm8, %v5781_v35  ;;  %5448 = vmatprep.mubr.f32.mxu1 %v4052_v4  ;;  %v5806_v62 = vadd.f32 %v13985_v2, %v5141_v56  ;;  %v15467_v4 = vld [vmem:[#allocation63_spill] sm:$0xff]  ;;  %v5151_v43 = vadd.f32 %v15469_v50, %v15468_v37  ;;  %v5166_v51 = vadd.f32 %v15472_v15, %v13988_v6  ;;  %v4063_v56 = vld [vmem:[%s15215_s20 + $0x870] sm:$0xff]  ;;  %v15476_v50 = vld [vmem:[#allocation78_spill] sm:$0xff] }
 0x8b5   : > { %v5207_v54 = vpop.f32.mrf.mxu1  ;;  %10089 = vmatprep.mubr.msk.f32.mxu0 %vm7008_vm8, %v5786_v29  ;;  %v5146_v19 = vadd.f32 %v15467_v4, %v15466_v36  ;;  %v4057_v29 = vld [vmem:[%s15215_s20 + $0x840] sm:$0xff] }
 0x8b6   : > { %v14165_v18 = vpop.f32.mrf.mxu0  ;;  %v4061_v2 = vld [vmem:[%s15215_s20 + $0x860] sm:$0xff]  ;;  %v5816_v41 = vadd.f32 %v14005_v9, %v5151_v43  ;;  %v15470_v54 = vld [vmem:[#allocation66_spill] sm:$0xff]  ;;  %v5831_v6 = vadd.f32 %v14012_v58, %v5166_v51  ;;  %v4066_v58 = vld [vmem:[%s15215_s20 + $0x888] sm:$0xff]  ;;  %v5186_v43 = vadd.f32 %v15476_v50, %v14068_v32 }
 0x8b7   : > { %v14168_v22 = vpop.f32.mrf.mxu1  ;;  %5449 = vmatmul.mubr.f32.gmra.mxu1 %v4051_v38  ;;  %v5811_v38 = vadd.f32 %v13972_v1, %v5146_v19  ;;  %v15471_v1 = vld [vmem:[#allocation72_spill] sm:$0xff]  ;;  %v4064_v9 = vld [vmem:[%s15215_s20 + $0x878] sm:$0xff] }
 0x8b8   : > { %v14172_v13 = vpop.f32.mrf.mxu0  ;;  %10090 = vmatmul.mubr.msk.f32.gmra.mxu0 %vm7008_vm8, %v5791_v33  ;;  %5453 = vmatprep.mubr.f32.mxu1 %v4055_v55  ;;  %v5156_v55 = vadd.f32 %v15470_v54, %v13949_v45  ;;  %v4060_v33 = vld [vmem:[%s15215_s20 + $0x858] sm:$0xff]  ;;  %v15475_v19 = vld [vmem:[#allocation80_spill] sm:$0xff] }
 0x8b9   : > { %v5212_v63 = vpop.f32.mrf.mxu1  ;;  %10092 = vmatprep.mubr.msk.f32.mxu0 %vm7008_vm8, %v5796_v14  ;;  %v5161_v14 = vadd.f32 %v13968_v8, %v15471_v1 }
 0x8ba   : > { %v14185_v46 = vpop.f32.mrf.mxu0  ;;  %v5821_v45 = vadd.f32 %v13992_v17, %v5156_v55  ;;  %v15473_v17 = vld [vmem:[#allocation76_spill] sm:$0xff] }
 0x8bb   : > { %v14188_v7 = vpop.f32.mrf.mxu1  ;;  %5454 = vmatmul.mubr.f32.gmra.mxu1 %v4054_v28  ;;  %v5826_v42 = vadd.f32 %v14025_v53, %v5161_v14  ;;  %v5171_v63 = vadd.f32 %v14008_v20, %v15473_v17  ;;  %v4067_v53 = vld [vmem:[%s15215_s20 + $0x890] sm:$0xff] }
 0x8bc   : > { %v14192_v35 = vpop.f32.mrf.mxu0  ;;  %10093 = vmatmul.mubr.msk.f32.gmra.mxu0 %vm7008_vm8, %v5801_v49  ;;  %5458 = vmatprep.mubr.f32.mxu1 %v4058_v47  ;;  %v15474_v49 = vld [vmem:[#allocation74_spill] sm:$0xff] }
 0x8bd   : > { %v5217_v30 = vpop.f32.mrf.mxu1  ;;  %10095 = vmatprep.mubr.msk.f32.mxu0 %vm7008_vm8, %v5806_v62  ;;  %v5176_v62 = vadd.f32 %v15474_v49, %v14028_v12  ;;  %v5836_v4 = vadd.f32 %v14045_v44, %v5171_v63  ;;  %v4070_v44 = vld [vmem:[%s15215_s20 + $0x8a8] sm:$0xff] }
 0x8be   : > { %v14205_v34 = vpop.f32.mrf.mxu0 }
 0x8bf   : > { %v14208_v40 = vpop.f32.mrf.mxu1  ;;  %5459 = vmatmul.mubr.f32.gmra.mxu1 %v4057_v29  ;;  %v5181_v29 = vadd.f32 %v14048_v27, %v15475_v19  ;;  %v5841_v27 = vadd.f32 %v14032_v52, %v5176_v62  ;;  %v4069_v52 = vld [vmem:[%s15215_s20 + $0x8a0] sm:$0xff] }
 0x8c0   : > { %v14212_v0 = vpop.f32.mrf.mxu0  ;;  %10096 = vmatmul.mubr.msk.f32.gmra.mxu0 %vm7008_vm8, %v5811_v38  ;;  %5463 = vmatprep.mubr.f32.mxu1 %v4061_v2  ;;  %v15477_v38 = vld [vmem:[#allocation84_spill] sm:$0xff] }
 0x8c1   : > { %v5222_v26 = vpop.f32.mrf.mxu1  ;;  %10098 = vmatprep.mubr.msk.f32.mxu0 %vm7008_vm8, %v5816_v41  ;;  %v5846_v2 = vadd.f32 %v14065_v61, %v5181_v29  ;;  %v5191_v41 = vadd.f32 %v14088_v57, %v15477_v38  ;;  %v4073_v61 = vld [vmem:[%s15215_s20 + $0x8c0] sm:$0xff]  ;;  %v5851_v57 = vadd.f32 %v14052_v10, %v5186_v43  ;;  %v4072_v10 = vld [vmem:[%s15215_s20 + $0x8b8] sm:$0xff] }
 0x8c2   : > { %v14225_v24 = vpop.f32.mrf.mxu0 }
 0x8c3   : > { %v14228_v28 = vpop.f32.mrf.mxu1  ;;  %5464 = vmatmul.mubr.f32.gmra.mxu1 %v4060_v33  ;;  %v15478_v33 = vld [vmem:[#allocation82_spill] sm:$0xff]  ;;  %v5856_v26 = vadd.f32 %v14085_v48, %v5191_v41  ;;  %v15485_v41 = vld [vmem:[#allocation100_spill] sm:$0xff] }
 0x8c4   : > { %v14232_v8 = vpop.f32.mrf.mxu0  ;;  %10099 = vmatmul.mubr.msk.f32.gmra.mxu0 %vm7008_vm8, %v5821_v45  ;;  %5468 = vmatprep.mubr.f32.mxu1 %v4064_v9  ;;  %v5196_v1 = vadd.f32 %v15478_v33, %v14108_v59  ;;  %v15479_v9 = vld [vmem:[#allocation88_spill] sm:$0xff]  ;;  %v4076_v48 = vld [vmem:[%s15215_s20 + $0x8d8] sm:$0xff] }
 0x8c5   : > { %v5227_v47 = vpop.f32.mrf.mxu1  ;;  %10101 = vmatprep.mubr.msk.f32.mxu0 %vm7008_vm8, %v5826_v42  ;;  %v5201_v45 = vadd.f32 %v14128_v11, %v15479_v9  ;;  %v15480_v11 = vld [vmem:[#allocation86_spill] sm:$0xff]  ;;  %v15487_v9 = vld [vmem:[#allocation104_spill] sm:$0xff] }
 0x8c6   : > { %v14247_v36 = vpop.f32.mrf.mxu0  ;;  %v5861_v59 = vadd.f32 %v14072_v21, %v5196_v1  ;;  %v15481_v47 = vld [vmem:[#allocation92_spill] sm:$0xff]  ;;  %v4075_v21 = vld [vmem:[%s15215_s20 + $0x8d0] sm:$0xff] }
 0x8c7   : > { %v14252_v20 = vpop.f32.mrf.mxu1  ;;  %5469 = vmatmul.mubr.f32.gmra.mxu1 %v4063_v56  ;;  %v5206_v56 = vadd.f32 %v15480_v11, %v14148_v3  ;;  %v5866_v63 = vadd.f32 %v14105_v39, %v5201_v45  ;;  %v4079_v39 = vld [vmem:[%s15215_s20 + $0x8f0] sm:$0xff] }
 0x8c8   : > { %v14254_v37 = vpop.f32.mrf.mxu0  ;;  %10102 = vmatmul.mubr.msk.f32.gmra.mxu0 %vm7008_vm8, %v5831_v6  ;;  %5473 = vmatprep.mubr.f32.mxu1 %v4067_v53  ;;  %v5211_v53 = vadd.f32 %v14168_v22, %v15481_v47  ;;  %v15482_v22 = vld [vmem:[#allocation90_spill] sm:$0xff] }
 0x8c9   : > { %v5232_v12 = vpop.f32.mrf.mxu1  ;;  %10104 = vmatprep.mubr.msk.f32.mxu0 %vm7008_vm8, %v5836_v4  ;;  %v5871_v3 = vadd.f32 %v14092_v60, %v5206_v56  ;;  %v5216_v4 = vadd.f32 %v15482_v22, %v14188_v7  ;;  %v4078_v60 = vld [vmem:[%s15215_s20 + $0x8e8] sm:$0xff] }
 0x8ca   : > { %v14267_v30 = vpop.f32.mrf.mxu0  ;;  %v5876_v29 = vadd.f32 %v14125_v25, %v5211_v53  ;;  %v4082_v25 = vld [vmem:[%s15215_s20 + $0x908] sm:$0xff] }
 0x8cb   : > { %v14272_v54 = vpop.f32.mrf.mxu1  ;;  %5474 = vmatmul.mubr.f32.gmra.mxu1 %v4066_v58  ;;  %v15483_v58 = vld [vmem:[#allocation96_spill] sm:$0xff]  ;;  %v5881_v7 = vadd.f32 %v14112_v31, %v5216_v4  ;;  %v4081_v31 = vld [vmem:[%s15215_s20 + $0x900] sm:$0xff] }
 0x8cc   : > { %v14274_v55 = vpop.f32.mrf.mxu0  ;;  %10105 = vmatmul.mubr.msk.f32.gmra.mxu0 %vm7008_vm8, %v5841_v27  ;;  %5478 = vmatprep.mubr.f32.mxu1 %v4070_v44  ;;  %v5221_v12 = vadd.f32 %v14208_v40, %v15483_v58  ;;  %v15484_v40 = vld [vmem:[#allocation94_spill] sm:$0xff] }
 0x8cd   : > { %v5237_v32 = vpop.f32.mrf.mxu1  ;;  %10107 = vmatprep.mubr.msk.f32.mxu0 %vm7008_vm8, %v5846_v2  ;;  %v5226_v43 = vadd.f32 %v15484_v40, %v14228_v28 }
 0x8ce   : > { %v14287_v14 = vpop.f32.mrf.mxu0  ;;  %v5886_v38 = vadd.f32 %v14145_v23, %v5221_v12  ;;  %v4085_v23 = vld [vmem:[%s15215_s20 + $0x920] sm:$0xff] }
 0x8cf   : > { %v5240_v42 = vpop.f32.mrf.mxu1  ;;  %5479 = vmatmul.mubr.f32.gmra.mxu1 %v4069_v52  ;;  %v5231_v52 = vadd.f32 %v14252_v20, %v15485_v41  ;;  %v5891_v28 = vadd.f32 %v14132_v5, %v5226_v43  ;;  %v15486_v20 = vld [vmem:[#allocation98_spill] sm:$0xff] }
 0x8d0   : > { %v14292_v15 = vpop.f32.mrf.mxu0  ;;  %10108 = vmatmul.mubr.msk.f32.gmra.mxu0 %vm7008_vm8, %v5851_v57  ;;  %5483 = vmatprep.mubr.f32.mxu1 %v4073_v61  ;;  %v5236_v33 = vadd.f32 %v15486_v20, %v14272_v54  ;;  %v5241_v45 = vadd.f32 %v5240_v42, %v15487_v9  ;;  %v4084_v5 = vld [vmem:[%s15215_s20 + $0x918] sm:$0xff]  ;;  %v15495_v9 = vld [vmem:[#allocation119_spill] sm:$0xff] }
 0x8d1   : > { %v5242_v51 = vpop.f32.mrf.mxu1  ;;  %10110 = vmatprep.mubr.msk.f32.mxu0 %vm7008_vm8, %v5856_v26  ;;  %v5896_v26 = vadd.f32 %v14165_v18, %v5231_v52  ;;  %v4088_v18 = vld [vmem:[%s15215_s20 + $0x938] sm:$0xff] }
 0x8d2   : > { %v14305_v17 = vpop.f32.mrf.mxu0  ;;  %v5901_v54 = vadd.f32 %v14152_v16, %v5236_v33  ;;  %v15488_v42 = vld [vmem:[#allocation102_spill] sm:$0xff]  ;;  %v5906_v56 = vadd.f32 %v14185_v46, %v5241_v45  ;;  %v4091_v46 = vld [vmem:[%s15215_s20 + $0x950] sm:$0xff] }
 0x8d3   : > { %v5245_v6 = vpop.f32.mrf.mxu1  ;;  %5484 = vmatmul.mubr.f32.gmra.mxu1 %v4072_v10 }
 0x8d4   : > { %v14310_v49 = vpop.f32.mrf.mxu0  ;;  %10111 = vmatmul.mubr.msk.f32.gmra.mxu0 %vm7008_vm8, %v5861_v59  ;;  %5488 = vmatprep.mubr.f32.mxu1 %v4076_v48  ;;  %v5246_v59 = vadd.f32 %v15488_v42, %v5245_v6 }
 0x8d5   : > { %v5247_v62 = vpop.f32.mrf.mxu1  ;;  %10113 = vmatprep.mubr.msk.f32.mxu0 %vm7008_vm8, %v5866_v63  ;;  %v15489_v63 = vld [vmem:[#allocation108_spill] sm:$0xff] }
 0x8d6   : > { %v14323_v19 = vpop.f32.mrf.mxu0  ;;  %v4087_v62 = vld [vmem:[%s15215_s20 + $0x930] sm:$0xff]  ;;  %v5911_v6 = vadd.f32 %v14172_v13, %v5246_v59  ;;  %v15496_v59 = vld [vmem:[#allocation118_spill] sm:$0xff] }
 0x8d7   : > { %v5250_v44 = vpop.f32.mrf.mxu1  ;;  %5489 = vmatmul.mubr.f32.gmra.mxu1 %v4075_v21 }
 0x8d8   : > { %v14328_v27 = vpop.f32.mrf.mxu0  ;;  %10114 = vmatmul.mubr.msk.f32.gmra.mxu0 %vm7008_vm8, %v5871_v3  ;;  %5493 = vmatprep.mubr.f32.mxu1 %v4079_v39  ;;  %v5251_v47 = vadd.f32 %v5250_v44, %v15489_v63  ;;  %v15490_v39 = vld [vmem:[#allocation106_spill] sm:$0xff] }
 0x8d9   : > { %v5252_v50 = vpop.f32.mrf.mxu1  ;;  %10116 = vmatprep.mubr.msk.f32.mxu0 %vm7008_vm8, %v5876_v29  ;;  %v15491_v29 = vld [vmem:[#allocation112_spill] sm:$0xff] }
 0x8da   : > { %v14341_v2 = vpop.f32.mrf.mxu0  ;;  %v5916_v4 = vadd.f32 %v14205_v34, %v5251_v47  ;;  %v4094_v34 = vld [vmem:[%s15215_s20 + $0x968] sm:$0xff]  ;;  %v4099_v47 = vld [vmem:[%s15215_s20 + $0x990] sm:$0xff] }
 0x8db   : > { %v5255_v32 = vpop.f32.mrf.mxu1  ;;  %5494 = vmatmul.mubr.f32.gmra.mxu1 %v4078_v60  ;;  %v4090_v60 = vld [vmem:[%s15215_s20 + $0x948] sm:$0xff] }
 0x8dc   : > { %v14346_v61 = vpop.f32.mrf.mxu0  ;;  %10117 = vmatmul.mubr.msk.f32.gmra.mxu0 %vm7008_vm8, %v5881_v7  ;;  %5498 = vmatprep.mubr.f32.mxu1 %v4082_v25  ;;  %v5256_v3 = vadd.f32 %v15490_v39, %v5255_v32  ;;  %v15492_v25 = vld [vmem:[#allocation110_spill] sm:$0xff] }
 0x8dd   : > { %v5257_v57 = vpop.f32.mrf.mxu1  ;;  %10119 = vmatprep.mubr.msk.f32.mxu0 %vm7008_vm8, %v5886_v38  ;;  %v15493_v38 = vld [vmem:[#allocation116_spill] sm:$0xff] }
 0x8de   : > { %v14359_v1 = vpop.f32.mrf.mxu0  ;;  %v5921_v50 = vadd.f32 %v14192_v35, %v5256_v3  ;;  %v4102_v3 = vld [vmem:[%s15215_s20 + $0x9a8] sm:$0xff] }
 0x8df   : > { %v5260_v10 = vpop.f32.mrf.mxu1  ;;  %5499 = vmatmul.mubr.f32.gmra.mxu1 %v4081_v31  ;;  %v4093_v31 = vld [vmem:[%s15215_s20 + $0x960] sm:$0xff] }
 0x8e0   : > { %v14363_v51 = vpop.f32.mrf.mxu0  ;;  %10120 = vmatmul.mubr.msk.f32.gmra.mxu0 %vm7008_vm8, %v5891_v28  ;;  %5503 = vmatprep.mubr.f32.mxu1 %v4085_v23  ;;  %v5261_v58 = vadd.f32 %v5260_v10, %v15491_v29  ;;  %v15494_v23 = vld [vmem:[#allocation114_spill] sm:$0xff] }
 0x8e1   : > { %v5262_v48 = vpop.f32.mrf.mxu1  ;;  %10122 = vmatprep.mubr.msk.f32.mxu0 %vm7008_vm8, %v5896_v26 }
 0x8e2   : > { %v14375_v11 = vpop.f32.mrf.mxu0  ;;  %v5926_v43 = vadd.f32 %v14225_v24, %v5261_v58  ;;  %v4097_v24 = vld [vmem:[%s15215_s20 + $0x980] sm:$0xff] }
 0x8e3   : > { %v5265_v53 = vpop.f32.mrf.mxu1  ;;  %5504 = vmatmul.mubr.f32.gmra.mxu1 %v4084_v5  ;;  %v4096_v5 = vld [vmem:[%s15215_s20 + $0x978] sm:$0xff] }
 0x8e4   : > { %v14379_v21 = vpop.f32.mrf.mxu0  ;;  %10123 = vmatmul.mubr.msk.f32.gmra.mxu0 %vm7008_vm8, %v5901_v54  ;;  %5508 = vmatprep.mubr.f32.mxu1 %v4088_v18  ;;  %v5266_v7 = vadd.f32 %v15492_v25, %v5265_v53 }
 0x8e5   : > { %v5267_v16 = vpop.f32.mrf.mxu1  ;;  %10125 = vmatprep.mubr.msk.f32.mxu0 %vm7008_vm8, %v5906_v56 }
 0x8e6   : > { %v14391_v22 = vpop.f32.mrf.mxu0  ;;  %v5931_v57 = vadd.f32 %v14212_v0, %v5266_v7 }
 0x8e7   : > { %v5270_v12 = vpop.f32.mrf.mxu1  ;;  %5509 = vmatmul.mubr.f32.gmra.mxu1 %v4087_v62 }
 0x8e8   : > { %v14395_v44 = vpop.f32.mrf.mxu0  ;;  %10126 = vmatmul.mubr.msk.f32.gmra.mxu0 %vm7008_vm8, %v5911_v6  ;;  %5513 = vmatprep.mubr.f32.mxu1 %v4091_v46  ;;  %v5271_v41 = vadd.f32 %v5270_v12, %v15493_v38  ;;  %v15497_v46 = vld [vmem:[#allocation121_spill] sm:$0xff] }
 0x8e9   : > { %v5272_v13 = vpop.f32.mrf.mxu1  ;;  %10128 = vmatprep.mubr.msk.f32.mxu0 %vm7008_vm8, %v5916_v4 }
 0x8ea   : > { %v14407_v40 = vpop.f32.mrf.mxu0  ;;  %v5936_v33 = vadd.f32 %v14247_v36, %v5271_v41  ;;  %v4100_v36 = vld [vmem:[%s15215_s20 + $0x998] sm:$0xff]  ;;  %v15499_v41 = vld [vmem:[#allocation123_spill] sm:$0xff] }
 0x8eb   : > { %v5275_v52 = vpop.f32.mrf.mxu1  ;;  %5514 = vmatmul.mubr.f32.gmra.mxu1 %v4090_v60  ;;  %v15498_v60 = vld [vmem:[#allocation120_spill] sm:$0xff] }
 0x8ec   : > { %v14411_v32 = vpop.f32.mrf.mxu0  ;;  %10129 = vmatmul.mubr.msk.f32.gmra.mxu0 %vm7008_vm8, %v5921_v50  ;;  %5518 = vmatprep.mubr.f32.mxu1 %v4094_v34  ;;  %v5276_v28 = vadd.f32 %v15494_v23, %v5275_v52  ;;  %v4105_v50 = vld [vmem:[%s15215_s20 + $0x9c0] sm:$0xff] }
 0x8ed   : > { %v5277_v35 = vpop.f32.mrf.mxu1  ;;  %10131 = vmatprep.mubr.msk.f32.mxu0 %vm7008_vm8, %v5926_v43 }
 0x8ee   : > { %v14423_v20 = vpop.f32.mrf.mxu0  ;;  %v5941_v48 = vadd.f32 %v14232_v8, %v5276_v28  ;;  %v4103_v8 = vld [vmem:[%s15215_s20 + $0x9b0] sm:$0xff]  ;;  %v4108_v35 = vld [vmem:[%s15215_s20 + $0x9d8] sm:$0xff] }
 0x8ef   : > { %v5280_v26 = vpop.f32.mrf.mxu1  ;;  %5519 = vmatmul.mubr.f32.gmra.mxu1 %v4093_v31 }
 0x8f0   : > { %v5281_v45 = vadd.f32 %v5280_v26, %v15495_v9  ;;  %v14427_v10 = vpop.f32.mrf.mxu0  ;;  %10132 = vmatmul.mubr.msk.f32.gmra.mxu0 %vm7008_vm8, %v5931_v57  ;;  %5523 = vmatprep.mubr.f32.mxu1 %v4097_v24 }
 0x8f1   : > { %v5282_v0 = vpop.f32.mrf.mxu1  ;;  %10134 = vmatprep.mubr.msk.f32.mxu0 %vm7008_vm8, %v5936_v33  ;;  %v15500_v33 = vld [vmem:[#allocation122_spill] sm:$0xff] }
 0x8f2   : > { %v5946_v18 = vadd.f32 %v14267_v30, %v5281_v45  ;;  %v14439_v54 = vpop.f32.mrf.mxu0  ;;  %v4111_v45 = vld [vmem:[%s15215_s20 + $0x9f0] sm:$0xff] }
 0x8f3   : > { %v5285_v42 = vpop.f32.mrf.mxu1  ;;  %5524 = vmatmul.mubr.f32.gmra.mxu1 %v4096_v5 }
 0x8f4   : > { %v5286_v56 = vadd.f32 %v15496_v59, %v5285_v42  ;;  %v14442_v63 = vpop.f32.mrf.mxu0  ;;  %10135 = vmatmul.mubr.msk.f32.gmra.mxu0 %vm7008_vm8, %v5941_v48  ;;  %5528 = vmatprep.mubr.f32.mxu1 %v4100_v36 }
 0x8f5   : > { %v5287_v53 = vpop.f32.mrf.mxu1  ;;  %10137 = vmatprep.mubr.msk.f32.mxu0 %vm7008_vm8, %v5946_v18  ;;  %v15501_v18 = vld [vmem:[#allocation125_spill] sm:$0xff] }
 0x8f6   : > { %v5951_v30 = vadd.f32 %v14254_v37, %v5286_v56  ;;  %v14453_v62 = vpop.f32.mrf.mxu0  ;;  %v4106_v37 = vld [vmem:[%s15215_s20 + $0x9c8] sm:$0xff] }
 0x8f7   : > { %v5290_v16 = vpop.f32.mrf.mxu1  ;;  %5529 = vmatmul.mubr.f32.gmra.mxu1 %v4099_v47  ;;  %v4114_v56 = vld [vmem:[%s15215_s20 + $0xa08] sm:$0xff] }
 0x8f8   : > { %v5291_v6 = vadd.f32 %v5290_v16, %v15497_v46  ;;  %v14456_v39 = vpop.f32.mrf.mxu0  ;;  %10138 = vmatmul.mubr.msk.f32.gmra.mxu0 %vm7008_vm8, %v5951_v30  ;;  %5533 = vmatprep.mubr.f32.mxu1 %v4103_v8  ;;  %v15502_v16 = vld [vmem:[#allocation124_spill] sm:$0xff] }
 0x8f9   : > { %v5292_v4 = vpop.f32.mrf.mxu1 }
 0x8fa   : > { %v5956_v29 = vadd.f32 %v14287_v14, %v5291_v6  ;;  %v14466_v58 = vpop.f32.mrf.mxu0  ;;  %v4109_v14 = vld [vmem:[%s15215_s20 + $0x9e0] sm:$0xff] }
 0x8fb   : > { %v5295_v12 = vpop.f32.mrf.mxu1  ;;  %5534 = vmatmul.mubr.f32.gmra.mxu1 %v4102_v3  ;;  %v4117_v3 = vld [vmem:[%s15215_s20 + $0xa20] sm:$0xff] }
 0x8fc   : > { %v5296_v13 = vadd.f32 %v15498_v60, %v5295_v12  ;;  %v14469_v34 = vpop.f32.mrf.mxu0  ;;  %10140 = vmatprep.mubr.msk.f32.mxu0 %vm7008_vm8, %v5956_v29  ;;  %5538 = vmatprep.mubr.f32.mxu1 %v4106_v37  ;;  %v15503_v60 = vld [vmem:[#allocation127_spill] sm:$0xff] }
 0x8fd   : > { %v5297_v25 = vpop.f32.mrf.mxu1 }
 0x8fe   : > { %v5961_v7 = vadd.f32 %v14274_v55, %v5296_v13  ;;  %v14479_v43 = vpop.f32.mrf.mxu0  ;;  %v4112_v55 = vld [vmem:[%s15215_s20 + $0x9f8] sm:$0xff] }
 0x8ff   : > { %v5300_v38 = vpop.f32.mrf.mxu1  ;;  %5539 = vmatmul.mubr.f32.gmra.mxu1 %v4105_v50  ;;  %v4120_v25 = vld [vmem:[%s15215_s20 + $0xa38] sm:$0xff] }
 0x900   : > { %v5301_v52 = vadd.f32 %v5300_v38, %v15499_v41  ;;  %v14482_v31 = vpop.f32.mrf.mxu0  ;;  %10141 = vmatmul.mubr.msk.f32.gmra.mxu0 %vm7008_vm8, %v5961_v7  ;;  %5543 = vmatprep.mubr.f32.mxu1 %v4109_v14 }
 0x901   : > { %v5302_v24 = vpop.f32.mrf.mxu1 }
 0x902   : > { %v5966_v57 = vadd.f32 %v14305_v17, %v5301_v52  ;;  %v14492_v23 = vpop.f32.mrf.mxu0  ;;  %v4115_v17 = vld [vmem:[%s15215_s20 + $0xa10] sm:$0xff]  ;;  %v15504_v52 = vld [vmem:[#allocation126_spill] sm:$0xff] }
 0x903   : > { %v5305_v28 = vpop.f32.mrf.mxu1  ;;  %5544 = vmatmul.mubr.f32.gmra.mxu1 %v4108_v35 }
 0x904   : > { %v5306_v26 = vadd.f32 %v15500_v33, %v5305_v28  ;;  %v14495_v9 = vpop.f32.mrf.mxu0  ;;  %10143 = vmatprep.mubr.msk.f32.mxu0 %vm7008_vm8, %v5966_v57  ;;  %5548 = vmatprep.mubr.f32.mxu1 %v4112_v55  ;;  %v4123_v55 = vld [vmem:[%s15215_s20 + $0xa50] sm:$0xff] }
 0x905   : > { %v5307_v5 = vpop.f32.mrf.mxu1 }
 0x906   : > { %v5971_v0 = vadd.f32 %v14292_v15, %v5306_v26  ;;  %v14505_v36 = vpop.f32.mrf.mxu0  ;;  %v4118_v15 = vld [vmem:[%s15215_s20 + $0xa28] sm:$0xff] }
 0x907   : > { %v5310_v48 = vpop.f32.mrf.mxu1  ;;  %5549 = vmatmul.mubr.f32.gmra.mxu1 %v4111_v45  ;;  %v15505_v45 = vld [vmem:[#allocation129_spill] sm:$0xff] }
 0x908   : > { %v5311_v42 = vadd.f32 %v5310_v48, %v15501_v18  ;;  %v14508_v59 = vpop.f32.mrf.mxu0  ;;  %10144 = vmatmul.mubr.msk.f32.gmra.mxu0 %vm7008_vm8, %v5971_v0  ;;  %5553 = vmatprep.mubr.f32.mxu1 %v4115_v17  ;;  %v4126_v0 = vld [vmem:[%s15215_s20 + $0xa68] sm:$0xff] }
 0x909   : > { %v5312_v47 = vpop.f32.mrf.mxu1 }
 0x90a   : > { %v5976_v53 = vadd.f32 %v14323_v19, %v5311_v42  ;;  %v14518_v8 = vpop.f32.mrf.mxu0  ;;  %v4121_v19 = vld [vmem:[%s15215_s20 + $0xa40] sm:$0xff]  ;;  %v15506_v47 = vld [vmem:[#allocation128_spill] sm:$0xff] }
 0x90b   : > { %v5315_v30 = vpop.f32.mrf.mxu1  ;;  %5554 = vmatmul.mubr.f32.gmra.mxu1 %v4114_v56 }
 0x90c   : > { %v5316_v46 = vadd.f32 %v15502_v16, %v5315_v30  ;;  %v14521_v6 = vpop.f32.mrf.mxu0  ;;  %10146 = vmatprep.mubr.msk.f32.mxu0 %vm7008_vm8, %v5976_v53  ;;  %5558 = vmatprep.mubr.f32.mxu1 %v4118_v15  ;;  %v4129_v30 = vld [vmem:[%s15215_s20 + $0xa80] sm:$0xff] }
 0x90d   : > { %v5317_v4 = vpop.f32.mrf.mxu1 }
 0x90e   : > { %v5981_v37 = vadd.f32 %v14310_v49, %v5316_v46  ;;  %v14531_v29 = vpop.f32.mrf.mxu0  ;;  %v4124_v49 = vld [vmem:[%s15215_s20 + $0xa58] sm:$0xff] }
 0x90f   : > { %v5320_v12 = vpop.f32.mrf.mxu1  ;;  %5559 = vmatmul.mubr.f32.gmra.mxu1 %v4117_v3 }
 0x910   : > { %v5321_v13 = vadd.f32 %v5320_v12, %v15503_v60  ;;  %v14534_v50 = vpop.f32.mrf.mxu0  ;;  %10147 = vmatmul.mubr.msk.f32.gmra.mxu0 %vm7008_vm8, %v5981_v37  ;;  %5563 = vmatprep.mubr.f32.mxu1 %v4121_v19  ;;  %v15507_v19 = vld [vmem:[#allocation131_spill] sm:$0xff]  ;;  %v4132_v60 = vld [vmem:[%s15215_s20 + $0xa98] sm:$0xff] }
 0x911   : > { %v5322_v14 = vpop.f32.mrf.mxu1 }
 0x912   : > { %v5986_v7 = vadd.f32 %v14341_v2, %v5321_v13  ;;  %v14544_v38 = vpop.f32.mrf.mxu0  ;;  %v4127_v2 = vld [vmem:[%s15215_s20 + $0xa70] sm:$0xff] }
 0x913   : > { %v5325_v41 = vpop.f32.mrf.mxu1  ;;  %5564 = vmatmul.mubr.f32.gmra.mxu1 %v4120_v25 }
 0x914   : > { %v5326_v35 = vadd.f32 %v15504_v52, %v5325_v41  ;;  %v14547_v24 = vpop.f32.mrf.mxu0  ;;  %10149 = vmatprep.mubr.msk.f32.mxu0 %vm7008_vm8, %v5986_v7  ;;  %5568 = vmatprep.mubr.f32.mxu1 %v4124_v49  ;;  %v15508_v7 = vld [vmem:[#allocation130_spill] sm:$0xff] }
 0x915   : > { %v5327_v57 = vpop.f32.mrf.mxu1 }
 0x916   : > { %v5991_v28 = vadd.f32 %v14328_v27, %v5326_v35  ;;  %v14557_v33 = vpop.f32.mrf.mxu0  ;;  %v4130_v27 = vld [vmem:[%s15215_s20 + $0xa88] sm:$0xff]  ;;  %v4135_v35 = vld [vmem:[%s15215_s20 + $0xab0] sm:$0xff] }
 0x917   : > { %v5330_v26 = vpop.f32.mrf.mxu1  ;;  %5569 = vmatmul.mubr.f32.gmra.mxu1 %v4123_v55 }
 0x918   : > { %v5331_v5 = vadd.f32 %v5330_v26, %v15505_v45  ;;  %v14560_v17 = vpop.f32.mrf.mxu0  ;;  %10150 = vmatmul.mubr.msk.f32.gmra.mxu0 %vm7008_vm8, %v5991_v28  ;;  %5573 = vmatprep.mubr.f32.mxu1 %v4127_v2  ;;  %v15509_v26 = vld [vmem:[#allocation133_spill] sm:$0xff] }
 0x919   : > { %v5332_v48 = vpop.f32.mrf.mxu1 }
 0x91a   : > { %v5996_v18 = vadd.f32 %v14359_v1, %v5331_v5  ;;  %v14570_v42 = vpop.f32.mrf.mxu0  ;;  %v4133_v1 = vld [vmem:[%s15215_s20 + $0xaa0] sm:$0xff] }
 0x91b   : > { %v5335_v56 = vpop.f32.mrf.mxu1  ;;  %5574 = vmatmul.mubr.f32.gmra.mxu1 %v4126_v0  ;;  %v4138_v0 = vld [vmem:[%s15215_s20 + $0xac8] sm:$0xff] }
 0x91c   : > { %v5336_v15 = vadd.f32 %v15506_v47, %v5335_v56  ;;  %v14573_v53 = vpop.f32.mrf.mxu0  ;;  %10152 = vmatprep.mubr.msk.f32.mxu0 %vm7008_vm8, %v5996_v18  ;;  %5578 = vmatprep.mubr.f32.mxu1 %v4130_v27  ;;  %v15510_v47 = vld [vmem:[#allocation132_spill] sm:$0xff] }
 0x91d   : > { %v5337_v16 = vpop.f32.mrf.mxu1 }
 0x91e   : > { %v6001_v46 = vadd.f32 %v14346_v61, %v5336_v15  ;;  %v14583_v3 = vpop.f32.mrf.mxu0  ;;  %v4136_v61 = vld [vmem:[%s15215_s20 + $0xab8] sm:$0xff]  ;;  %v4141_v16 = vld [vmem:[%s15215_s20 + $0xae0] sm:$0xff] }
 0x91f   : > { %v5340_v4 = vpop.f32.mrf.mxu1  ;;  %5579 = vmatmul.mubr.f32.gmra.mxu1 %v4129_v30 }
 0x920   : > { %v5341_v37 = vadd.f32 %v5340_v4, %v15507_v19  ;;  %v14586_v12 = vpop.f32.mrf.mxu0  ;;  %10153 = vmatmul.mubr.msk.f32.gmra.mxu0 %vm7008_vm8, %v6001_v46  ;;  %5583 = vmatprep.mubr.f32.mxu1 %v4133_v1 }
 0x921   : > { %v5342_v13 = vpop.f32.mrf.mxu1 }
 0x922   : > { %v6006_v25 = vadd.f32 %v14375_v11, %v5341_v37  ;;  %v14596_v14 = vpop.f32.mrf.mxu0  ;;  %v4139_v11 = vld [vmem:[%s15215_s20 + $0xad0] sm:$0xff]  ;;  %v15511_v37 = vld [vmem:[#allocation35_spill] sm:$0xff] }
 0x923   : > { %v5345_v49 = vpop.f32.mrf.mxu1  ;;  %5584 = vmatmul.mubr.f32.gmra.mxu1 %v4132_v60 }
 0x924   : > { %v5346_v41 = vadd.f32 %v15508_v7, %v5345_v49  ;;  %v14599_v52 = vpop.f32.mrf.mxu0  ;;  %10155 = vmatprep.mubr.msk.f32.mxu0 %vm7008_vm8, %v6006_v25  ;;  %5588 = vmatprep.mubr.f32.mxu1 %v4136_v61  ;;  %v4144_v61 = vld [vmem:[%s15215_s20 + $0xaf8] sm:$0xff] }
 0x925   : > { %v5347_v55 = vpop.f32.mrf.mxu1 }
 0x926   : > { %v6011_v57 = vadd.f32 %v14363_v51, %v5346_v41  ;;  %v14609_v2 = vpop.f32.mrf.mxu0  ;;  %v4142_v51 = vld [vmem:[%s15215_s20 + $0xae8] sm:$0xff] }
 0x927   : > { %v5350_v28 = vpop.f32.mrf.mxu1  ;;  %5589 = vmatmul.mubr.f32.gmra.mxu1 %v4135_v35  ;;  %v15512_v35 = vld [vmem:[#allocation11_spill] sm:$0xff] }
 0x928   : > { %v5351_v45 = vadd.f32 %v5350_v28, %v15509_v26  ;;  %v14612_v5 = vpop.f32.mrf.mxu0  ;;  %10156 = vmatmul.mubr.msk.f32.gmra.mxu0 %vm7008_vm8, %v6011_v57  ;;  %5593 = vmatprep.mubr.f32.mxu1 %v4139_v11  ;;  %v4147_v57 = vld [vmem:[%s15215_s20 + $0xb10] sm:$0xff] }
 0x929   : > { %v5352_v48 = vpop.f32.mrf.mxu1 }
 0x92a   : > { %v6016_v27 = vadd.f32 %v14391_v22, %v5351_v45  ;;  %v14622_v18 = vpop.f32.mrf.mxu0  ;;  %v4145_v22 = vld [vmem:[%s15215_s20 + $0xb00] sm:$0xff]  ;;  %v15513_v48 = vld [vmem:[#allocation36_spill] sm:$0xff] }
 0x92b   : > { %v5355_v56 = vpop.f32.mrf.mxu1  ;;  %5594 = vmatmul.mubr.f32.gmra.mxu1 %v4138_v0 }
 0x92c   : > { %v5356_v15 = vadd.f32 %v15510_v47, %v5355_v56  ;;  %v14625_v30 = vpop.f32.mrf.mxu0  ;;  %10158 = vmatprep.mubr.msk.f32.mxu0 %vm7008_vm8, %v6016_v27  ;;  %5598 = vmatprep.mubr.f32.mxu1 %v4142_v51  ;;  %v4150_v56 = vld [vmem:[%s15215_s20 + $0xb28] sm:$0xff] }
 0x92d   : > { %v5357_v1 = vpop.f32.mrf.mxu1 }
 0x92e   : > { %v6021_v46 = vadd.f32 %v14379_v21, %v5356_v15  ;;  %v14635_v4 = vpop.f32.mrf.mxu0  ;;  %v4148_v21 = vld [vmem:[%s15215_s20 + $0xb18] sm:$0xff]  ;;  %v15514_v1 = vld [vmem:[#allocation12_spill] sm:$0xff] }
 0x92f   : > { %v5360_v19 = vpop.f32.mrf.mxu1  ;;  %5599 = vmatmul.mubr.f32.gmra.mxu1 %v4141_v16 }
 0x930   : > { %v5361_v60 = vadd.f32 %v5360_v19, %v15511_v37  ;;  %v14638_v13 = vpop.f32.mrf.mxu0  ;;  %10159 = vmatmul.mubr.msk.f32.gmra.mxu0 %vm7008_vm8, %v6021_v46  ;;  %5603 = vmatprep.mubr.f32.mxu1 %v4145_v22 }
 0x931   : > { %v5362_v25 = vpop.f32.mrf.mxu1 }
 0x932   : > { %v6026_v49 = vadd.f32 %v14407_v40, %v5361_v60  ;;  %v14648_v7 = vpop.f32.mrf.mxu0  ;;  %v4151_v40 = vld [vmem:[%s15215_s20 + $0xb30] sm:$0xff] }
 0x933   : > { %v5365_v41 = vpop.f32.mrf.mxu1  ;;  %5604 = vmatmul.mubr.f32.gmra.mxu1 %v4144_v61  ;;  %v15515_v25 = vld [vmem:[#allocation37_spill] sm:$0xff] }
 0x934   : > { %v5366_v55 = vadd.f32 %v15512_v35, %v5365_v41  ;;  %v14651_v11 = vpop.f32.mrf.mxu0  ;;  %10161 = vmatprep.mubr.msk.f32.mxu0 %vm7008_vm8, %v6026_v49  ;;  %5608 = vmatprep.mubr.f32.mxu1 %v4148_v21 }
 0x935   : > { %v5367_v28 = vpop.f32.mrf.mxu1 }
 0x936   : > { %v6031_v26 = vadd.f32 %v14395_v44, %v5366_v55  ;;  %v14661_v45 = vpop.f32.mrf.mxu0 }
 0x937   : > { %v5370_v0 = vpop.f32.mrf.mxu1  ;;  %5609 = vmatmul.mubr.f32.gmra.mxu1 %v4147_v57  ;;  %v15516_v57 = vld [vmem:[#allocation13_spill] sm:$0xff] }
 0x938   : > { %v5371_v51 = vadd.f32 %v5370_v0, %v15513_v48  ;;  %v14664_v27 = vpop.f32.mrf.mxu0  ;;  %10162 = vmatmul.mubr.msk.f32.gmra.mxu0 %vm7008_vm8, %v6031_v26  ;;  %5613 = vmatprep.mubr.f32.mxu1 %v4151_v40 }
 0x939   : > { %v5372_v47 = vpop.f32.mrf.mxu1 }
 0x93a   : > { %v6036_v15 = vadd.f32 %v14423_v20, %v5371_v51  ;;  %v14671_v16 = vpop.f32.mrf.mxu0  ;;  %v15517_v51 = vld [vmem:[#allocation38_spill] sm:$0xff] }
 0x93b   : > { %v5375_v44 = vpop.f32.mrf.mxu1  ;;  %5614 = vmatmul.mubr.f32.gmra.mxu1 %v4150_v56 }
 0x93c   : > { %v5376_v22 = vadd.f32 %v15514_v1, %v5375_v44  ;;  %v14674_v46 = vpop.f32.mrf.mxu0  ;;  %10164 = vmatprep.mubr.msk.f32.mxu0 %vm7008_vm8, %v6036_v15 }
 0x93d   : > { %v5377_v19 = vpop.f32.mrf.mxu1 }
 0x93e   : > { %v6041_v37 = vadd.f32 %v14411_v32, %v5376_v22  ;;  %v14678_v60 = vpop.f32.mrf.mxu0  ;;  %v15518_v22 = vld [vmem:[#allocation14_spill] sm:$0xff] }
 0x93f   : > { %v5380_v61 = vpop.f32.mrf.mxu1 }
 0x940   : > { %v5381_v21 = vadd.f32 %v5380_v61, %v15515_v25  ;;  %v14681_v49 = vpop.f32.mrf.mxu0  ;;  %10165 = vmatmul.mubr.msk.f32.gmra.mxu0 %vm7008_vm8, %v6041_v37 }
 0x941   : > { %v5382_v20 = vpop.f32.mrf.mxu1 }
 0x942   : > { %v6046_v41 = vadd.f32 %v14439_v54, %v5381_v21  ;;  %v14685_v35 = vpop.f32.mrf.mxu0  ;;  %v15519_v20 = vld [vmem:[#allocation39_spill] sm:$0xff] }
 0x943   : > { %v5385_v55 = vpop.f32.mrf.mxu1 }
 0x944   : > { %v5386_v28 = vadd.f32 %v15516_v57, %v5385_v55  ;;  %v14688_v40 = vpop.f32.mrf.mxu0  ;;  %10167 = vmatprep.mubr.msk.f32.mxu0 %vm7008_vm8, %v6046_v41  ;;  %v15520_v55 = vld [vmem:[#allocation48_spill] sm:$0xff] }
 0x945   : > { %v5387_v32 = vpop.f32.mrf.mxu1 }
 0x946   : > { %v6051_v26 = vadd.f32 %v14427_v10, %v5386_v28  ;;  %v14692_v0 = vpop.f32.mrf.mxu0 }
 0x947   : > { %v5390_v48 = vpop.f32.mrf.mxu1 }
 0x948   : > { %v5391_v56 = vadd.f32 %v5390_v48, %v15517_v51  ;;  %v14695_v47 = vpop.f32.mrf.mxu0  ;;  %10168 = vmatmul.mubr.msk.f32.gmra.mxu0 %vm7008_vm8, %v6051_v26 }
 0x949   : > { %v5392_v54 = vpop.f32.mrf.mxu1 }
 0x94a   : > { %v6056_v15 = vadd.f32 %v14453_v62, %v5391_v56  ;;  %v14700_v44 = vpop.f32.mrf.mxu0  ;;  %v15522_v56 = vld [vmem:[#allocation15_spill] sm:$0xff] }
 0x94b   : > { %v5395_v1 = vpop.f32.mrf.mxu1 }
 0x94c   : > { %v5396_v19 = vadd.f32 %v15518_v22, %v5395_v1  ;;  %v14703_v37 = vpop.f32.mrf.mxu0  ;;  %10170 = vmatprep.mubr.msk.f32.mxu0 %vm7008_vm8, %v6056_v15 }
 0x94d   : > { %v5397_v10 = vpop.f32.mrf.mxu1 }
 0x94e   : > { %v6061_v61 = vadd.f32 %v14442_v63, %v5396_v19  ;;  %v14709_v25 = vpop.f32.mrf.mxu0  ;;  %v15521_v63 = vld [vmem:[#allocation24_spill] sm:$0xff] }
 0x94f   : > { %v5400_v21 = vpop.f32.mrf.mxu1 }
 0x950   : > { %v5401_v41 = vadd.f32 %v5400_v21, %v15519_v20  ;;  %v10061_v62 = vpop.f32.mrf.mxu0  ;;  %10171 = vmatmul.mubr.msk.f32.gmra.mxu0 %vm7008_vm8, %v6061_v61  ;;  %v15524_v61 = vld [vmem:[#allocation25_spill] sm:$0xff] }
 0x951   : > { %v7441_v57 = vadd.f32 %v10061_v62, %v15520_v55  ;;  %v5402_v28 = vpop.f32.mrf.mxu1 }
 0x952   : > { %v6066_v32 = vadd.f32 %v14466_v58, %v5401_v41  ;;  %v7435_v26 = vpop.f32.mrf.mxu0  ;;  %v15523_v58 = vld [vmem:[#allocation49_spill] sm:$0xff]  ;;  %v15525_v41 = vld [vmem:[#allocation60_spill] sm:$0xff] }
 0x953   : > { %8036 = vst.msk [vmem:[%s14715_s7 + $0x8] sm:$0xff] %vm8034_vm9, %v7441_v57  ;;  %v7436_v48 = vadd.f32 %v7435_v26, %v15521_v63  ;;  %v5405_v51 = vpop.f32.mrf.mxu1  ;;  %v15526_v57 = vld [vmem:[#allocation50_spill] sm:$0xff] }
 0x954   : > { %v5406_v54 = vadd.f32 %v15522_v56, %v5405_v51  ;;  %v10064_v15 = vpop.f32.mrf.mxu0  ;;  %10173 = vmatprep.mubr.msk.f32.mxu0 %vm7008_vm8, %v6066_v32  ;;  %v15527_v63 = vld [vmem:[#allocation26_spill] sm:$0xff]  ;;  %v15528_v56 = vld [vmem:[#allocation59_spill] sm:$0xff] }
 0x955   : > { %8035 = vst.msk [vmem:[%s14715_s7] sm:$0xff] %vm8034_vm9, %v7436_v48  ;;  %v7451_v1 = vadd.f32 %v10064_v15, %v15523_v58  ;;  %v5407_v22 = vpop.f32.mrf.mxu1  ;;  %v15529_v58 = vld [vmem:[#allocation51_spill] sm:$0xff] }
 0x956   : > { %v6071_v19 = vadd.f32 %v14456_v39, %v5406_v54  ;;  %v7445_v10 = vpop.f32.mrf.mxu0 }
 0x957   : > { %8038 = vst.msk [vmem:[%s14715_s7 + $0x18] sm:$0xff] %vm8034_vm9, %v7451_v1  ;;  %v7446_v21 = vadd.f32 %v7445_v10, %v15524_v61  ;;  %v5410_v20 = vpop.f32.mrf.mxu1  ;;  %v15530_v61 = vld [vmem:[#allocation27_spill] sm:$0xff] }
 0x958   : > { %v5411_v62 = vadd.f32 %v5410_v20, %v15525_v41  ;;  %v10067_v55 = vpop.f32.mrf.mxu0  ;;  %10174 = vmatmul.mubr.msk.f32.gmra.mxu0 %vm7008_vm8, %v6071_v19  ;;  %v14743_v19 = vpop.permute.xlu1 %6525 }
 0x959   : > { %8037 = vst.msk [vmem:[%s14715_s7 + $0x10] sm:$0xff] %vm8034_vm9, %v7446_v21  ;;  %v7461_v28 = vadd.f32 %v10067_v55, %v15526_v57  ;;  %v5412_v32 = vpop.f32.mrf.mxu1  ;;  %v14749_v41 = vpop.permute.xlu0 %6520 }
 0x95a   : > { %v6076_v39 = vadd.f32 %v14479_v43, %v5411_v62  ;;  %v7455_v26 = vpop.f32.mrf.mxu0  ;;  %v15531_v62 = vld [vmem:[#allocation40_spill] sm:$0xff] }
 0x95b   : > { %8040 = vst.msk [vmem:[%s14715_s7 + $0x28] sm:$0xff] %vm8034_vm9, %v7461_v28  ;;  %v7456_v48 = vadd.f32 %v7455_v26, %v15527_v63  ;;  %v5415_v51 = vpop.f32.mrf.mxu1  ;;  %v15532_v28 = vld [vmem:[#allocation52_spill] sm:$0xff] }
 0x95c   : > { %v5416_v54 = vadd.f32 %v15528_v56, %v5415_v51  ;;  %v10070_v15 = vpop.f32.mrf.mxu0  ;;  %10176 = vmatprep.mubr.msk.f32.mxu0 %vm7008_vm8, %v6076_v39  ;;  %v15533_v63 = vld [vmem:[#allocation28_spill] sm:$0xff]  ;;  %v14760_v56 = vpop.permute.xlu1 %6535 }
 0x95d   : > { %8039 = vst.msk [vmem:[%s14715_s7 + $0x20] sm:$0xff] %vm8034_vm9, %v7456_v48  ;;  %v7471_v1 = vadd.f32 %v10070_v15, %v15529_v58  ;;  %v5417_v22 = vpop.f32.mrf.mxu1 }
 0x95e   : > { %v6081_v43 = vadd.f32 %v14469_v34, %v5416_v54  ;;  %v7465_v10 = vpop.f32.mrf.mxu0  ;;  %v15534_v54 = vld [vmem:[#allocation16_spill] sm:$0xff] }
 0x95f   : > { %8042 = vst.msk [vmem:[%s14715_s7 + $0x38] sm:$0xff] %vm8034_vm9, %v7471_v1  ;;  %v7466_v21 = vadd.f32 %v7465_v10, %v15530_v61  ;;  %v5420_v20 = vpop.f32.mrf.mxu1  ;;  %v15535_v1 = vld [vmem:[#allocation53_spill] sm:$0xff] }
 0x960   : > { %v5421_v55 = vadd.f32 %v5420_v20, %v15531_v62  ;;  %v10073_v57 = vpop.f32.mrf.mxu0  ;;  %10177 = vmatmul.mubr.msk.f32.gmra.mxu0 %vm7008_vm8, %v6081_v43 }
 0x961   : > { %8041 = vst.msk [vmem:[%s14715_s7 + $0x30] sm:$0xff] %vm8034_vm9, %v7466_v21  ;;  %v7481_v32 = vadd.f32 %v10073_v57, %v15532_v28  ;;  %v5422_v39 = vpop.f32.mrf.mxu1  ;;  %v15536_v21 = vld [vmem:[#allocation29_spill] sm:$0xff] }
 0x962   : > { %v6086_v34 = vadd.f32 %v14492_v23, %v5421_v55  ;;  %v7475_v26 = vpop.f32.mrf.mxu0  ;;  %v14767_v23 = vpop.permute.xlu0 %6530  ;;  %v15537_v55 = vld [vmem:[#allocation41_spill] sm:$0xff] }
 0x963   : > { %8044 = vst.msk [vmem:[%s14715_s7 + $0x48] sm:$0xff] %vm8034_vm9, %v7481_v32  ;;  %v7476_v48 = vadd.f32 %v7475_v26, %v15533_v63  ;;  %v5425_v51 = vpop.f32.mrf.mxu1  ;;  %v15538_v32 = vld [vmem:[#allocation54_spill] sm:$0xff]  ;;  %v14778_v26 = vpop.permute.xlu1 %6545 }
 0x964   : > { %v5426_v15 = vadd.f32 %v15534_v54, %v5425_v51  ;;  %v10076_v58 = vpop.f32.mrf.mxu0  ;;  %10179 = vmatprep.mubr.msk.f32.mxu0 %vm7008_vm8, %v6086_v34 }
 0x965   : > { %8043 = vst.msk [vmem:[%s14715_s7 + $0x40] sm:$0xff] %vm8034_vm9, %v7476_v48  ;;  %v7491_v22 = vadd.f32 %v10076_v58, %v15535_v1  ;;  %v5427_v43 = vpop.f32.mrf.mxu1  ;;  %v15539_v48 = vld [vmem:[#allocation30_spill] sm:$0xff]  ;;  %v15540_v58 = vld [vmem:[#allocation17_spill] sm:$0xff] }
 0x966   : > { %v6091_v10 = vadd.f32 %v14482_v31, %v5426_v15  ;;  %v7485_v61 = vpop.f32.mrf.mxu0  ;;  %v14784_v15 = vpop.permute.xlu0 %6540  ;;  %v15541_v43 = vld [vmem:[#allocation55_spill] sm:$0xff] }
 0x967   : > { %8046 = vst.msk [vmem:[%s14715_s7 + $0x58] sm:$0xff] %vm8034_vm9, %v7491_v22  ;;  %v7486_v20 = vadd.f32 %v7485_v61, %v15536_v21  ;;  %v5430_v62 = vpop.f32.mrf.mxu1 }
 0x968   : > { %v5431_v57 = vadd.f32 %v5430_v62, %v15537_v55  ;;  %v10079_v28 = vpop.f32.mrf.mxu0  ;;  %10180 = vmatmul.mubr.msk.f32.gmra.mxu0 %vm7008_vm8, %v6091_v10 }
 0x969   : > { %8045 = vst.msk [vmem:[%s14715_s7 + $0x50] sm:$0xff] %vm8034_vm9, %v7486_v20  ;;  %v7501_v39 = vadd.f32 %v10079_v28, %v15538_v32  ;;  %v5432_v34 = vpop.f32.mrf.mxu1  ;;  %v15542_v20 = vld [vmem:[#allocation31_spill] sm:$0xff]  ;;  %v15543_v28 = vld [vmem:[#allocation42_spill] sm:$0xff] }
 0x96a   : > { %v6096_v31 = vadd.f32 %v14505_v36, %v5431_v57  ;;  %v7495_v63 = vpop.f32.mrf.mxu0  ;;  %v14795_v57 = vpop.permute.xlu1 %6555  ;;  %v15544_v34 = vld [vmem:[#allocation56_spill] sm:$0xff] }
 0x96b   : > { %8048 = vst.msk [vmem:[%s14715_s7 + $0x68] sm:$0xff] %vm8034_vm9, %v7501_v39  ;;  %v7496_v51 = vadd.f32 %v7495_v63, %v15539_v48  ;;  %v5435_v54 = vpop.f32.mrf.mxu1 }
 0x96c   : > { %v5436_v1 = vadd.f32 %v15540_v58, %v5435_v54  ;;  %v10082_v22 = vpop.f32.mrf.mxu0  ;;  %10182 = vmatprep.mubr.msk.f32.mxu0 %vm7008_vm8, %v6096_v31  ;;  %v15545_v54 = vld [vmem:[#allocation32_spill] sm:$0xff] }
 0x96d   : > { %8047 = vst.msk [vmem:[%s14715_s7 + $0x60] sm:$0xff] %vm8034_vm9, %v7496_v51  ;;  %v7511_v10 = vadd.f32 %v10082_v22, %v15541_v43  ;;  %v5437_v61 = vpop.f32.mrf.mxu1  ;;  %v15546_v22 = vld [vmem:[#allocation18_spill] sm:$0xff] }
 0x96e   : > { %v6101_v36 = vadd.f32 %v14495_v9, %v5436_v1  ;;  %v7505_v21 = vpop.f32.mrf.mxu0  ;;  %v14802_v9 = vpop.permute.xlu0 %6550  ;;  %v15547_v61 = vld [vmem:[#allocation57_spill] sm:$0xff] }
 0x96f   : > { %8050 = vst.msk [vmem:[%s14715_s7 + $0x78] sm:$0xff] %vm8034_vm9, %v7511_v10  ;;  %v7506_v62 = vadd.f32 %v7505_v21, %v15542_v20  ;;  %v5440_v55 = vpop.f32.mrf.mxu1  ;;  %v14813_v20 = vpop.permute.xlu1 %6565 }
 0x970   : > { %v5441_v32 = vadd.f32 %v5440_v55, %v15543_v28  ;;  %v10085_v39 = vpop.f32.mrf.mxu0  ;;  %10183 = vmatmul.mubr.msk.f32.gmra.mxu0 %vm7008_vm8, %v6101_v36  ;;  %v15548_v55 = vld [vmem:[#allocation33_spill] sm:$0xff] }
 0x971   : > { %8049 = vst.msk [vmem:[%s14715_s7 + $0x70] sm:$0xff] %vm8034_vm9, %v7506_v62  ;;  %v7521_v31 = vadd.f32 %v10085_v39, %v15544_v34  ;;  %v5442_v63 = vpop.f32.mrf.mxu1  ;;  %v15549_v34 = vld [vmem:[#allocation43_spill] sm:$0xff] }
 0x972   : > { %v6106_v48 = vadd.f32 %v14518_v8, %v5441_v32  ;;  %v7515_v51 = vpop.f32.mrf.mxu0  ;;  %v14819_v39 = vpop.permute.xlu0 %6560 }
 0x973   : > { %8052 = vst.msk [vmem:[%s14715_s7 + $0x88] sm:$0xff] %vm8034_vm9, %v7521_v31  ;;  %v7516_v58 = vadd.f32 %v7515_v51, %v15545_v54  ;;  %v5445_v1 = vpop.f32.mrf.mxu1 }
 0x974   : > { %v5446_v43 = vadd.f32 %v15546_v22, %v5445_v1  ;;  %v10088_v10 = vpop.f32.mrf.mxu0  ;;  %10185 = vmatprep.mubr.msk.f32.mxu0 %vm7008_vm8, %v6106_v48  ;;  %v15550_v48 = vld [vmem:[#allocation58_spill] sm:$0xff] }
 0x975   : > { %8051 = vst.msk [vmem:[%s14715_s7 + $0x80] sm:$0xff] %vm8034_vm9, %v7516_v58  ;;  %v7531_v36 = vadd.f32 %v10088_v10, %v15547_v61  ;;  %v5447_v21 = vpop.f32.mrf.mxu1  ;;  %v15551_v1 = vld [vmem:[#allocation34_spill] sm:$0xff]  ;;  %v14830_v10 = vpop.permute.xlu1 %6575  ;;  %v15552_v61 = vld [vmem:[#allocation19_spill] sm:$0xff] }
 0x976   : > { %v6111_v8 = vadd.f32 %v14508_v59, %v5446_v43  ;;  %v7525_v62 = vpop.f32.mrf.mxu0 }
 0x977   : > { %8054 = vst.msk [vmem:[%s14715_s7 + $0x98] sm:$0xff] %vm8034_vm9, %v7531_v36  ;;  %v7526_v28 = vadd.f32 %v7525_v62, %v15548_v55  ;;  %v5450_v32 = vpop.f32.mrf.mxu1 }
 0x978   : > { %v5451_v31 = vadd.f32 %v5450_v32, %v15549_v34  ;;  %v10091_v63 = vpop.f32.mrf.mxu0  ;;  %10186 = vmatmul.mubr.msk.f32.gmra.mxu0 %vm7008_vm8, %v6111_v8 }
 0x979   : > { %8053 = vst.msk [vmem:[%s14715_s7 + $0x90] sm:$0xff] %vm8034_vm9, %v7526_v28  ;;  %v7541_v51 = vadd.f32 %v10091_v63, %v15550_v48  ;;  %v5452_v54 = vpop.f32.mrf.mxu1 }
 0x97a   : > { %v6116_v59 = vadd.f32 %v14531_v29, %v5451_v31  ;;  %v7535_v58 = vpop.f32.mrf.mxu0  ;;  %v14837_v29 = vpop.permute.xlu0 %6570  ;;  %v15553_v31 = vld [vmem:[#allocation44_spill] sm:$0xff] }
 0x97b   : > { %8056 = vst.msk [vmem:[%s14715_s7 + $0xa8] sm:$0xff] %vm8034_vm9, %v7541_v51  ;;  %v7536_v22 = vadd.f32 %v7535_v58, %v15551_v1  ;;  %v5455_v43 = vpop.f32.mrf.mxu1  ;;  %v6586_v54 = vpop.permute.xlu1 %6585 }
 0x97c   : > { %v5456_v36 = vadd.f32 %v15552_v61, %v5455_v43  ;;  %v10094_v21 = vpop.f32.mrf.mxu0  ;;  %10188 = vmatprep.mubr.msk.f32.mxu0 %vm7008_vm8, %v6116_v59 }
 0x97d   : > { %8055 = vst.msk [vmem:[%s14715_s7 + $0xa0] sm:$0xff] %vm8034_vm9, %v7536_v22  ;;  %v7551_v8 = vadd.f32 %v10094_v21, %v14743_v19  ;;  %v5457_v62 = vpop.f32.mrf.mxu1  ;;  %v15554_v22 = vld [vmem:[#allocation20_spill] sm:$0xff] }
 0x97e   : > { %v6121_v55 = vadd.f32 %v14521_v6, %v5456_v36  ;;  %v7545_v28 = vpop.f32.mrf.mxu0  ;;  %v6581_v1 = vpop.permute.xlu0 %6580 }
 0x97f   : > { %8058 = vst.msk [vmem:[%s14715_s7 + $0xb8] sm:$0xff] %vm8034_vm9, %v7551_v8  ;;  %v7546_v32 = vadd.f32 %v7545_v28, %v14749_v41  ;;  %v5460_v34 = vpop.f32.mrf.mxu1  ;;  %v6596_v62 = vpop.permute.xlu1 %6595 }
 0x980   : > { %v5461_v63 = vadd.f32 %v5460_v34, %v15553_v31  ;;  %v10097_v48 = vpop.f32.mrf.mxu0  ;;  %10189 = vmatmul.mubr.msk.f32.gmra.mxu0 %vm7008_vm8, %v6121_v55  ;;  %v15555_v55 = vld [vmem:[#allocation23_spill] sm:$0xff] }
 0x981   : > { %8057 = vst.msk [vmem:[%s14715_s7 + $0xb0] sm:$0xff] %vm8034_vm9, %v7546_v32  ;;  %v7561_v19 = vadd.f32 %v10097_v48, %v14760_v56  ;;  %v5462_v51 = vpop.f32.mrf.mxu1 }
 0x982   : > { %v6126_v6 = vadd.f32 %v14544_v38, %v5461_v63  ;;  %v7555_v59 = vpop.f32.mrf.mxu0 }
 0x983   : > { %8060 = vst.msk [vmem:[%s14715_s7 + $0xc8] sm:$0xff] %vm8034_vm9, %v7561_v19  ;;  %v7556_v41 = vadd.f32 %v7555_v59, %v14767_v23  ;;  %v5465_v58 = vpop.f32.mrf.mxu1  ;;  %v15556_v19 = vld [vmem:[#allocation45_spill] sm:$0xff] }
 0x984   : > { %v5466_v43 = vadd.f32 %v15554_v22, %v5465_v58  ;;  %v10100_v61 = vpop.f32.mrf.mxu0  ;;  %10191 = vmatprep.mubr.msk.f32.mxu0 %vm7008_vm8, %v6126_v6 }
 0x985   : > { %8059 = vst.msk [vmem:[%s14715_s7 + $0xc0] sm:$0xff] %vm8034_vm9, %v7556_v41  ;;  %v7571_v56 = vadd.f32 %v10100_v61, %v14778_v26  ;;  %v5467_v36 = vpop.f32.mrf.mxu1  ;;  %v6606_v41 = vpop.permute.xlu1 %6605  ;;  %v15557_v61 = vld [vmem:[#allocation65_spill] sm:$0xff] }
 0x986   : > { %v6131_v38 = vadd.f32 %v14534_v50, %v5466_v43  ;;  %v7565_v21 = vpop.f32.mrf.mxu0  ;;  %v6591_v50 = vpop.permute.xlu0 %6590 }
 0x987   : > { %8062 = vst.msk [vmem:[%s14715_s7 + $0xd8] sm:$0xff] %vm8034_vm9, %v7571_v56  ;;  %v7566_v23 = vadd.f32 %v7565_v21, %v14784_v15  ;;  %v5470_v8 = vpop.f32.mrf.mxu1 }
 0x988   : > { %v5471_v28 = vadd.f32 %v5470_v8, %v15555_v55  ;;  %v10103_v32 = vpop.f32.mrf.mxu0  ;;  %10192 = vmatmul.mubr.msk.f32.gmra.mxu0 %vm7008_vm8, %v6131_v38  ;;  %v15558_v55 = vld [vmem:[#allocation62_spill] sm:$0xff] }
 0x989   : > { %8061 = vst.msk [vmem:[%s14715_s7 + $0xd0] sm:$0xff] %vm8034_vm9, %v7566_v23  ;;  %v7581_v26 = vadd.f32 %v10103_v32, %v14795_v57  ;;  %v5472_v34 = vpop.f32.mrf.mxu1  ;;  %v6616_v8 = vpop.permute.xlu1 %6615 }
 0x98a   : > { %v6136_v31 = vadd.f32 %v14557_v33, %v5471_v28  ;;  %v7575_v63 = vpop.f32.mrf.mxu0  ;;  %v6601_v43 = vpop.permute.xlu0 %6600 }
 0x98b   : > { %8064 = vst.msk [vmem:[%s14715_s7 + $0xe8] sm:$0xff] %vm8034_vm9, %v7581_v26  ;;  %v7576_v15 = vadd.f32 %v7575_v63, %v14802_v9  ;;  %v5475_v48 = vpop.f32.mrf.mxu1 }
 0x98c   : > { %v5476_v51 = vadd.f32 %v15556_v19, %v5475_v48  ;;  %v10106_v6 = vpop.f32.mrf.mxu0  ;;  %10194 = vmatprep.mubr.msk.f32.mxu0 %vm7008_vm8, %v6136_v31 }
 0x98d   : > { %8063 = vst.msk [vmem:[%s14715_s7 + $0xe0] sm:$0xff] %vm8034_vm9, %v7576_v15  ;;  %v7591_v57 = vadd.f32 %v10106_v6, %v14813_v20  ;;  %v5477_v59 = vpop.f32.mrf.mxu1  ;;  %v15559_v15 = vld [vmem:[#allocation69_spill] sm:$0xff]  ;;  %v6626_v6 = vpop.permute.xlu1 %6625 }
 0x98e   : > { %v6141_v33 = vadd.f32 %v14547_v24, %v5476_v51  ;;  %v7585_v58 = vpop.f32.mrf.mxu0  ;;  %v6611_v34 = vpop.permute.xlu0 %6610 }
 0x98f   : > { %8066 = vst.msk [vmem:[%s14715_s7 + $0xf8] sm:$0xff] %vm8034_vm9, %v7591_v57  ;;  %v7586_v9 = vadd.f32 %v7585_v58, %v14819_v39  ;;  %v5480_v22 = vpop.f32.mrf.mxu1  ;;  %v15560_v58 = vld [vmem:[#allocation67_spill] sm:$0xff] }
 0x990   : > { %v5481_v56 = vadd.f32 %v5480_v22, %v15557_v61  ;;  %v10109_v36 = vpop.f32.mrf.mxu0  ;;  %10195 = vmatmul.mubr.msk.f32.gmra.mxu0 %vm7008_vm8, %v6141_v33 }
 0x991   : > { %8065 = vst.msk [vmem:[%s14715_s7 + $0xf0] sm:$0xff] %vm8034_vm9, %v7586_v9  ;;  %v7601_v20 = vadd.f32 %v10109_v36, %v14830_v10  ;;  %v5482_v38 = vpop.f32.mrf.mxu1 }
 0x992   : > { %v6146_v24 = vadd.f32 %v14570_v42, %v5481_v56  ;;  %v7595_v21 = vpop.f32.mrf.mxu0  ;;  %v6621_v33 = vpop.permute.xlu0 %6620  ;;  %v15561_v38 = vld [vmem:[#allocation73_spill] sm:$0xff] }
 0x993   : > { %8068 = vst.msk [vmem:[%s14715_s7 + $0x108] sm:$0xff] %vm8034_vm9, %v7601_v20  ;;  %v7596_v39 = vadd.f32 %v7595_v21, %v14837_v29  ;;  %v5485_v23 = vpop.f32.mrf.mxu1  ;;  %v6636_v20 = vpop.permute.xlu1 %6635 }
 0x994   : > { %v5486_v28 = vadd.f32 %v15558_v55, %v5485_v23  ;;  %v10112_v32 = vpop.f32.mrf.mxu0  ;;  %10197 = vmatprep.mubr.msk.f32.mxu0 %vm7008_vm8, %v6146_v24 }
 0x995   : > { %8067 = vst.msk [vmem:[%s14715_s7 + $0x100] sm:$0xff] %vm8034_vm9, %v7596_v39  ;;  %v7611_v10 = vadd.f32 %v10112_v32, %v6586_v54  ;;  %v5487_v26 = vpop.f32.mrf.mxu1  ;;  %v15562_v32 = vld [vmem:[#allocation71_spill] sm:$0xff] }
 0x996   : > { %v6151_v42 = vadd.f32 %v14560_v17, %v5486_v28  ;;  %v7605_v31 = vpop.f32.mrf.mxu0  ;;  %v6631_v23 = vpop.permute.xlu0 %6630 }
 0x997   : > { %8070 = vst.msk [vmem:[%s14715_s7 + $0x118] sm:$0xff] %vm8034_vm9, %v7611_v10  ;;  %v7606_v29 = vadd.f32 %v7605_v31, %v6581_v1  ;;  %v5490_v63 = vpop.f32.mrf.mxu1  ;;  %v6646_v31 = vpop.permute.xlu1 %6645 }
 0x998   : > { %v5491_v48 = vadd.f32 %v5490_v63, %v15559_v15  ;;  %v10115_v19 = vpop.f32.mrf.mxu0  ;;  %10198 = vmatmul.mubr.msk.f32.gmra.mxu0 %vm7008_vm8, %v6151_v42 }
 0x999   : > { %8069 = vst.msk [vmem:[%s14715_s7 + $0x110] sm:$0xff] %vm8034_vm9, %v7606_v29  ;;  %v7621_v51 = vadd.f32 %v10115_v19, %v6596_v62  ;;  %v5492_v54 = vpop.f32.mrf.mxu1 }
 0x99a   : > { %v6156_v57 = vadd.f32 %v14583_v3, %v5491_v48  ;;  %v7615_v17 = vpop.f32.mrf.mxu0  ;;  %v6641_v15 = vpop.permute.xlu0 %6640  ;;  %v15563_v48 = vld [vmem:[#allocation77_spill] sm:$0xff] }
 0x99b   : > { %8072 = vst.msk [vmem:[%s14715_s7 + $0x128] sm:$0xff] %vm8034_vm9, %v7621_v51  ;;  %v7616_v59 = vadd.f32 %v7615_v17, %v6591_v50  ;;  %v5495_v1 = vpop.f32.mrf.mxu1 }
 0x99c   : > { %v5496_v9 = vadd.f32 %v15560_v58, %v5495_v1  ;;  %v10118_v22 = vpop.f32.mrf.mxu0  ;;  %10200 = vmatprep.mubr.msk.f32.mxu0 %vm7008_vm8, %v6156_v57  ;;  %v6656_v1 = vpop.permute.xlu1 %6655 }
 0x99d   : > { %8071 = vst.msk [vmem:[%s14715_s7 + $0x120] sm:$0xff] %vm8034_vm9, %v7616_v59  ;;  %v7631_v62 = vadd.f32 %v10118_v22, %v6606_v41  ;;  %v5497_v61 = vpop.f32.mrf.mxu1 }
 0x99e   : > { %v6161_v56 = vadd.f32 %v14573_v53, %v5496_v9  ;;  %v7625_v3 = vpop.f32.mrf.mxu0  ;;  %v6651_v61 = vpop.permute.xlu0 %6650 }
 0x99f   : > { %8074 = vst.msk [vmem:[%s14715_s7 + $0x138] sm:$0xff] %vm8034_vm9, %v7631_v62  ;;  %v7626_v36 = vadd.f32 %v7625_v3, %v6601_v43  ;;  %v5500_v50 = vpop.f32.mrf.mxu1 }
 0x9a0   : > { %v5501_v24 = vadd.f32 %v5500_v50, %v15561_v38  ;;  %v10121_v21 = vpop.f32.mrf.mxu0  ;;  %10201 = vmatmul.mubr.msk.f32.gmra.mxu0 %vm7008_vm8, %v6161_v56  ;;  %v15565_v50 = vld [vmem:[#allocation81_spill] sm:$0xff] }
 0x9a1   : > { %8073 = vst.msk [vmem:[%s14715_s7 + $0x130] sm:$0xff] %vm8034_vm9, %v7626_v36  ;;  %v7641_v39 = vadd.f32 %v10121_v21, %v6616_v8  ;;  %v5502_v41 = vpop.f32.mrf.mxu1 }
 0x9a2   : > { %v6166_v53 = vadd.f32 %v14596_v14, %v5501_v24  ;;  %v7635_v55 = vpop.f32.mrf.mxu0 }
 0x9a3   : > { %8076 = vst.msk [vmem:[%s14715_s7 + $0x148] sm:$0xff] %vm8034_vm9, %v7641_v39  ;;  %v7636_v43 = vadd.f32 %v7635_v55, %v6611_v34  ;;  %v5505_v28 = vpop.f32.mrf.mxu1  ;;  %v6666_v39 = vpop.permute.xlu1 %6665 }
 0x9a4   : > { %v5506_v10 = vadd.f32 %v15562_v32, %v5505_v28  ;;  %v10124_v26 = vpop.f32.mrf.mxu0  ;;  %10203 = vmatprep.mubr.msk.f32.mxu0 %vm7008_vm8, %v6166_v53  ;;  %v6661_v55 = vpop.permute.xlu0 %6660 }
 0x9a5   : > { %8075 = vst.msk [vmem:[%s14715_s7 + $0x140] sm:$0xff] %vm8034_vm9, %v7636_v43  ;;  %v7651_v42 = vadd.f32 %v10124_v26, %v6626_v6  ;;  %v5507_v8 = vpop.f32.mrf.mxu1  ;;  %v15566_v43 = vld [vmem:[#allocation79_spill] sm:$0xff] }
 0x9a6   : > { %v6171_v29 = vadd.f32 %v14586_v12, %v5506_v10  ;;  %v7645_v14 = vpop.f32.mrf.mxu0 }
 0x9a7   : > { %8078 = vst.msk [vmem:[%s14715_s7 + $0x158] sm:$0xff] %vm8034_vm9, %v7651_v42  ;;  %v7646_v63 = vadd.f32 %v7645_v14, %v6621_v33  ;;  %v5510_v34 = vpop.f32.mrf.mxu1  ;;  %v15564_v33 = vld [vmem:[#allocation75_spill] sm:$0xff]  ;;  %v15567_v14 = vld [vmem:[#allocation85_spill] sm:$0xff] }
 0x9a8   : > { %v5511_v19 = vadd.f32 %v5510_v34, %v15563_v48  ;;  %v10127_v51 = vpop.f32.mrf.mxu0  ;;  %10204 = vmatmul.mubr.msk.f32.gmra.mxu0 %vm7008_vm8, %v6171_v29  ;;  %v6676_v29 = vpop.permute.xlu1 %6675 }
 0x9a9   : > { %8077 = vst.msk [vmem:[%s14715_s7 + $0x150] sm:$0xff] %vm8034_vm9, %v7646_v63  ;;  %v7661_v54 = vadd.f32 %v10127_v51, %v6636_v20  ;;  %v5512_v6 = vpop.f32.mrf.mxu1 }
 0x9aa   : > { %v6176_v57 = vadd.f32 %v14609_v2, %v5511_v19  ;;  %v7655_v12 = vpop.f32.mrf.mxu0  ;;  %v6671_v19 = vpop.permute.xlu0 %6670 }
 0x9ab   : > { %8080 = vst.msk [vmem:[%s14715_s7 + $0x168] sm:$0xff] %vm8034_vm9, %v7661_v54  ;;  %v7656_v17 = vadd.f32 %v7655_v12, %v6631_v23  ;;  %v5515_v59 = vpop.f32.mrf.mxu1 }
 0x9ac   : > { %v5516_v58 = vadd.f32 %v15564_v33, %v5515_v59  ;;  %v10130_v9 = vpop.f32.mrf.mxu0  ;;  %10206 = vmatprep.mubr.msk.f32.mxu0 %vm7008_vm8, %v6176_v57  ;;  %v15568_v57 = vld [vmem:[#allocation83_spill] sm:$0xff]  ;;  %v6686_v33 = vpop.permute.xlu1 %6685 }
 0x9ad   : > { %8079 = vst.msk [vmem:[%s14715_s7 + $0x160] sm:$0xff] %vm8034_vm9, %v7656_v17  ;;  %v7671_v22 = vadd.f32 %v10130_v9, %v6646_v31  ;;  %v5517_v62 = vpop.f32.mrf.mxu1 }
 0x9ae   : > { %v6181_v2 = vadd.f32 %v14599_v52, %v5516_v58  ;;  %v7665_v56 = vpop.f32.mrf.mxu0  ;;  %v15569_v58 = vld [vmem:[#allocation89_spill] sm:$0xff] }
 0x9af   : > { %8082 = vst.msk [vmem:[%s14715_s7 + $0x178] sm:$0xff] %vm8034_vm9, %v7671_v22  ;;  %v7666_v3 = vadd.f32 %v7665_v56, %v6641_v15  ;;  %v5520_v36 = vpop.f32.mrf.mxu1 }
 0x9b0   : > { %v5521_v20 = vadd.f32 %v5520_v36, %v15565_v50  ;;  %v10133_v38 = vpop.f32.mrf.mxu0  ;;  %10207 = vmatmul.mubr.msk.f32.gmra.mxu0 %vm7008_vm8, %v6181_v2  ;;  %v15570_v50 = vld [vmem:[#allocation87_spill] sm:$0xff] }
 0x9b1   : > { %8081 = vst.msk [vmem:[%s14715_s7 + $0x170] sm:$0xff] %vm8034_vm9, %v7666_v3  ;;  %v7681_v24 = vadd.f32 %v10133_v38, %v6656_v1  ;;  %v5522_v21 = vpop.f32.mrf.mxu1 }
 0x9b2   : > { %v6186_v41 = vadd.f32 %v14622_v18, %v5521_v20  ;;  %v7675_v52 = vpop.f32.mrf.mxu0  ;;  %v6696_v21 = vpop.permute.xlu1 %6695 }
 0x9b3   : > { %8084 = vst.msk [vmem:[%s14715_s7 + $0x188] sm:$0xff] %vm8034_vm9, %v7681_v24  ;;  %v7676_v23 = vadd.f32 %v7675_v52, %v6651_v61  ;;  %v5525_v53 = vpop.f32.mrf.mxu1  ;;  %v6681_v61 = vpop.permute.xlu0 %6680 }
 0x9b4   : > { %v5526_v28 = vadd.f32 %v15566_v43, %v5525_v53  ;;  %v10136_v32 = vpop.f32.mrf.mxu0  ;;  %10209 = vmatprep.mubr.msk.f32.mxu0 %vm7008_vm8, %v6186_v41 }
 0x9b5   : > { %8083 = vst.msk [vmem:[%s14715_s7 + $0x180] sm:$0xff] %vm8034_vm9, %v7676_v23  ;;  %v7691_v10 = vadd.f32 %v10136_v32, %v6666_v39  ;;  %v5527_v26 = vpop.f32.mrf.mxu1  ;;  %v15571_v39 = vld [vmem:[#allocation93_spill] sm:$0xff] }
 0x9b6   : > { %v6191_v42 = vadd.f32 %v14612_v5, %v5526_v28  ;;  %v7685_v18 = vpop.f32.mrf.mxu0 }
 0x9b7   : > { %8086 = vst.msk [vmem:[%s14715_s7 + $0x198] sm:$0xff] %vm8034_vm9, %v7691_v10  ;;  %v7686_v8 = vadd.f32 %v7685_v18, %v6661_v55  ;;  %v5530_v31 = vpop.f32.mrf.mxu1  ;;  %v6691_v53 = vpop.permute.xlu0 %6690  ;;  %v15572_v10 = vld [vmem:[#allocation91_spill] sm:$0xff] }
 0x9b8   : > { %v5531_v63 = vadd.f32 %v5530_v31, %v15567_v14  ;;  %v10139_v34 = vpop.f32.mrf.mxu0  ;;  %10210 = vmatmul.mubr.msk.f32.gmra.mxu0 %vm7008_vm8, %v6191_v42  ;;  %v15573_v31 = vld [vmem:[#allocation97_spill] sm:$0xff] }
 0x9b9   : > { %8085 = vst.msk [vmem:[%s14715_s7 + $0x190] sm:$0xff] %vm8034_vm9, %v7686_v8  ;;  %v7701_v15 = vadd.f32 %v10139_v34, %v6676_v29  ;;  %v5532_v48 = vpop.f32.mrf.mxu1  ;;  %v6706_v8 = vpop.permute.xlu1 %6705 }
 0x9ba   : > { %v6196_v51 = vadd.f32 %v14635_v4, %v5531_v63  ;;  %v7695_v5 = vpop.f32.mrf.mxu0 }
 0x9bb   : > { %8088 = vst.msk [vmem:[%s14715_s7 + $0x1a8] sm:$0xff] %vm8034_vm9, %v7701_v15  ;;  %v7696_v54 = vadd.f32 %v7695_v5, %v6671_v19  ;;  %v5535_v6 = vpop.f32.mrf.mxu1  ;;  %v6701_v34 = vpop.permute.xlu0 %6700  ;;  %v15574_v5 = vld [vmem:[#allocation95_spill] sm:$0xff] }
 0x9bc   : > { %v5536_v12 = vadd.f32 %v15568_v57, %v5535_v6  ;;  %10212 = vmatprep.mubr.msk.f32.mxu0 %vm7008_vm8, %v6196_v51 }
 0x9bd   : > { %8087 = vst.msk [vmem:[%s14715_s7 + $0x1a0] sm:$0xff] %vm8034_vm9, %v7696_v54  ;;  %v5537_v17 = vpop.f32.mrf.mxu1 }
 0x9be   : > { %v6201_v59 = vadd.f32 %v14625_v30, %v5536_v12  ;;  %v6716_v12 = vpop.permute.xlu1 %6715  ;;  %v15575_v17 = vld [vmem:[#allocation101_spill] sm:$0xff] }
 0x9bf   : > { %v5540_v1 = vpop.f32.mrf.mxu1 }
 0x9c0   : > { %v5541_v4 = vadd.f32 %v5540_v1, %v15569_v58  ;;  %v10142_v9 = vpop.f32.mrf.mxu0  ;;  %10213 = vmatmul.mubr.msk.f32.gmra.mxu0 %vm7008_vm8, %v6201_v59  ;;  %v6711_v58 = vpop.permute.xlu0 %6710 }
 0x9c1   : > { %v7711_v22 = vadd.f32 %v10142_v9, %v6686_v33  ;;  %v5542_v62 = vpop.f32.mrf.mxu1 }
 0x9c2   : > { %v6206_v2 = vadd.f32 %v14648_v7, %v5541_v4  ;;  %v7705_v56 = vpop.f32.mrf.mxu0 }
 0x9c3   : > { %8090 = vst.msk [vmem:[%s14715_s7 + $0x1b8] sm:$0xff] %vm8034_vm9, %v7711_v22  ;;  %v7706_v3 = vadd.f32 %v7705_v56, %v6681_v61  ;;  %v5545_v36 = vpop.f32.mrf.mxu1  ;;  %v15576_v61 = vld [vmem:[#allocation99_spill] sm:$0xff] }
 0x9c4   : > { %v5546_v30 = vadd.f32 %v15570_v50, %v5545_v36  ;;  %10215 = vmatprep.mubr.msk.f32.mxu0 %vm7008_vm8, %v6206_v2  ;;  %v6726_v36 = vpop.permute.xlu1 %6725  ;;  %v15577_v50 = vld [vmem:[#allocation105_spill] sm:$0xff] }
 0x9c5   : > { %8089 = vst.msk [vmem:[%s14715_s7 + $0x1b0] sm:$0xff] %vm8034_vm9, %v7706_v3  ;;  %v5547_v20 = vpop.f32.mrf.mxu1 }
 0x9c6   : > { %v6211_v38 = vadd.f32 %v14638_v13, %v5546_v30 }
 0x9c7   : > { %v5550_v24 = vpop.f32.mrf.mxu1 }
 0x9c8   : > { %v5551_v7 = vadd.f32 %v5550_v24, %v15571_v39  ;;  %v10145_v41 = vpop.f32.mrf.mxu0  ;;  %10216 = vmatmul.mubr.msk.f32.gmra.mxu0 %vm7008_vm8, %v6211_v38  ;;  %v6721_v24 = vpop.permute.xlu0 %6720 }
 0x9c9   : > { %v7721_v52 = vadd.f32 %v10145_v41, %v6696_v21  ;;  %v5552_v23 = vpop.f32.mrf.mxu1 }
 0x9ca   : > { %v6216_v55 = vadd.f32 %v14661_v45, %v5551_v7  ;;  %v7715_v43 = vpop.f32.mrf.mxu0 }
 0x9cb   : > { %8092 = vst.msk [vmem:[%s14715_s7 + $0x1c8] sm:$0xff] %vm8034_vm9, %v7721_v52  ;;  %v7716_v28 = vadd.f32 %v7715_v43, %v6691_v53  ;;  %v5555_v32 = vpop.f32.mrf.mxu1  ;;  %v15578_v52 = vld [vmem:[#allocation103_spill] sm:$0xff]  ;;  %v6736_v43 = vpop.permute.xlu1 %6735 }
 0x9cc   : > { %v5556_v13 = vadd.f32 %v15572_v10, %v5555_v32  ;;  %10218 = vmatprep.mubr.msk.f32.mxu0 %vm7008_vm8, %v6216_v55 }
 0x9cd   : > { %8091 = vst.msk [vmem:[%s14715_s7 + $0x1c0] sm:$0xff] %vm8034_vm9, %v7716_v28  ;;  %v5557_v26 = vpop.f32.mrf.mxu1  ;;  %v15579_v28 = vld [vmem:[#allocation109_spill] sm:$0xff] }
 0x9ce   : > { %v6221_v42 = vadd.f32 %v14651_v11, %v5556_v13  ;;  %v6731_v26 = vpop.permute.xlu0 %6730 }
 0x9cf   : > { %v5560_v18 = vpop.f32.mrf.mxu1 }
 0x9d0   : > { %v5561_v45 = vadd.f32 %v5560_v18, %v15573_v31  ;;  %v10148_v29 = vpop.f32.mrf.mxu0  ;;  %10219 = vmatmul.mubr.msk.f32.gmra.mxu0 %vm7008_vm8, %v6221_v42 }
 0x9d1   : > { %v7731_v14 = vadd.f32 %v10148_v29, %v6706_v8  ;;  %v5562_v63 = vpop.f32.mrf.mxu1 }
 0x9d2   : > { %v6226_v15 = vadd.f32 %v14671_v16, %v5561_v45  ;;  %v7725_v48 = vpop.f32.mrf.mxu0  ;;  %v15580_v45 = vld [vmem:[#allocation107_spill] sm:$0xff] }
 0x9d3   : > { %8094 = vst.msk [vmem:[%s14715_s7 + $0x1d8] sm:$0xff] %vm8034_vm9, %v7731_v14  ;;  %v7726_v19 = vadd.f32 %v7725_v48, %v6701_v34  ;;  %v5565_v51 = vpop.f32.mrf.mxu1  ;;  %v6746_v34 = vpop.permute.xlu1 %6745 }
 0x9d4   : > { %v5566_v11 = vadd.f32 %v15574_v5, %v5565_v51  ;;  %10221 = vmatprep.mubr.msk.f32.mxu0 %vm7008_vm8, %v6226_v15  ;;  %v15581_v15 = vld [vmem:[#allocation113_spill] sm:$0xff]  ;;  %v6741_v5 = vpop.permute.xlu0 %6740 }
 0x9d5   : > { %8093 = vst.msk [vmem:[%s14715_s7 + $0x1d0] sm:$0xff] %vm8034_vm9, %v7726_v19  ;;  %v5567_v54 = vpop.f32.mrf.mxu1 }
 0x9d6   : > { %v6231_v6 = vadd.f32 %v14664_v27, %v5566_v11 }
 0x9d7   : > { %v5570_v57 = vpop.f32.mrf.mxu1 }
 0x9d8   : > { %v5571_v16 = vadd.f32 %v5570_v57, %v15575_v17  ;;  %v10151_v59 = vpop.f32.mrf.mxu0  ;;  %10222 = vmatmul.mubr.msk.f32.gmra.mxu0 %vm7008_vm8, %v6231_v6 }
 0x9d9   : > { %v7741_v1 = vadd.f32 %v10151_v59, %v6716_v12  ;;  %v5572_v33 = vpop.f32.mrf.mxu1  ;;  %v15582_v12 = vld [vmem:[#allocation111_spill] sm:$0xff] }
 0x9da   : > { %v6236_v4 = vadd.f32 %v14678_v60, %v5571_v16  ;;  %v7735_v9 = vpop.f32.mrf.mxu0  ;;  %v15583_v33 = vld [vmem:[#allocation117_spill] sm:$0xff] }
 0x9db   : > { %8096 = vst.msk [vmem:[%s14715_s7 + $0x1e8] sm:$0xff] %vm8034_vm9, %v7741_v1  ;;  %v7736_v22 = vadd.f32 %v7735_v9, %v6711_v58  ;;  %v5575_v62 = vpop.f32.mrf.mxu1  ;;  %v6756_v1 = vpop.permute.xlu1 %6755 }
 0x9dc   : > { %v5576_v27 = vadd.f32 %v15576_v61, %v5575_v62  ;;  %10224 = vmatprep.mubr.msk.f32.mxu0 %vm7008_vm8, %v6236_v4 }
 0x9dd   : > { %8095 = vst.msk [vmem:[%s14715_s7 + $0x1e0] sm:$0xff] %vm8034_vm9, %v7736_v22  ;;  %v5577_v2 = vpop.f32.mrf.mxu1  ;;  %v6751_v22 = vpop.permute.xlu0 %6750 }
 0x9de   : > { %v6241_v56 = vadd.f32 %v14674_v46, %v5576_v27  ;;  %v15584_v2 = vld [vmem:[#allocation115_spill] sm:$0xff] }
 0x9df   : > { %v5580_v3 = vpop.f32.mrf.mxu1 }
 0x9e0   : > { %v5581_v60 = vadd.f32 %v5580_v3, %v15577_v50  ;;  %v10154_v30 = vpop.f32.mrf.mxu0  ;;  %10225 = vmatmul.mubr.msk.f32.gmra.mxu0 %vm7008_vm8, %v6241_v56  ;;  %v6766_v50 = vpop.permute.xlu1 %6765 }
 0x9e1   : > { %v7751_v20 = vadd.f32 %v10154_v30, %v6726_v36  ;;  %v5582_v38 = vpop.f32.mrf.mxu1  ;;  %v6761_v30 = vpop.permute.xlu0 %6760 }
 0x9e2   : > { %v6246_v21 = vadd.f32 %v14685_v35, %v5581_v60  ;;  %v7745_v39 = vpop.f32.mrf.mxu0 }
 0x9e3   : > { %8098 = vst.msk [vmem:[%s14715_s7 + $0x1f8] sm:$0xff] %vm8034_vm9, %v7751_v20  ;;  %v7746_v7 = vadd.f32 %v7745_v39, %v6721_v24  ;;  %v5585_v41 = vpop.f32.mrf.mxu1 }
 0x9e4   : > { %v5586_v46 = vadd.f32 %v15578_v52, %v5585_v41  ;;  %10227 = vmatprep.mubr.msk.f32.mxu0 %vm7008_vm8, %v6246_v21  ;;  %v6776_v24 = vpop.permute.xlu1 %6775 }
 0x9e5   : > { %8097 = vst.msk [vmem:[%s14715_s7 + $0x1f0] sm:$0xff] %vm8034_vm9, %v7746_v7  ;;  %v5587_v23 = vpop.f32.mrf.mxu1  ;;  %v6771_v7 = vpop.permute.xlu0 %6770 }
 0x9e6   : > { %v6251_v53 = vadd.f32 %v14681_v49, %v5586_v46 }
 0x9e7   : > { %v5590_v55 = vpop.f32.mrf.mxu1 }
 0x9e8   : > { %v5591_v35 = vadd.f32 %v5590_v55, %v15579_v28  ;;  %v10157_v32 = vpop.f32.mrf.mxu0  ;;  %10228 = vmatmul.mubr.msk.f32.gmra.mxu0 %vm7008_vm8, %v6251_v53  ;;  %v6786_v52 = vpop.permute.xlu1 %6785 }
 0x9e9   : > { %v7761_v10 = vadd.f32 %v10157_v32, %v6736_v43  ;;  %v5592_v13 = vpop.f32.mrf.mxu1  ;;  %v6781_v53 = vpop.permute.xlu0 %6780 }
 0x9ea   : > { %v6256_v42 = vadd.f32 %v14692_v0, %v5591_v35  ;;  %v7755_v18 = vpop.f32.mrf.mxu0 }
 0x9eb   : > { %8100 = vst.msk [vmem:[%s14715_s7 + $0x208] sm:$0xff] %vm8034_vm9, %v7761_v10  ;;  %v7756_v8 = vadd.f32 %v7755_v18, %v6731_v26  ;;  %v5595_v31 = vpop.f32.mrf.mxu1 }
 0x9ec   : > { %v5596_v49 = vadd.f32 %v15580_v45, %v5595_v31  ;;  %10230 = vmatprep.mubr.msk.f32.mxu0 %vm7008_vm8, %v6256_v42  ;;  %v6796_v28 = vpop.permute.xlu1 %6795 }
 0x9ed   : > { %8099 = vst.msk [vmem:[%s14715_s7 + $0x200] sm:$0xff] %vm8034_vm9, %v7756_v8  ;;  %v5597_v29 = vpop.f32.mrf.mxu1  ;;  %v6791_v10 = vpop.permute.xlu0 %6790 }
 0x9ee   : > { %v6261_v14 = vadd.f32 %v14688_v40, %v5596_v49 }
 0x9ef   : > { %v5600_v63 = vpop.f32.mrf.mxu1 }
 0x9f0   : > { %v5601_v0 = vadd.f32 %v5600_v63, %v15581_v15  ;;  %v10160_v48 = vpop.f32.mrf.mxu0  ;;  %10231 = vmatmul.mubr.msk.f32.gmra.mxu0 %vm7008_vm8, %v6261_v14  ;;  %v6806_v42 = vpop.permute.xlu1 %6805 }
 0x9f1   : > { %v7771_v19 = vadd.f32 %v10160_v48, %v6746_v34  ;;  %v5602_v51 = vpop.f32.mrf.mxu1  ;;  %v6801_v31 = vpop.permute.xlu0 %6800 }
 0x9f2   : > { %v6266_v11 = vadd.f32 %v14700_v44, %v5601_v0  ;;  %v7765_v54 = vpop.f32.mrf.mxu0 }
 0x9f3   : > { %8102 = vst.msk [vmem:[%s14715_s7 + $0x218] sm:$0xff] %vm8034_vm9, %v7771_v19  ;;  %v7766_v6 = vadd.f32 %v7765_v54, %v6741_v5  ;;  %v5605_v57 = vpop.f32.mrf.mxu1 }
 0x9f4   : > { %v5606_v40 = vadd.f32 %v15582_v12, %v5605_v57  ;;  %10233 = vmatprep.mubr.msk.f32.mxu0 %vm7008_vm8, %v6266_v11  ;;  %v6816_v29 = vpop.permute.xlu1 %6815 }
 0x9f5   : > { %8101 = vst.msk [vmem:[%s14715_s7 + $0x210] sm:$0xff] %vm8034_vm9, %v7766_v6  ;;  %v5607_v17 = vpop.f32.mrf.mxu1  ;;  %v6811_v34 = vpop.permute.xlu0 %6810 }
 0x9f6   : > { %v6271_v16 = vadd.f32 %v14695_v47, %v5606_v40 }
 0x9f7   : > { %v5610_v59 = vpop.f32.mrf.mxu1 }
 0x9f8   : > { %v5611_v44 = vadd.f32 %v5610_v59, %v15583_v33  ;;  %v10163_v58 = vpop.f32.mrf.mxu0  ;;  %10234 = vmatmul.mubr.msk.f32.gmra.mxu0 %vm7008_vm8, %v6271_v16  ;;  %v6826_v48 = vpop.permute.xlu1 %6825 }
 0x9f9   : > { %v7781_v4 = vadd.f32 %v10163_v58, %v6756_v1  ;;  %v5612_v9 = vpop.f32.mrf.mxu1  ;;  %v6821_v5 = vpop.permute.xlu0 %6820 }
 0x9fa   : > { %v6276_v62 = vadd.f32 %v14709_v25, %v5611_v44  ;;  %v7775_v61 = vpop.f32.mrf.mxu0 }
 0x9fb   : > { %8104 = vst.msk [vmem:[%s14715_s7 + $0x228] sm:$0xff] %vm8034_vm9, %v7781_v4  ;;  %v7776_v27 = vadd.f32 %v7775_v61, %v6751_v22  ;;  %v5615_v47 = vpop.f32.mrf.mxu1 }
 0x9fc   : > { %v5616_v56 = vadd.f32 %v15584_v2, %v5615_v47  ;;  %10236 = vmatprep.mubr.msk.f32.mxu0 %vm7008_vm8, %v6276_v62  ;;  %v6836_v6 = vpop.permute.xlu1 %6835 }
 0x9fd   : > { %8103 = vst.msk [vmem:[%s14715_s7 + $0x220] sm:$0xff] %vm8034_vm9, %v7776_v27  ;;  %v5617_v3 = vpop.f32.mrf.mxu1  ;;  %v6831_v40 = vpop.permute.xlu0 %6830 }
 0x9fe   : > { %v6281_v36 = vadd.f32 %v14703_v37, %v5616_v56 }
 0xa00   : > { %v10166_v25 = vpop.f32.mrf.mxu0  ;;  %10237 = vmatmul.mubr.msk.f32.gmra.mxu0 %vm7008_vm8, %v6281_v36  ;;  %v6846_v59 = vpop.permute.xlu1 %6845 }
 0xa01   : > { %v7791_v60 = vadd.f32 %v10166_v25, %v6766_v50  ;;  %v6841_v44 = vpop.permute.xlu0 %6840 }
 0xa02   : > { %v7785_v20 = vpop.f32.mrf.mxu0 }
 0xa03   : > { %8106 = vst.msk [vmem:[%s14715_s7 + $0x238] sm:$0xff] %vm8034_vm9, %v7791_v60  ;;  %v7786_v38 = vadd.f32 %v7785_v20, %v6761_v30 }
 0xa04   : > { %v6856_v9 = vpop.permute.xlu1 %6855 }
 0xa05   : > { %8105 = vst.msk [vmem:[%s14715_s7 + $0x230] sm:$0xff] %vm8034_vm9, %v7786_v38  ;;  %v6851_v61 = vpop.permute.xlu0 %6850 }
 0xa08   : > { %v10169_v21 = vpop.f32.mrf.mxu0  ;;  %v6866_v2 = vpop.permute.xlu1 %6865 }
 0xa09   : > { %v7801_v39 = vadd.f32 %v10169_v21, %v6776_v24  ;;  %v6861_v36 = vpop.permute.xlu0 %6860 }
 0xa0a   : > { %v7795_v37 = vpop.f32.mrf.mxu0 }
 0xa0b   : > { %8108 = vst.msk [vmem:[%s14715_s7 + $0x248] sm:$0xff] %vm8034_vm9, %v7801_v39  ;;  %v7796_v41 = vadd.f32 %v7795_v37, %v6771_v7 }
 0xa0c   : > { %v6876_v60 = vpop.permute.xlu1 %6875 }
 0xa0d   : > { %8107 = vst.msk [vmem:[%s14715_s7 + $0x240] sm:$0xff] %vm8034_vm9, %v7796_v41  ;;  %v6871_v38 = vpop.permute.xlu0 %6870 }
 0xa10   : > { %v10172_v46 = vpop.f32.mrf.mxu0  ;;  %v6886_v39 = vpop.permute.xlu1 %6885 }
 0xa11   : > { %v7811_v23 = vadd.f32 %v10172_v46, %v6786_v52  ;;  %v6881_v41 = vpop.permute.xlu0 %6880 }
 0xa12   : > { %v7805_v55 = vpop.f32.mrf.mxu0 }
 0xa13   : > { %8110 = vst.msk [vmem:[%s14715_s7 + $0x258] sm:$0xff] %vm8034_vm9, %v7811_v23  ;;  %v7806_v43 = vadd.f32 %v7805_v55, %v6781_v53 }
 0xa14   : > { %v6896_v23 = vpop.permute.xlu1 %6895 }
 0xa15   : > { %8109 = vst.msk [vmem:[%s14715_s7 + $0x250] sm:$0xff] %vm8034_vm9, %v7806_v43  ;;  %v6891_v43 = vpop.permute.xlu0 %6890 }
 0xa18   : > { %v10175_v35 = vpop.f32.mrf.mxu0 }
 0xa19   : > { %v7821_v32 = vadd.f32 %v10175_v35, %v6796_v28 }
 0xa1a   : > { %v7815_v13 = vpop.f32.mrf.mxu0 }
 0xa1b   : > { %8112 = vst.msk [vmem:[%s14715_s7 + $0x268] sm:$0xff] %vm8034_vm9, %v7821_v32  ;;  %v7816_v26 = vadd.f32 %v7815_v13, %v6791_v10  ;;  %v6906_v32 = vpop.permute.xlu1 %6905 }
 0xa1d   : > { %8111 = vst.msk [vmem:[%s14715_s7 + $0x260] sm:$0xff] %vm8034_vm9, %v7816_v26  ;;  %v6901_v26 = vpop.permute.xlu0 %6900 }
 0xa20   : > { %v10178_v18 = vpop.f32.mrf.mxu0 }
 0xa21   : > { %v7831_v8 = vadd.f32 %v10178_v18, %v6806_v42 }
 0xa22   : > { %v7825_v45 = vpop.f32.mrf.mxu0 }
 0xa23   : > { %8114 = vst.msk [vmem:[%s14715_s7 + $0x278] sm:$0xff] %vm8034_vm9, %v7831_v8  ;;  %v7826_v49 = vadd.f32 %v7825_v45, %v6801_v31  ;;  %v6916_v8 = vpop.permute.xlu1 %6915 }
 0xa25   : > { %8113 = vst.msk [vmem:[%s14715_s7 + $0x270] sm:$0xff] %vm8034_vm9, %v7826_v49  ;;  %v6911_v49 = vpop.permute.xlu0 %6910 }
 0xa28   : > { %v10181_v14 = vpop.f32.mrf.mxu0 }
 0xa29   : > { %v7841_v63 = vadd.f32 %v10181_v14, %v6816_v29 }
 0xa2a   : > { %v7835_v15 = vpop.f32.mrf.mxu0 }
 0xa2b   : > { %8116 = vst.msk [vmem:[%s14715_s7 + $0x288] sm:$0xff] %vm8034_vm9, %v7841_v63  ;;  %v7836_v0 = vadd.f32 %v7835_v15, %v6811_v34  ;;  %v6926_v63 = vpop.permute.xlu1 %6925 }
 0xa2d   : > { %8115 = vst.msk [vmem:[%s14715_s7 + $0x280] sm:$0xff] %vm8034_vm9, %v7836_v0  ;;  %v6921_v0 = vpop.permute.xlu0 %6920 }
 0xa30   : > { %v10184_v19 = vpop.f32.mrf.mxu0 }
 0xa31   : > { %v7851_v51 = vadd.f32 %v10184_v19, %v6826_v48 }
 0xa32   : > { %v7845_v11 = vpop.f32.mrf.mxu0 }
 0xa33   : > { %8118 = vst.msk [vmem:[%s14715_s7 + $0x298] sm:$0xff] %vm8034_vm9, %v7851_v51  ;;  %v7846_v54 = vadd.f32 %v7845_v11, %v6821_v5  ;;  %v6936_v51 = vpop.permute.xlu1 %6935 }
 0xa35   : > { %8117 = vst.msk [vmem:[%s14715_s7 + $0x290] sm:$0xff] %vm8034_vm9, %v7846_v54  ;;  %v6931_v54 = vpop.permute.xlu0 %6930 }
 0xa38   : > { %v10187_v57 = vpop.f32.mrf.mxu0 }
 0xa39   : > { %v7861_v12 = vadd.f32 %v10187_v57, %v6836_v6 }
 0xa3a   : > { %v7855_v17 = vpop.f32.mrf.mxu0 }
 0xa3b   : > { %8120 = vst.msk [vmem:[%s14715_s7 + $0x2a8] sm:$0xff] %vm8034_vm9, %v7861_v12  ;;  %v7856_v16 = vadd.f32 %v7855_v17, %v6831_v40  ;;  %v6946_v12 = vpop.permute.xlu1 %6945 }
 0xa3d   : > { %8119 = vst.msk [vmem:[%s14715_s7 + $0x2a0] sm:$0xff] %vm8034_vm9, %v7856_v16  ;;  %v6941_v16 = vpop.permute.xlu0 %6940 }
 0xa40   : > { %v10190_v1 = vpop.f32.mrf.mxu0 }
 0xa41   : > { %v7871_v33 = vadd.f32 %v10190_v1, %v6846_v59 }
 0xa42   : > { %v7865_v58 = vpop.f32.mrf.mxu0 }
 0xa43   : > { %8122 = vst.msk [vmem:[%s14715_s7 + $0x2b8] sm:$0xff] %vm8034_vm9, %v7871_v33  ;;  %v7866_v4 = vadd.f32 %v7865_v58, %v6841_v44  ;;  %v6956_v33 = vpop.permute.xlu1 %6955 }
 0xa45   : > { %8121 = vst.msk [vmem:[%s14715_s7 + $0x2b0] sm:$0xff] %vm8034_vm9, %v7866_v4  ;;  %v6951_v4 = vpop.permute.xlu0 %6950 }
 0xa48   : > { %v10193_v22 = vpop.f32.mrf.mxu0 }
 0xa49   : > { %v7881_v62 = vadd.f32 %v10193_v22, %v6856_v9 }
 0xa4a   : > { %v7875_v27 = vpop.f32.mrf.mxu0 }
 0xa4b   : > { %8124 = vst.msk [vmem:[%s14715_s7 + $0x2c8] sm:$0xff] %vm8034_vm9, %v7881_v62  ;;  %v7876_v47 = vadd.f32 %v7875_v27, %v6851_v61  ;;  %v6966_v62 = vpop.permute.xlu1 %6965 }
 0xa4d   : > { %8123 = vst.msk [vmem:[%s14715_s7 + $0x2c0] sm:$0xff] %vm8034_vm9, %v7876_v47  ;;  %v6961_v47 = vpop.permute.xlu0 %6960 }
 0xa50   : > { %v10196_v56 = vpop.f32.mrf.mxu0 }
 0xa51   : > { %v7891_v3 = vadd.f32 %v10196_v56, %v6866_v2 }
 0xa52   : > { %v7885_v50 = vpop.f32.mrf.mxu0 }
 0xa53   : > { %8126 = vst.msk [vmem:[%s14715_s7 + $0x2d8] sm:$0xff] %vm8034_vm9, %v7891_v3  ;;  %v7886_v25 = vadd.f32 %v7885_v50, %v6861_v36  ;;  %v6976_v3 = vpop.permute.xlu1 %6975 }
 0xa55   : > { %8125 = vst.msk [vmem:[%s14715_s7 + $0x2d0] sm:$0xff] %vm8034_vm9, %v7886_v25  ;;  %v6971_v25 = vpop.permute.xlu0 %6970 }
 0xa58   : > { %v10199_v30 = vpop.f32.mrf.mxu0 }
 0xa59   : > { %v7901_v20 = vadd.f32 %v10199_v30, %v6876_v60 }
 0xa5a   : > { %v7895_v24 = vpop.f32.mrf.mxu0 }
 0xa5b   : > { %8128 = vst.msk [vmem:[%s14715_s7 + $0x2e8] sm:$0xff] %vm8034_vm9, %v7901_v20  ;;  %v7896_v21 = vadd.f32 %v7895_v24, %v6871_v38  ;;  %v6986_v20 = vpop.permute.xlu1 %6985 }
 0xa5d   : > { %8127 = vst.msk [vmem:[%s14715_s7 + $0x2e0] sm:$0xff] %vm8034_vm9, %v7896_v21  ;;  %v6981_v21 = vpop.permute.xlu0 %6980 }
 0xa60   : > { %v10202_v7 = vpop.f32.mrf.mxu0 }
 0xa61   : > { %v7911_v37 = vadd.f32 %v10202_v7, %v6886_v39 }
 0xa62   : > { %v7905_v52 = vpop.f32.mrf.mxu0 }
 0xa63   : > { %8130 = vst.msk [vmem:[%s14715_s7 + $0x2f8] sm:$0xff] %vm8034_vm9, %v7911_v37  ;;  %v7906_v46 = vadd.f32 %v7905_v52, %v6881_v41  ;;  %v6996_v37 = vpop.permute.xlu1 %6995 }
 0xa65   : > { %8129 = vst.msk [vmem:[%s14715_s7 + $0x2f0] sm:$0xff] %vm8034_vm9, %v7906_v46  ;;  %v6991_v46 = vpop.permute.xlu0 %6990 }
 0xa68   : > { %v10205_v53 = vpop.f32.mrf.mxu0 }
 0xa69   : > { %v7921_v55 = vadd.f32 %v10205_v53, %v6896_v23 }
 0xa6a   : > { %v7915_v28 = vpop.f32.mrf.mxu0 }
 0xa6b   : > { %8132 = vst.msk [vmem:[%s14715_s7 + $0x308] sm:$0xff] %vm8034_vm9, %v7921_v55  ;;  %v7916_v35 = vadd.f32 %v7915_v28, %v6891_v43  ;;  %v7006_v55 = vpop.permute.xlu1 %7005 }
 0xa6d   : > { %8131 = vst.msk [vmem:[%s14715_s7 + $0x300] sm:$0xff] %vm8034_vm9, %v7916_v35  ;;  %v7001_v35 = vpop.permute.xlu0 %7000 }
 0xa70   : > { %v10208_v10 = vpop.f32.mrf.mxu0 }
 0xa71   : > { %v7931_v13 = vadd.f32 %v10208_v10, %v6906_v32 }
 0xa72   : > { %v7925_v42 = vpop.f32.mrf.mxu0 }
 0xa73   : > { %8134 = vst.msk [vmem:[%s14715_s7 + $0x318] sm:$0xff] %vm8034_vm9, %v7931_v13  ;;  %v7926_v18 = vadd.f32 %v7925_v42, %v6901_v26 }
 0xa75   : > { %8133 = vst.msk [vmem:[%s14715_s7 + $0x310] sm:$0xff] %vm8034_vm9, %v7926_v18 }
 0xa78   : > { %v10211_v31 = vpop.f32.mrf.mxu0 }
 0xa79   : > { %v7941_v45 = vadd.f32 %v10211_v31, %v6916_v8 }
 0xa7a   : > { %v7935_v29 = vpop.f32.mrf.mxu0 }
 0xa7b   : > { %8136 = vst.msk [vmem:[%s14715_s7 + $0x328] sm:$0xff] %vm8034_vm9, %v7941_v45  ;;  %v7936_v14 = vadd.f32 %v7935_v29, %v6911_v49 }
 0xa7d   : > { %8135 = vst.msk [vmem:[%s14715_s7 + $0x320] sm:$0xff] %vm8034_vm9, %v7936_v14 }
 0xa80   : > { %v10214_v34 = vpop.f32.mrf.mxu0 }
 0xa81   : > { %v7951_v15 = vadd.f32 %v10214_v34, %v6926_v63 }
 0xa82   : > { %v7945_v48 = vpop.f32.mrf.mxu0 }
 0xa83   : > { %8138 = vst.msk [vmem:[%s14715_s7 + $0x338] sm:$0xff] %vm8034_vm9, %v7951_v15  ;;  %v7946_v19 = vadd.f32 %v7945_v48, %v6921_v0 }
 0xa85   : > { %8137 = vst.msk [vmem:[%s14715_s7 + $0x330] sm:$0xff] %vm8034_vm9, %v7946_v19 }
 0xa88   : > { %v10217_v5 = vpop.f32.mrf.mxu0 }
 0xa89   : > { %v7961_v11 = vadd.f32 %v10217_v5, %v6936_v51 }
 0xa8a   : > { %v7955_v6 = vpop.f32.mrf.mxu0 }
 0xa8b   : > { %8140 = vst.msk [vmem:[%s14715_s7 + $0x348] sm:$0xff] %vm8034_vm9, %v7961_v11  ;;  %v7956_v57 = vadd.f32 %v7955_v6, %v6931_v54 }
 0xa8d   : > { %8139 = vst.msk [vmem:[%s14715_s7 + $0x340] sm:$0xff] %vm8034_vm9, %v7956_v57 }
 0xa90   : > { %v10220_v40 = vpop.f32.mrf.mxu0 }
 0xa91   : > { %v7971_v17 = vadd.f32 %v10220_v40, %v6946_v12 }
 0xa92   : > { %v7965_v59 = vpop.f32.mrf.mxu0 }
 0xa93   : > { %8142 = vst.msk [vmem:[%s14715_s7 + $0x358] sm:$0xff] %vm8034_vm9, %v7971_v17  ;;  %v7966_v1 = vadd.f32 %v7965_v59, %v6941_v16 }
 0xa95   : > { %8141 = vst.msk [vmem:[%s14715_s7 + $0x350] sm:$0xff] %vm8034_vm9, %v7966_v1 }
 0xa98   : > { %v10223_v44 = vpop.f32.mrf.mxu0 }
 0xa99   : > { %v7981_v58 = vadd.f32 %v10223_v44, %v6956_v33 }
 0xa9a   : > { %v7975_v9 = vpop.f32.mrf.mxu0 }
 0xa9b   : > { %8144 = vst.msk [vmem:[%s14715_s7 + $0x368] sm:$0xff] %vm8034_vm9, %v7981_v58  ;;  %v7976_v22 = vadd.f32 %v7975_v9, %v6951_v4 }
 0xa9d   : > { %8143 = vst.msk [vmem:[%s14715_s7 + $0x360] sm:$0xff] %vm8034_vm9, %v7976_v22 }
 0xaa0   : > { %v10226_v61 = vpop.f32.mrf.mxu0 }
 0xaa1   : > { %v7991_v27 = vadd.f32 %v10226_v61, %v6966_v62 }
 0xaa2   : > { %v7985_v2 = vpop.f32.mrf.mxu0 }
 0xaa3   : > { %8146 = vst.msk [vmem:[%s14715_s7 + $0x378] sm:$0xff] %vm8034_vm9, %v7991_v27  ;;  %v7986_v56 = vadd.f32 %v7985_v2, %v6961_v47 }
 0xaa5   : > { %8145 = vst.msk [vmem:[%s14715_s7 + $0x370] sm:$0xff] %vm8034_vm9, %v7986_v56 }
 0xaa8   : > { %v10229_v36 = vpop.f32.mrf.mxu0 }
 0xaa9   : > { %v8001_v50 = vadd.f32 %v10229_v36, %v6976_v3 }
 0xaaa   : > { %v7995_v60 = vpop.f32.mrf.mxu0 }
 0xaab   : > { %8148 = vst.msk [vmem:[%s14715_s7 + $0x388] sm:$0xff] %vm8034_vm9, %v8001_v50  ;;  %v7996_v30 = vadd.f32 %v7995_v60, %v6971_v25 }
 0xaad   : > { %8147 = vst.msk [vmem:[%s14715_s7 + $0x380] sm:$0xff] %vm8034_vm9, %v7996_v30 }
 0xab0   : > { %v10232_v38 = vpop.f32.mrf.mxu0 }
 0xab1   : > { %v8011_v24 = vadd.f32 %v10232_v38, %v6986_v20 }
 0xab2   : > { %v8005_v39 = vpop.f32.mrf.mxu0 }
 0xab3   : > { %8150 = vst.msk [vmem:[%s14715_s7 + $0x398] sm:$0xff] %vm8034_vm9, %v8011_v24  ;;  %v8006_v7 = vadd.f32 %v8005_v39, %v6981_v21 }
 0xab5   : > { %8149 = vst.msk [vmem:[%s14715_s7 + $0x390] sm:$0xff] %vm8034_vm9, %v8006_v7 }
 0xab8   : > { %v10235_v41 = vpop.f32.mrf.mxu0 }
 0xab9   : > { %v8021_v52 = vadd.f32 %v10235_v41, %v6996_v37 }
 0xaba   : > { %v8015_v23 = vpop.f32.mrf.mxu0 }
 0xabb   : > { %8152 = vst.msk [vmem:[%s14715_s7 + $0x3a8] sm:$0xff] %vm8034_vm9, %v8021_v52  ;;  %v8016_v53 = vadd.f32 %v8015_v23, %v6991_v46 }
 0xabd   : > { %8151 = vst.msk [vmem:[%s14715_s7 + $0x3a0] sm:$0xff] %vm8034_vm9, %v8016_v53 }
 0xac0   : > { %v10238_v43 = vpop.f32.mrf.mxu0 }
 0xac1   : > { %v8031_v28 = vadd.f32 %v10238_v43, %v7006_v55 }
 0xac2   : > { %v8025_v32 = vpop.f32.mrf.mxu0 }
 0xac3   : > { %8154 = vst.msk [vmem:[%s14715_s7 + $0x3b8] sm:$0xff] %vm8034_vm9, %v8031_v28  ;;  %v8026_v10 = vadd.f32 %v8025_v32, %v7001_v35 }
 0xac5   : > { %8153 = vst.msk [vmem:[%s14715_s7 + $0x3b0] sm:$0xff] %vm8034_vm9, %v8026_v10 }
 0xac6   : > { %10331 = shalt.err (!%p10328_p3)
}
 0xac7   : > { %s10332_s2 = scalar_lea.hbm %s15145_s4, 15360  ;;  %s10336_s7 = scalar_lea.hbm %s15219_s24, 30720 }
 0xac8   : > { %p10333_p4 = scmp.ne.s32.totalorder %s15145_s4, %s10332_s2  ;;  %p10337_p9 = scmp.lt.s32.totalorder %s15145_s4, %s15219_s24 }
 0xac9   : > { %p10338_p10 = scmp.lt.s32.totalorder %s10336_s7, %s10332_s2 }
 0xaca   : > { %p10334_p7 = pnand %p10333_p4, %p10548_p5 }
 0xacb   : > { %p10339_p11 = por %p10338_p10, %p10337_p9 }
 0xacc   : > { %p10335_p8 = pneg %p10334_p7 }
 0xace   : > { %p10340_p12 = pnand %p10339_p11, %p10335_p8 }
 0xad0   : > { %10343 = shalt.err (!%p10340_p12)
}
 0xad1   : > { %s10383_s8 = smov 128   ;;  %s10384_s5 = smov 8  }
 0xad2   : > { %10273 = dma.vmem_to_hbm [thread:$0]  (%p10548_p5), %s15147_s9, 15360, %s15145_s4, %s15155_s6, %s10383_s8, %s10383_s8, %s10384_s5  }
 0xad3 PF: > { %s15585_s27 = sld [smem:[#allocation7_spill]] }
 0xad4   : > { %s15586_s1 = sld [smem:[#allocation5_spill]] }
 0xad9   : > { %p10279_p13 = scmp.ge.s32.totalorder %s15585_s27, 2 }
 0xada   : > { %s8184_s29 = sand.u32 1, %s15586_s1  }
 0xadb   : > { %p10276_p0 = pnand %p10279_p13, %p10552_p6  ;;  %s8185_s2 = scalar_lea.sflag [#allocation3], %s8184_s29 }
 0xadd   : > { %p10277_p1 = pneg %p10276_p0 }
 0xadf   : > { %10361 = dma.done.wait (%p10277_p1), %s8185_s2, 15360  }
 0xae0   : > { %10363 = vsyncadd (%p10277_p1), %s8185_s2, 4294951936  ;;  %s15588_s28 = sld [smem:[#allocation8_spill]]  ;;  %s15591_s5 = smov %s10370_s26 }
 0xae1   : > { %s15589_s0 = sld [smem:[#allocation6_spill]] }
 0xae2   : > { %s15590_s27 = sld [smem:[#allocation9_spill]] }
 0xae6   : > { %p34_p2 = scmp.ge.s32.totalorder %s15588_s28, 4  }
 0xae7   : > { %s15592_s26 = smov %s15589_s0 }
 0xae8   :  { %36 = sbr.rel (!%p34_p2) target bundleno = 15 (0xf), region = 163 }
 0xaed   :  { %8190 = vsyncpa [#allocation3], 1 }
 0xaee   :  { %8192 = vsyncpa [#allocation3 + $0x1], 1 }

</bundles_post_ra>
